<compile_context>
chip_gen: v7x
topology: tpu7x:2x2x1
jax: 0.10.0
libtpu: 0.0.40
codegen_flags: <defaults>
</compile_context>

<pallas_src>
import functools

import jax
import jax.numpy as jnp
from jax.experimental import pallas as pl
from jax.experimental.pallas import tpu as pltpu

RATES = (1, 6, 12, 18)
BN_EPS = 1e-5


# ----------------------------------------------------------------------------
# pass 1: dilated 3x3 conv branches (no bias) + BN partial stats + pooled conv
# ----------------------------------------------------------------------------
def _branch_kernel(x_ref, wconv_ref, wpool_ref, bpool_ref,
                   conv_ref, stats_ref, pconv_ref, xpad_s,
                   *, h, w, cin, cout, pmax, rates):
    hp, wp = h + 2 * pmax, w + 2 * pmax

    # In-kernel zero padding (the wrapper no longer ships a padded copy via HBM).
    # Re-zeroed every grid step: cheap and safe under "parallel" core splitting.
    xpad_s[...] = jnp.zeros((hp, wp, cin), jnp.float32)
    xpad_s[pmax:pmax + h, pmax:pmax + w, :] = x_ref[0]

    # ---- four dilated 3x3 conv branches (bias cancelled by BatchNorm) -------
    convs = []
    for b, d in enumerate(rates):
        conv = None
        for kx in range(3):
            ox = pmax + (kx - 1) * d
            # One (possibly sublane-misaligned) W slice per (branch, kx); the
            # three ky taps below are aligned row-range slices of the flat view.
            xk = xpad_s[:, ox:ox + w, :].reshape(hp * w, cin)
            for ky in range(3):
                oy = pmax + (ky - 1) * d
                tap = xk[oy * w:(oy + h) * w, :]               # (h*w, cin)
                wt = wconv_ref[b, ky * 3 + kx]                 # (cin, cout)
                part = jnp.dot(tap, wt, preferred_element_type=jnp.float32)
                conv = part if conv is None else conv + part
        convs.append(conv)

    cat = jnp.concatenate(convs, axis=1)                       # (h*w, 4*cout)
    conv_ref[0] = cat
    # Per-batch partial BatchNorm statistics (reduced over batch in glue).
    s = jnp.sum(cat, axis=0, keepdims=True)
    q = jnp.sum(cat * cat, axis=0, keepdims=True)
    stats_ref[0] = jnp.concatenate([s, q], axis=0)             # (2, 4*cout)

    # ---- global branch: adaptive 2x2 average pool + 1x1 conv ----------------
    # TODO(synk): matches PyTorch adaptive_avg_pool2d only for even H and W.
    hh, wh = h // 2, w // 2
    pooled = []
    for pi in range(2):
        for pj in range(2):
            blk = x_ref[0, pi * hh:(pi + 1) * hh, pj * wh:(pj + 1) * wh, :]
            ssum = jnp.sum(jnp.sum(blk, axis=0), axis=0, keepdims=True)
            pooled.append(ssum * (1.0 / float(hh * wh)))       # (1, cin)
    p = jnp.concatenate(pooled, axis=0)                        # (4, cin)
    pconv_ref[0] = (jnp.dot(p, wpool_ref[...],
                            preferred_element_type=jnp.float32)
                    + bpool_ref[...])


# ----------------------------------------------------------------------------
# pass 2: (BN-scaled branch sum + bilinear global branch) -> final 1x1 conv
# ----------------------------------------------------------------------------
def _combine_kernel(conv_ref, bw_ref, w5s_ref, pconv5_ref, const_ref, y_ref):
    # Branch sum + BatchNorm scale + final 1x1 conv folded into one matmul.
    y = jnp.dot(conv_ref[0], w5s_ref[...], preferred_element_type=jnp.float32)
    # Bilinearly upsampled global branch (already multiplied by the 1x1 conv).
    y = y + jnp.dot(bw_ref[...], pconv5_ref[0],
                    preferred_element_type=jnp.float32)
    y_ref[0] = y + const_ref[...]                              # shifts + biases


# ----------------------------------------------------------------------------
# helpers
# ----------------------------------------------------------------------------
def _vmem_block_bytes(shape, itemsize=4):
    """Padded VMEM footprint of one block (lane->128, sublane->8)."""
    s = list(shape)
    if len(s) >= 1:
        s[-1] = -(-s[-1] // 128) * 128
    if len(s) >= 2:
        s[-2] = -(-s[-2] // 8) * 8
    n = 1
    for d in s:
        n *= d
    return n * itemsize


def _mosaic_params(sems, block_shapes, extra_bytes=0):
    """Explicit VMEM budget: double-buffered blocks + scratch + headroom."""
    need = sum(2 * _vmem_block_bytes(s) for s in block_shapes) + extra_bytes
    limit = int(min(max(3 * need, 16 << 20), 48 << 20))
    return pltpu.CompilerParams(dimension_semantics=sems,
                                vmem_limit_bytes=limit)


def _row_tile(hw):
    """Largest row-block of the flattened H*W dim: multiple of 8, divides hw."""
    if hw % 8 != 0:
        return hw
    target = 512 if hw >= 2048 else max(8, (hw // 2) // 8 * 8)
    for c in range(target, 7, -8):
        if hw % c == 0:
            return c
    return hw


def init_params(key, cin, cout):
    ks = jax.random.split(key, 6)
    wconv = 0.1 * jax.random.normal(ks[0], (4, 3, 3, cin, cout), jnp.float32)
    return dict(
        wconv=wconv.reshape(4, 9, cin, cout),            # 4 branches, HWIO flat
        bconv=0.1 * jax.random.normal(ks[1], (4, cout), jnp.float32),
        gamma=jnp.ones((4, cout), jnp.float32),           # BatchNorm affine init
        beta=jnp.zeros((4, cout), jnp.float32),
        wpool=0.1 * jax.random.normal(ks[2], (cin, cout), jnp.float32),
        bpool=0.1 * jax.random.normal(ks[3], (1, cout), jnp.float32),
        w5=0.1 * jax.random.normal(ks[4], (cout, cout), jnp.float32),
        b5=0.1 * jax.random.normal(ks[5], (1, cout), jnp.float32),
    )


# ----------------------------------------------------------------------------
# forward
# ----------------------------------------------------------------------------
def aspp_forward(x_nchw, params):
    cout = params['w5'].shape[0]
    x = jnp.transpose(x_nchw, (0, 2, 3, 1)).astype(jnp.float32)   # NCHW -> NHWC
    n, h, w, cin = x.shape
    pmax = max(RATES)
    hp, wp = h + 2 * pmax, w + 2 * pmax
    hw = h * w
    c4 = 4 * cout

    # -------------------------- pass 1 --------------------------------------
    kernel1 = functools.partial(_branch_kernel, h=h, w=w, cin=cin, cout=cout,
                                pmax=pmax, rates=RATES)
    p1_blocks = [(1, h, w, cin), (4, 9, cin, cout), (cin, cout), (1, cout),
                 (1, hw, c4), (1, 2, c4), (1, 4, cout)]
    conv_cat, stats, pconv = pl.pallas_call(
        kernel1,
        grid=(n,),
        in_specs=[
            pl.BlockSpec((1, h, w, cin), lambda i: (i, 0, 0, 0)),
            pl.BlockSpec((4, 9, cin, cout), lambda i: (0, 0, 0, 0)),
            pl.BlockSpec((cin, cout), lambda i: (0, 0)),
            pl.BlockSpec((1, cout), lambda i: (0, 0)),
        ],
        out_specs=(
            pl.BlockSpec((1, hw, c4), lambda i: (i, 0, 0)),
            pl.BlockSpec((1, 2, c4), lambda i: (i, 0, 0)),
            pl.BlockSpec((1, 4, cout), lambda i: (i, 0, 0)),
        ),
        out_shape=(
            jax.ShapeDtypeStruct((n, hw, c4), jnp.float32),
            jax.ShapeDtypeStruct((n, 2, c4), jnp.float32),
            jax.ShapeDtypeStruct((n, 4, cout), jnp.float32),
        ),
        scratch_shapes=[pltpu.VMEM((hp, wp, cin), jnp.float32)],
        compiler_params=_mosaic_params(
            ("parallel",), p1_blocks,
            extra_bytes=_vmem_block_bytes((hp, wp, cin))),
    )(x, params['wconv'], params['wpool'], params['bpool'])

    # ------------------- glue (tiny, O(channels) math) ----------------------
    cnt = float(n * hw)
    ssum = jnp.sum(stats[:, 0, :], axis=0)                     # (4C,)
    ssq = jnp.sum(stats[:, 1, :], axis=0)                      # (4C,)
    mean = ssum / cnt
    var = ssq / cnt - mean * mean                              # biased variance
    gamma = params['gamma'].reshape(-1)
    beta = params['beta'].reshape(-1)
    scale = gamma * jax.lax.rsqrt(var + BN_EPS)                # (4C,)
    shift = beta - mean * scale                                # (4C,)
    w5 = params['w5']                                          # (cout, cout)
    w5s = scale[:, None] * jnp.tile(w5, (4, 1))                # (4C, cout)
    const = (shift.reshape(4, cout).sum(axis=0) @ w5
             + params['b5'][0]).reshape(1, cout)               # (1, cout)
    pconv5 = jnp.einsum('nkc,cd->nkd', pconv, w5)              # (n, 4, cout)

    # Bilinear (align_corners=True) weights for upsampling the 2x2 pooled grid,
    # as an (H*W, 4) matrix so the upsample becomes a tiny matmul in pass 2.
    ty = jnp.arange(h, dtype=jnp.float32) / max(h - 1, 1)
    tx = jnp.arange(w, dtype=jnp.float32) / max(w - 1, 1)
    rw = jnp.stack([1.0 - ty, ty], axis=1)                     # (h, 2)
    cw = jnp.stack([1.0 - tx, tx], axis=1)                     # (w, 2)
    bw = (rw[:, None, :, None] * cw[None, :, None, :]).reshape(hw, 4)

    # -------------------------- pass 2 --------------------------------------
    tr = _row_tile(hw)
    p2_blocks = [(1, tr, c4), (tr, 4), (c4, cout), (1, 4, cout), (1, cout),
                 (1, tr, cout)]
    y_flat = pl.pallas_call(
        _combine_kernel,
        grid=(n, hw // tr),
        in_specs=[
            pl.BlockSpec((1, tr, c4), lambda i, r: (i, r, 0)),
            pl.BlockSpec((tr, 4), lambda i, r: (r, 0)),
            pl.BlockSpec((c4, cout), lambda i, r: (0, 0)),
            pl.BlockSpec((1, 4, cout), lambda i, r: (i, 0, 0)),
            pl.BlockSpec((1, cout), lambda i, r: (0, 0)),
        ],
        out_specs=pl.BlockSpec((1, tr, cout), lambda i, r: (i, r, 0)),
        out_shape=jax.ShapeDtypeStruct((n, hw, cout), jnp.float32),
        compiler_params=_mosaic_params(("parallel", "parallel"), p2_blocks),
    )(conv_cat, bw, w5s, pconv5, const)

    y = y_flat.reshape(n, h, w, cout)
    return jnp.transpose(y, (0, 3, 1, 2))                      # NHWC -> NCHW


# ----------------------------------------------------------------------------
# plain-JAX reference of the same forward math (correctness check)
# ----------------------------------------------------------------------------
def _reference(x_nchw, p):
    x = jnp.transpose(x_nchw, (0, 2, 3, 1)).astype(jnp.float32)
    n, h, w, cin = x.shape
    cout = p['w5'].shape[0]
    acc = jnp.zeros((n, h, w, cout), jnp.float32)
    for b, d in enumerate(RATES):
        wt = p['wconv'][b].reshape(3, 3, cin, cout)            # HWIO
        conv = jax.lax.conv_general_dilated(
            x, wt, window_strides=(1, 1), padding=[(d, d), (d, d)],
            rhs_dilation=(d, d),
            dimension_numbers=('NHWC', 'HWIO', 'NHWC')) + p['bconv'][b]
        mean = jnp.mean(conv, axis=(0, 1, 2), keepdims=True)
        var = jnp.mean((conv - mean) ** 2, axis=(0, 1, 2), keepdims=True)
        acc = acc + (conv - mean) / jnp.sqrt(var + BN_EPS) * p['gamma'][b] + p['beta'][b]
    pooled = x.reshape(n, 2, h // 2, 2, w // 2, cin).mean(axis=(2, 4))
    pconv = jnp.einsum('nijc,cd->nijd', pooled, p['wpool']) + p['bpool'][0]
    th = jnp.arange(h, dtype=jnp.float32) / (h - 1)
    tw = jnp.arange(w, dtype=jnp.float32) / (w - 1)
    irow = jnp.stack([1.0 - th, th], axis=1)
    icol = jnp.stack([1.0 - tw, tw], axis=1)
    acc = acc + jnp.einsum('hi,wj,nijd->nhwd', irow, icol, pconv)
    y = jnp.einsum('nhwc,cd->nhwd', acc, p['w5']) + p['b5'][0]
    return jnp.transpose(y, (0, 3, 1, 2))


if __name__ == "__main__":
    key = jax.random.PRNGKey(0)
    kx_, kp = jax.random.split(key)
    N, CIN, COUT, H, W = 2, 4, 8, 16, 16
    x = jax.random.normal(kx_, (N, CIN, H, W), jnp.float32)
    params = init_params(kp, CIN, COUT)

    y = aspp_forward(x, params)
    jax.block_until_ready(y)

    y_ref = _reference(x, params)
    if y.shape != (N, COUT, H, W):
        raise AssertionError(f"bad output shape {y.shape}")
    if not jnp.allclose(y, y_ref, atol=1e-4, rtol=1e-4):
        err = float(jnp.max(jnp.abs(y - y_ref)))
        raise AssertionError(f"Pallas ASPP kernel mismatch (max abs err {err})")
    print("KERNEL_OK")
</pallas_src>

<mosaic_0001>
module attributes {stable_mosaic.version = 11 : i64} {
  func.func @_branch_kernel(%arg0: i32, %arg1: memref<1x16x16x4xf32, #tpu.memory_space<vmem>>, %arg2: memref<4x9x4x8xf32, #tpu.memory_space<vmem>>, %arg3: memref<4x8xf32, #tpu.memory_space<vmem>>, %arg4: memref<1x8xf32, #tpu.memory_space<vmem>>, %arg5: memref<1x256x32xf32, #tpu.memory_space<vmem>>, %arg6: memref<1x2x32xf32, #tpu.memory_space<vmem>>, %arg7: memref<1x4x8xf32, #tpu.memory_space<vmem>>, %arg8: memref<52x52x4xf32, #tpu.memory_space<vmem>>) attributes {dimension_semantics = [#tpu.dimension_semantics<parallel>], iteration_bounds = array<i64: 2>, scalar_prefetch = 0 : i64, scratch_operands = 1 : i64, tpu.core_type = #tpu.core_type<tc>, window_params = [{transform_indices = @transform_0, window_bounds = array<i64: 1, 16, 16, 4>}, {pipeline_mode = #tpu.pipeline_mode<synchronous>, transform_indices = @transform_1, window_bounds = array<i64: 4, 9, 4, 8>}, {pipeline_mode = #tpu.pipeline_mode<synchronous>, transform_indices = @transform_2, window_bounds = array<i64: 4, 8>}, {pipeline_mode = #tpu.pipeline_mode<synchronous>, transform_indices = @transform_3, window_bounds = array<i64: 1, 8>}, {transform_indices = @transform_4, window_bounds = array<i64: 1, 256, 32>}, {transform_indices = @transform_5, window_bounds = array<i64: 1, 2, 32>}, {transform_indices = @transform_6, window_bounds = array<i64: 1, 4, 8>}]} {
    %cst = arith.constant 0.000000e+00 : f32
    %0 = vector.broadcast %cst : f32 to vector<52x52x4xf32>
    %c0 = arith.constant 0 : index
    %c0_0 = arith.constant 0 : index
    %c0_1 = arith.constant 0 : index
    %1 = vector.load %arg8[%c0, %c0_0, %c0_1] : memref<52x52x4xf32, #tpu.memory_space<vmem>>, vector<52x52x4xf32>
    tpu.vector_store %arg8[%c0, %c0_0, %c0_1], %0 {strides = array<i32>} : memref<52x52x4xf32, #tpu.memory_space<vmem>>, vector<52x52x4xf32>,
    %c0_2 = arith.constant 0 : index
    %c0_3 = arith.constant 0 : index
    %c0_4 = arith.constant 0 : index
    %c0_5 = arith.constant 0 : index
    %2 = vector.load %arg1[%c0_2, %c0_3, %c0_4, %c0_5] : memref<1x16x16x4xf32, #tpu.memory_space<vmem>>, vector<1x16x16x4xf32>
    %3 = vector.shape_cast %2 : vector<1x16x16x4xf32> to vector<16x16x4xf32>
    %c18 = arith.constant 18 : index
    %c18_6 = arith.constant 18 : index
    %c0_7 = arith.constant 0 : index
    %4 = vector.load %arg8[%c18, %c18_6, %c0_7] : memref<52x52x4xf32, #tpu.memory_space<vmem>>, vector<16x16x4xf32>
    tpu.vector_store %arg8[%c18, %c18_6, %c0_7], %3 {strides = array<i32>} : memref<52x52x4xf32, #tpu.memory_space<vmem>>, vector<16x16x4xf32>,
    %c0_8 = arith.constant 0 : index
    %c17 = arith.constant 17 : index
    %c0_9 = arith.constant 0 : index
    %5 = vector.load %arg8[%c0_8, %c17, %c0_9] : memref<52x52x4xf32, #tpu.memory_space<vmem>>, vector<52x16x4xf32>
    %6 = vector.shape_cast %5 : vector<52x16x4xf32> to vector<832x4xf32>
    %7 = vector.extract_strided_slice %6 {offsets = [272, 0], sizes = [256, 4], strides = [1, 1]} : vector<832x4xf32> to vector<256x4xf32>
    %c0_10 = arith.constant 0 : index
    %c0_11 = arith.constant 0 : index
    %c0_12 = arith.constant 0 : index
    %c0_13 = arith.constant 0 : index
    %8 = vector.load %arg2[%c0_10, %c0_11, %c0_12, %c0_13] : memref<4x9x4x8xf32, #tpu.memory_space<vmem>>, vector<1x1x4x8xf32>
    %9 = vector.shape_cast %8 : vector<1x1x4x8xf32> to vector<4x8xf32>
    %cst_14 = arith.constant dense<0.000000e+00> : vector<256x8xf32>
    %10 = tpu.matmul %7, %9, %cst_14 {dimension_numbers = #tpu.dot_dimension_numbers<[1], [0], [0], [1], [0, 0, 1, 1], [], []>} : vector<256x4xf32>, vector<4x8xf32>, vector<256x8xf32> -> vector<256x8xf32>
    %11 = vector.extract_strided_slice %6 {offsets = [288, 0], sizes = [256, 4], strides = [1, 1]} : vector<832x4xf32> to vector<256x4xf32>
    %c0_15 = arith.constant 0 : index
    %c3 = arith.constant 3 : index
    %c0_16 = arith.constant 0 : index
    %c0_17 = arith.constant 0 : index
    %12 = vector.load %arg2[%c0_15, %c3, %c0_16, %c0_17] : memref<4x9x4x8xf32, #tpu.memory_space<vmem>>, vector<1x1x4x8xf32>
    %13 = vector.shape_cast %12 : vector<1x1x4x8xf32> to vector<4x8xf32>
    %cst_18 = arith.constant dense<0.000000e+00> : vector<256x8xf32>
    %14 = tpu.matmul %11, %13, %cst_18 {dimension_numbers = #tpu.dot_dimension_numbers<[1], [0], [0], [1], [0, 0, 1, 1], [], []>} : vector<256x4xf32>, vector<4x8xf32>, vector<256x8xf32> -> vector<256x8xf32>
    %15 = arith.addf %10, %14 : vector<256x8xf32>
    %16 = vector.extract_strided_slice %6 {offsets = [304, 0], sizes = [256, 4], strides = [1, 1]} : vector<832x4xf32> to vector<256x4xf32>
    %c0_19 = arith.constant 0 : index
    %c6 = arith.constant 6 : index
    %c0_20 = arith.constant 0 : index
    %c0_21 = arith.constant 0 : index
    %17 = vector.load %arg2[%c0_19, %c6, %c0_20, %c0_21] : memref<4x9x4x8xf32, #tpu.memory_space<vmem>>, vector<1x1x4x8xf32>
    %18 = vector.shape_cast %17 : vector<1x1x4x8xf32> to vector<4x8xf32>
    %cst_22 = arith.constant dense<0.000000e+00> : vector<256x8xf32>
    %19 = tpu.matmul %16, %18, %cst_22 {dimension_numbers = #tpu.dot_dimension_numbers<[1], [0], [0], [1], [0, 0, 1, 1], [], []>} : vector<256x4xf32>, vector<4x8xf32>, vector<256x8xf32> -> vector<256x8xf32>
    %20 = arith.addf %15, %19 : vector<256x8xf32>
    %c0_23 = arith.constant 0 : index
    %c18_24 = arith.constant 18 : index
    %c0_25 = arith.constant 0 : index
    %21 = vector.load %arg8[%c0_23, %c18_24, %c0_25] : memref<52x52x4xf32, #tpu.memory_space<vmem>>, vector<52x16x4xf32>
    %22 = vector.shape_cast %21 : vector<52x16x4xf32> to vector<832x4xf32>
    %23 = vector.extract_strided_slice %22 {offsets = [272, 0], sizes = [256, 4], strides = [1, 1]} : vector<832x4xf32> to vector<256x4xf32>
    %c0_26 = arith.constant 0 : index
    %c1 = arith.constant 1 : index
    %c0_27 = arith.constant 0 : index
    %c0_28 = arith.constant 0 : index
    %24 = vector.load %arg2[%c0_26, %c1, %c0_27, %c0_28] : memref<4x9x4x8xf32, #tpu.memory_space<vmem>>, vector<1x1x4x8xf32>
    %25 = vector.shape_cast %24 : vector<1x1x4x8xf32> to vector<4x8xf32>
    %cst_29 = arith.constant dense<0.000000e+00> : vector<256x8xf32>
    %26 = tpu.matmul %23, %25, %cst_29 {dimension_numbers = #tpu.dot_dimension_numbers<[1], [0], [0], [1], [0, 0, 1, 1], [], []>} : vector<256x4xf32>, vector<4x8xf32>, vector<256x8xf32> -> vector<256x8xf32>
    %27 = arith.addf %20, %26 : vector<256x8xf32>
    %28 = vector.extract_strided_slice %22 {offsets = [288, 0], sizes = [256, 4], strides = [1, 1]} : vector<832x4xf32> to vector<256x4xf32>
    %c0_30 = arith.constant 0 : index
    %c4 = arith.constant 4 : index
    %c0_31 = arith.constant 0 : index
    %c0_32 = arith.constant 0 : index
    %29 = vector.load %arg2[%c0_30, %c4, %c0_31, %c0_32] : memref<4x9x4x8xf32, #tpu.memory_space<vmem>>, vector<1x1x4x8xf32>
    %30 = vector.shape_cast %29 : vector<1x1x4x8xf32> to vector<4x8xf32>
    %cst_33 = arith.constant dense<0.000000e+00> : vector<256x8xf32>
    %31 = tpu.matmul %28, %30, %cst_33 {dimension_numbers = #tpu.dot_dimension_numbers<[1], [0], [0], [1], [0, 0, 1, 1], [], []>} : vector<256x4xf32>, vector<4x8xf32>, vector<256x8xf32> -> vector<256x8xf32>
    %32 = arith.addf %27, %31 : vector<256x8xf32>
    %33 = vector.extract_strided_slice %22 {offsets = [304, 0], sizes = [256, 4], strides = [1, 1]} : vector<832x4xf32> to vector<256x4xf32>
    %c0_34 = arith.constant 0 : index
    %c7 = arith.constant 7 : index
    %c0_35 = arith.constant 0 : index
    %c0_36 = arith.constant 0 : index
    %34 = vector.load %arg2[%c0_34, %c7, %c0_35, %c0_36] : memref<4x9x4x8xf32, #tpu.memory_space<vmem>>, vector<1x1x4x8xf32>
    %35 = vector.shape_cast %34 : vector<1x1x4x8xf32> to vector<4x8xf32>
    %cst_37 = arith.constant dense<0.000000e+00> : vector<256x8xf32>
    %36 = tpu.matmul %33, %35, %cst_37 {dimension_numbers = #tpu.dot_dimension_numbers<[1], [0], [0], [1], [0, 0, 1, 1], [], []>} : vector<256x4xf32>, vector<4x8xf32>, vector<256x8xf32> -> vector<256x8xf32>
    %37 = arith.addf %32, %36 : vector<256x8xf32>
    %c0_38 = arith.constant 0 : index
    %c19 = arith.constant 19 : index
    %c0_39 = arith.constant 0 : index
    %38 = vector.load %arg8[%c0_38, %c19, %c0_39] : memref<52x52x4xf32, #tpu.memory_space<vmem>>, vector<52x16x4xf32>
    %39 = vector.shape_cast %38 : vector<52x16x4xf32> to vector<832x4xf32>
    %40 = vector.extract_strided_slice %39 {offsets = [272, 0], sizes = [256, 4], strides = [1, 1]} : vector<832x4xf32> to vector<256x4xf32>
    %c0_40 = arith.constant 0 : index
    %c2 = arith.constant 2 : index
    %c0_41 = arith.constant 0 : index
    %c0_42 = arith.constant 0 : index
    %41 = vector.load %arg2[%c0_40, %c2, %c0_41, %c0_42] : memref<4x9x4x8xf32, #tpu.memory_space<vmem>>, vector<1x1x4x8xf32>
    %42 = vector.shape_cast %41 : vector<1x1x4x8xf32> to vector<4x8xf32>
    %cst_43 = arith.constant dense<0.000000e+00> : vector<256x8xf32>
    %43 = tpu.matmul %40, %42, %cst_43 {dimension_numbers = #tpu.dot_dimension_numbers<[1], [0], [0], [1], [0, 0, 1, 1], [], []>} : vector<256x4xf32>, vector<4x8xf32>, vector<256x8xf32> -> vector<256x8xf32>
    %44 = arith.addf %37, %43 : vector<256x8xf32>
    %45 = vector.extract_strided_slice %39 {offsets = [288, 0], sizes = [256, 4], strides = [1, 1]} : vector<832x4xf32> to vector<256x4xf32>
    %c0_44 = arith.constant 0 : index
    %c5 = arith.constant 5 : index
    %c0_45 = arith.constant 0 : index
    %c0_46 = arith.constant 0 : index
    %46 = vector.load %arg2[%c0_44, %c5, %c0_45, %c0_46] : memref<4x9x4x8xf32, #tpu.memory_space<vmem>>, vector<1x1x4x8xf32>
    %47 = vector.shape_cast %46 : vector<1x1x4x8xf32> to vector<4x8xf32>
    %cst_47 = arith.constant dense<0.000000e+00> : vector<256x8xf32>
    %48 = tpu.matmul %45, %47, %cst_47 {dimension_numbers = #tpu.dot_dimension_numbers<[1], [0], [0], [1], [0, 0, 1, 1], [], []>} : vector<256x4xf32>, vector<4x8xf32>, vector<256x8xf32> -> vector<256x8xf32>
    %49 = arith.addf %44, %48 : vector<256x8xf32>
    %50 = vector.extract_strided_slice %39 {offsets = [304, 0], sizes = [256, 4], strides = [1, 1]} : vector<832x4xf32> to vector<256x4xf32>
    %c0_48 = arith.constant 0 : index
    %c8 = arith.constant 8 : index
    %c0_49 = arith.constant 0 : index
    %c0_50 = arith.constant 0 : index
    %51 = vector.load %arg2[%c0_48, %c8, %c0_49, %c0_50] : memref<4x9x4x8xf32, #tpu.memory_space<vmem>>, vector<1x1x4x8xf32>
    %52 = vector.shape_cast %51 : vector<1x1x4x8xf32> to vector<4x8xf32>
    %cst_51 = arith.constant dense<0.000000e+00> : vector<256x8xf32>
    %53 = tpu.matmul %50, %52, %cst_51 {dimension_numbers = #tpu.dot_dimension_numbers<[1], [0], [0], [1], [0, 0, 1, 1], [], []>} : vector<256x4xf32>, vector<4x8xf32>, vector<256x8xf32> -> vector<256x8xf32>
    %54 = arith.addf %49, %53 : vector<256x8xf32>
    %c0_52 = arith.constant 0 : index
    %c12 = arith.constant 12 : index
    %c0_53 = arith.constant 0 : index
    %55 = vector.load %arg8[%c0_52, %c12, %c0_53] : memref<52x52x4xf32, #tpu.memory_space<vmem>>, vector<52x16x4xf32>
    %56 = vector.shape_cast %55 : vector<52x16x4xf32> to vector<832x4xf32>
    %57 = vector.extract_strided_slice %56 {offsets = [192, 0], sizes = [256, 4], strides = [1, 1]} : vector<832x4xf32> to vector<256x4xf32>
    %c1_54 = arith.constant 1 : index
    %c0_55 = arith.constant 0 : index
    %c0_56 = arith.constant 0 : index
    %c0_57 = arith.constant 0 : index
    %58 = vector.load %arg2[%c1_54, %c0_55, %c0_56, %c0_57] : memref<4x9x4x8xf32, #tpu.memory_space<vmem>>, vector<1x1x4x8xf32>
    %59 = vector.shape_cast %58 : vector<1x1x4x8xf32> to vector<4x8xf32>
    %cst_58 = arith.constant dense<0.000000e+00> : vector<256x8xf32>
    %60 = tpu.matmul %57, %59, %cst_58 {dimension_numbers = #tpu.dot_dimension_numbers<[1], [0], [0], [1], [0, 0, 1, 1], [], []>} : vector<256x4xf32>, vector<4x8xf32>, vector<256x8xf32> -> vector<256x8xf32>
    %61 = vector.extract_strided_slice %56 {offsets = [288, 0], sizes = [256, 4], strides = [1, 1]} : vector<832x4xf32> to vector<256x4xf32>
    %c1_59 = arith.constant 1 : index
    %c3_60 = arith.constant 3 : index
    %c0_61 = arith.constant 0 : index
    %c0_62 = arith.constant 0 : index
    %62 = vector.load %arg2[%c1_59, %c3_60, %c0_61, %c0_62] : memref<4x9x4x8xf32, #tpu.memory_space<vmem>>, vector<1x1x4x8xf32>
    %63 = vector.shape_cast %62 : vector<1x1x4x8xf32> to vector<4x8xf32>
    %cst_63 = arith.constant dense<0.000000e+00> : vector<256x8xf32>
    %64 = tpu.matmul %61, %63, %cst_63 {dimension_numbers = #tpu.dot_dimension_numbers<[1], [0], [0], [1], [0, 0, 1, 1], [], []>} : vector<256x4xf32>, vector<4x8xf32>, vector<256x8xf32> -> vector<256x8xf32>
    %65 = arith.addf %60, %64 : vector<256x8xf32>
    %66 = vector.extract_strided_slice %56 {offsets = [384, 0], sizes = [256, 4], strides = [1, 1]} : vector<832x4xf32> to vector<256x4xf32>
    %c1_64 = arith.constant 1 : index
    %c6_65 = arith.constant 6 : index
    %c0_66 = arith.constant 0 : index
    %c0_67 = arith.constant 0 : index
    %67 = vector.load %arg2[%c1_64, %c6_65, %c0_66, %c0_67] : memref<4x9x4x8xf32, #tpu.memory_space<vmem>>, vector<1x1x4x8xf32>
    %68 = vector.shape_cast %67 : vector<1x1x4x8xf32> to vector<4x8xf32>
    %cst_68 = arith.constant dense<0.000000e+00> : vector<256x8xf32>
    %69 = tpu.matmul %66, %68, %cst_68 {dimension_numbers = #tpu.dot_dimension_numbers<[1], [0], [0], [1], [0, 0, 1, 1], [], []>} : vector<256x4xf32>, vector<4x8xf32>, vector<256x8xf32> -> vector<256x8xf32>
    %70 = arith.addf %65, %69 : vector<256x8xf32>
    %c0_69 = arith.constant 0 : index
    %c18_70 = arith.constant 18 : index
    %c0_71 = arith.constant 0 : index
    %71 = vector.load %arg8[%c0_69, %c18_70, %c0_71] : memref<52x52x4xf32, #tpu.memory_space<vmem>>, vector<52x16x4xf32>
    %72 = vector.shape_cast %71 : vector<52x16x4xf32> to vector<832x4xf32>
    %73 = vector.extract_strided_slice %72 {offsets = [192, 0], sizes = [256, 4], strides = [1, 1]} : vector<832x4xf32> to vector<256x4xf32>
    %c1_72 = arith.constant 1 : index
    %c1_73 = arith.constant 1 : index
    %c0_74 = arith.constant 0 : index
    %c0_75 = arith.constant 0 : index
    %74 = vector.load %arg2[%c1_72, %c1_73, %c0_74, %c0_75] : memref<4x9x4x8xf32, #tpu.memory_space<vmem>>, vector<1x1x4x8xf32>
    %75 = vector.shape_cast %74 : vector<1x1x4x8xf32> to vector<4x8xf32>
    %cst_76 = arith.constant dense<0.000000e+00> : vector<256x8xf32>
    %76 = tpu.matmul %73, %75, %cst_76 {dimension_numbers = #tpu.dot_dimension_numbers<[1], [0], [0], [1], [0, 0, 1, 1], [], []>} : vector<256x4xf32>, vector<4x8xf32>, vector<256x8xf32> -> vector<256x8xf32>
    %77 = arith.addf %70, %76 : vector<256x8xf32>
    %78 = vector.extract_strided_slice %72 {offsets = [288, 0], sizes = [256, 4], strides = [1, 1]} : vector<832x4xf32> to vector<256x4xf32>
    %c1_77 = arith.constant 1 : index
    %c4_78 = arith.constant 4 : index
    %c0_79 = arith.constant 0 : index
    %c0_80 = arith.constant 0 : index
    %79 = vector.load %arg2[%c1_77, %c4_78, %c0_79, %c0_80] : memref<4x9x4x8xf32, #tpu.memory_space<vmem>>, vector<1x1x4x8xf32>
    %80 = vector.shape_cast %79 : vector<1x1x4x8xf32> to vector<4x8xf32>
    %cst_81 = arith.constant dense<0.000000e+00> : vector<256x8xf32>
    %81 = tpu.matmul %78, %80, %cst_81 {dimension_numbers = #tpu.dot_dimension_numbers<[1], [0], [0], [1], [0, 0, 1, 1], [], []>} : vector<256x4xf32>, vector<4x8xf32>, vector<256x8xf32> -> vector<256x8xf32>
    %82 = arith.addf %77, %81 : vector<256x8xf32>
    %83 = vector.extract_strided_slice %72 {offsets = [384, 0], sizes = [256, 4], strides = [1, 1]} : vector<832x4xf32> to vector<256x4xf32>
    %c1_82 = arith.constant 1 : index
    %c7_83 = arith.constant 7 : index
    %c0_84 = arith.constant 0 : index
    %c0_85 = arith.constant 0 : index
    %84 = vector.load %arg2[%c1_82, %c7_83, %c0_84, %c0_85] : memref<4x9x4x8xf32, #tpu.memory_space<vmem>>, vector<1x1x4x8xf32>
    %85 = vector.shape_cast %84 : vector<1x1x4x8xf32> to vector<4x8xf32>
    %cst_86 = arith.constant dense<0.000000e+00> : vector<256x8xf32>
    %86 = tpu.matmul %83, %85, %cst_86 {dimension_numbers = #tpu.dot_dimension_numbers<[1], [0], [0], [1], [0, 0, 1, 1], [], []>} : vector<256x4xf32>, vector<4x8xf32>, vector<256x8xf32> -> vector<256x8xf32>
    %87 = arith.addf %82, %86 : vector<256x8xf32>
    %c0_87 = arith.constant 0 : index
    %c24 = arith.constant 24 : index
    %c0_88 = arith.constant 0 : index
    %88 = vector.load %arg8[%c0_87, %c24, %c0_88] : memref<52x52x4xf32, #tpu.memory_space<vmem>>, vector<52x16x4xf32>
    %89 = vector.shape_cast %88 : vector<52x16x4xf32> to vector<832x4xf32>
    %90 = vector.extract_strided_slice %89 {offsets = [192, 0], sizes = [256, 4], strides = [1, 1]} : vector<832x4xf32> to vector<256x4xf32>
    %c1_89 = arith.constant 1 : index
    %c2_90 = arith.constant 2 : index
    %c0_91 = arith.constant 0 : index
    %c0_92 = arith.constant 0 : index
    %91 = vector.load %arg2[%c1_89, %c2_90, %c0_91, %c0_92] : memref<4x9x4x8xf32, #tpu.memory_space<vmem>>, vector<1x1x4x8xf32>
    %92 = vector.shape_cast %91 : vector<1x1x4x8xf32> to vector<4x8xf32>
    %cst_93 = arith.constant dense<0.000000e+00> : vector<256x8xf32>
    %93 = tpu.matmul %90, %92, %cst_93 {dimension_numbers = #tpu.dot_dimension_numbers<[1], [0], [0], [1], [0, 0, 1, 1], [], []>} : vector<256x4xf32>, vector<4x8xf32>, vector<256x8xf32> -> vector<256x8xf32>
    %94 = arith.addf %87, %93 : vector<256x8xf32>
    %95 = vector.extract_strided_slice %89 {offsets = [288, 0], sizes = [256, 4], strides = [1, 1]} : vector<832x4xf32> to vector<256x4xf32>
    %c1_94 = arith.constant 1 : index
    %c5_95 = arith.constant 5 : index
    %c0_96 = arith.constant 0 : index
    %c0_97 = arith.constant 0 : index
    %96 = vector.load %arg2[%c1_94, %c5_95, %c0_96, %c0_97] : memref<4x9x4x8xf32, #tpu.memory_space<vmem>>, vector<1x1x4x8xf32>
    %97 = vector.shape_cast %96 : vector<1x1x4x8xf32> to vector<4x8xf32>
    %cst_98 = arith.constant dense<0.000000e+00> : vector<256x8xf32>
    %98 = tpu.matmul %95, %97, %cst_98 {dimension_numbers = #tpu.dot_dimension_numbers<[1], [0], [0], [1], [0, 0, 1, 1], [], []>} : vector<256x4xf32>, vector<4x8xf32>, vector<256x8xf32> -> vector<256x8xf32>
    %99 = arith.addf %94, %98 : vector<256x8xf32>
    %100 = vector.extract_strided_slice %89 {offsets = [384, 0], sizes = [256, 4], strides = [1, 1]} : vector<832x4xf32> to vector<256x4xf32>
    %c1_99 = arith.constant 1 : index
    %c8_100 = arith.constant 8 : index
    %c0_101 = arith.constant 0 : index
    %c0_102 = arith.constant 0 : index
    %101 = vector.load %arg2[%c1_99, %c8_100, %c0_101, %c0_102] : memref<4x9x4x8xf32, #tpu.memory_space<vmem>>, vector<1x1x4x8xf32>
    %102 = vector.shape_cast %101 : vector<1x1x4x8xf32> to vector<4x8xf32>
    %cst_103 = arith.constant dense<0.000000e+00> : vector<256x8xf32>
    %103 = tpu.matmul %100, %102, %cst_103 {dimension_numbers = #tpu.dot_dimension_numbers<[1], [0], [0], [1], [0, 0, 1, 1], [], []>} : vector<256x4xf32>, vector<4x8xf32>, vector<256x8xf32> -> vector<256x8xf32>
    %104 = arith.addf %99, %103 : vector<256x8xf32>
    %c0_104 = arith.constant 0 : index
    %c6_105 = arith.constant 6 : index
    %c0_106 = arith.constant 0 : index
    %105 = vector.load %arg8[%c0_104, %c6_105, %c0_106] : memref<52x52x4xf32, #tpu.memory_space<vmem>>, vector<52x16x4xf32>
    %106 = vector.shape_cast %105 : vector<52x16x4xf32> to vector<832x4xf32>
    %107 = vector.extract_strided_slice %106 {offsets = [96, 0], sizes = [256, 4], strides = [1, 1]} : vector<832x4xf32> to vector<256x4xf32>
    %c2_107 = arith.constant 2 : index
    %c0_108 = arith.constant 0 : index
    %c0_109 = arith.constant 0 : index
    %c0_110 = arith.constant 0 : index
    %108 = vector.load %arg2[%c2_107, %c0_108, %c0_109, %c0_110] : memref<4x9x4x8xf32, #tpu.memory_space<vmem>>, vector<1x1x4x8xf32>
    %109 = vector.shape_cast %108 : vector<1x1x4x8xf32> to vector<4x8xf32>
    %cst_111 = arith.constant dense<0.000000e+00> : vector<256x8xf32>
    %110 = tpu.matmul %107, %109, %cst_111 {dimension_numbers = #tpu.dot_dimension_numbers<[1], [0], [0], [1], [0, 0, 1, 1], [], []>} : vector<256x4xf32>, vector<4x8xf32>, vector<256x8xf32> -> vector<256x8xf32>
    %111 = vector.extract_strided_slice %106 {offsets = [288, 0], sizes = [256, 4], strides = [1, 1]} : vector<832x4xf32> to vector<256x4xf32>
    %c2_112 = arith.constant 2 : index
    %c3_113 = arith.constant 3 : index
    %c0_114 = arith.constant 0 : index
    %c0_115 = arith.constant 0 : index
    %112 = vector.load %arg2[%c2_112, %c3_113, %c0_114, %c0_115] : memref<4x9x4x8xf32, #tpu.memory_space<vmem>>, vector<1x1x4x8xf32>
    %113 = vector.shape_cast %112 : vector<1x1x4x8xf32> to vector<4x8xf32>
    %cst_116 = arith.constant dense<0.000000e+00> : vector<256x8xf32>
    %114 = tpu.matmul %111, %113, %cst_116 {dimension_numbers = #tpu.dot_dimension_numbers<[1], [0], [0], [1], [0, 0, 1, 1], [], []>} : vector<256x4xf32>, vector<4x8xf32>, vector<256x8xf32> -> vector<256x8xf32>
    %115 = arith.addf %110, %114 : vector<256x8xf32>
    %116 = vector.extract_strided_slice %106 {offsets = [480, 0], sizes = [256, 4], strides = [1, 1]} : vector<832x4xf32> to vector<256x4xf32>
    %c2_117 = arith.constant 2 : index
    %c6_118 = arith.constant 6 : index
    %c0_119 = arith.constant 0 : index
    %c0_120 = arith.constant 0 : index
    %117 = vector.load %arg2[%c2_117, %c6_118, %c0_119, %c0_120] : memref<4x9x4x8xf32, #tpu.memory_space<vmem>>, vector<1x1x4x8xf32>
    %118 = vector.shape_cast %117 : vector<1x1x4x8xf32> to vector<4x8xf32>
    %cst_121 = arith.constant dense<0.000000e+00> : vector<256x8xf32>
    %119 = tpu.matmul %116, %118, %cst_121 {dimension_numbers = #tpu.dot_dimension_numbers<[1], [0], [0], [1], [0, 0, 1, 1], [], []>} : vector<256x4xf32>, vector<4x8xf32>, vector<256x8xf32> -> vector<256x8xf32>
    %120 = arith.addf %115, %119 : vector<256x8xf32>
    %c0_122 = arith.constant 0 : index
    %c18_123 = arith.constant 18 : index
    %c0_124 = arith.constant 0 : index
    %121 = vector.load %arg8[%c0_122, %c18_123, %c0_124] : memref<52x52x4xf32, #tpu.memory_space<vmem>>, vector<52x16x4xf32>
    %122 = vector.shape_cast %121 : vector<52x16x4xf32> to vector<832x4xf32>
    %123 = vector.extract_strided_slice %122 {offsets = [96, 0], sizes = [256, 4], strides = [1, 1]} : vector<832x4xf32> to vector<256x4xf32>
    %c2_125 = arith.constant 2 : index
    %c1_126 = arith.constant 1 : index
    %c0_127 = arith.constant 0 : index
    %c0_128 = arith.constant 0 : index
    %124 = vector.load %arg2[%c2_125, %c1_126, %c0_127, %c0_128] : memref<4x9x4x8xf32, #tpu.memory_space<vmem>>, vector<1x1x4x8xf32>
    %125 = vector.shape_cast %124 : vector<1x1x4x8xf32> to vector<4x8xf32>
    %cst_129 = arith.constant dense<0.000000e+00> : vector<256x8xf32>
    %126 = tpu.matmul %123, %125, %cst_129 {dimension_numbers = #tpu.dot_dimension_numbers<[1], [0], [0], [1], [0, 0, 1, 1], [], []>} : vector<256x4xf32>, vector<4x8xf32>, vector<256x8xf32> -> vector<256x8xf32>
    %127 = arith.addf %120, %126 : vector<256x8xf32>
    %128 = vector.extract_strided_slice %122 {offsets = [288, 0], sizes = [256, 4], strides = [1, 1]} : vector<832x4xf32> to vector<256x4xf32>
    %c2_130 = arith.constant 2 : index
    %c4_131 = arith.constant 4 : index
    %c0_132 = arith.constant 0 : index
    %c0_133 = arith.constant 0 : index
    %129 = vector.load %arg2[%c2_130, %c4_131, %c0_132, %c0_133] : memref<4x9x4x8xf32, #tpu.memory_space<vmem>>, vector<1x1x4x8xf32>
    %130 = vector.shape_cast %129 : vector<1x1x4x8xf32> to vector<4x8xf32>
    %cst_134 = arith.constant dense<0.000000e+00> : vector<256x8xf32>
    %131 = tpu.matmul %128, %130, %cst_134 {dimension_numbers = #tpu.dot_dimension_numbers<[1], [0], [0], [1], [0, 0, 1, 1], [], []>} : vector<256x4xf32>, vector<4x8xf32>, vector<256x8xf32> -> vector<256x8xf32>
    %132 = arith.addf %127, %131 : vector<256x8xf32>
    %133 = vector.extract_strided_slice %122 {offsets = [480, 0], sizes = [256, 4], strides = [1, 1]} : vector<832x4xf32> to vector<256x4xf32>
    %c2_135 = arith.constant 2 : index
    %c7_136 = arith.constant 7 : index
    %c0_137 = arith.constant 0 : index
    %c0_138 = arith.constant 0 : index
    %134 = vector.load %arg2[%c2_135, %c7_136, %c0_137, %c0_138] : memref<4x9x4x8xf32, #tpu.memory_space<vmem>>, vector<1x1x4x8xf32>
    %135 = vector.shape_cast %134 : vector<1x1x4x8xf32> to vector<4x8xf32>
    %cst_139 = arith.constant dense<0.000000e+00> : vector<256x8xf32>
    %136 = tpu.matmul %133, %135, %cst_139 {dimension_numbers = #tpu.dot_dimension_numbers<[1], [0], [0], [1], [0, 0, 1, 1], [], []>} : vector<256x4xf32>, vector<4x8xf32>, vector<256x8xf32> -> vector<256x8xf32>
    %137 = arith.addf %132, %136 : vector<256x8xf32>
    %c0_140 = arith.constant 0 : index
    %c30 = arith.constant 30 : index
    %c0_141 = arith.constant 0 : index
    %138 = vector.load %arg8[%c0_140, %c30, %c0_141] : memref<52x52x4xf32, #tpu.memory_space<vmem>>, vector<52x16x4xf32>
    %139 = vector.shape_cast %138 : vector<52x16x4xf32> to vector<832x4xf32>
    %140 = vector.extract_strided_slice %139 {offsets = [96, 0], sizes = [256, 4], strides = [1, 1]} : vector<832x4xf32> to vector<256x4xf32>
    %c2_142 = arith.constant 2 : index
    %c2_143 = arith.constant 2 : index
    %c0_144 = arith.constant 0 : index
    %c0_145 = arith.constant 0 : index
    %141 = vector.load %arg2[%c2_142, %c2_143, %c0_144, %c0_145] : memref<4x9x4x8xf32, #tpu.memory_space<vmem>>, vector<1x1x4x8xf32>
    %142 = vector.shape_cast %141 : vector<1x1x4x8xf32> to vector<4x8xf32>
    %cst_146 = arith.constant dense<0.000000e+00> : vector<256x8xf32>
    %143 = tpu.matmul %140, %142, %cst_146 {dimension_numbers = #tpu.dot_dimension_numbers<[1], [0], [0], [1], [0, 0, 1, 1], [], []>} : vector<256x4xf32>, vector<4x8xf32>, vector<256x8xf32> -> vector<256x8xf32>
    %144 = arith.addf %137, %143 : vector<256x8xf32>
    %145 = vector.extract_strided_slice %139 {offsets = [288, 0], sizes = [256, 4], strides = [1, 1]} : vector<832x4xf32> to vector<256x4xf32>
    %c2_147 = arith.constant 2 : index
    %c5_148 = arith.constant 5 : index
    %c0_149 = arith.constant 0 : index
    %c0_150 = arith.constant 0 : index
    %146 = vector.load %arg2[%c2_147, %c5_148, %c0_149, %c0_150] : memref<4x9x4x8xf32, #tpu.memory_space<vmem>>, vector<1x1x4x8xf32>
    %147 = vector.shape_cast %146 : vector<1x1x4x8xf32> to vector<4x8xf32>
    %cst_151 = arith.constant dense<0.000000e+00> : vector<256x8xf32>
    %148 = tpu.matmul %145, %147, %cst_151 {dimension_numbers = #tpu.dot_dimension_numbers<[1], [0], [0], [1], [0, 0, 1, 1], [], []>} : vector<256x4xf32>, vector<4x8xf32>, vector<256x8xf32> -> vector<256x8xf32>
    %149 = arith.addf %144, %148 : vector<256x8xf32>
    %150 = vector.extract_strided_slice %139 {offsets = [480, 0], sizes = [256, 4], strides = [1, 1]} : vector<832x4xf32> to vector<256x4xf32>
    %c2_152 = arith.constant 2 : index
    %c8_153 = arith.constant 8 : index
    %c0_154 = arith.constant 0 : index
    %c0_155 = arith.constant 0 : index
    %151 = vector.load %arg2[%c2_152, %c8_153, %c0_154, %c0_155] : memref<4x9x4x8xf32, #tpu.memory_space<vmem>>, vector<1x1x4x8xf32>
    %152 = vector.shape_cast %151 : vector<1x1x4x8xf32> to vector<4x8xf32>
    %cst_156 = arith.constant dense<0.000000e+00> : vector<256x8xf32>
    %153 = tpu.matmul %150, %152, %cst_156 {dimension_numbers = #tpu.dot_dimension_numbers<[1], [0], [0], [1], [0, 0, 1, 1], [], []>} : vector<256x4xf32>, vector<4x8xf32>, vector<256x8xf32> -> vector<256x8xf32>
    %154 = arith.addf %149, %153 : vector<256x8xf32>
    %c0_157 = arith.constant 0 : index
    %c0_158 = arith.constant 0 : index
    %c0_159 = arith.constant 0 : index
    %155 = vector.load %arg8[%c0_157, %c0_158, %c0_159] : memref<52x52x4xf32, #tpu.memory_space<vmem>>, vector<52x16x4xf32>
    %156 = vector.shape_cast %155 : vector<52x16x4xf32> to vector<832x4xf32>
    %157 = vector.extract_strided_slice %156 {offsets = [0, 0], sizes = [256, 4], strides = [1, 1]} : vector<832x4xf32> to vector<256x4xf32>
    %c3_160 = arith.constant 3 : index
    %c0_161 = arith.constant 0 : index
    %c0_162 = arith.constant 0 : index
    %c0_163 = arith.constant 0 : index
    %158 = vector.load %arg2[%c3_160, %c0_161, %c0_162, %c0_163] : memref<4x9x4x8xf32, #tpu.memory_space<vmem>>, vector<1x1x4x8xf32>
    %159 = vector.shape_cast %158 : vector<1x1x4x8xf32> to vector<4x8xf32>
    %cst_164 = arith.constant dense<0.000000e+00> : vector<256x8xf32>
    %160 = tpu.matmul %157, %159, %cst_164 {dimension_numbers = #tpu.dot_dimension_numbers<[1], [0], [0], [1], [0, 0, 1, 1], [], []>} : vector<256x4xf32>, vector<4x8xf32>, vector<256x8xf32> -> vector<256x8xf32>
    %161 = vector.extract_strided_slice %156 {offsets = [288, 0], sizes = [256, 4], strides = [1, 1]} : vector<832x4xf32> to vector<256x4xf32>
    %c3_165 = arith.constant 3 : index
    %c3_166 = arith.constant 3 : index
    %c0_167 = arith.constant 0 : index
    %c0_168 = arith.constant 0 : index
    %162 = vector.load %arg2[%c3_165, %c3_166, %c0_167, %c0_168] : memref<4x9x4x8xf32, #tpu.memory_space<vmem>>, vector<1x1x4x8xf32>
    %163 = vector.shape_cast %162 : vector<1x1x4x8xf32> to vector<4x8xf32>
    %cst_169 = arith.constant dense<0.000000e+00> : vector<256x8xf32>
    %164 = tpu.matmul %161, %163, %cst_169 {dimension_numbers = #tpu.dot_dimension_numbers<[1], [0], [0], [1], [0, 0, 1, 1], [], []>} : vector<256x4xf32>, vector<4x8xf32>, vector<256x8xf32> -> vector<256x8xf32>
    %165 = arith.addf %160, %164 : vector<256x8xf32>
    %166 = vector.extract_strided_slice %156 {offsets = [576, 0], sizes = [256, 4], strides = [1, 1]} : vector<832x4xf32> to vector<256x4xf32>
    %c3_170 = arith.constant 3 : index
    %c6_171 = arith.constant 6 : index
    %c0_172 = arith.constant 0 : index
    %c0_173 = arith.constant 0 : index
    %167 = vector.load %arg2[%c3_170, %c6_171, %c0_172, %c0_173] : memref<4x9x4x8xf32, #tpu.memory_space<vmem>>, vector<1x1x4x8xf32>
    %168 = vector.shape_cast %167 : vector<1x1x4x8xf32> to vector<4x8xf32>
    %cst_174 = arith.constant dense<0.000000e+00> : vector<256x8xf32>
    %169 = tpu.matmul %166, %168, %cst_174 {dimension_numbers = #tpu.dot_dimension_numbers<[1], [0], [0], [1], [0, 0, 1, 1], [], []>} : vector<256x4xf32>, vector<4x8xf32>, vector<256x8xf32> -> vector<256x8xf32>
    %170 = arith.addf %165, %169 : vector<256x8xf32>
    %c0_175 = arith.constant 0 : index
    %c18_176 = arith.constant 18 : index
    %c0_177 = arith.constant 0 : index
    %171 = vector.load %arg8[%c0_175, %c18_176, %c0_177] : memref<52x52x4xf32, #tpu.memory_space<vmem>>, vector<52x16x4xf32>
    %172 = vector.shape_cast %171 : vector<52x16x4xf32> to vector<832x4xf32>
    %173 = vector.extract_strided_slice %172 {offsets = [0, 0], sizes = [256, 4], strides = [1, 1]} : vector<832x4xf32> to vector<256x4xf32>
    %c3_178 = arith.constant 3 : index
    %c1_179 = arith.constant 1 : index
    %c0_180 = arith.constant 0 : index
    %c0_181 = arith.constant 0 : index
    %174 = vector.load %arg2[%c3_178, %c1_179, %c0_180, %c0_181] : memref<4x9x4x8xf32, #tpu.memory_space<vmem>>, vector<1x1x4x8xf32>
    %175 = vector.shape_cast %174 : vector<1x1x4x8xf32> to vector<4x8xf32>
    %cst_182 = arith.constant dense<0.000000e+00> : vector<256x8xf32>
    %176 = tpu.matmul %173, %175, %cst_182 {dimension_numbers = #tpu.dot_dimension_numbers<[1], [0], [0], [1], [0, 0, 1, 1], [], []>} : vector<256x4xf32>, vector<4x8xf32>, vector<256x8xf32> -> vector<256x8xf32>
    %177 = arith.addf %170, %176 : vector<256x8xf32>
    %178 = vector.extract_strided_slice %172 {offsets = [288, 0], sizes = [256, 4], strides = [1, 1]} : vector<832x4xf32> to vector<256x4xf32>
    %c3_183 = arith.constant 3 : index
    %c4_184 = arith.constant 4 : index
    %c0_185 = arith.constant 0 : index
    %c0_186 = arith.constant 0 : index
    %179 = vector.load %arg2[%c3_183, %c4_184, %c0_185, %c0_186] : memref<4x9x4x8xf32, #tpu.memory_space<vmem>>, vector<1x1x4x8xf32>
    %180 = vector.shape_cast %179 : vector<1x1x4x8xf32> to vector<4x8xf32>
    %cst_187 = arith.constant dense<0.000000e+00> : vector<256x8xf32>
    %181 = tpu.matmul %178, %180, %cst_187 {dimension_numbers = #tpu.dot_dimension_numbers<[1], [0], [0], [1], [0, 0, 1, 1], [], []>} : vector<256x4xf32>, vector<4x8xf32>, vector<256x8xf32> -> vector<256x8xf32>
    %182 = arith.addf %177, %181 : vector<256x8xf32>
    %183 = vector.extract_strided_slice %172 {offsets = [576, 0], sizes = [256, 4], strides = [1, 1]} : vector<832x4xf32> to vector<256x4xf32>
    %c3_188 = arith.constant 3 : index
    %c7_189 = arith.constant 7 : index
    %c0_190 = arith.constant 0 : index
    %c0_191 = arith.constant 0 : index
    %184 = vector.load %arg2[%c3_188, %c7_189, %c0_190, %c0_191] : memref<4x9x4x8xf32, #tpu.memory_space<vmem>>, vector<1x1x4x8xf32>
    %185 = vector.shape_cast %184 : vector<1x1x4x8xf32> to vector<4x8xf32>
    %cst_192 = arith.constant dense<0.000000e+00> : vector<256x8xf32>
    %186 = tpu.matmul %183, %185, %cst_192 {dimension_numbers = #tpu.dot_dimension_numbers<[1], [0], [0], [1], [0, 0, 1, 1], [], []>} : vector<256x4xf32>, vector<4x8xf32>, vector<256x8xf32> -> vector<256x8xf32>
    %187 = arith.addf %182, %186 : vector<256x8xf32>
    %c0_193 = arith.constant 0 : index
    %c36 = arith.constant 36 : index
    %c0_194 = arith.constant 0 : index
    %188 = vector.load %arg8[%c0_193, %c36, %c0_194] : memref<52x52x4xf32, #tpu.memory_space<vmem>>, vector<52x16x4xf32>
    %189 = vector.shape_cast %188 : vector<52x16x4xf32> to vector<832x4xf32>
    %190 = vector.extract_strided_slice %189 {offsets = [0, 0], sizes = [256, 4], strides = [1, 1]} : vector<832x4xf32> to vector<256x4xf32>
    %c3_195 = arith.constant 3 : index
    %c2_196 = arith.constant 2 : index
    %c0_197 = arith.constant 0 : index
    %c0_198 = arith.constant 0 : index
    %191 = vector.load %arg2[%c3_195, %c2_196, %c0_197, %c0_198] : memref<4x9x4x8xf32, #tpu.memory_space<vmem>>, vector<1x1x4x8xf32>
    %192 = vector.shape_cast %191 : vector<1x1x4x8xf32> to vector<4x8xf32>
    %cst_199 = arith.constant dense<0.000000e+00> : vector<256x8xf32>
    %193 = tpu.matmul %190, %192, %cst_199 {dimension_numbers = #tpu.dot_dimension_numbers<[1], [0], [0], [1], [0, 0, 1, 1], [], []>} : vector<256x4xf32>, vector<4x8xf32>, vector<256x8xf32> -> vector<256x8xf32>
    %194 = arith.addf %187, %193 : vector<256x8xf32>
    %195 = vector.extract_strided_slice %189 {offsets = [288, 0], sizes = [256, 4], strides = [1, 1]} : vector<832x4xf32> to vector<256x4xf32>
    %c3_200 = arith.constant 3 : index
    %c5_201 = arith.constant 5 : index
    %c0_202 = arith.constant 0 : index
    %c0_203 = arith.constant 0 : index
    %196 = vector.load %arg2[%c3_200, %c5_201, %c0_202, %c0_203] : memref<4x9x4x8xf32, #tpu.memory_space<vmem>>, vector<1x1x4x8xf32>
    %197 = vector.shape_cast %196 : vector<1x1x4x8xf32> to vector<4x8xf32>
    %cst_204 = arith.constant dense<0.000000e+00> : vector<256x8xf32>
    %198 = tpu.matmul %195, %197, %cst_204 {dimension_numbers = #tpu.dot_dimension_numbers<[1], [0], [0], [1], [0, 0, 1, 1], [], []>} : vector<256x4xf32>, vector<4x8xf32>, vector<256x8xf32> -> vector<256x8xf32>
    %199 = arith.addf %194, %198 : vector<256x8xf32>
    %200 = vector.extract_strided_slice %189 {offsets = [576, 0], sizes = [256, 4], strides = [1, 1]} : vector<832x4xf32> to vector<256x4xf32>
    %c3_205 = arith.constant 3 : index
    %c8_206 = arith.constant 8 : index
    %c0_207 = arith.constant 0 : index
    %c0_208 = arith.constant 0 : index
    %201 = vector.load %arg2[%c3_205, %c8_206, %c0_207, %c0_208] : memref<4x9x4x8xf32, #tpu.memory_space<vmem>>, vector<1x1x4x8xf32>
    %202 = vector.shape_cast %201 : vector<1x1x4x8xf32> to vector<4x8xf32>
    %cst_209 = arith.constant dense<0.000000e+00> : vector<256x8xf32>
    %203 = tpu.matmul %200, %202, %cst_209 {dimension_numbers = #tpu.dot_dimension_numbers<[1], [0], [0], [1], [0, 0, 1, 1], [], []>} : vector<256x4xf32>, vector<4x8xf32>, vector<256x8xf32> -> vector<256x8xf32>
    %204 = arith.addf %199, %203 : vector<256x8xf32>
    %205 = tpu.concatenate %54, %104, %154, %204 in 1 : vector<256x8xf32>, vector<256x8xf32>, vector<256x8xf32>, vector<256x8xf32> -> vector<256x32xf32>
    %c0_210 = arith.constant 0 : index
    %c0_211 = arith.constant 0 : index
    %c0_212 = arith.constant 0 : index
    %206 = vector.load %arg5[%c0_210, %c0_211, %c0_212] : memref<1x256x32xf32, #tpu.memory_space<vmem>>, vector<1x256x32xf32>
    %207 = vector.shape_cast %206 : vector<1x256x32xf32> to vector<256x32xf32>
    %208 = vector.shape_cast %205 : vector<256x32xf32> to vector<1x256x32xf32>
    tpu.vector_store %arg5[%c0_210, %c0_211, %c0_212], %208 {strides = array<i32>} : memref<1x256x32xf32, #tpu.memory_space<vmem>>, vector<1x256x32xf32>,
    %cst_213 = arith.constant dense<0.000000e+00> : vector<32xf32>
    %209 = vector.multi_reduction <add>, %205, %cst_213 [0] : vector<256x32xf32> to vector<32xf32>
    %210 = vector.shape_cast %209 : vector<32xf32> to vector<1x32xf32>
    %211 = arith.mulf %205, %205 : vector<256x32xf32>
    %cst_214 = arith.constant dense<0.000000e+00> : vector<32xf32>
    %212 = vector.multi_reduction <add>, %211, %cst_214 [0] : vector<256x32xf32> to vector<32xf32>
    %213 = vector.shape_cast %212 : vector<32xf32> to vector<1x32xf32>
    %214 = tpu.concatenate %210, %213 in 0 : vector<1x32xf32>, vector<1x32xf32> -> vector<2x32xf32>
    %c0_215 = arith.constant 0 : index
    %c0_216 = arith.constant 0 : index
    %c0_217 = arith.constant 0 : index
    %215 = vector.load %arg6[%c0_215, %c0_216, %c0_217] : memref<1x2x32xf32, #tpu.memory_space<vmem>>, vector<1x2x32xf32>
    %216 = vector.shape_cast %215 : vector<1x2x32xf32> to vector<2x32xf32>
    %217 = vector.shape_cast %214 : vector<2x32xf32> to vector<1x2x32xf32>
    tpu.vector_store %arg6[%c0_215, %c0_216, %c0_217], %217 {strides = array<i32>} : memref<1x2x32xf32, #tpu.memory_space<vmem>>, vector<1x2x32xf32>,
    %c0_218 = arith.constant 0 : index
    %c0_219 = arith.constant 0 : index
    %c0_220 = arith.constant 0 : index
    %c0_221 = arith.constant 0 : index
    %218 = vector.load %arg1[%c0_218, %c0_219, %c0_220, %c0_221] : memref<1x16x16x4xf32, #tpu.memory_space<vmem>>, vector<1x8x8x4xf32>
    %219 = vector.shape_cast %218 : vector<1x8x8x4xf32> to vector<8x8x4xf32>
    %cst_222 = arith.constant dense<0.000000e+00> : vector<8x4xf32>
    %220 = vector.multi_reduction <add>, %219, %cst_222 [0] : vector<8x8x4xf32> to vector<8x4xf32>
    %cst_223 = arith.constant dense<0.000000e+00> : vector<4xf32>
    %221 = vector.multi_reduction <add>, %220, %cst_223 [0] : vector<8x4xf32> to vector<4xf32>
    %222 = vector.shape_cast %221 : vector<4xf32> to vector<1x4xf32>
    %cst_224 = arith.constant 1.562500e-02 : f32
    %223 = vector.broadcast %cst_224 : f32 to vector<1x4xf32>
    %224 = arith.mulf %222, %223 : vector<1x4xf32>
    %c0_225 = arith.constant 0 : index
    %c0_226 = arith.constant 0 : index
    %c8_227 = arith.constant 8 : index
    %c0_228 = arith.constant 0 : index
    %225 = vector.load %arg1[%c0_225, %c0_226, %c8_227, %c0_228] : memref<1x16x16x4xf32, #tpu.memory_space<vmem>>, vector<1x8x8x4xf32>
    %226 = vector.shape_cast %225 : vector<1x8x8x4xf32> to vector<8x8x4xf32>
    %cst_229 = arith.constant dense<0.000000e+00> : vector<8x4xf32>
    %227 = vector.multi_reduction <add>, %226, %cst_229 [0] : vector<8x8x4xf32> to vector<8x4xf32>
    %cst_230 = arith.constant dense<0.000000e+00> : vector<4xf32>
    %228 = vector.multi_reduction <add>, %227, %cst_230 [0] : vector<8x4xf32> to vector<4xf32>
    %229 = vector.shape_cast %228 : vector<4xf32> to vector<1x4xf32>
    %cst_231 = arith.constant 1.562500e-02 : f32
    %230 = vector.broadcast %cst_231 : f32 to vector<1x4xf32>
    %231 = arith.mulf %229, %230 : vector<1x4xf32>
    %c0_232 = arith.constant 0 : index
    %c8_233 = arith.constant 8 : index
    %c0_234 = arith.constant 0 : index
    %c0_235 = arith.constant 0 : index
    %232 = vector.load %arg1[%c0_232, %c8_233, %c0_234, %c0_235] : memref<1x16x16x4xf32, #tpu.memory_space<vmem>>, vector<1x8x8x4xf32>
    %233 = vector.shape_cast %232 : vector<1x8x8x4xf32> to vector<8x8x4xf32>
    %cst_236 = arith.constant dense<0.000000e+00> : vector<8x4xf32>
    %234 = vector.multi_reduction <add>, %233, %cst_236 [0] : vector<8x8x4xf32> to vector<8x4xf32>
    %cst_237 = arith.constant dense<0.000000e+00> : vector<4xf32>
    %235 = vector.multi_reduction <add>, %234, %cst_237 [0] : vector<8x4xf32> to vector<4xf32>
    %236 = vector.shape_cast %235 : vector<4xf32> to vector<1x4xf32>
    %cst_238 = arith.constant 1.562500e-02 : f32
    %237 = vector.broadcast %cst_238 : f32 to vector<1x4xf32>
    %238 = arith.mulf %236, %237 : vector<1x4xf32>
    %c0_239 = arith.constant 0 : index
    %c8_240 = arith.constant 8 : index
    %c8_241 = arith.constant 8 : index
    %c0_242 = arith.constant 0 : index
    %239 = vector.load %arg1[%c0_239, %c8_240, %c8_241, %c0_242] : memref<1x16x16x4xf32, #tpu.memory_space<vmem>>, vector<1x8x8x4xf32>
    %240 = vector.shape_cast %239 : vector<1x8x8x4xf32> to vector<8x8x4xf32>
    %cst_243 = arith.constant dense<0.000000e+00> : vector<8x4xf32>
    %241 = vector.multi_reduction <add>, %240, %cst_243 [0] : vector<8x8x4xf32> to vector<8x4xf32>
    %cst_244 = arith.constant dense<0.000000e+00> : vector<4xf32>
    %242 = vector.multi_reduction <add>, %241, %cst_244 [0] : vector<8x4xf32> to vector<4xf32>
    %243 = vector.shape_cast %242 : vector<4xf32> to vector<1x4xf32>
    %cst_245 = arith.constant 1.562500e-02 : f32
    %244 = vector.broadcast %cst_245 : f32 to vector<1x4xf32>
    %245 = arith.mulf %243, %244 : vector<1x4xf32>
    %246 = tpu.concatenate %224, %231, %238, %245 in 0 : vector<1x4xf32>, vector<1x4xf32>, vector<1x4xf32>, vector<1x4xf32> -> vector<4x4xf32>
    %c0_246 = arith.constant 0 : index
    %c0_247 = arith.constant 0 : index
    %247 = vector.load %arg3[%c0_246, %c0_247] : memref<4x8xf32, #tpu.memory_space<vmem>>, vector<4x8xf32>
    %cst_248 = arith.constant dense<0.000000e+00> : vector<4x8xf32>
    %248 = tpu.matmul %246, %247, %cst_248 {dimension_numbers = #tpu.dot_dimension_numbers<[1], [0], [0], [1], [0, 0, 1, 1], [], []>} : vector<4x4xf32>, vector<4x8xf32>, vector<4x8xf32> -> vector<4x8xf32>
    %c0_249 = arith.constant 0 : index
    %c0_250 = arith.constant 0 : index
    %249 = vector.load %arg4[%c0_249, %c0_250] : memref<1x8xf32, #tpu.memory_space<vmem>>, vector<1x8xf32>
    %250 = vector.broadcast %249 : vector<1x8xf32> to vector<4x8xf32>
    %251 = arith.addf %248, %250 : vector<4x8xf32>
    %c0_251 = arith.constant 0 : index
    %c0_252 = arith.constant 0 : index
    %c0_253 = arith.constant 0 : index
    %252 = vector.load %arg7[%c0_251, %c0_252, %c0_253] : memref<1x4x8xf32, #tpu.memory_space<vmem>>, vector<1x4x8xf32>
    %253 = vector.shape_cast %252 : vector<1x4x8xf32> to vector<4x8xf32>
    %254 = vector.shape_cast %251 : vector<4x8xf32> to vector<1x4x8xf32>
    tpu.vector_store %arg7[%c0_251, %c0_252, %c0_253], %254 {strides = array<i32>} : memref<1x4x8xf32, #tpu.memory_space<vmem>>, vector<1x4x8xf32>,
    return
  }
  func.func @transform_0(%arg0: i32) -> (i32, i32, i32, i32) {
    %c0_i32 = arith.constant 0 : i32
    %c0_i32_0 = arith.constant 0 : i32
    %c0_i32_1 = arith.constant 0 : i32
    %c0_i32_2 = arith.constant 0 : i32
    return %arg0, %c0_i32, %c0_i32_0, %c0_i32_1 : i32, i32, i32, i32
  }
  func.func @transform_1(%arg0: i32) -> (i32, i32, i32, i32) {
    %c0_i32 = arith.constant 0 : i32
    %c0_i32_0 = arith.constant 0 : i32
    %c0_i32_1 = arith.constant 0 : i32
    %c0_i32_2 = arith.constant 0 : i32
    %c0_i32_3 = arith.constant 0 : i32
    return %c0_i32, %c0_i32_0, %c0_i32_1, %c0_i32_2 : i32, i32, i32, i32
  }
  func.func @transform_2(%arg0: i32) -> (i32, i32) {
    %c0_i32 = arith.constant 0 : i32
    %c0_i32_0 = arith.constant 0 : i32
    %c0_i32_1 = arith.constant 0 : i32
    return %c0_i32, %c0_i32_0 : i32, i32
  }
  func.func @transform_3(%arg0: i32) -> (i32, i32) {
    %c0_i32 = arith.constant 0 : i32
    %c0_i32_0 = arith.constant 0 : i32
    %c0_i32_1 = arith.constant 0 : i32
    return %c0_i32, %c0_i32_0 : i32, i32
  }
  func.func @transform_4(%arg0: i32) -> (i32, i32, i32) {
    %c0_i32 = arith.constant 0 : i32
    %c0_i32_0 = arith.constant 0 : i32
    %c0_i32_1 = arith.constant 0 : i32
    return %arg0, %c0_i32, %c0_i32_0 : i32, i32, i32
  }
  func.func @transform_5(%arg0: i32) -> (i32, i32, i32) {
    %c0_i32 = arith.constant 0 : i32
    %c0_i32_0 = arith.constant 0 : i32
    %c0_i32_1 = arith.constant 0 : i32
    return %arg0, %c0_i32, %c0_i32_0 : i32, i32, i32
  }
  func.func @transform_6(%arg0: i32) -> (i32, i32, i32) {
    %c0_i32 = arith.constant 0 : i32
    %c0_i32_0 = arith.constant 0 : i32
    %c0_i32_1 = arith.constant 0 : i32
    return %arg0, %c0_i32, %c0_i32_0 : i32, i32, i32
  }
}

</mosaic_0001>

<bundles_post_ra>
// kernel: tpu_custom_call.1
= control target key start
LH: loop header
LB: loop body
LE: loop exit
PB: predicated region body
PF: predicated region fallthrough
CT: control target
= control target key end

     0   :  { %12 = vsyncpa [#allocation4], 0  ;;  %s22913_s0 = inlined_call_operand.vmem [shape: f32[2,16,16,4], index: 0, kind: input, shape index: {}]   ;;  %s22914_s1 = inlined_call_operand.vmem [shape: f32[4,9,4,8], index: 1, kind: input, shape index: {}]   ;;  %s22915_s2 = inlined_call_operand.vmem [shape: f32[4,8], index: 2, kind: input, shape index: {}]   ;;  %s22916_s3 = inlined_call_operand.vmem [shape: f32[1,8], index: 3, kind: input, shape index: {}]   ;;  %s22917_s4 = inlined_call_operand.vmem [shape: f32[2,256,32], index: 4, kind: output, shape index: {0}]   ;;  %s22918_s5 = inlined_call_operand.hbm [shape: f32[2,2,32], index: 5, kind: output, shape index: {1}]   ;;  %s22919_s6 = inlined_call_operand.hbm [shape: f32[2,4,8], index: 6, kind: output, shape index: {2}]  }
   0x1   :  { %14 = vsyncpa [#allocation4 + $0x1], 0 }
   0x2   :  { %15 = vsyncpa [#allocation6], 0 }
   0x3   :  { %17 = vsyncpa [#allocation6 + $0x1], 0  ;;  %s19024_s21 = smov 0   ;;  %s19026_s22 = smov 0  }
   0x4   :  { %s19028_s23 = smov 0   ;;  %s19030_s24 = smov 0  }
   0x5 LB: > { %s19045_s25 = sadd.s32 4294967295, %s18980_s24   ;;  %s13502_s26 = sadd.s32 4294967294, %s18980_s24   ;;  %s18980_s24 = sphi %s19030_s24, %s22967_s24   ;;  %s18976_s23 = sphi %s19028_s23, %s22966_s23   ;;  %s18972_s22 = sphi %s19026_s22, %s22965_s22   ;;  %s18968_s21 = sphi %s19024_s21, %s22964_s21  }
   0x6   : > { %s19049_s27 = sadd.s32 1, %s18980_s24   ;;  %s145_s28 = sadd.s32 1, %s18976_s23 }
   0x7   : > { %s142_s29 = ssub.s32 %s18980_s24, %s19049_s27  ;;  %p155_p0 = scmp.ne.s32.totalorder %s18976_s23, %s18972_s22 }
   0x8   : > { %p143_p1 = scmp.eq.s32.totalorder %s142_s29, 0  ;;  %p156_p2 = scmp.eq.s32.totalorder %s19045_s25, 1 }
   0x9   : > { %p161_p3 = scmp.ne.s32.totalorder %s18972_s22, %s18968_s21  ;;  %p162_p4 = scmp.eq.s32.totalorder %s13502_s26, 1 }
   0xa   : > { %s19060_s30 = scalar_select %p143_p1, %s18976_s23, %s145_s28  }
   0xb   : > { %p19062_p5 = por %p156_p2, %p155_p0  ;;  %p19066_p6 = por %p162_p4, %p161_p3 }
   0xc   : > { %p13505_p7 = scmp.ge.s32.totalorder %s18980_s24, 1  ;;  %p223_p8 = scmp.lt.s32.totalorder %s18980_s24, 3 }
   0xe   : > { %p224_p9 = pnand %p13505_p7, %p223_p8 }
  0x10   : > { %227 = sbr.rel (%p224_p9) target bundleno = 1777 (0x6f1), region = 36 }
  0x17   : > { %v13512_v0 = vld [vmem:[%s22914_s1 + $0xc] sm:$0xf]  ;;  %vm839_vm0 = vcmask 1043456   ;;  %v19078_v1 = vld [vmem:[%s22914_s1 + $0x30] sm:$0xf]  ;;  %p263_p10 = scmp.lt.s32.totalorder %s19045_s25, 1 }
  0x18   : > { %15952 = vmatprep.subr.msk.mxu0 %vm839_vm0, %v13512_v0  ;;  %16402 = vmatprep.subr.msk.mxu1 %vm839_vm0, %v19078_v1  ;;  %vm273_vm1 = vcmask 31744   ;;  %v19087_v2 = vld [vmem:[%s22914_s1] sm:$0xf]  ;;  %v19092_v3 = vld [vmem:[%s22914_s1 + $0x24] sm:$0xf]  ;;  %v22920_v4 = vmov 0.0  }
  0x19   : > { %15953 = vmatpush3.msk.msra.mxu0 %vm839_vm0, %v13512_v0  ;;  %s19096_s17 = scalar_select %p263_p10, %s19045_s25, 1  ;;  %403 = vst.msk [vmem:[#allocation2 + $0x400] sm:$0xff] %vm273_vm1, %v22920_v4  ;;  %404 = vst.msk [vmem:[#allocation2 + $0x408] sm:$0xff] %vm273_vm1, %v22920_v4  ;;  %16403 = vmatpush3.msk.msra.mxu1 %vm839_vm0, %v19078_v1  ;;  %v19807_v35 = vld [vmem:[%s22914_s1 + $0x18] sm:$0xf]  ;;  %vm280_vm2 = vcmask 27648  }
  0x1a   : > { %274 = vst.msk [vmem:[#allocation2] sm:$0xff] %vm273_vm1, %v22920_v4  ;;  %275 = vst.msk [vmem:[#allocation2 + $0x8] sm:$0xff] %vm273_vm1, %v22920_v4  ;;  %16002 = vmatprep.subr.msk.mxu0 %vm839_vm0, %v19087_v2  ;;  %16452 = vmatprep.subr.msk.mxu1 %vm839_vm0, %v19092_v3  ;;  %v19812_v36 = vld [vmem:[%s22914_s1 + $0x3c] sm:$0xf]  ;;  %s18983_s28 = smov 8   ;;  %vm12824_vm3 = vcmask 64512  }
  0x1b   : > { %276 = vst.msk [vmem:[#allocation2 + $0x10] sm:$0xff] %vm273_vm1, %v22920_v4  ;;  %277 = vst.msk [vmem:[#allocation2 + $0x18] sm:$0xff] %vm273_vm1, %v22920_v4  ;;  %s14760_s18 = sshll.u32 %s19096_s17, 8  ;;  %vm13126_vm4 = vcmask 1040384   ;;  %vm13256_vm5 = vcmask 1041408   ;;  %vm13258_vm6 = vcmask 1042432  }
  0x1c   : > { %278 = vst.msk [vmem:[#allocation2 + $0x20] sm:$0xff] %vm273_vm1, %v22920_v4  ;;  %279 = vst.msk [vmem:[#allocation2 + $0x28] sm:$0xff] %vm273_vm1, %v22920_v4  ;;  %s19734_s26 = scalar_lea.vmem %s22913_s0, %s14760_s18  ;;  %vm18984_vm7 = vmmov 0   ;;  %s18986_s14 = smov 24   ;;  %vm12857_vm8 = vcmask 130048   ;;  %vm12890_vm9 = vcmask 195584  }
  0x1d   : > { %282 = vst.msk [vmem:[#allocation2 + $0x38] sm:$0xff] %vm273_vm1, %v22920_v4  ;;  %283 = vst.msk [vmem:[#allocation2 + $0x40] sm:$0xff] %vm273_vm1, %v22920_v4  ;;  %v639_v5 = vld [vmem:[%s19734_s26] sm:$0xff]  ;;  %v640_v6 = vld [vmem:[%s19734_s26 + $0x8] sm:$0xff]  ;;  %s22591_s19 = scalar_lea.vmem %s22917_s4, %s14760_s18  ;;  %vm12923_vm10 = vcmask 261120   ;;  %s22622_s17 = sand.u32 1, %s18972_s22  }
  0x1e   : > { %284 = vst.msk [vmem:[#allocation2 + $0x48] sm:$0xff] %vm273_vm1, %v22920_v4  ;;  %285 = vst.msk [vmem:[#allocation2 + $0x50] sm:$0xff] %vm273_vm1, %v22920_v4  ;;  %v641_v7 = vld [vmem:[%s19734_s26 + $0x10] sm:$0xff]  ;;  %v642_v8 = vld [vmem:[%s19734_s26 + $0x18] sm:$0xff]  ;;  %vm13344_vm11 = vcmask 60416   ;;  %s14757_s9 = sshll.u32 %s19045_s25, 6 }
  0x1f   : > { %286 = vst.msk [vmem:[#allocation2 + $0x58] sm:$0xff] %vm273_vm1, %v22920_v4  ;;  %287 = vst.msk [vmem:[#allocation2 + $0x60] sm:$0xff] %vm273_vm1, %v22920_v4  ;;  %v643_v9 = vld [vmem:[%s19734_s26 + $0x20] sm:$0xff]  ;;  %v644_v10 = vld [vmem:[%s19734_s26 + $0x28] sm:$0xff]  ;;  %s22649_s13 = scalar_lea.hbm %s22919_s6, %s14757_s9  ;;  %s18987_s15 = smov [#allocation5]  }
  0x20   : > { %289 = vst.msk [vmem:[#allocation2 + $0x70] sm:$0xff] %vm273_vm1, %v22920_v4  ;;  %290 = vst.msk [vmem:[#allocation2 + $0x78] sm:$0xff] %vm273_vm1, %v22920_v4  ;;  %v645_v11 = vld [vmem:[%s19734_s26 + $0x30] sm:$0xff]  ;;  %v646_v12 = vld [vmem:[%s19734_s26 + $0x38] sm:$0xff]  ;;  %s18890_s16 = sshll.u32 %s18987_s15, 4  ;;  %s18891_s16 = int_to_ptr.vmem [resolvable:$false] %s18890_s16 }
  0x21   : > { %291 = vst.msk [vmem:[#allocation2 + $0x80] sm:$0xff] %vm273_vm1, %v22920_v4  ;;  %292 = vst.msk [vmem:[#allocation2 + $0x88] sm:$0xff] %vm273_vm1, %v22920_v4  ;;  %v647_v13 = vld [vmem:[%s19734_s26 + $0x40] sm:$0xff]  ;;  %v648_v14 = vld [vmem:[%s19734_s26 + $0x48] sm:$0xff]  ;;  %s18892_s18 = scalar_lea.vmem %s18891_s16, 128 }
  0x22   : > { %293 = vst.msk [vmem:[#allocation2 + $0x90] sm:$0xff] %vm273_vm1, %v22920_v4  ;;  %294 = vst.msk [vmem:[#allocation2 + $0x98] sm:$0xff] %vm273_vm1, %v22920_v4  ;;  %v649_v15 = vld [vmem:[%s19734_s26 + $0x50] sm:$0xff]  ;;  %v650_v16 = vld [vmem:[%s19734_s26 + $0x58] sm:$0xff] }
  0x23   : > { %296 = vst.msk [vmem:[#allocation2 + $0xa8] sm:$0xff] %vm273_vm1, %v22920_v4  ;;  %297 = vst.msk [vmem:[#allocation2 + $0xb0] sm:$0xff] %vm273_vm1, %v22920_v4  ;;  %v651_v17 = vld [vmem:[%s19734_s26 + $0x60] sm:$0xff]  ;;  %v652_v18 = vld [vmem:[%s19734_s26 + $0x68] sm:$0xff] }
  0x24   : > { %298 = vst.msk [vmem:[#allocation2 + $0xb8] sm:$0xff] %vm273_vm1, %v22920_v4  ;;  %299 = vst.msk [vmem:[#allocation2 + $0xc0] sm:$0xff] %vm273_vm1, %v22920_v4  ;;  %v653_v19 = vld [vmem:[%s19734_s26 + $0x70] sm:$0xff]  ;;  %v654_v20 = vld [vmem:[%s19734_s26 + $0x78] sm:$0xff] }
  0x25   : > { %300 = vst.msk [vmem:[#allocation2 + $0xc8] sm:$0xff] %vm273_vm1, %v22920_v4  ;;  %301 = vst.msk [vmem:[#allocation2 + $0xd0] sm:$0xff] %vm273_vm1, %v22920_v4  ;;  %v655_v21 = vld [vmem:[%s19734_s26 + $0x80] sm:$0xff]  ;;  %v656_v22 = vld [vmem:[%s19734_s26 + $0x88] sm:$0xff] }
  0x26   : > { %303 = vst.msk [vmem:[#allocation2 + $0xe0] sm:$0xff] %vm273_vm1, %v22920_v4  ;;  %304 = vst.msk [vmem:[#allocation2 + $0xe8] sm:$0xff] %vm273_vm1, %v22920_v4  ;;  %v657_v23 = vld [vmem:[%s19734_s26 + $0x90] sm:$0xff]  ;;  %v658_v24 = vld [vmem:[%s19734_s26 + $0x98] sm:$0xff] }
  0x27   : > { %305 = vst.msk [vmem:[#allocation2 + $0xf0] sm:$0xff] %vm273_vm1, %v22920_v4  ;;  %306 = vst.msk [vmem:[#allocation2 + $0xf8] sm:$0xff] %vm273_vm1, %v22920_v4  ;;  %v659_v25 = vld [vmem:[%s19734_s26 + $0xa0] sm:$0xff]  ;;  %v660_v26 = vld [vmem:[%s19734_s26 + $0xa8] sm:$0xff] }
  0x28   : > { %307 = vst.msk [vmem:[#allocation2 + $0x100] sm:$0xff] %vm273_vm1, %v22920_v4  ;;  %308 = vst.msk [vmem:[#allocation2 + $0x108] sm:$0xff] %vm273_vm1, %v22920_v4  ;;  %v661_v27 = vld [vmem:[%s19734_s26 + $0xb0] sm:$0xff]  ;;  %v662_v28 = vld [vmem:[%s19734_s26 + $0xb8] sm:$0xff] }
  0x29   : > { %310 = vst.msk [vmem:[#allocation2 + $0x118] sm:$0xff] %vm273_vm1, %v22920_v4  ;;  %311 = vst.msk [vmem:[#allocation2 + $0x120] sm:$0xff] %vm273_vm1, %v22920_v4  ;;  %v663_v53 = vld [vmem:[%s19734_s26 + $0xc0] sm:$0xff]  ;;  %v664_v54 = vld [vmem:[%s19734_s26 + $0xc8] sm:$0xff] }
  0x2a   : > { %312 = vst.msk [vmem:[#allocation2 + $0x128] sm:$0xff] %vm273_vm1, %v22920_v4  ;;  %313 = vst.msk [vmem:[#allocation2 + $0x130] sm:$0xff] %vm273_vm1, %v22920_v4  ;;  %v665_v55 = vld [vmem:[%s19734_s26 + $0xd0] sm:$0xff]  ;;  %v666_v56 = vld [vmem:[%s19734_s26 + $0xd8] sm:$0xff] }
  0x2b   : > { %314 = vst.msk [vmem:[#allocation2 + $0x138] sm:$0xff] %vm273_vm1, %v22920_v4  ;;  %315 = vst.msk [vmem:[#allocation2 + $0x140] sm:$0xff] %vm273_vm1, %v22920_v4  ;;  %v667_v57 = vld [vmem:[%s19734_s26 + $0xe0] sm:$0xff]  ;;  %v668_v58 = vld [vmem:[%s19734_s26 + $0xe8] sm:$0xff] }
  0x2c   : > { %317 = vst.msk [vmem:[#allocation2 + $0x150] sm:$0xff] %vm273_vm1, %v22920_v4  ;;  %318 = vst.msk [vmem:[#allocation2 + $0x158] sm:$0xff] %vm273_vm1, %v22920_v4  ;;  %v669_v59 = vld [vmem:[%s19734_s26 + $0xf0] sm:$0xff]  ;;  %v670_v60 = vld [vmem:[%s19734_s26 + $0xf8] sm:$0xff] }
  0x2d   : > { %319 = vst.msk [vmem:[#allocation2 + $0x160] sm:$0xff] %vm273_vm1, %v22920_v4  ;;  %320 = vst.msk [vmem:[#allocation2 + $0x168] sm:$0xff] %vm273_vm1, %v22920_v4 }
  0x2e   : > { %321 = vst.msk [vmem:[#allocation2 + $0x170] sm:$0xff] %vm273_vm1, %v22920_v4  ;;  %322 = vst.msk [vmem:[#allocation2 + $0x178] sm:$0xff] %vm273_vm1, %v22920_v4 }
  0x2f   : > { %324 = vst.msk [vmem:[#allocation2 + $0x188] sm:$0xff] %vm273_vm1, %v22920_v4  ;;  %325 = vst.msk [vmem:[#allocation2 + $0x190] sm:$0xff] %vm273_vm1, %v22920_v4 }
  0x30   : > { %326 = vst.msk [vmem:[#allocation2 + $0x198] sm:$0xff] %vm273_vm1, %v22920_v4  ;;  %327 = vst.msk [vmem:[#allocation2 + $0x1a0] sm:$0xff] %vm273_vm1, %v22920_v4 }
  0x31   : > { %328 = vst.msk [vmem:[#allocation2 + $0x1a8] sm:$0xff] %vm273_vm1, %v22920_v4  ;;  %329 = vst.msk [vmem:[#allocation2 + $0x1b0] sm:$0xff] %vm273_vm1, %v22920_v4 }
  0x32   : > { %331 = vst.msk [vmem:[#allocation2 + $0x1c0] sm:$0xff] %vm273_vm1, %v22920_v4  ;;  %332 = vst.msk [vmem:[#allocation2 + $0x1c8] sm:$0xff] %vm273_vm1, %v22920_v4 }
  0x33   : > { %333 = vst.msk [vmem:[#allocation2 + $0x1d0] sm:$0xff] %vm273_vm1, %v22920_v4  ;;  %334 = vst.msk [vmem:[#allocation2 + $0x1d8] sm:$0xff] %vm273_vm1, %v22920_v4 }
  0x34   : > { %335 = vst.msk [vmem:[#allocation2 + $0x1e0] sm:$0xff] %vm273_vm1, %v22920_v4  ;;  %336 = vst.msk [vmem:[#allocation2 + $0x1e8] sm:$0xff] %vm273_vm1, %v22920_v4 }
  0x35   : > { %338 = vst.msk [vmem:[#allocation2 + $0x1f8] sm:$0xff] %vm273_vm1, %v22920_v4  ;;  %339 = vst.msk [vmem:[#allocation2 + $0x200] sm:$0xff] %vm273_vm1, %v22920_v4 }
  0x36   : > { %340 = vst.msk [vmem:[#allocation2 + $0x208] sm:$0xff] %vm273_vm1, %v22920_v4  ;;  %341 = vst.msk [vmem:[#allocation2 + $0x210] sm:$0xff] %vm273_vm1, %v22920_v4 }
  0x37   : > { %342 = vst.msk [vmem:[#allocation2 + $0x218] sm:$0xff] %vm273_vm1, %v22920_v4  ;;  %343 = vst.msk [vmem:[#allocation2 + $0x220] sm:$0xff] %vm273_vm1, %v22920_v4 }
  0x38   : > { %345 = vst.msk [vmem:[#allocation2 + $0x230] sm:$0xff] %vm273_vm1, %v22920_v4  ;;  %346 = vst.msk [vmem:[#allocation2 + $0x238] sm:$0xff] %vm273_vm1, %v22920_v4 }
  0x39   : > { %347 = vst.msk [vmem:[#allocation2 + $0x240] sm:$0xff] %vm273_vm1, %v22920_v4  ;;  %348 = vst.msk [vmem:[#allocation2 + $0x248] sm:$0xff] %vm273_vm1, %v22920_v4 }
  0x3a   : > { %349 = vst.msk [vmem:[#allocation2 + $0x250] sm:$0xff] %vm273_vm1, %v22920_v4  ;;  %350 = vst.msk [vmem:[#allocation2 + $0x258] sm:$0xff] %vm273_vm1, %v22920_v4 }
  0x3b   : > { %352 = vst.msk [vmem:[#allocation2 + $0x268] sm:$0xff] %vm273_vm1, %v22920_v4  ;;  %353 = vst.msk [vmem:[#allocation2 + $0x270] sm:$0xff] %vm273_vm1, %v22920_v4 }
  0x3c   : > { %354 = vst.msk [vmem:[#allocation2 + $0x278] sm:$0xff] %vm273_vm1, %v22920_v4  ;;  %355 = vst.msk [vmem:[#allocation2 + $0x280] sm:$0xff] %vm273_vm1, %v22920_v4 }
  0x3d   : > { %356 = vst.msk [vmem:[#allocation2 + $0x288] sm:$0xff] %vm273_vm1, %v22920_v4  ;;  %357 = vst.msk [vmem:[#allocation2 + $0x290] sm:$0xff] %vm273_vm1, %v22920_v4 }
  0x3e   : > { %359 = vst.msk [vmem:[#allocation2 + $0x2a0] sm:$0xff] %vm273_vm1, %v22920_v4  ;;  %360 = vst.msk [vmem:[#allocation2 + $0x2a8] sm:$0xff] %vm273_vm1, %v22920_v4 }
  0x3f   : > { %361 = vst.msk [vmem:[#allocation2 + $0x2b0] sm:$0xff] %vm273_vm1, %v22920_v4  ;;  %362 = vst.msk [vmem:[#allocation2 + $0x2b8] sm:$0xff] %vm273_vm1, %v22920_v4 }
  0x40   : > { %363 = vst.msk [vmem:[#allocation2 + $0x2c0] sm:$0xff] %vm273_vm1, %v22920_v4  ;;  %364 = vst.msk [vmem:[#allocation2 + $0x2c8] sm:$0xff] %vm273_vm1, %v22920_v4 }
  0x41   : > { %366 = vst.msk [vmem:[#allocation2 + $0x2d8] sm:$0xff] %vm273_vm1, %v22920_v4  ;;  %367 = vst.msk [vmem:[#allocation2 + $0x2e0] sm:$0xff] %vm273_vm1, %v22920_v4 }
  0x42   : > { %368 = vst.msk [vmem:[#allocation2 + $0x2e8] sm:$0xff] %vm273_vm1, %v22920_v4  ;;  %369 = vst.msk [vmem:[#allocation2 + $0x2f0] sm:$0xff] %vm273_vm1, %v22920_v4 }
  0x43   : > { %370 = vst.msk [vmem:[#allocation2 + $0x2f8] sm:$0xff] %vm273_vm1, %v22920_v4  ;;  %371 = vst.msk [vmem:[#allocation2 + $0x300] sm:$0xff] %vm273_vm1, %v22920_v4 }
  0x44   : > { %373 = vst.msk [vmem:[#allocation2 + $0x310] sm:$0xff] %vm273_vm1, %v22920_v4  ;;  %374 = vst.msk [vmem:[#allocation2 + $0x318] sm:$0xff] %vm273_vm1, %v22920_v4 }
  0x45   : > { %375 = vst.msk [vmem:[#allocation2 + $0x320] sm:$0xff] %vm273_vm1, %v22920_v4  ;;  %376 = vst.msk [vmem:[#allocation2 + $0x328] sm:$0xff] %vm273_vm1, %v22920_v4 }
  0x46   : > { %377 = vst.msk [vmem:[#allocation2 + $0x330] sm:$0xff] %vm273_vm1, %v22920_v4  ;;  %378 = vst.msk [vmem:[#allocation2 + $0x338] sm:$0xff] %vm273_vm1, %v22920_v4 }
  0x47   : > { %380 = vst.msk [vmem:[#allocation2 + $0x348] sm:$0xff] %vm273_vm1, %v22920_v4  ;;  %381 = vst.msk [vmem:[#allocation2 + $0x350] sm:$0xff] %vm273_vm1, %v22920_v4 }
  0x48   : > { %382 = vst.msk [vmem:[#allocation2 + $0x358] sm:$0xff] %vm273_vm1, %v22920_v4  ;;  %383 = vst.msk [vmem:[#allocation2 + $0x360] sm:$0xff] %vm273_vm1, %v22920_v4 }
  0x49   : > { %384 = vst.msk [vmem:[#allocation2 + $0x368] sm:$0xff] %vm273_vm1, %v22920_v4  ;;  %385 = vst.msk [vmem:[#allocation2 + $0x370] sm:$0xff] %vm273_vm1, %v22920_v4 }
  0x4a   : > { %387 = vst.msk [vmem:[#allocation2 + $0x380] sm:$0xff] %vm273_vm1, %v22920_v4  ;;  %388 = vst.msk [vmem:[#allocation2 + $0x388] sm:$0xff] %vm273_vm1, %v22920_v4 }
  0x4b   : > { %389 = vst.msk [vmem:[#allocation2 + $0x390] sm:$0xff] %vm273_vm1, %v22920_v4  ;;  %390 = vst.msk [vmem:[#allocation2 + $0x398] sm:$0xff] %vm273_vm1, %v22920_v4 }
  0x4c   : > { %391 = vst.msk [vmem:[#allocation2 + $0x3a0] sm:$0xff] %vm273_vm1, %v22920_v4  ;;  %392 = vst.msk [vmem:[#allocation2 + $0x3a8] sm:$0xff] %vm273_vm1, %v22920_v4 }
  0x4d   : > { %394 = vst.msk [vmem:[#allocation2 + $0x3b8] sm:$0xff] %vm273_vm1, %v22920_v4  ;;  %395 = vst.msk [vmem:[#allocation2 + $0x3c0] sm:$0xff] %vm273_vm1, %v22920_v4 }
  0x4e   : > { %396 = vst.msk [vmem:[#allocation2 + $0x3c8] sm:$0xff] %vm273_vm1, %v22920_v4  ;;  %397 = vst.msk [vmem:[#allocation2 + $0x3d0] sm:$0xff] %vm273_vm1, %v22920_v4 }
  0x4f   : > { %398 = vst.msk [vmem:[#allocation2 + $0x3d8] sm:$0xff] %vm273_vm1, %v22920_v4  ;;  %399 = vst.msk [vmem:[#allocation2 + $0x3e0] sm:$0xff] %vm273_vm1, %v22920_v4 }
  0x50   : > { %401 = vst.msk [vmem:[#allocation2 + $0x3f0] sm:$0xff] %vm273_vm1, %v22920_v4  ;;  %402 = vst.msk [vmem:[#allocation2 + $0x3f8] sm:$0xff] %vm273_vm1, %v22920_v4 }
  0x51   : > { %405 = vst.msk [vmem:[#allocation2 + $0x410] sm:$0xff] %vm273_vm1, %v22920_v4  ;;  %406 = vst.msk [vmem:[#allocation2 + $0x418] sm:$0xff] %vm273_vm1, %v22920_v4 }
  0x52   : > { %408 = vst.msk [vmem:[#allocation2 + $0x428] sm:$0xff] %vm273_vm1, %v22920_v4  ;;  %409 = vst.msk [vmem:[#allocation2 + $0x430] sm:$0xff] %vm273_vm1, %v22920_v4 }
  0x53   : > { %410 = vst.msk [vmem:[#allocation2 + $0x438] sm:$0xff] %vm273_vm1, %v22920_v4  ;;  %411 = vst.msk [vmem:[#allocation2 + $0x440] sm:$0xff] %vm273_vm1, %v22920_v4 }
  0x54   : > { %412 = vst.msk [vmem:[#allocation2 + $0x448] sm:$0xff] %vm273_vm1, %v22920_v4  ;;  %413 = vst.msk [vmem:[#allocation2 + $0x450] sm:$0xff] %vm273_vm1, %v22920_v4 }
  0x55   : > { %415 = vst.msk [vmem:[#allocation2 + $0x460] sm:$0xff] %vm273_vm1, %v22920_v4  ;;  %416 = vst.msk [vmem:[#allocation2 + $0x468] sm:$0xff] %vm273_vm1, %v22920_v4 }
  0x56   : > { %417 = vst.msk [vmem:[#allocation2 + $0x470] sm:$0xff] %vm273_vm1, %v22920_v4  ;;  %418 = vst.msk [vmem:[#allocation2 + $0x478] sm:$0xff] %vm273_vm1, %v22920_v4 }
  0x57   : > { %419 = vst.msk [vmem:[#allocation2 + $0x480] sm:$0xff] %vm273_vm1, %v22920_v4  ;;  %420 = vst.msk [vmem:[#allocation2 + $0x488] sm:$0xff] %vm273_vm1, %v22920_v4 }
  0x58   : > { %422 = vst.msk [vmem:[#allocation2 + $0x498] sm:$0xff] %vm273_vm1, %v22920_v4  ;;  %423 = vst.msk [vmem:[#allocation2 + $0x4a0] sm:$0xff] %vm273_vm1, %v22920_v4 }
  0x59   : > { %424 = vst.msk [vmem:[#allocation2 + $0x4a8] sm:$0xff] %vm273_vm1, %v22920_v4  ;;  %425 = vst.msk [vmem:[#allocation2 + $0x4b0] sm:$0xff] %vm273_vm1, %v22920_v4 }
  0x5a   : > { %426 = vst.msk [vmem:[#allocation2 + $0x4b8] sm:$0xff] %vm273_vm1, %v22920_v4  ;;  %427 = vst.msk [vmem:[#allocation2 + $0x4c0] sm:$0xff] %vm273_vm1, %v22920_v4 }
  0x5b   : > { %429 = vst.msk [vmem:[#allocation2 + $0x4d0] sm:$0xff] %vm273_vm1, %v22920_v4  ;;  %430 = vst.msk [vmem:[#allocation2 + $0x4d8] sm:$0xff] %vm273_vm1, %v22920_v4 }
  0x5c   : > { %431 = vst.msk [vmem:[#allocation2 + $0x4e0] sm:$0xff] %vm273_vm1, %v22920_v4  ;;  %432 = vst.msk [vmem:[#allocation2 + $0x4e8] sm:$0xff] %vm273_vm1, %v22920_v4 }
  0x5d   : > { %433 = vst.msk [vmem:[#allocation2 + $0x4f0] sm:$0xff] %vm273_vm1, %v22920_v4  ;;  %434 = vst.msk [vmem:[#allocation2 + $0x4f8] sm:$0xff] %vm273_vm1, %v22920_v4 }
  0x5e   : > { %436 = vst.msk [vmem:[#allocation2 + $0x508] sm:$0xff] %vm273_vm1, %v22920_v4  ;;  %437 = vst.msk [vmem:[#allocation2 + $0x510] sm:$0xff] %vm273_vm1, %v22920_v4 }
  0x5f   : > { %438 = vst.msk [vmem:[#allocation2 + $0x518] sm:$0xff] %vm273_vm1, %v22920_v4  ;;  %439 = vst.msk [vmem:[#allocation2 + $0x520] sm:$0xff] %vm273_vm1, %v22920_v4 }
  0x60   : > { %440 = vst.msk [vmem:[#allocation2 + $0x528] sm:$0xff] %vm273_vm1, %v22920_v4  ;;  %441 = vst.msk [vmem:[#allocation2 + $0x530] sm:$0xff] %vm273_vm1, %v22920_v4 }
  0x61   : > { %443 = vst.msk [vmem:[#allocation2 + $0x540] sm:$0xff] %vm273_vm1, %v22920_v4  ;;  %444 = vst.msk [vmem:[#allocation2 + $0x548] sm:$0xff] %vm273_vm1, %v22920_v4 }
  0x62   : > { %445 = vst.msk [vmem:[#allocation2 + $0x550] sm:$0xff] %vm273_vm1, %v22920_v4  ;;  %446 = vst.msk [vmem:[#allocation2 + $0x558] sm:$0xff] %vm273_vm1, %v22920_v4 }
  0x63   : > { %447 = vst.msk [vmem:[#allocation2 + $0x560] sm:$0xff] %vm273_vm1, %v22920_v4  ;;  %448 = vst.msk [vmem:[#allocation2 + $0x568] sm:$0xff] %vm273_vm1, %v22920_v4 }
  0x64   : > { %450 = vst.msk [vmem:[#allocation2 + $0x578] sm:$0xff] %vm273_vm1, %v22920_v4  ;;  %451 = vst.msk [vmem:[#allocation2 + $0x580] sm:$0xff] %vm273_vm1, %v22920_v4 }
  0x65   : > { %452 = vst.msk [vmem:[#allocation2 + $0x588] sm:$0xff] %vm273_vm1, %v22920_v4  ;;  %453 = vst.msk [vmem:[#allocation2 + $0x590] sm:$0xff] %vm273_vm1, %v22920_v4 }
  0x66   : > { %454 = vst.msk [vmem:[#allocation2 + $0x598] sm:$0xff] %vm273_vm1, %v22920_v4  ;;  %455 = vst.msk [vmem:[#allocation2 + $0x5a0] sm:$0xff] %vm273_vm1, %v22920_v4 }
  0x67   : > { %457 = vst.msk [vmem:[#allocation2 + $0x5b0] sm:$0xff] %vm273_vm1, %v22920_v4  ;;  %458 = vst.msk [vmem:[#allocation2 + $0x5b8] sm:$0xff] %vm273_vm1, %v22920_v4 }
  0x68   : > { %459 = vst.msk [vmem:[#allocation2 + $0x5c0] sm:$0xff] %vm273_vm1, %v22920_v4  ;;  %460 = vst.msk [vmem:[#allocation2 + $0x5c8] sm:$0xff] %vm273_vm1, %v22920_v4 }
  0x69   : > { %461 = vst.msk [vmem:[#allocation2 + $0x5d0] sm:$0xff] %vm273_vm1, %v22920_v4  ;;  %462 = vst.msk [vmem:[#allocation2 + $0x5d8] sm:$0xff] %vm273_vm1, %v22920_v4 }
  0x6a   : > { %464 = vst.msk [vmem:[#allocation2 + $0x5e8] sm:$0xff] %vm273_vm1, %v22920_v4  ;;  %465 = vst.msk [vmem:[#allocation2 + $0x5f0] sm:$0xff] %vm273_vm1, %v22920_v4 }
  0x6b   : > { %466 = vst.msk [vmem:[#allocation2 + $0x5f8] sm:$0xff] %vm273_vm1, %v22920_v4  ;;  %467 = vst.msk [vmem:[#allocation2 + $0x600] sm:$0xff] %vm273_vm1, %v22920_v4 }
  0x6c   : > { %468 = vst.msk [vmem:[#allocation2 + $0x608] sm:$0xff] %vm273_vm1, %v22920_v4  ;;  %469 = vst.msk [vmem:[#allocation2 + $0x610] sm:$0xff] %vm273_vm1, %v22920_v4 }
  0x6d   : > { %471 = vst.msk [vmem:[#allocation2 + $0x620] sm:$0xff] %vm273_vm1, %v22920_v4  ;;  %472 = vst.msk [vmem:[#allocation2 + $0x628] sm:$0xff] %vm273_vm1, %v22920_v4 }
  0x6e   : > { %473 = vst.msk [vmem:[#allocation2 + $0x630] sm:$0xff] %vm273_vm1, %v22920_v4  ;;  %474 = vst.msk [vmem:[#allocation2 + $0x638] sm:$0xff] %vm273_vm1, %v22920_v4 }
  0x6f   : > { %475 = vst.msk [vmem:[#allocation2 + $0x640] sm:$0xff] %vm273_vm1, %v22920_v4  ;;  %476 = vst.msk [vmem:[#allocation2 + $0x648] sm:$0xff] %vm273_vm1, %v22920_v4 }
  0x70   : > { %478 = vst.msk [vmem:[#allocation2 + $0x658] sm:$0xff] %vm273_vm1, %v22920_v4  ;;  %479 = vst.msk [vmem:[#allocation2 + $0x660] sm:$0xff] %vm273_vm1, %v22920_v4 }
  0x71   : > { %480 = vst.msk [vmem:[#allocation2 + $0x668] sm:$0xff] %vm273_vm1, %v22920_v4  ;;  %481 = vst.msk [vmem:[#allocation2 + $0x670] sm:$0xff] %vm273_vm1, %v22920_v4 }
  0x72   : > { %482 = vst.msk [vmem:[#allocation2 + $0x678] sm:$0xff] %vm273_vm1, %v22920_v4  ;;  %483 = vst.msk [vmem:[#allocation2 + $0x680] sm:$0xff] %vm273_vm1, %v22920_v4 }
  0x73   : > { %485 = vst.msk [vmem:[#allocation2 + $0x690] sm:$0xff] %vm273_vm1, %v22920_v4  ;;  %486 = vst.msk [vmem:[#allocation2 + $0x698] sm:$0xff] %vm273_vm1, %v22920_v4 }
  0x74   : > { %487 = vst.msk [vmem:[#allocation2 + $0x6a0] sm:$0xff] %vm273_vm1, %v22920_v4  ;;  %488 = vst.msk [vmem:[#allocation2 + $0x6a8] sm:$0xff] %vm273_vm1, %v22920_v4 }
  0x75   : > { %489 = vst.msk [vmem:[#allocation2 + $0x6b0] sm:$0xff] %vm273_vm1, %v22920_v4  ;;  %490 = vst.msk [vmem:[#allocation2 + $0x6b8] sm:$0xff] %vm273_vm1, %v22920_v4 }
  0x76   : > { %492 = vst.msk [vmem:[#allocation2 + $0x6c8] sm:$0xff] %vm273_vm1, %v22920_v4  ;;  %493 = vst.msk [vmem:[#allocation2 + $0x6d0] sm:$0xff] %vm273_vm1, %v22920_v4 }
  0x77   : > { %494 = vst.msk [vmem:[#allocation2 + $0x6d8] sm:$0xff] %vm273_vm1, %v22920_v4  ;;  %495 = vst.msk [vmem:[#allocation2 + $0x6e0] sm:$0xff] %vm273_vm1, %v22920_v4 }
  0x78   : > { %496 = vst.msk [vmem:[#allocation2 + $0x6e8] sm:$0xff] %vm273_vm1, %v22920_v4  ;;  %497 = vst.msk [vmem:[#allocation2 + $0x6f0] sm:$0xff] %vm273_vm1, %v22920_v4 }
  0x79   : > { %499 = vst.msk [vmem:[#allocation2 + $0x700] sm:$0xff] %vm273_vm1, %v22920_v4  ;;  %500 = vst.msk [vmem:[#allocation2 + $0x708] sm:$0xff] %vm273_vm1, %v22920_v4 }
  0x7a   : > { %501 = vst.msk [vmem:[#allocation2 + $0x710] sm:$0xff] %vm273_vm1, %v22920_v4  ;;  %502 = vst.msk [vmem:[#allocation2 + $0x718] sm:$0xff] %vm273_vm1, %v22920_v4 }
  0x7b   : > { %503 = vst.msk [vmem:[#allocation2 + $0x720] sm:$0xff] %vm273_vm1, %v22920_v4  ;;  %504 = vst.msk [vmem:[#allocation2 + $0x728] sm:$0xff] %vm273_vm1, %v22920_v4 }
  0x7c   : > { %506 = vst.msk [vmem:[#allocation2 + $0x738] sm:$0xff] %vm273_vm1, %v22920_v4  ;;  %507 = vst.msk [vmem:[#allocation2 + $0x740] sm:$0xff] %vm273_vm1, %v22920_v4 }
  0x7d   : > { %508 = vst.msk [vmem:[#allocation2 + $0x748] sm:$0xff] %vm273_vm1, %v22920_v4  ;;  %509 = vst.msk [vmem:[#allocation2 + $0x750] sm:$0xff] %vm273_vm1, %v22920_v4 }
  0x7e   : > { %510 = vst.msk [vmem:[#allocation2 + $0x758] sm:$0xff] %vm273_vm1, %v22920_v4  ;;  %511 = vst.msk [vmem:[#allocation2 + $0x760] sm:$0xff] %vm273_vm1, %v22920_v4 }
  0x7f   : > { %513 = vst.msk [vmem:[#allocation2 + $0x770] sm:$0xff] %vm273_vm1, %v22920_v4  ;;  %514 = vst.msk [vmem:[#allocation2 + $0x778] sm:$0xff] %vm273_vm1, %v22920_v4 }
  0x80   : > { %515 = vst.msk [vmem:[#allocation2 + $0x780] sm:$0xff] %vm273_vm1, %v22920_v4  ;;  %516 = vst.msk [vmem:[#allocation2 + $0x788] sm:$0xff] %vm273_vm1, %v22920_v4 }
  0x81   : > { %517 = vst.msk [vmem:[#allocation2 + $0x790] sm:$0xff] %vm273_vm1, %v22920_v4  ;;  %518 = vst.msk [vmem:[#allocation2 + $0x798] sm:$0xff] %vm273_vm1, %v22920_v4 }
  0x82   : > { %520 = vst.msk [vmem:[#allocation2 + $0x7a8] sm:$0xff] %vm273_vm1, %v22920_v4  ;;  %521 = vst.msk [vmem:[#allocation2 + $0x7b0] sm:$0xff] %vm273_vm1, %v22920_v4 }
  0x83   : > { %522 = vst.msk [vmem:[#allocation2 + $0x7b8] sm:$0xff] %vm273_vm1, %v22920_v4  ;;  %523 = vst.msk [vmem:[#allocation2 + $0x7c0] sm:$0xff] %vm273_vm1, %v22920_v4 }
  0x84   : > { %524 = vst.msk [vmem:[#allocation2 + $0x7c8] sm:$0xff] %vm273_vm1, %v22920_v4  ;;  %525 = vst.msk [vmem:[#allocation2 + $0x7d0] sm:$0xff] %vm273_vm1, %v22920_v4 }
  0x85   : > { %527 = vst.msk [vmem:[#allocation2 + $0x7e0] sm:$0xff] %vm273_vm1, %v22920_v4  ;;  %528 = vst.msk [vmem:[#allocation2 + $0x7e8] sm:$0xff] %vm273_vm1, %v22920_v4 }
  0x86   : > { %529 = vst.msk [vmem:[#allocation2 + $0x7f0] sm:$0xff] %vm273_vm1, %v22920_v4  ;;  %530 = vst.msk [vmem:[#allocation2 + $0x7f8] sm:$0xff] %vm273_vm1, %v22920_v4 }
  0x87   : > { %531 = vst.msk [vmem:[#allocation2 + $0x800] sm:$0xff] %vm273_vm1, %v22920_v4  ;;  %532 = vst.msk [vmem:[#allocation2 + $0x808] sm:$0xff] %vm273_vm1, %v22920_v4 }
  0x88   : > { %534 = vst.msk [vmem:[#allocation2 + $0x818] sm:$0xff] %vm273_vm1, %v22920_v4  ;;  %535 = vst.msk [vmem:[#allocation2 + $0x820] sm:$0xff] %vm273_vm1, %v22920_v4 }
  0x89   : > { %536 = vst.msk [vmem:[#allocation2 + $0x828] sm:$0xff] %vm273_vm1, %v22920_v4  ;;  %537 = vst.msk [vmem:[#allocation2 + $0x830] sm:$0xff] %vm273_vm1, %v22920_v4 }
  0x8a   : > { %538 = vst.msk [vmem:[#allocation2 + $0x838] sm:$0xff] %vm273_vm1, %v22920_v4  ;;  %539 = vst.msk [vmem:[#allocation2 + $0x840] sm:$0xff] %vm273_vm1, %v22920_v4 }
  0x8b   : > { %541 = vst.msk [vmem:[#allocation2 + $0x850] sm:$0xff] %vm273_vm1, %v22920_v4  ;;  %542 = vst.msk [vmem:[#allocation2 + $0x858] sm:$0xff] %vm273_vm1, %v22920_v4 }
  0x8c   : > { %543 = vst.msk [vmem:[#allocation2 + $0x860] sm:$0xff] %vm273_vm1, %v22920_v4  ;;  %544 = vst.msk [vmem:[#allocation2 + $0x868] sm:$0xff] %vm273_vm1, %v22920_v4 }
  0x8d   : > { %545 = vst.msk [vmem:[#allocation2 + $0x870] sm:$0xff] %vm273_vm1, %v22920_v4  ;;  %546 = vst.msk [vmem:[#allocation2 + $0x878] sm:$0xff] %vm273_vm1, %v22920_v4 }
  0x8e   : > { %548 = vst.msk [vmem:[#allocation2 + $0x888] sm:$0xff] %vm273_vm1, %v22920_v4  ;;  %549 = vst.msk [vmem:[#allocation2 + $0x890] sm:$0xff] %vm273_vm1, %v22920_v4 }
  0x8f   : > { %550 = vst.msk [vmem:[#allocation2 + $0x898] sm:$0xff] %vm273_vm1, %v22920_v4  ;;  %551 = vst.msk [vmem:[#allocation2 + $0x8a0] sm:$0xff] %vm273_vm1, %v22920_v4 }
  0x90   : > { %552 = vst.msk [vmem:[#allocation2 + $0x8a8] sm:$0xff] %vm273_vm1, %v22920_v4  ;;  %553 = vst.msk [vmem:[#allocation2 + $0x8b0] sm:$0xff] %vm273_vm1, %v22920_v4 }
  0x91   : > { %555 = vst.msk [vmem:[#allocation2 + $0x8c0] sm:$0xff] %vm273_vm1, %v22920_v4  ;;  %556 = vst.msk [vmem:[#allocation2 + $0x8c8] sm:$0xff] %vm273_vm1, %v22920_v4 }
  0x92   : > { %557 = vst.msk [vmem:[#allocation2 + $0x8d0] sm:$0xff] %vm273_vm1, %v22920_v4  ;;  %558 = vst.msk [vmem:[#allocation2 + $0x8d8] sm:$0xff] %vm273_vm1, %v22920_v4 }
  0x93   : > { %559 = vst.msk [vmem:[#allocation2 + $0x8e0] sm:$0xff] %vm273_vm1, %v22920_v4  ;;  %560 = vst.msk [vmem:[#allocation2 + $0x8e8] sm:$0xff] %vm273_vm1, %v22920_v4 }
  0x94   : > { %562 = vst.msk [vmem:[#allocation2 + $0x8f8] sm:$0xff] %vm273_vm1, %v22920_v4  ;;  %563 = vst.msk [vmem:[#allocation2 + $0x900] sm:$0xff] %vm273_vm1, %v22920_v4 }
  0x95   : > { %564 = vst.msk [vmem:[#allocation2 + $0x908] sm:$0xff] %vm273_vm1, %v22920_v4  ;;  %565 = vst.msk [vmem:[#allocation2 + $0x910] sm:$0xff] %vm273_vm1, %v22920_v4 }
  0x96   : > { %566 = vst.msk [vmem:[#allocation2 + $0x918] sm:$0xff] %vm273_vm1, %v22920_v4  ;;  %567 = vst.msk [vmem:[#allocation2 + $0x920] sm:$0xff] %vm273_vm1, %v22920_v4 }
  0x97   : > { %569 = vst.msk [vmem:[#allocation2 + $0x930] sm:$0xff] %vm273_vm1, %v22920_v4  ;;  %570 = vst.msk [vmem:[#allocation2 + $0x938] sm:$0xff] %vm273_vm1, %v22920_v4 }
  0x98   : > { %571 = vst.msk [vmem:[#allocation2 + $0x940] sm:$0xff] %vm273_vm1, %v22920_v4  ;;  %572 = vst.msk [vmem:[#allocation2 + $0x948] sm:$0xff] %vm273_vm1, %v22920_v4 }
  0x99   : > { %573 = vst.msk [vmem:[#allocation2 + $0x950] sm:$0xff] %vm273_vm1, %v22920_v4  ;;  %574 = vst.msk [vmem:[#allocation2 + $0x958] sm:$0xff] %vm273_vm1, %v22920_v4 }
  0x9a   : > { %576 = vst.msk [vmem:[#allocation2 + $0x968] sm:$0xff] %vm273_vm1, %v22920_v4  ;;  %577 = vst.msk [vmem:[#allocation2 + $0x970] sm:$0xff] %vm273_vm1, %v22920_v4 }
  0x9b   : > { %578 = vst.msk [vmem:[#allocation2 + $0x978] sm:$0xff] %vm273_vm1, %v22920_v4  ;;  %579 = vst.msk [vmem:[#allocation2 + $0x980] sm:$0xff] %vm273_vm1, %v22920_v4 }
  0x9c   : > { %580 = vst.msk [vmem:[#allocation2 + $0x988] sm:$0xff] %vm273_vm1, %v22920_v4  ;;  %581 = vst.msk [vmem:[#allocation2 + $0x990] sm:$0xff] %vm273_vm1, %v22920_v4 }
  0x9d   : > { %583 = vst.msk [vmem:[#allocation2 + $0x9a0] sm:$0xff] %vm273_vm1, %v22920_v4  ;;  %584 = vst.msk [vmem:[#allocation2 + $0x9a8] sm:$0xff] %vm273_vm1, %v22920_v4 }
  0x9e   : > { %585 = vst.msk [vmem:[#allocation2 + $0x9b0] sm:$0xff] %vm273_vm1, %v22920_v4  ;;  %586 = vst.msk [vmem:[#allocation2 + $0x9b8] sm:$0xff] %vm273_vm1, %v22920_v4 }
  0x9f   : > { %587 = vst.msk [vmem:[#allocation2 + $0x9c0] sm:$0xff] %vm273_vm1, %v22920_v4  ;;  %588 = vst.msk [vmem:[#allocation2 + $0x9c8] sm:$0xff] %vm273_vm1, %v22920_v4 }
  0xa0   : > { %590 = vst.msk [vmem:[#allocation2 + $0x9d8] sm:$0xff] %vm273_vm1, %v22920_v4  ;;  %591 = vst.msk [vmem:[#allocation2 + $0x9e0] sm:$0xff] %vm273_vm1, %v22920_v4 }
  0xa1   : > { %592 = vst.msk [vmem:[#allocation2 + $0x9e8] sm:$0xff] %vm273_vm1, %v22920_v4  ;;  %593 = vst.msk [vmem:[#allocation2 + $0x9f0] sm:$0xff] %vm273_vm1, %v22920_v4 }
  0xa2   : > { %594 = vst.msk [vmem:[#allocation2 + $0x9f8] sm:$0xff] %vm273_vm1, %v22920_v4  ;;  %595 = vst.msk [vmem:[#allocation2 + $0xa00] sm:$0xff] %vm273_vm1, %v22920_v4 }
  0xa3   : > { %597 = vst.msk [vmem:[#allocation2 + $0xa10] sm:$0xff] %vm273_vm1, %v22920_v4  ;;  %598 = vst.msk [vmem:[#allocation2 + $0xa18] sm:$0xff] %vm273_vm1, %v22920_v4 }
  0xa4   : > { %599 = vst.msk [vmem:[#allocation2 + $0xa20] sm:$0xff] %vm273_vm1, %v22920_v4  ;;  %600 = vst.msk [vmem:[#allocation2 + $0xa28] sm:$0xff] %vm273_vm1, %v22920_v4 }
  0xa5   : > { %601 = vst.msk [vmem:[#allocation2 + $0xa30] sm:$0xff] %vm273_vm1, %v22920_v4  ;;  %602 = vst.msk [vmem:[#allocation2 + $0xa38] sm:$0xff] %vm273_vm1, %v22920_v4 }
  0xa6   : > { %604 = vst.msk [vmem:[#allocation2 + $0xa48] sm:$0xff] %vm273_vm1, %v22920_v4  ;;  %605 = vst.msk [vmem:[#allocation2 + $0xa50] sm:$0xff] %vm273_vm1, %v22920_v4 }
  0xa7   : > { %606 = vst.msk [vmem:[#allocation2 + $0xa58] sm:$0xff] %vm273_vm1, %v22920_v4  ;;  %607 = vst.msk [vmem:[#allocation2 + $0xa60] sm:$0xff] %vm273_vm1, %v22920_v4 }
  0xa8   : > { %608 = vst.msk [vmem:[#allocation2 + $0xa68] sm:$0xff] %vm273_vm1, %v22920_v4  ;;  %609 = vst.msk [vmem:[#allocation2 + $0xa70] sm:$0xff] %vm273_vm1, %v22920_v4 }
  0xa9   : > { %611 = vst.msk [vmem:[#allocation2 + $0xa80] sm:$0xff] %vm273_vm1, %v22920_v4  ;;  %612 = vst.msk [vmem:[#allocation2 + $0xa88] sm:$0xff] %vm273_vm1, %v22920_v4 }
  0xaa   : > { %613 = vst.msk [vmem:[#allocation2 + $0xa90] sm:$0xff] %vm273_vm1, %v22920_v4  ;;  %614 = vst.msk [vmem:[#allocation2 + $0xa98] sm:$0xff] %vm273_vm1, %v22920_v4 }
  0xab   : > { %615 = vst.msk [vmem:[#allocation2 + $0xaa0] sm:$0xff] %vm273_vm1, %v22920_v4  ;;  %616 = vst.msk [vmem:[#allocation2 + $0xaa8] sm:$0xff] %vm273_vm1, %v22920_v4 }
  0xac   : > { %618 = vst.msk [vmem:[#allocation2 + $0xab8] sm:$0xff] %vm273_vm1, %v22920_v4  ;;  %619 = vst.msk [vmem:[#allocation2 + $0xac0] sm:$0xff] %vm273_vm1, %v22920_v4 }
  0xad   : > { %620 = vst.msk [vmem:[#allocation2 + $0xac8] sm:$0xff] %vm273_vm1, %v22920_v4  ;;  %621 = vst.msk [vmem:[#allocation2 + $0xad0] sm:$0xff] %vm273_vm1, %v22920_v4 }
  0xae   : > { %622 = vst.msk [vmem:[#allocation2 + $0xad8] sm:$0xff] %vm273_vm1, %v22920_v4  ;;  %623 = vst.msk [vmem:[#allocation2 + $0xae0] sm:$0xff] %vm273_vm1, %v22920_v4 }
  0xaf   : > { %625 = vst.msk [vmem:[#allocation2 + $0xaf0] sm:$0xff] %vm273_vm1, %v22920_v4  ;;  %626 = vst.msk [vmem:[#allocation2 + $0xaf8] sm:$0xff] %vm273_vm1, %v22920_v4 }
  0xb0   : > { %627 = vst.msk [vmem:[#allocation2 + $0xb00] sm:$0xff] %vm273_vm1, %v22920_v4  ;;  %628 = vst.msk [vmem:[#allocation2 + $0xb08] sm:$0xff] %vm273_vm1, %v22920_v4 }
  0xb1   : > { %629 = vst.msk [vmem:[#allocation2 + $0xb10] sm:$0xff] %vm273_vm1, %v22920_v4  ;;  %630 = vst.msk [vmem:[#allocation2 + $0xb18] sm:$0xff] %vm273_vm1, %v22920_v4 }
  0xb2   : > { %632 = vst.msk [vmem:[#allocation2 + $0xb28] sm:$0xff] %vm273_vm1, %v22920_v4  ;;  %633 = vst.msk [vmem:[#allocation2 + $0xb30] sm:$0xff] %vm273_vm1, %v22920_v4 }
  0xb3   : > { %634 = vst.msk [vmem:[#allocation2 + $0xb38] sm:$0xff] %vm273_vm1, %v22920_v4  ;;  %635 = vst.msk [vmem:[#allocation2 + $0xb40] sm:$0xff] %vm273_vm1, %v22920_v4 }
  0xb4   : > { %636 = vst.msk [vmem:[#allocation2 + $0xb48] sm:$0xff] %vm273_vm1, %v22920_v4  ;;  %637 = vst.msk [vmem:[#allocation2 + $0xb50] sm:$0xff] %vm273_vm1, %v22920_v4 }
  0xb5   : > { %672 = vst.msk [vmem:[#allocation2 + $0x402] sm:$0xff] %vm273_vm1, %v639_v5  ;;  %673 = vst.msk [vmem:[#allocation2 + $0x40a] sm:$0xff] %vm273_vm1, %v640_v6 }
  0xb6   : > { %674 = vst.msk [vmem:[#allocation2 + $0x43a] sm:$0xff] %vm273_vm1, %v641_v7  ;;  %675 = vst.msk [vmem:[#allocation2 + $0x442] sm:$0xff] %vm273_vm1, %v642_v8 }
  0xb7   : > { %676 = vst.msk [vmem:[#allocation2 + $0x472] sm:$0xff] %vm273_vm1, %v643_v9  ;;  %677 = vst.msk [vmem:[#allocation2 + $0x47a] sm:$0xff] %vm273_vm1, %v644_v10 }
  0xb8   : > { %678 = vst.msk [vmem:[#allocation2 + $0x4aa] sm:$0xff] %vm273_vm1, %v645_v11  ;;  %679 = vst.msk [vmem:[#allocation2 + $0x4b2] sm:$0xff] %vm273_vm1, %v646_v12 }
  0xb9   : > { %680 = vst.msk [vmem:[#allocation2 + $0x4e2] sm:$0xff] %vm273_vm1, %v647_v13  ;;  %681 = vst.msk [vmem:[#allocation2 + $0x4ea] sm:$0xff] %vm273_vm1, %v648_v14 }
  0xba   : > { %682 = vst.msk [vmem:[#allocation2 + $0x51a] sm:$0xff] %vm273_vm1, %v649_v15  ;;  %683 = vst.msk [vmem:[#allocation2 + $0x522] sm:$0xff] %vm273_vm1, %v650_v16 }
  0xbb   : > { %684 = vst.msk [vmem:[#allocation2 + $0x552] sm:$0xff] %vm273_vm1, %v651_v17  ;;  %685 = vst.msk [vmem:[#allocation2 + $0x55a] sm:$0xff] %vm273_vm1, %v652_v18 }
  0xbc   : > { %686 = vst.msk [vmem:[#allocation2 + $0x58a] sm:$0xff] %vm273_vm1, %v653_v19  ;;  %687 = vst.msk [vmem:[#allocation2 + $0x592] sm:$0xff] %vm273_vm1, %v654_v20  ;;  %v19781_v29 = vld [vmem:[#allocation2 + $0x401] sm:$0xff]  ;;  %v19785_v31 = vld [vmem:[#allocation2 + $0x409] sm:$0xff] }
  0xbd   : > { %688 = vst.msk [vmem:[#allocation2 + $0x5c2] sm:$0xff] %vm273_vm1, %v655_v21  ;;  %689 = vst.msk [vmem:[#allocation2 + $0x5ca] sm:$0xff] %vm273_vm1, %v656_v22  ;;  %v19783_v30 = vld [vmem:[#allocation2 + $0x3fc] sm:$0xff]  ;;  %15954 = vmatprep.mubr.msk.f32.mxu0 %vm273_vm1, %v19781_v29  ;;  %v19794_v32 = vld [vmem:[#allocation2 + $0x404] sm:$0xff] }
  0xbe   : > { %690 = vst.msk [vmem:[#allocation2 + $0x5fa] sm:$0xff] %vm273_vm1, %v657_v23  ;;  %691 = vst.msk [vmem:[#allocation2 + $0x602] sm:$0xff] %vm273_vm1, %v658_v24  ;;  %16404 = vmatprep.mubr.msk.f32.mxu1 %vm273_vm1, %v19783_v30  ;;  %v19796_v33 = vld [vmem:[#allocation2 + $0x439] sm:$0xff]  ;;  %15955 = vmatmul.mubr.msk.f32.vlgmr.msra.gmra.mrb[0].mxu0 %vm273_vm1, %v19785_v31  ;;  %v19818_v37 = vld [vmem:[#allocation2 + $0x441] sm:$0xff] }
  0xbf   : > { %692 = vst.msk [vmem:[#allocation2 + $0x632] sm:$0xff] %vm273_vm1, %v659_v25  ;;  %693 = vst.msk [vmem:[#allocation2 + $0x63a] sm:$0xff] %vm273_vm1, %v660_v26  ;;  %v19798_v34 = vld [vmem:[#allocation2 + $0x434] sm:$0xff]  ;;  %16405 = vmatmul.mubr.msk.f32.vlgmr.msra.gmra.mrb[0].mxu1 %vm273_vm1, %v19794_v32  ;;  %16003 = vmatpush3.msk.msra.mxu0 %vm839_vm0, %v19087_v2  ;;  %v19820_v38 = vld [vmem:[#allocation2 + $0x43c] sm:$0xff] }
  0xc0   : > { %694 = vst.msk [vmem:[#allocation2 + $0x66a] sm:$0xff] %vm273_vm1, %v661_v27  ;;  %695 = vst.msk [vmem:[#allocation2 + $0x672] sm:$0xff] %vm273_vm1, %v662_v28  ;;  %15957 = vmatprep.mubr.msk.f32.mxu0 %vm273_vm1, %v19796_v33  ;;  %16407 = vmatprep.mubr.msk.f32.mxu1 %vm273_vm1, %v19798_v34  ;;  %v19826_v39 = vld [vmem:[#allocation2 + $0x471] sm:$0xff]  ;;  %v19842_v41 = vld [vmem:[#allocation2 + $0x479] sm:$0xff] }
  0xc1   : > { %16453 = vmatpush3.msk.msra.mxu1 %vm839_vm0, %v19092_v3  ;;  %v19828_v40 = vld [vmem:[#allocation2 + $0x46c] sm:$0xff]  ;;  %16052 = vmatprep.subr.msk.mxu0 %vm839_vm0, %v19807_v35  ;;  %v19844_v42 = vld [vmem:[#allocation2 + $0x474] sm:$0xff]  ;;  %v19848_v44 = vld [vmem:[#allocation2 + $0x4a4] sm:$0xff]  ;;  %696 = vst.msk [vmem:[#allocation2 + $0x6a2] sm:$0xff] %vm273_vm1, %v663_v53 }
  0xc2   : > { %16502 = vmatprep.subr.msk.mxu1 %vm839_vm0, %v19812_v36  ;;  %15958 = vmatmul.mubr.msk.f32.gmra.mrb[2].mxu0 %vm273_vm1, %v19818_v37  ;;  %v19846_v43 = vld [vmem:[#allocation2 + $0x4a9] sm:$0xff]  ;;  %v19858_v45 = vld [vmem:[#allocation2 + $0x4b1] sm:$0xff]  ;;  %v19862_v47 = vld [vmem:[#allocation2 + $0x4e1] sm:$0xff]  ;;  %697 = vst.msk [vmem:[#allocation2 + $0x6aa] sm:$0xff] %vm273_vm1, %v664_v54 }
  0xc3   : > { %16408 = vmatmul.mubr.msk.f32.gmra.mrb[2].mxu1 %vm273_vm1, %v19820_v38  ;;  %15960 = vmatprep.mubr.msk.f32.mxu0 %vm273_vm1, %v19826_v39  ;;  %v19860_v46 = vld [vmem:[#allocation2 + $0x4ac] sm:$0xff]  ;;  %v19864_v48 = vld [vmem:[#allocation2 + $0x4dc] sm:$0xff]  ;;  %v19876_v50 = vld [vmem:[#allocation2 + $0x4e4] sm:$0xff]  ;;  %698 = vst.msk [vmem:[#allocation2 + $0x6da] sm:$0xff] %vm273_vm1, %v665_v55 }
  0xc4   : > { %16410 = vmatprep.mubr.msk.f32.mxu1 %vm273_vm1, %v19828_v40  ;;  %v19870_v49 = vld [vmem:[#allocation2 + $0x4e9] sm:$0xff]  ;;  %v19878_v51 = vld [vmem:[#allocation2 + $0x519] sm:$0xff]  ;;  %699 = vst.msk [vmem:[#allocation2 + $0x6e2] sm:$0xff] %vm273_vm1, %v666_v56  ;;  %700 = vst.msk [vmem:[#allocation2 + $0x712] sm:$0xff] %vm273_vm1, %v667_v57 }
  0xc5   : > { %v19880_v52 = vld [vmem:[#allocation2 + $0x514] sm:$0xff]  ;;  %701 = vst.msk [vmem:[#allocation2 + $0x71a] sm:$0xff] %vm273_vm1, %v668_v58  ;;  %v19904_v61 = vld [vmem:[#allocation2 + $0x521] sm:$0xff]  ;;  %702 = vst.msk [vmem:[#allocation2 + $0x74a] sm:$0xff] %vm273_vm1, %v669_v59 }
  0xc6   : > { %15961 = vmatmul.mubr.msk.f32.gmra.mrb[4].mxu0 %vm273_vm1, %v19842_v41  ;;  %v19906_v62 = vld [vmem:[#allocation2 + $0x51c] sm:$0xff]  ;;  %703 = vst.msk [vmem:[#allocation2 + $0x752] sm:$0xff] %vm273_vm1, %v670_v60  ;;  %v19910_v63 = vld [vmem:[#allocation2 + $0x551] sm:$0xff]  ;;  %v19926_v3 = vld [vmem:[#allocation2 + $0x589] sm:$0xff] }
  0xc7   : > { %16411 = vmatmul.mubr.msk.f32.gmra.mrb[4].mxu1 %vm273_vm1, %v19844_v42  ;;  %15963 = vmatprep.mubr.msk.f32.mxu0 %vm273_vm1, %v19846_v43  ;;  %v19912_v0 = vld [vmem:[#allocation2 + $0x54c] sm:$0xff]  ;;  %v19922_v1 = vld [vmem:[#allocation2 + $0x559] sm:$0xff]  ;;  %v19928_v5 = vld [vmem:[#allocation2 + $0x584] sm:$0xff] }
  0xc8   : > { %16413 = vmatprep.mubr.msk.f32.mxu1 %vm273_vm1, %v19848_v44  ;;  %v19924_v2 = vld [vmem:[#allocation2 + $0x554] sm:$0xff]  ;;  %v19940_v7 = vld [vmem:[#allocation2 + $0x58c] sm:$0xff]  ;;  %v19942_v8 = vld [vmem:[#allocation2 + $0x5c1] sm:$0xff] }
  0xc9   : > { %v19938_v6 = vld [vmem:[#allocation2 + $0x591] sm:$0xff]  ;;  %v19944_v9 = vld [vmem:[#allocation2 + $0x5bc] sm:$0xff]  ;;  %v19954_v10 = vld [vmem:[#allocation2 + $0x5c9] sm:$0xff] }
  0xca   : > { %15964 = vmatmul.mubr.msk.f32.gmra.mrb[6].mxu0 %vm273_vm1, %v19858_v45  ;;  %v19956_v11 = vld [vmem:[#allocation2 + $0x5c4] sm:$0xff]  ;;  %v19958_v12 = vld [vmem:[#allocation2 + $0x5f9] sm:$0xff]  ;;  %v19974_v16 = vld [vmem:[#allocation2 + $0x631] sm:$0xff] }
  0xcb   : > { %16414 = vmatmul.mubr.msk.f32.gmra.mrb[6].mxu1 %vm273_vm1, %v19860_v46  ;;  %15966 = vmatprep.mubr.msk.f32.mxu0 %vm273_vm1, %v19862_v47  ;;  %v19960_v13 = vld [vmem:[#allocation2 + $0x5f4] sm:$0xff]  ;;  %v19970_v14 = vld [vmem:[#allocation2 + $0x601] sm:$0xff]  ;;  %v19976_v17 = vld [vmem:[#allocation2 + $0x62c] sm:$0xff] }
  0xcc   : > { %16416 = vmatprep.mubr.msk.f32.mxu1 %vm273_vm1, %v19864_v48  ;;  %v19972_v15 = vld [vmem:[#allocation2 + $0x5fc] sm:$0xff]  ;;  %v19988_v19 = vld [vmem:[#allocation2 + $0x634] sm:$0xff]  ;;  %v19990_v20 = vld [vmem:[#allocation2 + $0x669] sm:$0xff] }
  0xcd   : > { %v19986_v18 = vld [vmem:[#allocation2 + $0x639] sm:$0xff]  ;;  %v19992_v21 = vld [vmem:[#allocation2 + $0x664] sm:$0xff]  ;;  %v20002_v22 = vld [vmem:[#allocation2 + $0x671] sm:$0xff] }
  0xce   : > { %15967 = vmatmul.mubr.msk.f32.gmra.mrb[8].mxu0 %vm273_vm1, %v19870_v49  ;;  %v20004_v23 = vld [vmem:[#allocation2 + $0x66c] sm:$0xff]  ;;  %v20006_v24 = vld [vmem:[#allocation2 + $0x6a1] sm:$0xff]  ;;  %v20022_v28 = vld [vmem:[#allocation2 + $0x6d9] sm:$0xff] }
  0xcf   : > { %16417 = vmatmul.mubr.msk.f32.gmra.mrb[8].mxu1 %vm273_vm1, %v19876_v50  ;;  %15969 = vmatprep.mubr.msk.f32.mxu0 %vm273_vm1, %v19878_v51  ;;  %v20008_v25 = vld [vmem:[#allocation2 + $0x69c] sm:$0xff]  ;;  %v20018_v26 = vld [vmem:[#allocation2 + $0x6a9] sm:$0xff]  ;;  %v20024_v53 = vld [vmem:[#allocation2 + $0x6d4] sm:$0xff] }
  0xd0   : > { %16419 = vmatprep.mubr.msk.f32.mxu1 %vm273_vm1, %v19880_v52  ;;  %22933 = vst [vmem:[#allocation9_spill] sm:$0xff] %v20008_v25  ;;  %v20020_v27 = vld [vmem:[#allocation2 + $0x6a4] sm:$0xff]  ;;  %22935 = vst [vmem:[#allocation11_spill] sm:$0xff] %v20024_v53  ;;  %v20036_v55 = vld [vmem:[#allocation2 + $0x6dc] sm:$0xff] }
  0xd1   : > { %22934 = vst [vmem:[#allocation10_spill] sm:$0xff] %v20020_v27  ;;  %v20034_v54 = vld [vmem:[#allocation2 + $0x6e1] sm:$0xff]  ;;  %22936 = vst [vmem:[#allocation12_spill] sm:$0xff] %v20036_v55  ;;  %v20038_v56 = vld [vmem:[#allocation2 + $0x711] sm:$0xff] }
  0xd2   : > { %15970 = vmatmul.mubr.msk.f32.gmra.mrb[10].mxu0 %vm273_vm1, %v19904_v61  ;;  %v20040_v57 = vld [vmem:[#allocation2 + $0x70c] sm:$0xff]  ;;  %v20050_v58 = vld [vmem:[#allocation2 + $0x719] sm:$0xff]  ;;  %v20056_v4 = vld [vmem:[#allocation2 + $0x744] sm:$0xff] }
  0xd3   : > { %16420 = vmatmul.mubr.msk.f32.gmra.mrb[10].mxu1 %vm273_vm1, %v19906_v62  ;;  %15972 = vmatprep.mubr.msk.f32.mxu0 %vm273_vm1, %v19910_v63  ;;  %22937 = vst [vmem:[#allocation13_spill] sm:$0xff] %v20040_v57  ;;  %v20052_v59 = vld [vmem:[#allocation2 + $0x714] sm:$0xff]  ;;  %v20054_v60 = vld [vmem:[#allocation2 + $0x749] sm:$0xff]  ;;  %22940 = vst [vmem:[#allocation16_spill] sm:$0xff] %v20056_v4 }
  0xd4   : > { %16422 = vmatprep.mubr.msk.f32.mxu1 %vm273_vm1, %v19912_v0  ;;  %22938 = vst [vmem:[#allocation14_spill] sm:$0xff] %v20052_v59  ;;  %22939 = vst [vmem:[#allocation15_spill] sm:$0xff] %v20054_v60 }
  0xd6   : > { %15973 = vmatmul.mubr.msk.f32.gmra.mrb[12].mxu0 %vm273_vm1, %v19922_v1 }
  0xd7   : > { %16423 = vmatmul.mubr.msk.f32.gmra.mrb[12].mxu1 %vm273_vm1, %v19924_v2  ;;  %15975 = vmatprep.mubr.msk.f32.mxu0 %vm273_vm1, %v19926_v3 }
  0xd8   : > { %16425 = vmatprep.mubr.msk.f32.mxu1 %vm273_vm1, %v19928_v5 }
  0xda   : > { %15976 = vmatmul.mubr.msk.f32.gmra.mrb[14].mxu0 %vm273_vm1, %v19938_v6 }
  0xdb   : > { %16426 = vmatmul.mubr.msk.f32.gmra.mrb[14].mxu1 %vm273_vm1, %v19940_v7  ;;  %15978 = vmatprep.mubr.msk.f32.mxu0 %vm273_vm1, %v19942_v8 }
  0xdc   : > { %16428 = vmatprep.mubr.msk.f32.mxu1 %vm273_vm1, %v19944_v9 }
  0xde   : > { %15979 = vmatmul.mubr.msk.f32.gmra.mrb[16].mxu0 %vm273_vm1, %v19954_v10 }
  0xdf   : > { %16429 = vmatmul.mubr.msk.f32.gmra.mrb[16].mxu1 %vm273_vm1, %v19956_v11  ;;  %15981 = vmatprep.mubr.msk.f32.mxu0 %vm273_vm1, %v19958_v12 }
  0xe0   : > { %16431 = vmatprep.mubr.msk.f32.mxu1 %vm273_vm1, %v19960_v13 }
  0xe2   : > { %15982 = vmatmul.mubr.msk.f32.gmra.mrb[18].mxu0 %vm273_vm1, %v19970_v14 }
  0xe3   : > { %16432 = vmatmul.mubr.msk.f32.gmra.mrb[18].mxu1 %vm273_vm1, %v19972_v15  ;;  %15984 = vmatprep.mubr.msk.f32.mxu0 %vm273_vm1, %v19974_v16 }
  0xe4   : > { %16434 = vmatprep.mubr.msk.f32.mxu1 %vm273_vm1, %v19976_v17 }
  0xe6   : > { %15985 = vmatmul.mubr.msk.f32.gmra.mrb[20].mxu0 %vm273_vm1, %v19986_v18 }
  0xe7   : > { %16435 = vmatmul.mubr.msk.f32.gmra.mrb[20].mxu1 %vm273_vm1, %v19988_v19  ;;  %15987 = vmatprep.mubr.msk.f32.mxu0 %vm273_vm1, %v19990_v20 }
  0xe8   : > { %16437 = vmatprep.mubr.msk.f32.mxu1 %vm273_vm1, %v19992_v21 }
  0xea   : > { %15988 = vmatmul.mubr.msk.f32.gmra.mrb[22].mxu0 %vm273_vm1, %v20002_v22 }
  0xeb   : > { %16438 = vmatmul.mubr.msk.f32.gmra.mrb[22].mxu1 %vm273_vm1, %v20004_v23  ;;  %15990 = vmatprep.mubr.msk.f32.mxu0 %vm273_vm1, %v20006_v24 }
  0xec   : > { %16440 = vmatprep.mubr.msk.f32.mxu1 %vm273_vm1, %v20008_v25  ;;  %v3500_v25 = vld [vmem:[#allocation2 + $0x2e4] sm:$0xff] }
  0xee   : > { %15991 = vmatmul.mubr.msk.f32.gmra.mrb[24].mxu0 %vm273_vm1, %v20018_v26 }
  0xef   : > { %16441 = vmatmul.mubr.msk.f32.gmra.mrb[24].mxu1 %vm273_vm1, %v20020_v27  ;;  %15993 = vmatprep.mubr.msk.f32.mxu0 %vm273_vm1, %v20022_v28  ;;  %v3498_v27 = vld [vmem:[#allocation2 + $0x2ac] sm:$0xff] }
  0xf0   : > { %16443 = vmatprep.mubr.msk.f32.mxu1 %vm273_vm1, %v20024_v53  ;;  %v704_v53 = vld [vmem:[#allocation2 + $0x3c9] sm:$0xff] }
  0xf2   : > { %15994 = vmatmul.mubr.msk.f32.gmra.mrb[26].mxu0 %vm273_vm1, %v20034_v54 }
  0xf3   : > { %16444 = vmatmul.mubr.msk.f32.gmra.mrb[26].mxu1 %vm273_vm1, %v20036_v55  ;;  %15996 = vmatprep.mubr.msk.f32.mxu0 %vm273_vm1, %v20038_v56  ;;  %v20068_v55 = vld [vmem:[#allocation2 + $0x74c] sm:$0xff] }
  0xf4   : > { %16446 = vmatprep.mubr.msk.f32.mxu1 %vm273_vm1, %v20040_v57  ;;  %v20066_v57 = vld [vmem:[#allocation2 + $0x751] sm:$0xff] }
  0xf5   : > { %22941 = vst [vmem:[#allocation17_spill] sm:$0xff] %v20066_v57 }
  0xf6   : > { %15997 = vmatmul.mubr.msk.f32.gmra.mrb[28].mxu0 %vm273_vm1, %v20050_v58 }
  0xf7   : > { %16447 = vmatmul.mubr.msk.f32.gmra.mrb[28].mxu1 %vm273_vm1, %v20052_v59  ;;  %15999 = vmatprep.mubr.msk.f32.mxu0 %vm273_vm1, %v20054_v60  ;;  %v705_v60 = vld [vmem:[#allocation2 + $0x3d1] sm:$0xff] }
  0xf8   : > { %16449 = vmatprep.mubr.msk.f32.mxu1 %vm273_vm1, %v20056_v4  ;;  %v3499_v59 = vld [vmem:[#allocation2 + $0x2b4] sm:$0xff]  ;;  %v20081_v4 = vld [vmem:[%s22914_s1 + $0x4] sm:$0xf] }
  0xfa   : > { %16000 = vmatmul.mubr.msk.f32.gmra.mrb[30].mxu0 %vm273_vm1, %v20066_v57  ;;  %v20086_v57 = vld [vmem:[%s22914_s1 + $0x28] sm:$0xf] }
  0xfb   : > { %16450 = vmatmul.mubr.msk.f32.gmra.mrb[30].mxu1 %vm273_vm1, %v20068_v55  ;;  %16004 = vmatprep.mubr.msk.f32.mxu0 %vm273_vm1, %v704_v53  ;;  %v3502_v53 = vld [vmem:[#allocation2 + $0x31c] sm:$0xff] }
  0xfc   : > { %16454 = vmatprep.mubr.msk.f32.mxu1 %vm273_vm1, %v3498_v27  ;;  %v3501_v27 = vld [vmem:[#allocation2 + $0x2ec] sm:$0xff] }
  0xfe   : > { %16005 = vmatmul.mubr.msk.f32.vlgmr.msra.gmra.mrb[0].mxu0 %vm273_vm1, %v705_v60  ;;  %v3509_v60 = vld [vmem:[#allocation2 + $0x3cc] sm:$0xff] }
  0xff   : > { %16455 = vmatmul.mubr.msk.f32.vlgmr.msra.gmra.mrb[0].mxu1 %vm273_vm1, %v3499_v59  ;;  %16053 = vmatpush3.msk.msra.mxu0 %vm839_vm0, %v19807_v35  ;;  %v3504_v35 = vld [vmem:[#allocation2 + $0x354] sm:$0xff]  ;;  %v3508_v59 = vld [vmem:[#allocation2 + $0x3c4] sm:$0xff] }
 0x100   : > { %16007 = vmatprep.mubr.msk.f32.mxu0 %vm273_vm1, %v19781_v29  ;;  %16457 = vmatprep.mubr.msk.f32.mxu1 %vm273_vm1, %v3500_v25  ;;  %v3503_v29 = vld [vmem:[#allocation2 + $0x324] sm:$0xff]  ;;  %v3507_v25 = vld [vmem:[#allocation2 + $0x394] sm:$0xff] }
 0x101   : > { %16503 = vmatpush3.msk.msra.mxu1 %vm839_vm0, %v19812_v36  ;;  %16102 = vmatprep.subr.msk.mxu0 %vm839_vm0, %v20081_v4  ;;  %v3506_v36 = vld [vmem:[#allocation2 + $0x38c] sm:$0xff] }
 0x102   : > { %16552 = vmatprep.subr.msk.mxu1 %vm839_vm0, %v20086_v57  ;;  %16008 = vmatmul.mubr.msk.f32.gmra.mrb[2].mxu0 %vm273_vm1, %v19785_v31  ;;  %v3505_v31 = vld [vmem:[#allocation2 + $0x35c] sm:$0xff] }
 0x103   : > { %16458 = vmatmul.mubr.msk.f32.gmra.mrb[2].mxu1 %vm273_vm1, %v3501_v27  ;;  %16010 = vmatprep.mubr.msk.f32.mxu0 %vm273_vm1, %v19796_v33  ;;  %v20442_v27 = vld [vmem:[#allocation2 + $0x5c2] sm:$0xff] }
 0x104   : > { %16460 = vmatprep.mubr.msk.f32.mxu1 %vm273_vm1, %v3502_v53  ;;  %v20452_v53 = vld [vmem:[#allocation2 + $0x5ca] sm:$0xff] }
 0x106   : > { %16011 = vmatmul.mubr.msk.f32.gmra.mrb[4].mxu0 %vm273_vm1, %v19818_v37 }
 0x107   : > { %16461 = vmatmul.mubr.msk.f32.gmra.mrb[4].mxu1 %vm273_vm1, %v3503_v29  ;;  %16013 = vmatprep.mubr.msk.f32.mxu0 %vm273_vm1, %v19826_v39  ;;  %v20454_v29 = vld [vmem:[#allocation2 + $0x5fa] sm:$0xff] }
 0x108   : > { %16463 = vmatprep.mubr.msk.f32.mxu1 %vm273_vm1, %v3504_v35  ;;  %v20464_v35 = vld [vmem:[#allocation2 + $0x602] sm:$0xff] }
 0x10a   : > { %16014 = vmatmul.mubr.msk.f32.gmra.mrb[6].mxu0 %vm273_vm1, %v19842_v41 }
 0x10b   : > { %16464 = vmatmul.mubr.msk.f32.gmra.mrb[6].mxu1 %vm273_vm1, %v3505_v31  ;;  %16016 = vmatprep.mubr.msk.f32.mxu0 %vm273_vm1, %v19846_v43  ;;  %v20466_v31 = vld [vmem:[#allocation2 + $0x632] sm:$0xff] }
 0x10c   : > { %16466 = vmatprep.mubr.msk.f32.mxu1 %vm273_vm1, %v3506_v36  ;;  %v20476_v36 = vld [vmem:[#allocation2 + $0x63a] sm:$0xff] }
 0x10e   : > { %16017 = vmatmul.mubr.msk.f32.gmra.mrb[8].mxu0 %vm273_vm1, %v19858_v45 }
 0x10f   : > { %16467 = vmatmul.mubr.msk.f32.gmra.mrb[8].mxu1 %vm273_vm1, %v3507_v25  ;;  %16019 = vmatprep.mubr.msk.f32.mxu0 %vm273_vm1, %v19862_v47  ;;  %v20478_v25 = vld [vmem:[#allocation2 + $0x66a] sm:$0xff] }
 0x110   : > { %16469 = vmatprep.mubr.msk.f32.mxu1 %vm273_vm1, %v3508_v59  ;;  %v20488_v59 = vld [vmem:[#allocation2 + $0x672] sm:$0xff] }
 0x112   : > { %16020 = vmatmul.mubr.msk.f32.gmra.mrb[10].mxu0 %vm273_vm1, %v19870_v49 }
 0x113   : > { %16470 = vmatmul.mubr.msk.f32.gmra.mrb[10].mxu1 %vm273_vm1, %v3509_v60  ;;  %16022 = vmatprep.mubr.msk.f32.mxu0 %vm273_vm1, %v19878_v51  ;;  %v20490_v60 = vld [vmem:[#allocation2 + $0x6a2] sm:$0xff] }
 0x114   : > { %16472 = vmatprep.mubr.msk.f32.mxu1 %vm273_vm1, %v19783_v30  ;;  %v20217_v30 = vld [vmem:[%s22914_s1 + $0x10] sm:$0xf] }
 0x116   : > { %16023 = vmatmul.mubr.msk.f32.gmra.mrb[12].mxu0 %vm273_vm1, %v19904_v61 }
 0x117   : > { %16473 = vmatmul.mubr.msk.f32.gmra.mrb[12].mxu1 %vm273_vm1, %v19794_v32  ;;  %16025 = vmatprep.mubr.msk.f32.mxu0 %vm273_vm1, %v19910_v63  ;;  %v20222_v32 = vld [vmem:[%s22914_s1 + $0x34] sm:$0xf] }
 0x118   : > { %16475 = vmatprep.mubr.msk.f32.mxu1 %vm273_vm1, %v19798_v34  ;;  %v22944_v34 = vld [vmem:[#allocation11_spill] sm:$0xff] }
 0x11a   : > { %16026 = vmatmul.mubr.msk.f32.gmra.mrb[14].mxu0 %vm273_vm1, %v19922_v1 }
 0x11b   : > { %16476 = vmatmul.mubr.msk.f32.gmra.mrb[14].mxu1 %vm273_vm1, %v19820_v38  ;;  %16028 = vmatprep.mubr.msk.f32.mxu0 %vm273_vm1, %v19926_v3  ;;  %v22946_v38 = vld [vmem:[#allocation13_spill] sm:$0xff] }
 0x11c   : > { %16478 = vmatprep.mubr.msk.f32.mxu1 %vm273_vm1, %v19828_v40  ;;  %v22948_v40 = vld [vmem:[#allocation16_spill] sm:$0xff] }
 0x11e   : > { %16029 = vmatmul.mubr.msk.f32.gmra.mrb[16].mxu0 %vm273_vm1, %v19938_v6 }
 0x11f   : > { %16479 = vmatmul.mubr.msk.f32.gmra.mrb[16].mxu1 %vm273_vm1, %v19844_v42  ;;  %16031 = vmatprep.mubr.msk.f32.mxu0 %vm273_vm1, %v19942_v8  ;;  %v3543_v42 = vld [vmem:[#allocation2 + $0x784] sm:$0xff] }
 0x120   : > { %16481 = vmatprep.mubr.msk.f32.mxu1 %vm273_vm1, %v19848_v44  ;;  %v3545_v44 = vld [vmem:[#allocation2 + $0x7bc] sm:$0xff] }
 0x122   : > { %16032 = vmatmul.mubr.msk.f32.gmra.mrb[18].mxu0 %vm273_vm1, %v19954_v10 }
 0x123   : > { %16482 = vmatmul.mubr.msk.f32.gmra.mrb[18].mxu1 %vm273_vm1, %v19860_v46  ;;  %16034 = vmatprep.mubr.msk.f32.mxu0 %vm273_vm1, %v19958_v12  ;;  %v3547_v46 = vld [vmem:[#allocation2 + $0x7f4] sm:$0xff] }
 0x124   : > { %16484 = vmatprep.mubr.msk.f32.mxu1 %vm273_vm1, %v19864_v48  ;;  %v3549_v48 = vld [vmem:[#allocation2 + $0x82c] sm:$0xff] }
 0x126   : > { %16035 = vmatmul.mubr.msk.f32.gmra.mrb[20].mxu0 %vm273_vm1, %v19970_v14 }
 0x127   : > { %16485 = vmatmul.mubr.msk.f32.gmra.mrb[20].mxu1 %vm273_vm1, %v19876_v50  ;;  %16037 = vmatprep.mubr.msk.f32.mxu0 %vm273_vm1, %v19974_v16  ;;  %v22949_v50 = vld [vmem:[#allocation15_spill] sm:$0xff] }
 0x128   : > { %16487 = vmatprep.mubr.msk.f32.mxu1 %vm273_vm1, %v19880_v52  ;;  %v738_v52 = vld [vmem:[#allocation2 + $0x781] sm:$0xff] }
 0x12a   : > { %16038 = vmatmul.mubr.msk.f32.gmra.mrb[22].mxu0 %vm273_vm1, %v19986_v18 }
 0x12b   : > { %16488 = vmatmul.mubr.msk.f32.gmra.mrb[22].mxu1 %vm273_vm1, %v19906_v62  ;;  %16040 = vmatprep.mubr.msk.f32.mxu0 %vm273_vm1, %v19990_v20  ;;  %v22950_v62 = vld [vmem:[#allocation17_spill] sm:$0xff] }
 0x12c   : > { %16490 = vmatprep.mubr.msk.f32.mxu1 %vm273_vm1, %v19912_v0 }
 0x12e   : > { %16041 = vmatmul.mubr.msk.f32.gmra.mrb[24].mxu0 %vm273_vm1, %v20002_v22 }
 0x12f   : > { %16491 = vmatmul.mubr.msk.f32.gmra.mrb[24].mxu1 %vm273_vm1, %v19924_v2  ;;  %16043 = vmatprep.mubr.msk.f32.mxu0 %vm273_vm1, %v20006_v24 }
 0x130   : > { %16493 = vmatprep.mubr.msk.f32.mxu1 %vm273_vm1, %v19928_v5 }
 0x132   : > { %16044 = vmatmul.mubr.msk.f32.gmra.mrb[26].mxu0 %vm273_vm1, %v20018_v26 }
 0x133   : > { %16494 = vmatmul.mubr.msk.f32.gmra.mrb[26].mxu1 %vm273_vm1, %v19940_v7  ;;  %16046 = vmatprep.mubr.msk.f32.mxu0 %vm273_vm1, %v20022_v28 }
 0x134   : > { %16496 = vmatprep.mubr.msk.f32.mxu1 %vm273_vm1, %v19944_v9 }
 0x136   : > { %16047 = vmatmul.mubr.msk.f32.gmra.mrb[28].mxu0 %vm273_vm1, %v20034_v54 }
 0x137   : > { %16497 = vmatmul.mubr.msk.f32.gmra.mrb[28].mxu1 %vm273_vm1, %v19956_v11  ;;  %16049 = vmatprep.mubr.msk.f32.mxu0 %vm273_vm1, %v20038_v56 }
 0x138   : > { %16499 = vmatprep.mubr.msk.f32.mxu1 %vm273_vm1, %v19960_v13 }
 0x13a   : > { %16050 = vmatmul.mubr.msk.f32.gmra.mrb[30].mxu0 %vm273_vm1, %v20050_v58 }
 0x13b   : > { %16500 = vmatmul.mubr.msk.f32.gmra.mrb[30].mxu1 %vm273_vm1, %v19972_v15  ;;  %16054 = vmatprep.mubr.msk.f32.mxu0 %vm273_vm1, %v19796_v33  ;;  %v22943_v33 = vld [vmem:[#allocation10_spill] sm:$0xff] }
 0x13c   : > { %16504 = vmatprep.mubr.msk.f32.mxu1 %vm273_vm1, %v19912_v0  ;;  %v3553_v0 = vld [vmem:[#allocation2 + $0x89c] sm:$0xff] }
 0x13e   : > { %16055 = vmatmul.mubr.msk.f32.vlgmr.msra.gmra.mrb[0].mxu0 %vm273_vm1, %v19818_v37  ;;  %v22945_v37 = vld [vmem:[#allocation12_spill] sm:$0xff] }
 0x13f   : > { %16505 = vmatmul.mubr.msk.f32.vlgmr.msra.gmra.mrb[0].mxu1 %vm273_vm1, %v19924_v2  ;;  %16103 = vmatpush3.msk.msra.mxu0 %vm839_vm0, %v20081_v4  ;;  %v22942_v4 = vld [vmem:[#allocation9_spill] sm:$0xff] }
 0x140   : > { %16057 = vmatprep.mubr.msk.f32.mxu0 %vm273_vm1, %v19826_v39  ;;  %16507 = vmatprep.mubr.msk.f32.mxu1 %vm273_vm1, %v19928_v5  ;;  %v22947_v39 = vld [vmem:[#allocation14_spill] sm:$0xff] }
 0x141   : > { %16553 = vmatpush3.msk.msra.mxu1 %vm839_vm0, %v20086_v57  ;;  %16152 = vmatprep.subr.msk.mxu0 %vm839_vm0, %v20217_v30  ;;  %v1594_v2 = vld [vmem:[#allocation2 + $0x2b2] sm:$0xff]  ;;  %v1595_v5 = vld [vmem:[#allocation2 + $0x2ba] sm:$0xff]  ;;  %v20430_v57 = vld [vmem:[#allocation2 + $0x58a] sm:$0xff] }
 0x142   : > { %16602 = vmatprep.subr.msk.mxu1 %vm839_vm0, %v20222_v32  ;;  %16058 = vmatmul.mubr.msk.f32.gmra.mrb[2].mxu0 %vm273_vm1, %v19842_v41  ;;  %v3542_v41 = vld [vmem:[#allocation2 + $0x77c] sm:$0xff] }
 0x143   : > { %16508 = vmatmul.mubr.msk.f32.gmra.mrb[2].mxu1 %vm273_vm1, %v19940_v7  ;;  %16060 = vmatprep.mubr.msk.f32.mxu0 %vm273_vm1, %v19846_v43  ;;  %v3544_v43 = vld [vmem:[#allocation2 + $0x7b4] sm:$0xff]  ;;  %v1596_v7 = vld [vmem:[#allocation2 + $0x2ea] sm:$0xff] }
 0x144   : > { %16510 = vmatprep.mubr.msk.f32.mxu1 %vm273_vm1, %v19944_v9  ;;  %v20352_v9 = vld [vmem:[%s22914_s1 + $0x40] sm:$0xf] }
 0x146   : > { %16061 = vmatmul.mubr.msk.f32.gmra.mrb[4].mxu0 %vm273_vm1, %v19858_v45  ;;  %v3546_v45 = vld [vmem:[#allocation2 + $0x7ec] sm:$0xff] }
 0x147   : > { %16511 = vmatmul.mubr.msk.f32.gmra.mrb[4].mxu1 %vm273_vm1, %v19956_v11  ;;  %16063 = vmatprep.mubr.msk.f32.mxu0 %vm273_vm1, %v19862_v47  ;;  %v3548_v47 = vld [vmem:[#allocation2 + $0x824] sm:$0xff]  ;;  %v1597_v11 = vld [vmem:[#allocation2 + $0x2f2] sm:$0xff] }
 0x148   : > { %16513 = vmatprep.mubr.msk.f32.mxu1 %vm273_vm1, %v19960_v13  ;;  %v1598_v13 = vld [vmem:[#allocation2 + $0x322] sm:$0xff] }
 0x14a   : > { %16064 = vmatmul.mubr.msk.f32.gmra.mrb[6].mxu0 %vm273_vm1, %v19870_v49  ;;  %v3550_v49 = vld [vmem:[#allocation2 + $0x85c] sm:$0xff] }
 0x14b   : > { %16514 = vmatmul.mubr.msk.f32.gmra.mrb[6].mxu1 %vm273_vm1, %v19972_v15  ;;  %16066 = vmatprep.mubr.msk.f32.mxu0 %vm273_vm1, %v19878_v51  ;;  %v3551_v51 = vld [vmem:[#allocation2 + $0x864] sm:$0xff] }
 0x14c   : > { %16516 = vmatprep.mubr.msk.f32.mxu1 %vm273_vm1, %v19976_v17  ;;  %v1599_v15 = vld [vmem:[#allocation2 + $0x32a] sm:$0xff]  ;;  %v1600_v17 = vld [vmem:[#allocation2 + $0x35a] sm:$0xff] }
 0x14e   : > { %16067 = vmatmul.mubr.msk.f32.gmra.mrb[8].mxu0 %vm273_vm1, %v19904_v61  ;;  %v3552_v61 = vld [vmem:[#allocation2 + $0x894] sm:$0xff] }
 0x14f   : > { %16517 = vmatmul.mubr.msk.f32.gmra.mrb[8].mxu1 %vm273_vm1, %v19988_v19  ;;  %16069 = vmatprep.mubr.msk.f32.mxu0 %vm273_vm1, %v19910_v63  ;;  %v739_v63 = vld [vmem:[#allocation2 + $0x789] sm:$0xff] }
 0x150   : > { %16519 = vmatprep.mubr.msk.f32.mxu1 %vm273_vm1, %v19992_v21  ;;  %v1601_v19 = vld [vmem:[#allocation2 + $0x362] sm:$0xff]  ;;  %v1602_v21 = vld [vmem:[#allocation2 + $0x392] sm:$0xff] }
 0x152   : > { %16070 = vmatmul.mubr.msk.f32.gmra.mrb[10].mxu0 %vm273_vm1, %v19922_v1  ;;  %v1604_v1 = vld [vmem:[#allocation2 + $0x3ca] sm:$0xff] }
 0x153   : > { %16520 = vmatmul.mubr.msk.f32.gmra.mrb[10].mxu1 %vm273_vm1, %v20004_v23  ;;  %16072 = vmatprep.mubr.msk.f32.mxu0 %vm273_vm1, %v19926_v3  ;;  %v1605_v3 = vld [vmem:[#allocation2 + $0x3d2] sm:$0xff]  ;;  %v1603_v23 = vld [vmem:[#allocation2 + $0x39a] sm:$0xff] }
 0x154   : > { %16522 = vmatprep.mubr.msk.f32.mxu1 %vm273_vm1, %v22942_v4  ;;  %v20512_v4 = vld [vmem:[#allocation2 + $0x6e2] sm:$0xff] }
 0x156   : > { %16073 = vmatmul.mubr.msk.f32.gmra.mrb[12].mxu0 %vm273_vm1, %v19938_v6  ;;  %v20340_v6 = vld [vmem:[#allocation2 + $0x402] sm:$0xff] }
 0x157   : > { %16523 = vmatmul.mubr.msk.f32.gmra.mrb[12].mxu1 %vm273_vm1, %v22943_v33  ;;  %16075 = vmatprep.mubr.msk.f32.mxu0 %vm273_vm1, %v19942_v8  ;;  %v20347_v8 = vld [vmem:[%s22914_s1 + $0x1c] sm:$0xf]  ;;  %v20514_v33 = vld [vmem:[#allocation2 + $0x712] sm:$0xff] }
 0x158   : > { %16525 = vmatprep.mubr.msk.f32.mxu1 %vm273_vm1, %v22944_v34  ;;  %v20524_v34 = vld [vmem:[#allocation2 + $0x71a] sm:$0xff] }
 0x15a   : > { %16076 = vmatmul.mubr.msk.f32.gmra.mrb[14].mxu0 %vm273_vm1, %v19954_v10  ;;  %v20358_v10 = vld [vmem:[#allocation2 + $0x40a] sm:$0xff] }
 0x15b   : > { %16526 = vmatmul.mubr.msk.f32.gmra.mrb[14].mxu1 %vm273_vm1, %v22945_v37  ;;  %16078 = vmatprep.mubr.msk.f32.mxu0 %vm273_vm1, %v19958_v12  ;;  %v20363_v12 = vld [vmem:[#allocation2 + $0x43a] sm:$0xff]  ;;  %v20541_v37 = vld [vmem:[%s22914_s1 + $0x8] sm:$0xf] }
 0x15c   : > { %16528 = vmatprep.mubr.msk.f32.mxu1 %vm273_vm1, %v22946_v38  ;;  %v20546_v38 = vld [vmem:[%s22914_s1 + $0x2c] sm:$0xf] }
 0x15e   : > { %16079 = vmatmul.mubr.msk.f32.gmra.mrb[16].mxu0 %vm273_vm1, %v19970_v14  ;;  %v20375_v14 = vld [vmem:[#allocation2 + $0x442] sm:$0xff] }
 0x15f   : > { %16529 = vmatmul.mubr.msk.f32.gmra.mrb[16].mxu1 %vm273_vm1, %v22947_v39  ;;  %16081 = vmatprep.mubr.msk.f32.mxu0 %vm273_vm1, %v19974_v16  ;;  %v20377_v16 = vld [vmem:[#allocation2 + $0x472] sm:$0xff]  ;;  %v20664_v39 = vld [vmem:[#allocation2 + $0x74a] sm:$0xff] }
 0x160   : > { %16531 = vmatprep.mubr.msk.f32.mxu1 %vm273_vm1, %v22948_v40  ;;  %v20674_v40 = vld [vmem:[#allocation2 + $0x752] sm:$0xff] }
 0x162   : > { %16082 = vmatmul.mubr.msk.f32.gmra.mrb[18].mxu0 %vm273_vm1, %v19986_v18  ;;  %v20385_v18 = vld [vmem:[#allocation2 + $0x47a] sm:$0xff] }
 0x163   : > { %16532 = vmatmul.mubr.msk.f32.gmra.mrb[18].mxu1 %vm273_vm1, %v20068_v55  ;;  %16084 = vmatprep.mubr.msk.f32.mxu0 %vm273_vm1, %v19990_v20  ;;  %v20387_v20 = vld [vmem:[#allocation2 + $0x4aa] sm:$0xff]  ;;  %v20418_v55 = vld [vmem:[#allocation2 + $0x552] sm:$0xff] }
 0x164   : > { %16534 = vmatprep.mubr.msk.f32.mxu1 %vm273_vm1, %v3542_v41  ;;  %v20691_v41 = vld [vmem:[%s22914_s1 + $0x14] sm:$0xf] }
 0x166   : > { %16085 = vmatmul.mubr.msk.f32.gmra.mrb[20].mxu0 %vm273_vm1, %v20002_v22  ;;  %v20395_v22 = vld [vmem:[#allocation2 + $0x4b2] sm:$0xff] }
 0x167   : > { %16535 = vmatmul.mubr.msk.f32.gmra.mrb[20].mxu1 %vm273_vm1, %v3543_v42  ;;  %16087 = vmatprep.mubr.msk.f32.mxu0 %vm273_vm1, %v20006_v24  ;;  %v20397_v24 = vld [vmem:[#allocation2 + $0x4e2] sm:$0xff]  ;;  %v20696_v42 = vld [vmem:[%s22914_s1 + $0x38] sm:$0xf] }
 0x168   : > { %16537 = vmatprep.mubr.msk.f32.mxu1 %vm273_vm1, %v3544_v43  ;;  %v1638_v43 = vld [vmem:[#allocation2 + $0x782] sm:$0xff] }
 0x16a   : > { %16088 = vmatmul.mubr.msk.f32.gmra.mrb[22].mxu0 %vm273_vm1, %v20018_v26  ;;  %v20405_v26 = vld [vmem:[#allocation2 + $0x4ea] sm:$0xff] }
 0x16b   : > { %16538 = vmatmul.mubr.msk.f32.gmra.mrb[22].mxu1 %vm273_vm1, %v3545_v44  ;;  %16090 = vmatprep.mubr.msk.f32.mxu0 %vm273_vm1, %v20022_v28  ;;  %v20407_v28 = vld [vmem:[#allocation2 + $0x51a] sm:$0xff]  ;;  %v1639_v44 = vld [vmem:[#allocation2 + $0x78a] sm:$0xff] }
 0x16c   : > { %16540 = vmatprep.mubr.msk.f32.mxu1 %vm273_vm1, %v3546_v45  ;;  %v1640_v45 = vld [vmem:[#allocation2 + $0x7ba] sm:$0xff] }
 0x16e   : > { %16091 = vmatmul.mubr.msk.f32.gmra.mrb[24].mxu0 %vm273_vm1, %v20034_v54  ;;  %v20416_v54 = vld [vmem:[#allocation2 + $0x522] sm:$0xff] }
 0x16f   : > { %16541 = vmatmul.mubr.msk.f32.gmra.mrb[24].mxu1 %vm273_vm1, %v3547_v46  ;;  %16093 = vmatprep.mubr.msk.f32.mxu0 %vm273_vm1, %v20038_v56  ;;  %v20428_v56 = vld [vmem:[#allocation2 + $0x55a] sm:$0xff]  ;;  %v1641_v46 = vld [vmem:[#allocation2 + $0x7c2] sm:$0xff] }
 0x170   : > { %16543 = vmatprep.mubr.msk.f32.mxu1 %vm273_vm1, %v3548_v47  ;;  %v1642_v47 = vld [vmem:[#allocation2 + $0x7f2] sm:$0xff] }
 0x172   : > { %16094 = vmatmul.mubr.msk.f32.gmra.mrb[26].mxu0 %vm273_vm1, %v20050_v58  ;;  %v20440_v58 = vld [vmem:[#allocation2 + $0x592] sm:$0xff] }
 0x173   : > { %16544 = vmatmul.mubr.msk.f32.gmra.mrb[26].mxu1 %vm273_vm1, %v3549_v48  ;;  %16096 = vmatprep.mubr.msk.f32.mxu0 %vm273_vm1, %v22949_v50  ;;  %v1643_v48 = vld [vmem:[#allocation2 + $0x7fa] sm:$0xff]  ;;  %v1645_v50 = vld [vmem:[#allocation2 + $0x832] sm:$0xff] }
 0x174   : > { %16546 = vmatprep.mubr.msk.f32.mxu1 %vm273_vm1, %v3550_v49  ;;  %v1644_v49 = vld [vmem:[#allocation2 + $0x82a] sm:$0xff] }
 0x176   : > { %16097 = vmatmul.mubr.msk.f32.gmra.mrb[28].mxu0 %vm273_vm1, %v22950_v62  ;;  %v1649_v62 = vld [vmem:[#allocation2 + $0x8a2] sm:$0xff] }
 0x177   : > { %16547 = vmatmul.mubr.msk.f32.gmra.mrb[28].mxu1 %vm273_vm1, %v3551_v51  ;;  %16099 = vmatprep.mubr.msk.f32.mxu0 %vm273_vm1, %v738_v52  ;;  %v1646_v51 = vld [vmem:[#allocation2 + $0x862] sm:$0xff]  ;;  %v1647_v52 = vld [vmem:[#allocation2 + $0x86a] sm:$0xff] }
 0x178   : > { %16549 = vmatprep.mubr.msk.f32.mxu1 %vm273_vm1, %v3552_v61  ;;  %v1648_v61 = vld [vmem:[#allocation2 + $0x89a] sm:$0xff] }
 0x17a   : > { %16100 = vmatmul.mubr.msk.f32.gmra.mrb[30].mxu0 %vm273_vm1, %v739_v63  ;;  %v2568_v63 = vld [vmem:[#allocation2 + $0x3cb] sm:$0xff] }
 0x17b   : > { %16550 = vmatmul.mubr.msk.f32.gmra.mrb[30].mxu1 %vm273_vm1, %v3553_v0  ;;  %16104 = vmatprep.mubr.msk.f32.mxu0 %vm273_vm1, %v1604_v1  ;;  %v5290_v0 = vld [vmem:[#allocation2 + $0x2b8] sm:$0xff] }
 0x17c   : > { %16554 = vmatprep.mubr.msk.f32.mxu1 %vm273_vm1, %v1594_v2  ;;  %v5291_v2 = vld [vmem:[#allocation2 + $0x2c0] sm:$0xff] }
 0x17e   : > { %16105 = vmatmul.mubr.msk.f32.vlgmr.msra.gmra.mrb[0].mxu0 %vm273_vm1, %v1605_v3 }
 0x17f   : > { %16555 = vmatmul.mubr.msk.f32.vlgmr.msra.gmra.mrb[0].mxu1 %vm273_vm1, %v1595_v5  ;;  %16153 = vmatpush3.msk.msra.mxu0 %vm839_vm0, %v20217_v30  ;;  %v20500_v30 = vld [vmem:[#allocation2 + $0x6aa] sm:$0xff] }
 0x180   : > { %16107 = vmatprep.mubr.msk.f32.mxu0 %vm273_vm1, %v20340_v6  ;;  %16557 = vmatprep.mubr.msk.f32.mxu1 %vm273_vm1, %v1596_v7  ;;  %v5292_v5 = vld [vmem:[#allocation2 + $0x2f0] sm:$0xff]  ;;  %v20826_v7 = vld [vmem:[%s22914_s1 + $0x44] sm:$0xf] }
 0x181   : > { %16603 = vmatpush3.msk.msra.mxu1 %vm839_vm0, %v20222_v32  ;;  %16202 = vmatprep.subr.msk.mxu0 %vm839_vm0, %v20347_v8  ;;  %v20502_v32 = vld [vmem:[#allocation2 + $0x6da] sm:$0xff] }
 0x182   : > { %16652 = vmatprep.subr.msk.mxu1 %vm839_vm0, %v20352_v9  ;;  %16108 = vmatmul.mubr.msk.f32.gmra.mrb[2].mxu0 %vm273_vm1, %v20358_v10 }
 0x183   : > { %16558 = vmatmul.mubr.msk.f32.gmra.mrb[2].mxu1 %vm273_vm1, %v1597_v11  ;;  %16110 = vmatprep.mubr.msk.f32.mxu0 %vm273_vm1, %v20363_v12  ;;  %v5294_v11 = vld [vmem:[#allocation2 + $0x328] sm:$0xff] }
 0x184   : > { %16560 = vmatprep.mubr.msk.f32.mxu1 %vm273_vm1, %v1598_v13  ;;  %v5295_v13 = vld [vmem:[#allocation2 + $0x330] sm:$0xff] }
 0x186   : > { %16111 = vmatmul.mubr.msk.f32.gmra.mrb[4].mxu0 %vm273_vm1, %v20375_v14 }
 0x187   : > { %16561 = vmatmul.mubr.msk.f32.gmra.mrb[4].mxu1 %vm273_vm1, %v1599_v15  ;;  %16113 = vmatprep.mubr.msk.f32.mxu0 %vm273_vm1, %v20377_v16  ;;  %v5296_v15 = vld [vmem:[#allocation2 + $0x360] sm:$0xff] }
 0x188   : > { %16563 = vmatprep.mubr.msk.f32.mxu1 %vm273_vm1, %v1600_v17  ;;  %v5297_v17 = vld [vmem:[#allocation2 + $0x368] sm:$0xff] }
 0x18a   : > { %16114 = vmatmul.mubr.msk.f32.gmra.mrb[6].mxu0 %vm273_vm1, %v20385_v18 }
 0x18b   : > { %16564 = vmatmul.mubr.msk.f32.gmra.mrb[6].mxu1 %vm273_vm1, %v1601_v19  ;;  %16116 = vmatprep.mubr.msk.f32.mxu0 %vm273_vm1, %v20387_v20  ;;  %v5298_v19 = vld [vmem:[#allocation2 + $0x398] sm:$0xff] }
 0x18c   : > { %16566 = vmatprep.mubr.msk.f32.mxu1 %vm273_vm1, %v1602_v21  ;;  %v5299_v21 = vld [vmem:[#allocation2 + $0x3a0] sm:$0xff] }
 0x18e   : > { %16117 = vmatmul.mubr.msk.f32.gmra.mrb[8].mxu0 %vm273_vm1, %v20395_v22 }
 0x18f   : > { %16567 = vmatmul.mubr.msk.f32.gmra.mrb[8].mxu1 %vm273_vm1, %v1603_v23  ;;  %16119 = vmatprep.mubr.msk.f32.mxu0 %vm273_vm1, %v20397_v24  ;;  %v5300_v23 = vld [vmem:[#allocation2 + $0x3d0] sm:$0xff] }
 0x190   : > { %16569 = vmatprep.mubr.msk.f32.mxu1 %vm273_vm1, %v1604_v1  ;;  %v2569_v1 = vld [vmem:[#allocation2 + $0x3d3] sm:$0xff] }
 0x192   : > { %16120 = vmatmul.mubr.msk.f32.gmra.mrb[10].mxu0 %vm273_vm1, %v20405_v26 }
 0x193   : > { %16570 = vmatmul.mubr.msk.f32.gmra.mrb[10].mxu1 %vm273_vm1, %v1605_v3  ;;  %16122 = vmatprep.mubr.msk.f32.mxu0 %vm273_vm1, %v20407_v28  ;;  %v20814_v3 = vld [vmem:[#allocation2 + $0x403] sm:$0xff] }
 0x194   : > { %16572 = vmatprep.mubr.msk.f32.mxu1 %vm273_vm1, %v20340_v6 }
 0x196   : > { %16123 = vmatmul.mubr.msk.f32.gmra.mrb[12].mxu0 %vm273_vm1, %v20416_v54 }
 0x197   : > { %16573 = vmatmul.mubr.msk.f32.gmra.mrb[12].mxu1 %vm273_vm1, %v20358_v10  ;;  %16125 = vmatprep.mubr.msk.f32.mxu0 %vm273_vm1, %v20418_v55 }
 0x198   : > { %16575 = vmatprep.mubr.msk.f32.mxu1 %vm273_vm1, %v20363_v12 }
 0x19a   : > { %16126 = vmatmul.mubr.msk.f32.gmra.mrb[14].mxu0 %vm273_vm1, %v20428_v56 }
 0x19b   : > { %16576 = vmatmul.mubr.msk.f32.gmra.mrb[14].mxu1 %vm273_vm1, %v20375_v14  ;;  %16128 = vmatprep.mubr.msk.f32.mxu0 %vm273_vm1, %v20430_v57 }
 0x19c   : > { %16578 = vmatprep.mubr.msk.f32.mxu1 %vm273_vm1, %v20377_v16 }
 0x19e   : > { %16129 = vmatmul.mubr.msk.f32.gmra.mrb[16].mxu0 %vm273_vm1, %v20440_v58 }
 0x19f   : > { %16579 = vmatmul.mubr.msk.f32.gmra.mrb[16].mxu1 %vm273_vm1, %v20385_v18  ;;  %16131 = vmatprep.mubr.msk.f32.mxu0 %vm273_vm1, %v20442_v27 }
 0x1a0   : > { %16581 = vmatprep.mubr.msk.f32.mxu1 %vm273_vm1, %v20387_v20 }
 0x1a2   : > { %16132 = vmatmul.mubr.msk.f32.gmra.mrb[18].mxu0 %vm273_vm1, %v20452_v53 }
 0x1a3   : > { %16582 = vmatmul.mubr.msk.f32.gmra.mrb[18].mxu1 %vm273_vm1, %v20395_v22  ;;  %16134 = vmatprep.mubr.msk.f32.mxu0 %vm273_vm1, %v20454_v29 }
 0x1a4   : > { %16584 = vmatprep.mubr.msk.f32.mxu1 %vm273_vm1, %v20397_v24 }
 0x1a6   : > { %16135 = vmatmul.mubr.msk.f32.gmra.mrb[20].mxu0 %vm273_vm1, %v20464_v35 }
 0x1a7   : > { %16585 = vmatmul.mubr.msk.f32.gmra.mrb[20].mxu1 %vm273_vm1, %v20405_v26  ;;  %16137 = vmatprep.mubr.msk.f32.mxu0 %vm273_vm1, %v20466_v31 }
 0x1a8   : > { %16587 = vmatprep.mubr.msk.f32.mxu1 %vm273_vm1, %v20407_v28 }
 0x1aa   : > { %16138 = vmatmul.mubr.msk.f32.gmra.mrb[22].mxu0 %vm273_vm1, %v20476_v36 }
 0x1ab   : > { %16588 = vmatmul.mubr.msk.f32.gmra.mrb[22].mxu1 %vm273_vm1, %v20416_v54  ;;  %16140 = vmatprep.mubr.msk.f32.mxu0 %vm273_vm1, %v20478_v25 }
 0x1ac   : > { %16590 = vmatprep.mubr.msk.f32.mxu1 %vm273_vm1, %v20418_v55 }
 0x1ae   : > { %16141 = vmatmul.mubr.msk.f32.gmra.mrb[24].mxu0 %vm273_vm1, %v20488_v59 }
 0x1af   : > { %16591 = vmatmul.mubr.msk.f32.gmra.mrb[24].mxu1 %vm273_vm1, %v20428_v56  ;;  %16143 = vmatprep.mubr.msk.f32.mxu0 %vm273_vm1, %v20490_v60 }
 0x1b0   : > { %16593 = vmatprep.mubr.msk.f32.mxu1 %vm273_vm1, %v20430_v57 }
 0x1b2   : > { %16144 = vmatmul.mubr.msk.f32.gmra.mrb[26].mxu0 %vm273_vm1, %v20500_v30 }
 0x1b3   : > { %16594 = vmatmul.mubr.msk.f32.gmra.mrb[26].mxu1 %vm273_vm1, %v20440_v58  ;;  %16146 = vmatprep.mubr.msk.f32.mxu0 %vm273_vm1, %v20502_v32 }
 0x1b4   : > { %16596 = vmatprep.mubr.msk.f32.mxu1 %vm273_vm1, %v20442_v27 }
 0x1b6   : > { %16147 = vmatmul.mubr.msk.f32.gmra.mrb[28].mxu0 %vm273_vm1, %v20512_v4 }
 0x1b7   : > { %16597 = vmatmul.mubr.msk.f32.gmra.mrb[28].mxu1 %vm273_vm1, %v20452_v53  ;;  %16149 = vmatprep.mubr.msk.f32.mxu0 %vm273_vm1, %v20514_v33 }
 0x1b8   : > { %16599 = vmatprep.mubr.msk.f32.mxu1 %vm273_vm1, %v20454_v29 }
 0x1ba   : > { %16150 = vmatmul.mubr.msk.f32.gmra.mrb[30].mxu0 %vm273_vm1, %v20524_v34 }
 0x1bb   : > { %16600 = vmatmul.mubr.msk.f32.gmra.mrb[30].mxu1 %vm273_vm1, %v20464_v35  ;;  %16154 = vmatprep.mubr.msk.f32.mxu0 %vm273_vm1, %v20340_v6 }
 0x1bc   : > { %16604 = vmatprep.mubr.msk.f32.mxu1 %vm273_vm1, %v20340_v6  ;;  %v20821_v6 = vld [vmem:[%s22914_s1 + $0x20] sm:$0xf] }
 0x1be   : > { %16155 = vmatmul.mubr.msk.f32.vlgmr.msra.gmra.mrb[0].mxu0 %vm273_vm1, %v20358_v10 }
 0x1bf   : > { %16605 = vmatmul.mubr.msk.f32.vlgmr.msra.gmra.mrb[0].mxu1 %vm273_vm1, %v20358_v10  ;;  %16203 = vmatpush3.msk.msra.mxu0 %vm839_vm0, %v20347_v8  ;;  %v20832_v8 = vld [vmem:[#allocation2 + $0x40b] sm:$0xff]  ;;  %v20837_v10 = vld [vmem:[#allocation2 + $0x43b] sm:$0xff] }
 0x1c0   : > { %16157 = vmatprep.mubr.msk.f32.mxu0 %vm273_vm1, %v20363_v12  ;;  %16607 = vmatprep.mubr.msk.f32.mxu1 %vm273_vm1, %v20363_v12 }
 0x1c1   : > { %16653 = vmatpush3.msk.msra.mxu1 %vm839_vm0, %v20352_v9  ;;  %16252 = vmatprep.subr.msk.mxu0 %vm839_vm0, %v20541_v37  ;;  %v5293_v9 = vld [vmem:[#allocation2 + $0x2f8] sm:$0xff] }
 0x1c2   : > { %16702 = vmatprep.subr.msk.mxu1 %vm839_vm0, %v20546_v38  ;;  %16158 = vmatmul.mubr.msk.f32.gmra.mrb[2].mxu0 %vm273_vm1, %v20375_v14 }
 0x1c3   : > { %16608 = vmatmul.mubr.msk.f32.gmra.mrb[2].mxu1 %vm273_vm1, %v20375_v14  ;;  %16160 = vmatprep.mubr.msk.f32.mxu0 %vm273_vm1, %v20377_v16 }
 0x1c4   : > { %16610 = vmatprep.mubr.msk.f32.mxu1 %vm273_vm1, %v20377_v16 }
 0x1c6   : > { %16161 = vmatmul.mubr.msk.f32.gmra.mrb[4].mxu0 %vm273_vm1, %v20385_v18 }
 0x1c7   : > { %16611 = vmatmul.mubr.msk.f32.gmra.mrb[4].mxu1 %vm273_vm1, %v20385_v18  ;;  %16163 = vmatprep.mubr.msk.f32.mxu0 %vm273_vm1, %v20387_v20 }
 0x1c8   : > { %16613 = vmatprep.mubr.msk.f32.mxu1 %vm273_vm1, %v20387_v20 }
 0x1ca   : > { %16164 = vmatmul.mubr.msk.f32.gmra.mrb[6].mxu0 %vm273_vm1, %v20395_v22 }
 0x1cb   : > { %16614 = vmatmul.mubr.msk.f32.gmra.mrb[6].mxu1 %vm273_vm1, %v20395_v22  ;;  %16166 = vmatprep.mubr.msk.f32.mxu0 %vm273_vm1, %v20397_v24 }
 0x1cc   : > { %16616 = vmatprep.mubr.msk.f32.mxu1 %vm273_vm1, %v20397_v24 }
 0x1ce   : > { %16167 = vmatmul.mubr.msk.f32.gmra.mrb[8].mxu0 %vm273_vm1, %v20405_v26 }
 0x1cf   : > { %16617 = vmatmul.mubr.msk.f32.gmra.mrb[8].mxu1 %vm273_vm1, %v20405_v26  ;;  %16169 = vmatprep.mubr.msk.f32.mxu0 %vm273_vm1, %v20407_v28 }
 0x1d0   : > { %16619 = vmatprep.mubr.msk.f32.mxu1 %vm273_vm1, %v20407_v28 }
 0x1d2   : > { %16170 = vmatmul.mubr.msk.f32.gmra.mrb[10].mxu0 %vm273_vm1, %v20416_v54 }
 0x1d3   : > { %16620 = vmatmul.mubr.msk.f32.gmra.mrb[10].mxu1 %vm273_vm1, %v20416_v54  ;;  %16172 = vmatprep.mubr.msk.f32.mxu0 %vm273_vm1, %v20418_v55 }
 0x1d4   : > { %16622 = vmatprep.mubr.msk.f32.mxu1 %vm273_vm1, %v20418_v55 }
 0x1d6   : > { %16173 = vmatmul.mubr.msk.f32.gmra.mrb[12].mxu0 %vm273_vm1, %v20428_v56 }
 0x1d7   : > { %16623 = vmatmul.mubr.msk.f32.gmra.mrb[12].mxu1 %vm273_vm1, %v20428_v56  ;;  %16175 = vmatprep.mubr.msk.f32.mxu0 %vm273_vm1, %v20430_v57 }
 0x1d8   : > { %16625 = vmatprep.mubr.msk.f32.mxu1 %vm273_vm1, %v20430_v57 }
 0x1da   : > { %16176 = vmatmul.mubr.msk.f32.gmra.mrb[14].mxu0 %vm273_vm1, %v20440_v58 }
 0x1db   : > { %16626 = vmatmul.mubr.msk.f32.gmra.mrb[14].mxu1 %vm273_vm1, %v20440_v58  ;;  %16178 = vmatprep.mubr.msk.f32.mxu0 %vm273_vm1, %v20442_v27 }
 0x1dc   : > { %16628 = vmatprep.mubr.msk.f32.mxu1 %vm273_vm1, %v20442_v27 }
 0x1de   : > { %16179 = vmatmul.mubr.msk.f32.gmra.mrb[16].mxu0 %vm273_vm1, %v20452_v53 }
 0x1df   : > { %16629 = vmatmul.mubr.msk.f32.gmra.mrb[16].mxu1 %vm273_vm1, %v20452_v53  ;;  %16181 = vmatprep.mubr.msk.f32.mxu0 %vm273_vm1, %v20454_v29 }
 0x1e0   : > { %16631 = vmatprep.mubr.msk.f32.mxu1 %vm273_vm1, %v20454_v29 }
 0x1e2   : > { %16182 = vmatmul.mubr.msk.f32.gmra.mrb[18].mxu0 %vm273_vm1, %v20464_v35 }
 0x1e3   : > { %16632 = vmatmul.mubr.msk.f32.gmra.mrb[18].mxu1 %vm273_vm1, %v20464_v35  ;;  %16184 = vmatprep.mubr.msk.f32.mxu0 %vm273_vm1, %v20466_v31 }
 0x1e4   : > { %16634 = vmatprep.mubr.msk.f32.mxu1 %vm273_vm1, %v20466_v31 }
 0x1e6   : > { %16185 = vmatmul.mubr.msk.f32.gmra.mrb[20].mxu0 %vm273_vm1, %v20476_v36 }
 0x1e7   : > { %16635 = vmatmul.mubr.msk.f32.gmra.mrb[20].mxu1 %vm273_vm1, %v20476_v36  ;;  %16187 = vmatprep.mubr.msk.f32.mxu0 %vm273_vm1, %v20478_v25 }
 0x1e8   : > { %16637 = vmatprep.mubr.msk.f32.mxu1 %vm273_vm1, %v20478_v25 }
 0x1ea   : > { %16188 = vmatmul.mubr.msk.f32.gmra.mrb[22].mxu0 %vm273_vm1, %v20488_v59 }
 0x1eb   : > { %16638 = vmatmul.mubr.msk.f32.gmra.mrb[22].mxu1 %vm273_vm1, %v20488_v59  ;;  %16190 = vmatprep.mubr.msk.f32.mxu0 %vm273_vm1, %v20490_v60 }
 0x1ec   : > { %16640 = vmatprep.mubr.msk.f32.mxu1 %vm273_vm1, %v20490_v60 }
 0x1ee   : > { %16191 = vmatmul.mubr.msk.f32.gmra.mrb[24].mxu0 %vm273_vm1, %v20500_v30 }
 0x1ef   : > { %16641 = vmatmul.mubr.msk.f32.gmra.mrb[24].mxu1 %vm273_vm1, %v20500_v30  ;;  %16193 = vmatprep.mubr.msk.f32.mxu0 %vm273_vm1, %v20502_v32 }
 0x1f0   : > { %16643 = vmatprep.mubr.msk.f32.mxu1 %vm273_vm1, %v20502_v32 }
 0x1f2   : > { %16194 = vmatmul.mubr.msk.f32.gmra.mrb[26].mxu0 %vm273_vm1, %v20512_v4 }
 0x1f3   : > { %16644 = vmatmul.mubr.msk.f32.gmra.mrb[26].mxu1 %vm273_vm1, %v20512_v4  ;;  %16196 = vmatprep.mubr.msk.f32.mxu0 %vm273_vm1, %v20514_v33 }
 0x1f4   : > { %16646 = vmatprep.mubr.msk.f32.mxu1 %vm273_vm1, %v20514_v33 }
 0x1f6   : > { %16197 = vmatmul.mubr.msk.f32.gmra.mrb[28].mxu0 %vm273_vm1, %v20524_v34 }
 0x1f7   : > { %16647 = vmatmul.mubr.msk.f32.gmra.mrb[28].mxu1 %vm273_vm1, %v20524_v34  ;;  %16199 = vmatprep.mubr.msk.f32.mxu0 %vm273_vm1, %v20664_v39 }
 0x1f8   : > { %16649 = vmatprep.mubr.msk.f32.mxu1 %vm273_vm1, %v20664_v39 }
 0x1fa   : > { %16200 = vmatmul.mubr.msk.f32.gmra.mrb[30].mxu0 %vm273_vm1, %v20674_v40 }
 0x1fb   : > { %16650 = vmatmul.mubr.msk.f32.gmra.mrb[30].mxu1 %vm273_vm1, %v20674_v40  ;;  %16204 = vmatprep.mubr.msk.f32.mxu0 %vm273_vm1, %v20363_v12  ;;  %v20849_v12 = vld [vmem:[#allocation2 + $0x443] sm:$0xff] }
 0x1fc   : > { %16654 = vmatprep.mubr.msk.f32.mxu1 %vm273_vm1, %v20418_v55 }
 0x1fe   : > { %16205 = vmatmul.mubr.msk.f32.vlgmr.msra.gmra.mrb[0].mxu0 %vm273_vm1, %v20375_v14  ;;  %v20851_v14 = vld [vmem:[#allocation2 + $0x473] sm:$0xff] }
 0x1ff   : > { %16655 = vmatmul.mubr.msk.f32.vlgmr.msra.gmra.mrb[0].mxu1 %vm273_vm1, %v20428_v56  ;;  %16253 = vmatpush3.msk.msra.mxu0 %vm839_vm0, %v20541_v37  ;;  %v20960_v37 = vld [vmem:[#allocation2 + $0x633] sm:$0xff] }
 0x200   : > { %16207 = vmatprep.mubr.msk.f32.mxu0 %vm273_vm1, %v20377_v16  ;;  %16657 = vmatprep.mubr.msk.f32.mxu1 %vm273_vm1, %v20430_v57  ;;  %v20859_v16 = vld [vmem:[#allocation2 + $0x47b] sm:$0xff] }
 0x201   : > { %16703 = vmatpush3.msk.msra.mxu1 %vm839_vm0, %v20546_v38  ;;  %16302 = vmatprep.subr.msk.mxu0 %vm839_vm0, %v20691_v41  ;;  %v20962_v38 = vld [vmem:[#allocation2 + $0x520] sm:$0xff] }
 0x202   : > { %16752 = vmatprep.subr.msk.mxu1 %vm839_vm0, %v20696_v42  ;;  %16208 = vmatmul.mubr.msk.f32.gmra.mrb[2].mxu0 %vm273_vm1, %v20385_v18  ;;  %v20861_v18 = vld [vmem:[#allocation2 + $0x4ab] sm:$0xff] }
 0x203   : > { %16658 = vmatmul.mubr.msk.f32.gmra.mrb[2].mxu1 %vm273_vm1, %v20440_v58  ;;  %16210 = vmatprep.mubr.msk.f32.mxu0 %vm273_vm1, %v20387_v20  ;;  %v20869_v20 = vld [vmem:[#allocation2 + $0x4b3] sm:$0xff] }
 0x204   : > { %16660 = vmatprep.mubr.msk.f32.mxu1 %vm273_vm1, %v20442_v27 }
 0x206   : > { %16211 = vmatmul.mubr.msk.f32.gmra.mrb[4].mxu0 %vm273_vm1, %v20395_v22  ;;  %v20871_v22 = vld [vmem:[#allocation2 + $0x4e3] sm:$0xff] }
 0x207   : > { %16661 = vmatmul.mubr.msk.f32.gmra.mrb[4].mxu1 %vm273_vm1, %v20452_v53  ;;  %16213 = vmatprep.mubr.msk.f32.mxu0 %vm273_vm1, %v20397_v24  ;;  %v20879_v24 = vld [vmem:[#allocation2 + $0x4eb] sm:$0xff] }
 0x208   : > { %16663 = vmatprep.mubr.msk.f32.mxu1 %vm273_vm1, %v20454_v29 }
 0x20a   : > { %16214 = vmatmul.mubr.msk.f32.gmra.mrb[6].mxu0 %vm273_vm1, %v20405_v26  ;;  %v5301_v26 = vld [vmem:[#allocation2 + $0x3d8] sm:$0xff] }
 0x20b   : > { %16664 = vmatmul.mubr.msk.f32.gmra.mrb[6].mxu1 %vm273_vm1, %v20464_v35  ;;  %16216 = vmatprep.mubr.msk.f32.mxu0 %vm273_vm1, %v20407_v28  ;;  %v20881_v28 = vld [vmem:[#allocation2 + $0x51b] sm:$0xff] }
 0x20c   : > { %16666 = vmatprep.mubr.msk.f32.mxu1 %vm273_vm1, %v20466_v31 }
 0x20e   : > { %16217 = vmatmul.mubr.msk.f32.gmra.mrb[8].mxu0 %vm273_vm1, %v20416_v54  ;;  %v20883_v54 = vld [vmem:[#allocation2 + $0x408] sm:$0xff] }
 0x20f   : > { %16667 = vmatmul.mubr.msk.f32.gmra.mrb[8].mxu1 %vm273_vm1, %v20476_v36  ;;  %16219 = vmatprep.mubr.msk.f32.mxu0 %vm273_vm1, %v20418_v55  ;;  %v20892_v55 = vld [vmem:[#allocation2 + $0x523] sm:$0xff] }
 0x210   : > { %16669 = vmatprep.mubr.msk.f32.mxu1 %vm273_vm1, %v20478_v25 }
 0x212   : > { %16220 = vmatmul.mubr.msk.f32.gmra.mrb[10].mxu0 %vm273_vm1, %v20428_v56  ;;  %v20894_v56 = vld [vmem:[#allocation2 + $0x410] sm:$0xff] }
 0x213   : > { %16670 = vmatmul.mubr.msk.f32.gmra.mrb[10].mxu1 %vm273_vm1, %v20488_v59  ;;  %16222 = vmatprep.mubr.msk.f32.mxu0 %vm273_vm1, %v20430_v57  ;;  %v20896_v57 = vld [vmem:[#allocation2 + $0x553] sm:$0xff] }
 0x214   : > { %16672 = vmatprep.mubr.msk.f32.mxu1 %vm273_vm1, %v20490_v60 }
 0x216   : > { %16223 = vmatmul.mubr.msk.f32.gmra.mrb[12].mxu0 %vm273_vm1, %v20440_v58  ;;  %v20898_v58 = vld [vmem:[#allocation2 + $0x440] sm:$0xff] }
 0x217   : > { %16673 = vmatmul.mubr.msk.f32.gmra.mrb[12].mxu1 %vm273_vm1, %v20500_v30  ;;  %16225 = vmatprep.mubr.msk.f32.mxu0 %vm273_vm1, %v20442_v27  ;;  %v20908_v27 = vld [vmem:[#allocation2 + $0x55b] sm:$0xff] }
 0x218   : > { %16675 = vmatprep.mubr.msk.f32.mxu1 %vm273_vm1, %v20502_v32 }
 0x21a   : > { %16226 = vmatmul.mubr.msk.f32.gmra.mrb[14].mxu0 %vm273_vm1, %v20452_v53  ;;  %v20910_v53 = vld [vmem:[#allocation2 + $0x448] sm:$0xff] }
 0x21b   : > { %16676 = vmatmul.mubr.msk.f32.gmra.mrb[14].mxu1 %vm273_vm1, %v20512_v4  ;;  %16228 = vmatprep.mubr.msk.f32.mxu0 %vm273_vm1, %v20454_v29  ;;  %v20912_v29 = vld [vmem:[#allocation2 + $0x58b] sm:$0xff] }
 0x21c   : > { %16678 = vmatprep.mubr.msk.f32.mxu1 %vm273_vm1, %v20514_v33 }
 0x21e   : > { %16229 = vmatmul.mubr.msk.f32.gmra.mrb[16].mxu0 %vm273_vm1, %v20464_v35  ;;  %v20914_v35 = vld [vmem:[#allocation2 + $0x478] sm:$0xff] }
 0x21f   : > { %16679 = vmatmul.mubr.msk.f32.gmra.mrb[16].mxu1 %vm273_vm1, %v20524_v34  ;;  %16231 = vmatprep.mubr.msk.f32.mxu0 %vm273_vm1, %v20466_v31  ;;  %v20924_v31 = vld [vmem:[#allocation2 + $0x593] sm:$0xff] }
 0x220   : > { %16681 = vmatprep.mubr.msk.f32.mxu1 %vm273_vm1, %v20664_v39 }
 0x222   : > { %16232 = vmatmul.mubr.msk.f32.gmra.mrb[18].mxu0 %vm273_vm1, %v20476_v36  ;;  %v20926_v36 = vld [vmem:[#allocation2 + $0x480] sm:$0xff] }
 0x223   : > { %16682 = vmatmul.mubr.msk.f32.gmra.mrb[18].mxu1 %vm273_vm1, %v20674_v40  ;;  %16234 = vmatprep.mubr.msk.f32.mxu0 %vm273_vm1, %v20478_v25  ;;  %v20928_v25 = vld [vmem:[#allocation2 + $0x5c3] sm:$0xff] }
 0x224   : > { %16684 = vmatprep.mubr.msk.f32.mxu1 %vm273_vm1, %v1638_v43 }
 0x226   : > { %16235 = vmatmul.mubr.msk.f32.gmra.mrb[20].mxu0 %vm273_vm1, %v20488_v59  ;;  %v20930_v59 = vld [vmem:[#allocation2 + $0x4b0] sm:$0xff] }
 0x227   : > { %16685 = vmatmul.mubr.msk.f32.gmra.mrb[20].mxu1 %vm273_vm1, %v1639_v44  ;;  %16237 = vmatprep.mubr.msk.f32.mxu0 %vm273_vm1, %v20490_v60  ;;  %v20940_v60 = vld [vmem:[#allocation2 + $0x5cb] sm:$0xff] }
 0x228   : > { %16687 = vmatprep.mubr.msk.f32.mxu1 %vm273_vm1, %v1640_v45  ;;  %v20992_v45 = vld [vmem:[#allocation2 + $0x6a3] sm:$0xff] }
 0x22a   : > { %16238 = vmatmul.mubr.msk.f32.gmra.mrb[22].mxu0 %vm273_vm1, %v20500_v30  ;;  %v20942_v30 = vld [vmem:[#allocation2 + $0x4b8] sm:$0xff] }
 0x22b   : > { %16688 = vmatmul.mubr.msk.f32.gmra.mrb[22].mxu1 %vm273_vm1, %v1641_v46  ;;  %16240 = vmatprep.mubr.msk.f32.mxu0 %vm273_vm1, %v20502_v32  ;;  %v20944_v32 = vld [vmem:[#allocation2 + $0x5fb] sm:$0xff]  ;;  %v20994_v46 = vld [vmem:[#allocation2 + $0x590] sm:$0xff] }
 0x22c   : > { %16690 = vmatprep.mubr.msk.f32.mxu1 %vm273_vm1, %v1642_v47  ;;  %v21004_v47 = vld [vmem:[#allocation2 + $0x6ab] sm:$0xff] }
 0x22e   : > { %16241 = vmatmul.mubr.msk.f32.gmra.mrb[24].mxu0 %vm273_vm1, %v20512_v4  ;;  %v20946_v4 = vld [vmem:[#allocation2 + $0x4e8] sm:$0xff] }
 0x22f   : > { %16691 = vmatmul.mubr.msk.f32.gmra.mrb[24].mxu1 %vm273_vm1, %v1643_v48  ;;  %16243 = vmatprep.mubr.msk.f32.mxu0 %vm273_vm1, %v20514_v33  ;;  %v20956_v33 = vld [vmem:[#allocation2 + $0x603] sm:$0xff]  ;;  %v21006_v48 = vld [vmem:[#allocation2 + $0x598] sm:$0xff] }
 0x230   : > { %16693 = vmatprep.mubr.msk.f32.mxu1 %vm273_vm1, %v1644_v49  ;;  %v21008_v49 = vld [vmem:[#allocation2 + $0x6db] sm:$0xff] }
 0x232   : > { %16244 = vmatmul.mubr.msk.f32.gmra.mrb[26].mxu0 %vm273_vm1, %v20524_v34  ;;  %v20958_v34 = vld [vmem:[#allocation2 + $0x4f0] sm:$0xff] }
 0x233   : > { %16694 = vmatmul.mubr.msk.f32.gmra.mrb[26].mxu1 %vm273_vm1, %v1645_v50  ;;  %16246 = vmatprep.mubr.msk.f32.mxu0 %vm273_vm1, %v20664_v39  ;;  %v20972_v39 = vld [vmem:[#allocation2 + $0x63b] sm:$0xff]  ;;  %v21010_v50 = vld [vmem:[#allocation2 + $0x5c8] sm:$0xff] }
 0x234   : > { %16696 = vmatprep.mubr.msk.f32.mxu1 %vm273_vm1, %v1646_v51  ;;  %v21020_v51 = vld [vmem:[#allocation2 + $0x6e3] sm:$0xff] }
 0x236   : > { %16247 = vmatmul.mubr.msk.f32.gmra.mrb[28].mxu0 %vm273_vm1, %v20674_v40  ;;  %v20974_v40 = vld [vmem:[#allocation2 + $0x528] sm:$0xff] }
 0x237   : > { %16697 = vmatmul.mubr.msk.f32.gmra.mrb[28].mxu1 %vm273_vm1, %v1647_v52  ;;  %16249 = vmatprep.mubr.msk.f32.mxu0 %vm273_vm1, %v1638_v43  ;;  %v20988_v43 = vld [vmem:[#allocation2 + $0x673] sm:$0xff] }
 0x238   : > { %16699 = vmatprep.mubr.msk.f32.mxu1 %vm273_vm1, %v1648_v61  ;;  %v21022_v52 = vld [vmem:[#allocation2 + $0x5d0] sm:$0xff] }
 0x239   : > { %v21024_v61 = vld [vmem:[#allocation2 + $0x713] sm:$0xff] }
 0x23a   : > { %16250 = vmatmul.mubr.msk.f32.gmra.mrb[30].mxu0 %vm273_vm1, %v1639_v44  ;;  %v20990_v44 = vld [vmem:[#allocation2 + $0x560] sm:$0xff] }
 0x23b   : > { %16700 = vmatmul.mubr.msk.f32.gmra.mrb[30].mxu1 %vm273_vm1, %v1649_v62  ;;  %16254 = vmatprep.mubr.msk.f32.mxu0 %vm273_vm1, %v2568_v63  ;;  %v21026_v62 = vld [vmem:[#allocation2 + $0x600] sm:$0xff] }
 0x23c   : > { %16704 = vmatprep.mubr.msk.f32.mxu1 %vm273_vm1, %v5290_v0  ;;  %v21036_v63 = vld [vmem:[#allocation2 + $0x71b] sm:$0xff]  ;;  %v21038_v0 = vld [vmem:[#allocation2 + $0x608] sm:$0xff] }
 0x23e   : > { %16255 = vmatmul.mubr.msk.f32.vlgmr.msra.gmra.mrb[0].mxu0 %vm273_vm1, %v2569_v1  ;;  %v21055_v1 = vld [vmem:[%s22914_s1 + $0x54] sm:$0xf] }
 0x23f   : > { %16705 = vmatmul.mubr.msk.f32.vlgmr.msra.gmra.mrb[0].mxu1 %vm273_vm1, %v5291_v2  ;;  %16303 = vmatpush3.msk.msra.mxu0 %vm839_vm0, %v20691_v41  ;;  %v20976_v41 = vld [vmem:[#allocation2 + $0x66b] sm:$0xff]  ;;  %v21060_v2 = vld [vmem:[%s22914_s1 + $0x78] sm:$0xf] }
 0x240   : > { %16257 = vmatprep.mubr.msk.f32.mxu0 %vm273_vm1, %v20814_v3  ;;  %16707 = vmatprep.mubr.msk.f32.mxu1 %vm273_vm1, %v5292_v5  ;;  %v5323_v5 = vld [vmem:[#allocation2 + $0x640] sm:$0xff] }
 0x241   : > { %16753 = vmatpush3.msk.msra.mxu1 %vm839_vm0, %v20696_v42  ;;  %16352 = vmatprep.subr.msk.mxu0 %vm839_vm0, %v20821_v6  ;;  %v20978_v42 = vld [vmem:[#allocation2 + $0x558] sm:$0xff] }
 0x242   : > { %16802 = vmatprep.subr.msk.mxu1 %vm839_vm0, %v20826_v7  ;;  %16258 = vmatmul.mubr.msk.f32.gmra.mrb[2].mxu0 %vm273_vm1, %v20832_v8 }
 0x243   : > { %16708 = vmatmul.mubr.msk.f32.gmra.mrb[2].mxu1 %vm273_vm1, %v5293_v9  ;;  %16260 = vmatprep.mubr.msk.f32.mxu0 %vm273_vm1, %v20837_v10  ;;  %v5327_v9 = vld [vmem:[#allocation2 + $0x6b0] sm:$0xff] }
 0x244   : > { %16710 = vmatprep.mubr.msk.f32.mxu1 %vm273_vm1, %v5294_v11  ;;  %v5328_v11 = vld [vmem:[#allocation2 + $0x6e0] sm:$0xff] }
 0x246   : > { %16261 = vmatmul.mubr.msk.f32.gmra.mrb[4].mxu0 %vm273_vm1, %v20849_v12 }
 0x247   : > { %16711 = vmatmul.mubr.msk.f32.gmra.mrb[4].mxu1 %vm273_vm1, %v5295_v13  ;;  %16263 = vmatprep.mubr.msk.f32.mxu0 %vm273_vm1, %v20851_v14  ;;  %v5329_v13 = vld [vmem:[#allocation2 + $0x6e8] sm:$0xff] }
 0x248   : > { %16713 = vmatprep.mubr.msk.f32.mxu1 %vm273_vm1, %v5296_v15  ;;  %v5330_v15 = vld [vmem:[#allocation2 + $0x718] sm:$0xff] }
 0x24a   : > { %16264 = vmatmul.mubr.msk.f32.gmra.mrb[6].mxu0 %vm273_vm1, %v20859_v16 }
 0x24b   : > { %16714 = vmatmul.mubr.msk.f32.gmra.mrb[6].mxu1 %vm273_vm1, %v5297_v17  ;;  %16266 = vmatprep.mubr.msk.f32.mxu0 %vm273_vm1, %v20861_v18  ;;  %v5331_v17 = vld [vmem:[#allocation2 + $0x720] sm:$0xff] }
 0x24c   : > { %16716 = vmatprep.mubr.msk.f32.mxu1 %vm273_vm1, %v5298_v19  ;;  %v21172_v19 = vld [vmem:[#allocation2 + $0x74b] sm:$0xff] }
 0x24e   : > { %16267 = vmatmul.mubr.msk.f32.gmra.mrb[8].mxu0 %vm273_vm1, %v20869_v20 }
 0x24f   : > { %16717 = vmatmul.mubr.msk.f32.gmra.mrb[8].mxu1 %vm273_vm1, %v5299_v21  ;;  %16269 = vmatprep.mubr.msk.f32.mxu0 %vm273_vm1, %v20871_v22  ;;  %v5332_v21 = vld [vmem:[#allocation2 + $0x750] sm:$0xff] }
 0x250   : > { %16719 = vmatprep.mubr.msk.f32.mxu1 %vm273_vm1, %v5300_v23  ;;  %v21180_v23 = vld [vmem:[#allocation2 + $0x753] sm:$0xff] }
 0x252   : > { %16270 = vmatmul.mubr.msk.f32.gmra.mrb[10].mxu0 %vm273_vm1, %v20879_v24 }
 0x253   : > { %16720 = vmatmul.mubr.msk.f32.gmra.mrb[10].mxu1 %vm273_vm1, %v5301_v26  ;;  %16272 = vmatprep.mubr.msk.f32.mxu0 %vm273_vm1, %v20881_v28  ;;  %v5333_v26 = vld [vmem:[#allocation2 + $0x758] sm:$0xff] }
 0x254   : > { %16722 = vmatprep.mubr.msk.f32.mxu1 %vm273_vm1, %v20883_v54 }
 0x256   : > { %16273 = vmatmul.mubr.msk.f32.gmra.mrb[12].mxu0 %vm273_vm1, %v20892_v55 }
 0x257   : > { %16723 = vmatmul.mubr.msk.f32.gmra.mrb[12].mxu1 %vm273_vm1, %v20894_v56  ;;  %16275 = vmatprep.mubr.msk.f32.mxu0 %vm273_vm1, %v20896_v57 }
 0x258   : > { %16725 = vmatprep.mubr.msk.f32.mxu1 %vm273_vm1, %v20898_v58 }
 0x25a   : > { %16276 = vmatmul.mubr.msk.f32.gmra.mrb[14].mxu0 %vm273_vm1, %v20908_v27 }
 0x25b   : > { %16726 = vmatmul.mubr.msk.f32.gmra.mrb[14].mxu1 %vm273_vm1, %v20910_v53  ;;  %16278 = vmatprep.mubr.msk.f32.mxu0 %vm273_vm1, %v20912_v29 }
 0x25c   : > { %16728 = vmatprep.mubr.msk.f32.mxu1 %vm273_vm1, %v20914_v35 }
 0x25e   : > { %16279 = vmatmul.mubr.msk.f32.gmra.mrb[16].mxu0 %vm273_vm1, %v20924_v31 }
 0x25f   : > { %16729 = vmatmul.mubr.msk.f32.gmra.mrb[16].mxu1 %vm273_vm1, %v20926_v36  ;;  %16281 = vmatprep.mubr.msk.f32.mxu0 %vm273_vm1, %v20928_v25 }
 0x260   : > { %16731 = vmatprep.mubr.msk.f32.mxu1 %vm273_vm1, %v20930_v59 }
 0x262   : > { %16282 = vmatmul.mubr.msk.f32.gmra.mrb[18].mxu0 %vm273_vm1, %v20940_v60 }
 0x263   : > { %16732 = vmatmul.mubr.msk.f32.gmra.mrb[18].mxu1 %vm273_vm1, %v20942_v30  ;;  %16284 = vmatprep.mubr.msk.f32.mxu0 %vm273_vm1, %v20944_v32 }
 0x264   : > { %16734 = vmatprep.mubr.msk.f32.mxu1 %vm273_vm1, %v20946_v4 }
 0x266   : > { %16285 = vmatmul.mubr.msk.f32.gmra.mrb[20].mxu0 %vm273_vm1, %v20956_v33 }
 0x267   : > { %16735 = vmatmul.mubr.msk.f32.gmra.mrb[20].mxu1 %vm273_vm1, %v20958_v34  ;;  %16287 = vmatprep.mubr.msk.f32.mxu0 %vm273_vm1, %v20960_v37 }
 0x268   : > { %16737 = vmatprep.mubr.msk.f32.mxu1 %vm273_vm1, %v20962_v38 }
 0x26a   : > { %16288 = vmatmul.mubr.msk.f32.gmra.mrb[22].mxu0 %vm273_vm1, %v20972_v39 }
 0x26b   : > { %16738 = vmatmul.mubr.msk.f32.gmra.mrb[22].mxu1 %vm273_vm1, %v20974_v40  ;;  %16290 = vmatprep.mubr.msk.f32.mxu0 %vm273_vm1, %v20976_v41 }
 0x26c   : > { %16740 = vmatprep.mubr.msk.f32.mxu1 %vm273_vm1, %v20978_v42 }
 0x26e   : > { %16291 = vmatmul.mubr.msk.f32.gmra.mrb[24].mxu0 %vm273_vm1, %v20988_v43 }
 0x26f   : > { %16741 = vmatmul.mubr.msk.f32.gmra.mrb[24].mxu1 %vm273_vm1, %v20990_v44  ;;  %16293 = vmatprep.mubr.msk.f32.mxu0 %vm273_vm1, %v20992_v45 }
 0x270   : > { %16743 = vmatprep.mubr.msk.f32.mxu1 %vm273_vm1, %v20994_v46 }
 0x272   : > { %16294 = vmatmul.mubr.msk.f32.gmra.mrb[26].mxu0 %vm273_vm1, %v21004_v47 }
 0x273   : > { %16744 = vmatmul.mubr.msk.f32.gmra.mrb[26].mxu1 %vm273_vm1, %v21006_v48  ;;  %16296 = vmatprep.mubr.msk.f32.mxu0 %vm273_vm1, %v21008_v49 }
 0x274   : > { %16746 = vmatprep.mubr.msk.f32.mxu1 %vm273_vm1, %v21010_v50 }
 0x276   : > { %16297 = vmatmul.mubr.msk.f32.gmra.mrb[28].mxu0 %vm273_vm1, %v21020_v51 }
 0x277   : > { %16747 = vmatmul.mubr.msk.f32.gmra.mrb[28].mxu1 %vm273_vm1, %v21022_v52  ;;  %16299 = vmatprep.mubr.msk.f32.mxu0 %vm273_vm1, %v21024_v61 }
 0x278   : > { %16749 = vmatprep.mubr.msk.f32.mxu1 %vm273_vm1, %v21026_v62 }
 0x27a   : > { %16300 = vmatmul.mubr.msk.f32.gmra.mrb[30].mxu0 %vm273_vm1, %v21036_v63 }
 0x27b   : > { %16750 = vmatmul.mubr.msk.f32.gmra.mrb[30].mxu1 %vm273_vm1, %v21038_v0  ;;  %16304 = vmatprep.mubr.msk.f32.mxu0 %vm273_vm1, %v20814_v3  ;;  %v21138_v3 = vld [vmem:[#allocation2 + $0x638] sm:$0xff] }
 0x27c   : > { %16754 = vmatprep.mubr.msk.f32.mxu1 %vm273_vm1, %v20883_v54  ;;  %v21196_v54 = vld [vmem:[%s22914_s1 + $0x48] sm:$0xf] }
 0x27e   : > { %16305 = vmatmul.mubr.msk.f32.vlgmr.msra.gmra.mrb[0].mxu0 %vm273_vm1, %v20832_v8  ;;  %v5326_v8 = vld [vmem:[#allocation2 + $0x6a8] sm:$0xff] }
 0x27f   : > { %16755 = vmatmul.mubr.msk.f32.vlgmr.msra.gmra.mrb[0].mxu1 %vm273_vm1, %v20894_v56  ;;  %16353 = vmatpush3.msk.msra.mxu0 %vm839_vm0, %v20821_v6  ;;  %v5324_v6 = vld [vmem:[#allocation2 + $0x670] sm:$0xff]  ;;  %v21201_v56 = vld [vmem:[%s22914_s1 + $0x6c] sm:$0xf] }
 0x280   : > { %16307 = vmatprep.mubr.msk.f32.mxu0 %vm273_vm1, %v20837_v10  ;;  %16757 = vmatprep.mubr.msk.f32.mxu1 %vm273_vm1, %v20898_v58  ;;  %v5344_v58 = vld [vmem:[#allocation2 + $0x8a0] sm:$0xff] }
 0x281   : > { %16803 = vmatpush3.msk.msra.mxu1 %vm839_vm0, %v20826_v7  ;;  %16852 = vmatprep.subr.msk.mxu0 %vm839_vm0, %v21055_v1  ;;  %v5325_v7 = vld [vmem:[#allocation2 + $0x678] sm:$0xff] }
 0x282   : > { %17302 = vmatprep.subr.msk.mxu1 %vm839_vm0, %v21060_v2  ;;  %16308 = vmatmul.mubr.msk.f32.gmra.mrb[2].mxu0 %vm273_vm1, %v20849_v12 }
 0x283   : > { %16758 = vmatmul.mubr.msk.f32.gmra.mrb[2].mxu1 %vm273_vm1, %v20910_v53  ;;  %16310 = vmatprep.mubr.msk.f32.mxu0 %vm273_vm1, %v20851_v14  ;;  %v5345_v53 = vld [vmem:[#allocation2 + $0x8a8] sm:$0xff] }
 0x284   : > { %16760 = vmatprep.mubr.msk.f32.mxu1 %vm273_vm1, %v20914_v35  ;;  %v9338_v35 = vld [vmem:[#allocation2 + $0x3f0] sm:$0xff] }
 0x286   : > { %16311 = vmatmul.mubr.msk.f32.gmra.mrb[4].mxu0 %vm273_vm1, %v20859_v16 }
 0x287   : > { %16761 = vmatmul.mubr.msk.f32.gmra.mrb[4].mxu1 %vm273_vm1, %v20926_v36  ;;  %16313 = vmatprep.mubr.msk.f32.mxu0 %vm273_vm1, %v20861_v18  ;;  %v9339_v36 = vld [vmem:[#allocation2 + $0x3f8] sm:$0xff] }
 0x288   : > { %16763 = vmatprep.mubr.msk.f32.mxu1 %vm273_vm1, %v20930_v59  ;;  %v9340_v59 = vld [vmem:[#allocation2 + $0x428] sm:$0xff] }
 0x28a   : > { %16314 = vmatmul.mubr.msk.f32.gmra.mrb[6].mxu0 %vm273_vm1, %v20869_v20 }
 0x28b   : > { %16764 = vmatmul.mubr.msk.f32.gmra.mrb[6].mxu1 %vm273_vm1, %v20942_v30  ;;  %16316 = vmatprep.mubr.msk.f32.mxu0 %vm273_vm1, %v20871_v22  ;;  %v21326_v30 = vld [vmem:[%s22914_s1 + $0x84] sm:$0xf] }
 0x28c   : > { %16766 = vmatprep.mubr.msk.f32.mxu1 %vm273_vm1, %v20946_v4  ;;  %v9341_v4 = vld [vmem:[#allocation2 + $0x430] sm:$0xff] }
 0x28e   : > { %16317 = vmatmul.mubr.msk.f32.gmra.mrb[8].mxu0 %vm273_vm1, %v20879_v24 }
 0x28f   : > { %16767 = vmatmul.mubr.msk.f32.gmra.mrb[8].mxu1 %vm273_vm1, %v20958_v34  ;;  %16319 = vmatprep.mubr.msk.f32.mxu0 %vm273_vm1, %v20881_v28  ;;  %v9342_v34 = vld [vmem:[#allocation2 + $0x460] sm:$0xff] }
 0x290   : > { %16769 = vmatprep.mubr.msk.f32.mxu1 %vm273_vm1, %v20962_v38  ;;  %v9343_v38 = vld [vmem:[#allocation2 + $0x468] sm:$0xff] }
 0x292   : > { %16320 = vmatmul.mubr.msk.f32.gmra.mrb[10].mxu0 %vm273_vm1, %v20892_v55 }
 0x293   : > { %16770 = vmatmul.mubr.msk.f32.gmra.mrb[10].mxu1 %vm273_vm1, %v20974_v40  ;;  %16322 = vmatprep.mubr.msk.f32.mxu0 %vm273_vm1, %v20896_v57  ;;  %v9344_v40 = vld [vmem:[#allocation2 + $0x498] sm:$0xff] }
 0x294   : > { %16772 = vmatprep.mubr.msk.f32.mxu1 %vm273_vm1, %v20978_v42 }
 0x296   : > { %16323 = vmatmul.mubr.msk.f32.gmra.mrb[12].mxu0 %vm273_vm1, %v20908_v27 }
 0x297   : > { %16773 = vmatmul.mubr.msk.f32.gmra.mrb[12].mxu1 %vm273_vm1, %v20990_v44  ;;  %16325 = vmatprep.mubr.msk.f32.mxu0 %vm273_vm1, %v20912_v29 }
 0x298   : > { %16775 = vmatprep.mubr.msk.f32.mxu1 %vm273_vm1, %v20994_v46 }
 0x29a   : > { %16326 = vmatmul.mubr.msk.f32.gmra.mrb[14].mxu0 %vm273_vm1, %v20924_v31 }
 0x29b   : > { %16776 = vmatmul.mubr.msk.f32.gmra.mrb[14].mxu1 %vm273_vm1, %v21006_v48  ;;  %16328 = vmatprep.mubr.msk.f32.mxu0 %vm273_vm1, %v20928_v25 }
 0x29c   : > { %16778 = vmatprep.mubr.msk.f32.mxu1 %vm273_vm1, %v21010_v50 }
 0x29e   : > { %16329 = vmatmul.mubr.msk.f32.gmra.mrb[16].mxu0 %vm273_vm1, %v20940_v60 }
 0x29f   : > { %16779 = vmatmul.mubr.msk.f32.gmra.mrb[16].mxu1 %vm273_vm1, %v21022_v52  ;;  %16331 = vmatprep.mubr.msk.f32.mxu0 %vm273_vm1, %v20944_v32 }
 0x2a0   : > { %16781 = vmatprep.mubr.msk.f32.mxu1 %vm273_vm1, %v21026_v62 }
 0x2a2   : > { %16332 = vmatmul.mubr.msk.f32.gmra.mrb[18].mxu0 %vm273_vm1, %v20956_v33 }
 0x2a3   : > { %16782 = vmatmul.mubr.msk.f32.gmra.mrb[18].mxu1 %vm273_vm1, %v21038_v0  ;;  %16334 = vmatprep.mubr.msk.f32.mxu0 %vm273_vm1, %v20960_v37 }
 0x2a4   : > { %16784 = vmatprep.mubr.msk.f32.mxu1 %vm273_vm1, %v21138_v3 }
 0x2a6   : > { %16335 = vmatmul.mubr.msk.f32.gmra.mrb[20].mxu0 %vm273_vm1, %v20972_v39 }
 0x2a7   : > { %16785 = vmatmul.mubr.msk.f32.gmra.mrb[20].mxu1 %vm273_vm1, %v5323_v5  ;;  %16337 = vmatprep.mubr.msk.f32.mxu0 %vm273_vm1, %v20976_v41 }
 0x2a8   : > { %16787 = vmatprep.mubr.msk.f32.mxu1 %vm273_vm1, %v5324_v6 }
 0x2aa   : > { %16338 = vmatmul.mubr.msk.f32.gmra.mrb[22].mxu0 %vm273_vm1, %v20988_v43 }
 0x2ab   : > { %16788 = vmatmul.mubr.msk.f32.gmra.mrb[22].mxu1 %vm273_vm1, %v5325_v7  ;;  %16340 = vmatprep.mubr.msk.f32.mxu0 %vm273_vm1, %v20992_v45 }
 0x2ac   : > { %16790 = vmatprep.mubr.msk.f32.mxu1 %vm273_vm1, %v5326_v8 }
 0x2ae   : > { %16341 = vmatmul.mubr.msk.f32.gmra.mrb[24].mxu0 %vm273_vm1, %v21004_v47 }
 0x2af   : > { %16791 = vmatmul.mubr.msk.f32.gmra.mrb[24].mxu1 %vm273_vm1, %v5327_v9  ;;  %16343 = vmatprep.mubr.msk.f32.mxu0 %vm273_vm1, %v21008_v49 }
 0x2b0   : > { %16793 = vmatprep.mubr.msk.f32.mxu1 %vm273_vm1, %v5328_v11 }
 0x2b2   : > { %16344 = vmatmul.mubr.msk.f32.gmra.mrb[26].mxu0 %vm273_vm1, %v21020_v51 }
 0x2b3   : > { %16794 = vmatmul.mubr.msk.f32.gmra.mrb[26].mxu1 %vm273_vm1, %v5329_v13  ;;  %16346 = vmatprep.mubr.msk.f32.mxu0 %vm273_vm1, %v21024_v61 }
 0x2b4   : > { %16796 = vmatprep.mubr.msk.f32.mxu1 %vm273_vm1, %v5330_v15 }
 0x2b6   : > { %16347 = vmatmul.mubr.msk.f32.gmra.mrb[28].mxu0 %vm273_vm1, %v21036_v63 }
 0x2b7   : > { %16797 = vmatmul.mubr.msk.f32.gmra.mrb[28].mxu1 %vm273_vm1, %v5331_v17  ;;  %16349 = vmatprep.mubr.msk.f32.mxu0 %vm273_vm1, %v21172_v19 }
 0x2b8   : > { %16799 = vmatprep.mubr.msk.f32.mxu1 %vm273_vm1, %v5332_v21 }
 0x2ba   : > { %16350 = vmatmul.mubr.msk.f32.gmra.mrb[30].mxu0 %vm273_vm1, %v21180_v23 }
 0x2bb   : > { %16800 = vmatmul.mubr.msk.f32.gmra.mrb[30].mxu1 %vm273_vm1, %v5333_v26  ;;  %16354 = vmatprep.mubr.msk.f32.mxu0 %vm273_vm1, %v20837_v10  ;;  %v5334_v10 = vld [vmem:[#allocation2 + $0x788] sm:$0xff] }
 0x2bc   : > { %16804 = vmatprep.mubr.msk.f32.mxu1 %vm273_vm1, %v20978_v42  ;;  %v9345_v42 = vld [vmem:[#allocation2 + $0x4a0] sm:$0xff] }
 0x2be   : > { %16355 = vmatmul.mubr.msk.f32.vlgmr.msra.gmra.mrb[0].mxu0 %vm273_vm1, %v20849_v12  ;;  %v5335_v12 = vld [vmem:[#allocation2 + $0x790] sm:$0xff] }
 0x2bf   : > { %16805 = vmatmul.mubr.msk.f32.vlgmr.msra.gmra.mrb[0].mxu1 %vm273_vm1, %v20990_v44  ;;  %16853 = vmatpush3.msk.msra.mxu0 %vm839_vm0, %v21055_v1  ;;  %v9346_v44 = vld [vmem:[#allocation2 + $0x4d0] sm:$0xff]  ;;  %v6339_v1 = vld [vmem:[#allocation2 + $0x586] sm:$0xff] }
 0x2c0   : > { %16357 = vmatprep.mubr.msk.f32.mxu0 %vm273_vm1, %v20851_v14  ;;  %16807 = vmatprep.mubr.msk.f32.mxu1 %vm273_vm1, %v20994_v46  ;;  %v5336_v14 = vld [vmem:[#allocation2 + $0x7c0] sm:$0xff]  ;;  %v9347_v46 = vld [vmem:[#allocation2 + $0x4d8] sm:$0xff] }
 0x2c1   : > { %17303 = vmatpush3.msk.msra.mxu1 %vm839_vm0, %v21060_v2  ;;  %16902 = vmatprep.subr.msk.mxu0 %vm839_vm0, %v21196_v54  ;;  %v9353_v2 = vld [vmem:[#allocation2 + $0x580] sm:$0xff] }
 0x2c2   : > { %17352 = vmatprep.subr.msk.mxu1 %vm839_vm0, %v21201_v56  ;;  %16358 = vmatmul.mubr.msk.f32.gmra.mrb[2].mxu0 %vm273_vm1, %v20859_v16  ;;  %v5337_v16 = vld [vmem:[#allocation2 + $0x7c8] sm:$0xff] }
 0x2c3   : > { %16808 = vmatmul.mubr.msk.f32.gmra.mrb[2].mxu1 %vm273_vm1, %v21006_v48  ;;  %16360 = vmatprep.mubr.msk.f32.mxu0 %vm273_vm1, %v20861_v18  ;;  %v5338_v18 = vld [vmem:[#allocation2 + $0x7f8] sm:$0xff]  ;;  %v9348_v48 = vld [vmem:[#allocation2 + $0x508] sm:$0xff] }
 0x2c4   : > { %16810 = vmatprep.mubr.msk.f32.mxu1 %vm273_vm1, %v21010_v50  ;;  %v9349_v50 = vld [vmem:[#allocation2 + $0x510] sm:$0xff] }
 0x2c6   : > { %16361 = vmatmul.mubr.msk.f32.gmra.mrb[4].mxu0 %vm273_vm1, %v20869_v20  ;;  %v5339_v20 = vld [vmem:[#allocation2 + $0x800] sm:$0xff] }
 0x2c7   : > { %16811 = vmatmul.mubr.msk.f32.gmra.mrb[4].mxu1 %vm273_vm1, %v21022_v52  ;;  %16363 = vmatprep.mubr.msk.f32.mxu0 %vm273_vm1, %v20871_v22  ;;  %v5340_v22 = vld [vmem:[#allocation2 + $0x830] sm:$0xff]  ;;  %v9350_v52 = vld [vmem:[#allocation2 + $0x540] sm:$0xff] }
 0x2c8   : > { %16813 = vmatprep.mubr.msk.f32.mxu1 %vm273_vm1, %v21026_v62  ;;  %v9351_v62 = vld [vmem:[#allocation2 + $0x548] sm:$0xff] }
 0x2ca   : > { %16364 = vmatmul.mubr.msk.f32.gmra.mrb[6].mxu0 %vm273_vm1, %v20879_v24  ;;  %v5341_v24 = vld [vmem:[#allocation2 + $0x838] sm:$0xff] }
 0x2cb   : > { %16814 = vmatmul.mubr.msk.f32.gmra.mrb[6].mxu1 %vm273_vm1, %v21038_v0  ;;  %16366 = vmatprep.mubr.msk.f32.mxu0 %vm273_vm1, %v20881_v28  ;;  %v5342_v28 = vld [vmem:[#allocation2 + $0x868] sm:$0xff]  ;;  %v9352_v0 = vld [vmem:[#allocation2 + $0x578] sm:$0xff] }
 0x2cc   : > { %16816 = vmatprep.mubr.msk.f32.mxu1 %vm273_vm1, %v21138_v3  ;;  %v6340_v3 = vld [vmem:[#allocation2 + $0x5b6] sm:$0xff] }
 0x2ce   : > { %16367 = vmatmul.mubr.msk.f32.gmra.mrb[8].mxu0 %vm273_vm1, %v20892_v55  ;;  %v5343_v55 = vld [vmem:[#allocation2 + $0x870] sm:$0xff] }
 0x2cf   : > { %16817 = vmatmul.mubr.msk.f32.gmra.mrb[8].mxu1 %vm273_vm1, %v5323_v5  ;;  %16369 = vmatprep.mubr.msk.f32.mxu0 %vm273_vm1, %v20896_v57  ;;  %v2602_v57 = vld [vmem:[#allocation2 + $0x783] sm:$0xff]  ;;  %v9354_v5 = vld [vmem:[#allocation2 + $0x5b0] sm:$0xff] }
 0x2d0   : > { %16819 = vmatprep.mubr.msk.f32.mxu1 %vm273_vm1, %v5324_v6  ;;  %v6341_v6 = vld [vmem:[#allocation2 + $0x5be] sm:$0xff] }
 0x2d2   : > { %16370 = vmatmul.mubr.msk.f32.gmra.mrb[10].mxu0 %vm273_vm1, %v20908_v27  ;;  %v2603_v27 = vld [vmem:[#allocation2 + $0x78b] sm:$0xff] }
 0x2d3   : > { %16820 = vmatmul.mubr.msk.f32.gmra.mrb[10].mxu1 %vm273_vm1, %v5325_v7  ;;  %16372 = vmatprep.mubr.msk.f32.mxu0 %vm273_vm1, %v20912_v29  ;;  %v21304_v29 = vld [vmem:[#allocation2 + $0x3f6] sm:$0xff] }
 0x2d4   : > { %16822 = vmatprep.mubr.msk.f32.mxu1 %vm273_vm1, %v5326_v8  ;;  %v9355_v7 = vld [vmem:[#allocation2 + $0x5b8] sm:$0xff]  ;;  %v6342_v8 = vld [vmem:[#allocation2 + $0x5ee] sm:$0xff] }
 0x2d6   : > { %16373 = vmatmul.mubr.msk.f32.gmra.mrb[12].mxu0 %vm273_vm1, %v20924_v31  ;;  %v21311_v31 = vld [vmem:[#allocation2 + $0x3fe] sm:$0xff] }
 0x2d7   : > { %16823 = vmatmul.mubr.msk.f32.gmra.mrb[12].mxu1 %vm273_vm1, %v5327_v9  ;;  %16375 = vmatprep.mubr.msk.f32.mxu0 %vm273_vm1, %v20928_v25  ;;  %v21313_v25 = vld [vmem:[#allocation2 + $0x42e] sm:$0xff] }
 0x2d8   : > { %16825 = vmatprep.mubr.msk.f32.mxu1 %vm273_vm1, %v5328_v11  ;;  %v9356_v9 = vld [vmem:[#allocation2 + $0x5e8] sm:$0xff]  ;;  %v6343_v11 = vld [vmem:[#allocation2 + $0x5f6] sm:$0xff] }
 0x2da   : > { %16376 = vmatmul.mubr.msk.f32.gmra.mrb[14].mxu0 %vm273_vm1, %v20940_v60  ;;  %v21321_v60 = vld [vmem:[%s22914_s1 + $0x60] sm:$0xf] }
 0x2db   : > { %16826 = vmatmul.mubr.msk.f32.gmra.mrb[14].mxu1 %vm273_vm1, %v5329_v13  ;;  %16378 = vmatprep.mubr.msk.f32.mxu0 %vm273_vm1, %v20944_v32  ;;  %v21332_v32 = vld [vmem:[#allocation2 + $0x436] sm:$0xff] }
 0x2dc   : > { %16828 = vmatprep.mubr.msk.f32.mxu1 %vm273_vm1, %v5330_v15  ;;  %v9357_v13 = vld [vmem:[#allocation2 + $0x5f0] sm:$0xff]  ;;  %v6344_v15 = vld [vmem:[#allocation2 + $0x626] sm:$0xff] }
 0x2de   : > { %16379 = vmatmul.mubr.msk.f32.gmra.mrb[16].mxu0 %vm273_vm1, %v20956_v33  ;;  %v21337_v33 = vld [vmem:[#allocation2 + $0x466] sm:$0xff] }
 0x2df   : > { %16829 = vmatmul.mubr.msk.f32.gmra.mrb[16].mxu1 %vm273_vm1, %v5331_v17  ;;  %16381 = vmatprep.mubr.msk.f32.mxu0 %vm273_vm1, %v20960_v37  ;;  %v21349_v37 = vld [vmem:[#allocation2 + $0x46e] sm:$0xff]  ;;  %v9358_v17 = vld [vmem:[#allocation2 + $0x620] sm:$0xff] }
 0x2e0   : > { %16831 = vmatprep.mubr.msk.f32.mxu1 %vm273_vm1, %v5332_v21  ;;  %v9359_v21 = vld [vmem:[#allocation2 + $0x628] sm:$0xff] }
 0x2e2   : > { %16382 = vmatmul.mubr.msk.f32.gmra.mrb[18].mxu0 %vm273_vm1, %v20972_v39  ;;  %v21351_v39 = vld [vmem:[#allocation2 + $0x49e] sm:$0xff] }
 0x2e3   : > { %16832 = vmatmul.mubr.msk.f32.gmra.mrb[18].mxu1 %vm273_vm1, %v5333_v26  ;;  %16384 = vmatprep.mubr.msk.f32.mxu0 %vm273_vm1, %v20976_v41  ;;  %v21359_v41 = vld [vmem:[#allocation2 + $0x4a6] sm:$0xff]  ;;  %v9360_v26 = vld [vmem:[#allocation2 + $0x658] sm:$0xff] }
 0x2e4   : > { %16834 = vmatprep.mubr.msk.f32.mxu1 %vm273_vm1, %v5334_v10  ;;  %v21394_v10 = vld [vmem:[#allocation2 + $0x696] sm:$0xff] }
 0x2e6   : > { %16385 = vmatmul.mubr.msk.f32.gmra.mrb[20].mxu0 %vm273_vm1, %v20988_v43  ;;  %v6332_v43 = vld [vmem:[#allocation2 + $0x4d6] sm:$0xff] }
 0x2e7   : > { %16835 = vmatmul.mubr.msk.f32.gmra.mrb[20].mxu1 %vm273_vm1, %v5335_v12  ;;  %16387 = vmatprep.mubr.msk.f32.mxu0 %vm273_vm1, %v20992_v45  ;;  %v6333_v45 = vld [vmem:[#allocation2 + $0x4de] sm:$0xff]  ;;  %v9362_v12 = vld [vmem:[#allocation2 + $0x690] sm:$0xff] }
 0x2e8   : > { %16837 = vmatprep.mubr.msk.f32.mxu1 %vm273_vm1, %v5336_v14  ;;  %v21401_v14 = vld [vmem:[#allocation2 + $0x69e] sm:$0xff] }
 0x2ea   : > { %16388 = vmatmul.mubr.msk.f32.gmra.mrb[22].mxu0 %vm273_vm1, %v21004_v47  ;;  %v6334_v47 = vld [vmem:[#allocation2 + $0x50e] sm:$0xff] }
 0x2eb   : > { %16838 = vmatmul.mubr.msk.f32.gmra.mrb[22].mxu1 %vm273_vm1, %v5337_v16  ;;  %16390 = vmatprep.mubr.msk.f32.mxu0 %vm273_vm1, %v21008_v49  ;;  %v6335_v49 = vld [vmem:[#allocation2 + $0x516] sm:$0xff] }
 0x2ec   : > { %16840 = vmatprep.mubr.msk.f32.mxu1 %vm273_vm1, %v5338_v18  ;;  %v9363_v16 = vld [vmem:[#allocation2 + $0x698] sm:$0xff]  ;;  %v21403_v18 = vld [vmem:[#allocation2 + $0x6ce] sm:$0xff] }
 0x2ee   : > { %16391 = vmatmul.mubr.msk.f32.gmra.mrb[24].mxu0 %vm273_vm1, %v21020_v51  ;;  %v6336_v51 = vld [vmem:[#allocation2 + $0x546] sm:$0xff] }
 0x2ef   : > { %16841 = vmatmul.mubr.msk.f32.gmra.mrb[24].mxu1 %vm273_vm1, %v5339_v20  ;;  %16393 = vmatprep.mubr.msk.f32.mxu0 %vm273_vm1, %v21024_v61  ;;  %v6337_v61 = vld [vmem:[#allocation2 + $0x54e] sm:$0xff] }
 0x2f0   : > { %16843 = vmatprep.mubr.msk.f32.mxu1 %vm273_vm1, %v5340_v22  ;;  %v9364_v20 = vld [vmem:[#allocation2 + $0x6c8] sm:$0xff]  ;;  %v21411_v22 = vld [vmem:[#allocation2 + $0x6d6] sm:$0xff] }
 0x2f2   : > { %16394 = vmatmul.mubr.msk.f32.gmra.mrb[26].mxu0 %vm273_vm1, %v21036_v63  ;;  %v6338_v63 = vld [vmem:[#allocation2 + $0x57e] sm:$0xff] }
 0x2f3   : > { %16844 = vmatmul.mubr.msk.f32.gmra.mrb[26].mxu1 %vm273_vm1, %v5341_v24  ;;  %16396 = vmatprep.mubr.msk.f32.mxu0 %vm273_vm1, %v21172_v19  ;;  %v6345_v19 = vld [vmem:[#allocation2 + $0x62e] sm:$0xff] }
 0x2f4   : > { %16846 = vmatprep.mubr.msk.f32.mxu1 %vm273_vm1, %v5342_v28  ;;  %v9365_v24 = vld [vmem:[#allocation2 + $0x6d0] sm:$0xff]  ;;  %v21413_v28 = vld [vmem:[#allocation2 + $0x706] sm:$0xff] }
 0x2f6   : > { %16397 = vmatmul.mubr.msk.f32.gmra.mrb[28].mxu0 %vm273_vm1, %v21180_v23  ;;  %v6346_v23 = vld [vmem:[#allocation2 + $0x65e] sm:$0xff] }
 0x2f7   : > { %16847 = vmatmul.mubr.msk.f32.gmra.mrb[28].mxu1 %vm273_vm1, %v5343_v55  ;;  %16399 = vmatprep.mubr.msk.f32.mxu0 %vm273_vm1, %v2602_v57  ;;  %v9366_v55 = vld [vmem:[#allocation2 + $0x700] sm:$0xff]  ;;  %v21421_v57 = vld [vmem:[#allocation2 + $0x70e] sm:$0xff] }
 0x2f8   : > { %16849 = vmatprep.mubr.msk.f32.mxu1 %vm273_vm1, %v5344_v58  ;;  %v9367_v58 = vld [vmem:[#allocation2 + $0x708] sm:$0xff] }
 0x2fa   : > { %16400 = vmatmul.mubr.msk.f32.gmra.mrb[30].mxu0 %vm273_vm1, %v2603_v27  ;;  %v21423_v27 = vld [vmem:[#allocation2 + $0x73e] sm:$0xff] }
 0x2fb   : > { %16850 = vmatmul.mubr.msk.f32.gmra.mrb[30].mxu1 %vm273_vm1, %v5345_v53  ;;  %16854 = vmatprep.mubr.msk.f32.mxu0 %vm273_vm1, %v21304_v29  ;;  %v9368_v53 = vld [vmem:[#allocation2 + $0x738] sm:$0xff] }
 0x2fc   : > { %17304 = vmatprep.mubr.msk.f32.mxu1 %vm273_vm1, %v9338_v35  ;;  %v21431_v35 = vld [vmem:[#allocation2 + $0x746] sm:$0xff] }
 0x2fe   : > { %16855 = vmatmul.mubr.msk.f32.vlgmr.msra.gmra.mrb[32].mxu0 %vm273_vm1, %v21311_v31 }
 0x2ff   : > { %17305 = vmatmul.mubr.msk.f32.vlgmr.msra.gmra.mrb[32].mxu1 %vm273_vm1, %v9339_v36  ;;  %16903 = vmatpush3.msk.msra.mxu0 %vm839_vm0, %v21196_v54  ;;  %v6347_v54 = vld [vmem:[#allocation2 + $0x666] sm:$0xff] }
 0x300   : > { %16857 = vmatprep.mubr.msk.f32.mxu0 %vm273_vm1, %v21313_v25  ;;  %17307 = vmatprep.mubr.msk.f32.mxu1 %vm273_vm1, %v9340_v59  ;;  %v9369_v36 = vld [vmem:[#allocation2 + $0x740] sm:$0xff]  ;;  %v6300_v59 = vld [vmem:[#allocation2 + $0x156] sm:$0xff] }
 0x301   : > { %17353 = vmatpush3.msk.msra.mxu1 %vm839_vm0, %v21201_v56  ;;  %16952 = vmatprep.subr.msk.mxu0 %vm839_vm0, %v21321_v60  ;;  %v9361_v56 = vld [vmem:[#allocation2 + $0x660] sm:$0xff] }
 0x302   : > { %17402 = vmatprep.subr.msk.mxu1 %vm839_vm0, %v21326_v30  ;;  %16858 = vmatmul.mubr.msk.f32.gmra.mrb[34].mxu0 %vm273_vm1, %v21332_v32 }
 0x303   : > { %17308 = vmatmul.mubr.msk.f32.gmra.mrb[34].mxu1 %vm273_vm1, %v9341_v4  ;;  %16860 = vmatprep.mubr.msk.f32.mxu0 %vm273_vm1, %v21337_v33  ;;  %v9306_v4 = vld [vmem:[#allocation2] sm:$0xff] }
 0x304   : > { %17310 = vmatprep.mubr.msk.f32.mxu1 %vm273_vm1, %v9342_v34  ;;  %v6301_v34 = vld [vmem:[#allocation2 + $0x15e] sm:$0xff] }
 0x306   : > { %16861 = vmatmul.mubr.msk.f32.gmra.mrb[36].mxu0 %vm273_vm1, %v21349_v37 }
 0x307   : > { %17311 = vmatmul.mubr.msk.f32.gmra.mrb[36].mxu1 %vm273_vm1, %v9343_v38  ;;  %16863 = vmatprep.mubr.msk.f32.mxu0 %vm273_vm1, %v21351_v39  ;;  %v9307_v38 = vld [vmem:[#allocation2 + $0x8] sm:$0xff] }
 0x308   : > { %17313 = vmatprep.mubr.msk.f32.mxu1 %vm273_vm1, %v9344_v40  ;;  %v6302_v40 = vld [vmem:[#allocation2 + $0x18e] sm:$0xff] }
 0x30a   : > { %16864 = vmatmul.mubr.msk.f32.gmra.mrb[38].mxu0 %vm273_vm1, %v21359_v41 }
 0x30b   : > { %17314 = vmatmul.mubr.msk.f32.gmra.mrb[38].mxu1 %vm273_vm1, %v9345_v42  ;;  %16866 = vmatprep.mubr.msk.f32.mxu0 %vm273_vm1, %v6332_v43  ;;  %v9308_v42 = vld [vmem:[#allocation2 + $0x38] sm:$0xff]  ;;  %v21443_v43 = vld [vmem:[%s22914_s1 + $0x4c] sm:$0xf] }
 0x30c   : > { %17316 = vmatprep.mubr.msk.f32.mxu1 %vm273_vm1, %v9346_v44  ;;  %v21448_v44 = vld [vmem:[%s22914_s1 + $0x70] sm:$0xf] }
 0x30e   : > { %16867 = vmatmul.mubr.msk.f32.gmra.mrb[40].mxu0 %vm273_vm1, %v6333_v45  ;;  %v6303_v45 = vld [vmem:[#allocation2 + $0x196] sm:$0xff] }
 0x30f   : > { %17317 = vmatmul.mubr.msk.f32.gmra.mrb[40].mxu1 %vm273_vm1, %v9347_v46  ;;  %16869 = vmatprep.mubr.msk.f32.mxu0 %vm273_vm1, %v6334_v47  ;;  %v9309_v46 = vld [vmem:[#allocation2 + $0x40] sm:$0xff] }
 0x310   : > { %17319 = vmatprep.mubr.msk.f32.mxu1 %vm273_vm1, %v9348_v48  ;;  %v6304_v47 = vld [vmem:[#allocation2 + $0x1c6] sm:$0xff]  ;;  %v9310_v48 = vld [vmem:[#allocation2 + $0x70] sm:$0xff] }
 0x312   : > { %16870 = vmatmul.mubr.msk.f32.gmra.mrb[42].mxu0 %vm273_vm1, %v6335_v49  ;;  %v9311_v49 = vld [vmem:[#allocation2 + $0x78] sm:$0xff] }
 0x313   : > { %17320 = vmatmul.mubr.msk.f32.gmra.mrb[42].mxu1 %vm273_vm1, %v9349_v50  ;;  %16872 = vmatprep.mubr.msk.f32.mxu0 %vm273_vm1, %v6336_v51  ;;  %v6306_v50 = vld [vmem:[#allocation2 + $0x1fe] sm:$0xff]  ;;  %v6307_v51 = vld [vmem:[#allocation2 + $0x206] sm:$0xff] }
 0x314   : > { %17322 = vmatprep.mubr.msk.f32.mxu1 %vm273_vm1, %v9350_v52  ;;  %v9313_v52 = vld [vmem:[#allocation2 + $0xb0] sm:$0xff] }
 0x316   : > { %16873 = vmatmul.mubr.msk.f32.gmra.mrb[44].mxu0 %vm273_vm1, %v6337_v61  ;;  %v6308_v61 = vld [vmem:[#allocation2 + $0x236] sm:$0xff] }
 0x317   : > { %17323 = vmatmul.mubr.msk.f32.gmra.mrb[44].mxu1 %vm273_vm1, %v9351_v62  ;;  %16875 = vmatprep.mubr.msk.f32.mxu0 %vm273_vm1, %v6338_v63  ;;  %v9314_v62 = vld [vmem:[#allocation2 + $0xe0] sm:$0xff] }
 0x318   : > { %17325 = vmatprep.mubr.msk.f32.mxu1 %vm273_vm1, %v9352_v0  ;;  %v6309_v63 = vld [vmem:[#allocation2 + $0x23e] sm:$0xff]  ;;  %v9315_v0 = vld [vmem:[#allocation2 + $0xe8] sm:$0xff] }
 0x31a   : > { %16876 = vmatmul.mubr.msk.f32.gmra.mrb[46].mxu0 %vm273_vm1, %v6339_v1  ;;  %v6310_v1 = vld [vmem:[#allocation2 + $0x26e] sm:$0xff] }
 0x31b   : > { %17326 = vmatmul.mubr.msk.f32.gmra.mrb[46].mxu1 %vm273_vm1, %v9353_v2  ;;  %16878 = vmatprep.mubr.msk.f32.mxu0 %vm273_vm1, %v6340_v3  ;;  %v9316_v2 = vld [vmem:[#allocation2 + $0x118] sm:$0xff] }
 0x31c   : > { %17328 = vmatprep.mubr.msk.f32.mxu1 %vm273_vm1, %v9354_v5  ;;  %v6311_v3 = vld [vmem:[#allocation2 + $0x276] sm:$0xff]  ;;  %v9317_v5 = vld [vmem:[#allocation2 + $0x120] sm:$0xff] }
 0x31e   : > { %16879 = vmatmul.mubr.msk.f32.gmra.mrb[48].mxu0 %vm273_vm1, %v6341_v6  ;;  %v6312_v6 = vld [vmem:[#allocation2 + $0x2a6] sm:$0xff] }
 0x31f   : > { %17329 = vmatmul.mubr.msk.f32.gmra.mrb[48].mxu1 %vm273_vm1, %v9355_v7  ;;  %16881 = vmatprep.mubr.msk.f32.mxu0 %vm273_vm1, %v6342_v8  ;;  %v9318_v7 = vld [vmem:[#allocation2 + $0x150] sm:$0xff] }
 0x320   : > { %17331 = vmatprep.mubr.msk.f32.mxu1 %vm273_vm1, %v9356_v9  ;;  %v6313_v8 = vld [vmem:[#allocation2 + $0x2ae] sm:$0xff]  ;;  %v9319_v9 = vld [vmem:[#allocation2 + $0x158] sm:$0xff] }
 0x322   : > { %16882 = vmatmul.mubr.msk.f32.gmra.mrb[50].mxu0 %vm273_vm1, %v6343_v11  ;;  %v6314_v11 = vld [vmem:[#allocation2 + $0x2de] sm:$0xff] }
 0x323   : > { %17332 = vmatmul.mubr.msk.f32.gmra.mrb[50].mxu1 %vm273_vm1, %v9357_v13  ;;  %16884 = vmatprep.mubr.msk.f32.mxu0 %vm273_vm1, %v6344_v15  ;;  %v9320_v13 = vld [vmem:[#allocation2 + $0x188] sm:$0xff] }
 0x324   : > { %17334 = vmatprep.mubr.msk.f32.mxu1 %vm273_vm1, %v9358_v17  ;;  %v6315_v15 = vld [vmem:[#allocation2 + $0x2e6] sm:$0xff]  ;;  %v9321_v17 = vld [vmem:[#allocation2 + $0x190] sm:$0xff] }
 0x326   : > { %16885 = vmatmul.mubr.msk.f32.gmra.mrb[52].mxu0 %vm273_vm1, %v6345_v19  ;;  %v6316_v19 = vld [vmem:[#allocation2 + $0x316] sm:$0xff] }
 0x327   : > { %17335 = vmatmul.mubr.msk.f32.gmra.mrb[52].mxu1 %vm273_vm1, %v9359_v21  ;;  %16887 = vmatprep.mubr.msk.f32.mxu0 %vm273_vm1, %v6346_v23  ;;  %v9322_v21 = vld [vmem:[#allocation2 + $0x1c0] sm:$0xff] }
 0x328   : > { %17337 = vmatprep.mubr.msk.f32.mxu1 %vm273_vm1, %v9360_v26  ;;  %v6317_v23 = vld [vmem:[#allocation2 + $0x31e] sm:$0xff]  ;;  %v9323_v26 = vld [vmem:[#allocation2 + $0x1c8] sm:$0xff] }
 0x32a   : > { %16888 = vmatmul.mubr.msk.f32.gmra.mrb[54].mxu0 %vm273_vm1, %v6347_v54  ;;  %v6318_v54 = vld [vmem:[#allocation2 + $0x34e] sm:$0xff] }
 0x32b   : > { %17338 = vmatmul.mubr.msk.f32.gmra.mrb[54].mxu1 %vm273_vm1, %v9361_v56  ;;  %16890 = vmatprep.mubr.msk.f32.mxu0 %vm273_vm1, %v21394_v10  ;;  %v9324_v56 = vld [vmem:[#allocation2 + $0x1f8] sm:$0xff] }
 0x32c   : > { %17340 = vmatprep.mubr.msk.f32.mxu1 %vm273_vm1, %v9362_v12  ;;  %v6319_v12 = vld [vmem:[#allocation2 + $0x356] sm:$0xff] }
 0x32e   : > { %16891 = vmatmul.mubr.msk.f32.gmra.mrb[56].mxu0 %vm273_vm1, %v21401_v14 }
 0x32f   : > { %17341 = vmatmul.mubr.msk.f32.gmra.mrb[56].mxu1 %vm273_vm1, %v9363_v16  ;;  %16893 = vmatprep.mubr.msk.f32.mxu0 %vm273_vm1, %v21403_v18  ;;  %v9325_v16 = vld [vmem:[#allocation2 + $0x200] sm:$0xff] }
 0x330   : > { %17343 = vmatprep.mubr.msk.f32.mxu1 %vm273_vm1, %v9364_v20  ;;  %v6320_v20 = vld [vmem:[#allocation2 + $0x386] sm:$0xff] }
 0x332   : > { %16894 = vmatmul.mubr.msk.f32.gmra.mrb[58].mxu0 %vm273_vm1, %v21411_v22 }
 0x333   : > { %17344 = vmatmul.mubr.msk.f32.gmra.mrb[58].mxu1 %vm273_vm1, %v9365_v24  ;;  %16896 = vmatprep.mubr.msk.f32.mxu0 %vm273_vm1, %v21413_v28  ;;  %v9326_v24 = vld [vmem:[#allocation2 + $0x230] sm:$0xff] }
 0x334   : > { %17346 = vmatprep.mubr.msk.f32.mxu1 %vm273_vm1, %v9366_v55  ;;  %v6321_v55 = vld [vmem:[#allocation2 + $0x38e] sm:$0xff] }
 0x336   : > { %16897 = vmatmul.mubr.msk.f32.gmra.mrb[60].mxu0 %vm273_vm1, %v21421_v57 }
 0x337   : > { %17347 = vmatmul.mubr.msk.f32.gmra.mrb[60].mxu1 %vm273_vm1, %v9367_v58  ;;  %16899 = vmatprep.mubr.msk.f32.mxu0 %vm273_vm1, %v21423_v27  ;;  %v9327_v58 = vld [vmem:[#allocation2 + $0x238] sm:$0xff] }
 0x338   : > { %17349 = vmatprep.mubr.msk.f32.mxu1 %vm273_vm1, %v9368_v53  ;;  %v6322_v53 = vld [vmem:[#allocation2 + $0x3be] sm:$0xff] }
 0x33a   : > { %16900 = vmatmul.mubr.msk.f32.gmra.mrb[62].mxu0 %vm273_vm1, %v21431_v35 }
 0x33b   : > { %17350 = vmatmul.mubr.msk.f32.gmra.mrb[62].mxu1 %vm273_vm1, %v9369_v36  ;;  %16904 = vmatprep.mubr.msk.f32.mxu0 %vm273_vm1, %v6300_v59  ;;  %v9328_v36 = vld [vmem:[#allocation2 + $0x268] sm:$0xff] }
 0x33c   : > { %17354 = vmatprep.mubr.msk.f32.mxu1 %vm273_vm1, %v9306_v4  ;;  %v6323_v59 = vld [vmem:[#allocation2 + $0x3c6] sm:$0xff]  ;;  %v9329_v4 = vld [vmem:[#allocation2 + $0x270] sm:$0xff] }
 0x33e   : > { %16905 = vmatmul.mubr.msk.f32.vlgmr.msra.gmra.mrb[32].mxu0 %vm273_vm1, %v6301_v34  ;;  %v9330_v34 = vld [vmem:[#allocation2 + $0x2a0] sm:$0xff] }
 0x33f   : > { %17355 = vmatmul.mubr.msk.f32.vlgmr.msra.gmra.mrb[32].mxu1 %vm273_vm1, %v9307_v38  ;;  %16953 = vmatpush3.msk.msra.mxu0 %vm839_vm0, %v21321_v60  ;;  %v6305_v60 = vld [vmem:[#allocation2 + $0x1ce] sm:$0xff] }
 0x340   : > { %16907 = vmatprep.mubr.msk.f32.mxu0 %vm273_vm1, %v6302_v40  ;;  %17357 = vmatprep.mubr.msk.f32.mxu1 %vm273_vm1, %v9308_v42  ;;  %v9331_v38 = vld [vmem:[#allocation2 + $0x2a8] sm:$0xff]  ;;  %v9332_v40 = vld [vmem:[#allocation2 + $0x2d8] sm:$0xff]  ;;  %v9333_v42 = vld [vmem:[#allocation2 + $0x2e0] sm:$0xff] }
 0x341   : > { %17403 = vmatpush3.msk.msra.mxu1 %vm839_vm0, %v21326_v30  ;;  %17002 = vmatprep.subr.msk.mxu0 %vm839_vm0, %v21443_v43  ;;  %v9312_v30 = vld [vmem:[#allocation2 + $0xa8] sm:$0xff] }
 0x342   : > { %17452 = vmatprep.subr.msk.mxu1 %vm839_vm0, %v21448_v44  ;;  %16908 = vmatmul.mubr.msk.f32.gmra.mrb[34].mxu0 %vm273_vm1, %v6303_v45  ;;  %v9334_v45 = vld [vmem:[#allocation2 + $0x310] sm:$0xff] }
 0x343   : > { %17358 = vmatmul.mubr.msk.f32.gmra.mrb[34].mxu1 %vm273_vm1, %v9309_v46  ;;  %16910 = vmatprep.mubr.msk.f32.mxu0 %vm273_vm1, %v6304_v47  ;;  %v9378_v46 = vld [vmem:[#allocation2 + $0x8c0] sm:$0xff]  ;;  %v6358_v47 = vld [vmem:[#allocation2 + $0x7ae] sm:$0xff] }
 0x344   : > { %17360 = vmatprep.mubr.msk.f32.mxu1 %vm273_vm1, %v9310_v48  ;;  %v9380_v48 = vld [vmem:[#allocation2 + $0x8f8] sm:$0xff] }
 0x346   : > { %16911 = vmatmul.mubr.msk.f32.gmra.mrb[36].mxu0 %vm273_vm1, %v6305_v60  ;;  %v9382_v60 = vld [vmem:[#allocation2 + $0x930] sm:$0xff] }
 0x347   : > { %17361 = vmatmul.mubr.msk.f32.gmra.mrb[36].mxu1 %vm273_vm1, %v9311_v49  ;;  %16913 = vmatprep.mubr.msk.f32.mxu0 %vm273_vm1, %v6306_v50 }
 0x348   : > { %17363 = vmatprep.mubr.msk.f32.mxu1 %vm273_vm1, %v9312_v30  ;;  %v6360_v30 = vld [vmem:[#allocation2 + $0x7e6] sm:$0xff] }
 0x34a   : > { %16914 = vmatmul.mubr.msk.f32.gmra.mrb[38].mxu0 %vm273_vm1, %v6307_v51 }
 0x34b   : > { %17364 = vmatmul.mubr.msk.f32.gmra.mrb[38].mxu1 %vm273_vm1, %v9313_v52  ;;  %16916 = vmatprep.mubr.msk.f32.mxu0 %vm273_vm1, %v6308_v61  ;;  %v9383_v61 = vld [vmem:[#allocation2 + $0x938] sm:$0xff] }
 0x34c   : > { %17366 = vmatprep.mubr.msk.f32.mxu1 %vm273_vm1, %v9314_v62  ;;  %v6361_v62 = vld [vmem:[#allocation2 + $0x7ee] sm:$0xff] }
 0x34e   : > { %16917 = vmatmul.mubr.msk.f32.gmra.mrb[40].mxu0 %vm273_vm1, %v6309_v63 }
 0x34f   : > { %17367 = vmatmul.mubr.msk.f32.gmra.mrb[40].mxu1 %vm273_vm1, %v9315_v0  ;;  %16919 = vmatprep.mubr.msk.f32.mxu0 %vm273_vm1, %v6310_v1  ;;  %v6362_v1 = vld [vmem:[#allocation2 + $0x81e] sm:$0xff] }
 0x350   : > { %17369 = vmatprep.mubr.msk.f32.mxu1 %vm273_vm1, %v9316_v2  ;;  %v9384_v2 = vld [vmem:[#allocation2 + $0x968] sm:$0xff] }
 0x352   : > { %16920 = vmatmul.mubr.msk.f32.gmra.mrb[42].mxu0 %vm273_vm1, %v6311_v3 }
 0x353   : > { %17370 = vmatmul.mubr.msk.f32.gmra.mrb[42].mxu1 %vm273_vm1, %v9317_v5  ;;  %16922 = vmatprep.mubr.msk.f32.mxu0 %vm273_vm1, %v6312_v6  ;;  %v9385_v6 = vld [vmem:[#allocation2 + $0x970] sm:$0xff] }
 0x354   : > { %17372 = vmatprep.mubr.msk.f32.mxu1 %vm273_vm1, %v9318_v7  ;;  %v6363_v7 = vld [vmem:[#allocation2 + $0x826] sm:$0xff] }
 0x356   : > { %16923 = vmatmul.mubr.msk.f32.gmra.mrb[44].mxu0 %vm273_vm1, %v6313_v8 }
 0x357   : > { %17373 = vmatmul.mubr.msk.f32.gmra.mrb[44].mxu1 %vm273_vm1, %v9319_v9  ;;  %16925 = vmatprep.mubr.msk.f32.mxu0 %vm273_vm1, %v6314_v11  ;;  %v6364_v11 = vld [vmem:[#allocation2 + $0x856] sm:$0xff] }
 0x358   : > { %17375 = vmatprep.mubr.msk.f32.mxu1 %vm273_vm1, %v9320_v13 }
 0x35a   : > { %16926 = vmatmul.mubr.msk.f32.gmra.mrb[46].mxu0 %vm273_vm1, %v6315_v15 }
 0x35b   : > { %17376 = vmatmul.mubr.msk.f32.gmra.mrb[46].mxu1 %vm273_vm1, %v9321_v17  ;;  %16928 = vmatprep.mubr.msk.f32.mxu0 %vm273_vm1, %v6316_v19  ;;  %v9386_v17 = vld [vmem:[#allocation2 + $0x9a0] sm:$0xff]  ;;  %v9387_v19 = vld [vmem:[#allocation2 + $0x9a8] sm:$0xff] }
 0x35c   : > { %17378 = vmatprep.mubr.msk.f32.mxu1 %vm273_vm1, %v9322_v21  ;;  %v6365_v21 = vld [vmem:[#allocation2 + $0x85e] sm:$0xff] }
 0x35e   : > { %16929 = vmatmul.mubr.msk.f32.gmra.mrb[48].mxu0 %vm273_vm1, %v6317_v23 }
 0x35f   : > { %17379 = vmatmul.mubr.msk.f32.gmra.mrb[48].mxu1 %vm273_vm1, %v9323_v26  ;;  %16931 = vmatprep.mubr.msk.f32.mxu0 %vm273_vm1, %v6318_v54  ;;  %v6366_v54 = vld [vmem:[#allocation2 + $0x88e] sm:$0xff] }
 0x360   : > { %17381 = vmatprep.mubr.msk.f32.mxu1 %vm273_vm1, %v9324_v56 }
 0x362   : > { %16932 = vmatmul.mubr.msk.f32.gmra.mrb[50].mxu0 %vm273_vm1, %v6319_v12 }
 0x363   : > { %17382 = vmatmul.mubr.msk.f32.gmra.mrb[50].mxu1 %vm273_vm1, %v9325_v16  ;;  %16934 = vmatprep.mubr.msk.f32.mxu0 %vm273_vm1, %v6320_v20  ;;  %v9388_v16 = vld [vmem:[#allocation2 + $0x9d8] sm:$0xff]  ;;  %v9389_v20 = vld [vmem:[#allocation2 + $0x9e0] sm:$0xff] }
 0x364   : > { %17384 = vmatprep.mubr.msk.f32.mxu1 %vm273_vm1, %v9326_v24  ;;  %v6367_v24 = vld [vmem:[#allocation2 + $0x896] sm:$0xff] }
 0x366   : > { %16935 = vmatmul.mubr.msk.f32.gmra.mrb[52].mxu0 %vm273_vm1, %v6321_v55 }
 0x367   : > { %17385 = vmatmul.mubr.msk.f32.gmra.mrb[52].mxu1 %vm273_vm1, %v9327_v58  ;;  %16937 = vmatprep.mubr.msk.f32.mxu0 %vm273_vm1, %v6322_v53  ;;  %v6368_v53 = vld [vmem:[#allocation2 + $0x8c6] sm:$0xff] }
 0x368   : > { %17387 = vmatprep.mubr.msk.f32.mxu1 %vm273_vm1, %v9328_v36 }
 0x36a   : > { %16938 = vmatmul.mubr.msk.f32.gmra.mrb[54].mxu0 %vm273_vm1, %v6323_v59 }
 0x36b   : > { %17388 = vmatmul.mubr.msk.f32.gmra.mrb[54].mxu1 %vm273_vm1, %v9329_v4  ;;  %16940 = vmatprep.mubr.msk.f32.mxu0 %vm273_vm1, %v21304_v29  ;;  %v9335_v29 = vld [vmem:[#allocation2 + $0x318] sm:$0xff]  ;;  %v9390_v4 = vld [vmem:[#allocation2 + $0xa10] sm:$0xff] }
 0x36c   : > { %17390 = vmatprep.mubr.msk.f32.mxu1 %vm273_vm1, %v9330_v34  ;;  %v9391_v34 = vld [vmem:[#allocation2 + $0xa18] sm:$0xff] }
 0x36e   : > { %16941 = vmatmul.mubr.msk.f32.gmra.mrb[56].mxu0 %vm273_vm1, %v21311_v31  ;;  %v9336_v31 = vld [vmem:[#allocation2 + $0x348] sm:$0xff] }
 0x36f   : > { %17391 = vmatmul.mubr.msk.f32.gmra.mrb[56].mxu1 %vm273_vm1, %v9331_v38  ;;  %16943 = vmatprep.mubr.msk.f32.mxu0 %vm273_vm1, %v21313_v25  ;;  %v9337_v25 = vld [vmem:[#allocation2 + $0x350] sm:$0xff] }
 0x370   : > { %17393 = vmatprep.mubr.msk.f32.mxu1 %vm273_vm1, %v9332_v40  ;;  %v6369_v38 = vld [vmem:[#allocation2 + $0x8ce] sm:$0xff] }
 0x372   : > { %16944 = vmatmul.mubr.msk.f32.gmra.mrb[58].mxu0 %vm273_vm1, %v21332_v32  ;;  %v9370_v32 = vld [vmem:[#allocation2 + $0x7e0] sm:$0xff] }
 0x373   : > { %17394 = vmatmul.mubr.msk.f32.gmra.mrb[58].mxu1 %vm273_vm1, %v9333_v42  ;;  %16946 = vmatprep.mubr.msk.f32.mxu0 %vm273_vm1, %v21337_v33  ;;  %v9371_v33 = vld [vmem:[#allocation2 + $0x7e8] sm:$0xff] }
 0x374   : > { %17396 = vmatprep.mubr.msk.f32.mxu1 %vm273_vm1, %v9334_v45  ;;  %v6370_v45 = vld [vmem:[#allocation2 + $0x8fe] sm:$0xff] }
 0x376   : > { %16947 = vmatmul.mubr.msk.f32.gmra.mrb[60].mxu0 %vm273_vm1, %v21349_v37  ;;  %v9372_v37 = vld [vmem:[#allocation2 + $0x818] sm:$0xff] }
 0x377   : > { %17397 = vmatmul.mubr.msk.f32.gmra.mrb[60].mxu1 %vm273_vm1, %v9335_v29  ;;  %16949 = vmatprep.mubr.msk.f32.mxu0 %vm273_vm1, %v21351_v39  ;;  %v21535_v39 = vld [vmem:[%s22914_s1 + $0x58] sm:$0xf] }
 0x378   : > { %17399 = vmatprep.mubr.msk.f32.mxu1 %vm273_vm1, %v9336_v31 }
 0x37a   : > { %16950 = vmatmul.mubr.msk.f32.gmra.mrb[62].mxu0 %vm273_vm1, %v21359_v41  ;;  %v21540_v41 = vld [vmem:[%s22914_s1 + $0x7c] sm:$0xf] }
 0x37b   : > { %17400 = vmatmul.mubr.msk.f32.gmra.mrb[62].mxu1 %vm273_vm1, %v9337_v25  ;;  %16954 = vmatprep.mubr.msk.f32.mxu0 %vm273_vm1, %v21394_v10  ;;  %v9373_v10 = vld [vmem:[#allocation2 + $0x820] sm:$0xff]  ;;  %v9392_v25 = vld [vmem:[#allocation2 + $0xa48] sm:$0xff] }
 0x37c   : > { %17404 = vmatprep.mubr.msk.f32.mxu1 %vm273_vm1, %v9370_v32  ;;  %v9393_v32 = vld [vmem:[#allocation2 + $0xa50] sm:$0xff] }
 0x37e   : > { %16955 = vmatmul.mubr.msk.f32.vlgmr.msra.gmra.mrb[32].mxu0 %vm273_vm1, %v21401_v14  ;;  %v9374_v14 = vld [vmem:[#allocation2 + $0x850] sm:$0xff] }
 0x37f   : > { %17405 = vmatmul.mubr.msk.f32.vlgmr.msra.gmra.mrb[32].mxu1 %vm273_vm1, %v9371_v33  ;;  %17003 = vmatpush3.msk.msra.mxu0 %vm839_vm0, %v21443_v43  ;;  %v9376_v43 = vld [vmem:[#allocation2 + $0x888] sm:$0xff] }
 0x380   : > { %16957 = vmatprep.mubr.msk.f32.mxu0 %vm273_vm1, %v21403_v18  ;;  %17407 = vmatprep.mubr.msk.f32.mxu1 %vm273_vm1, %v9372_v37  ;;  %v9375_v18 = vld [vmem:[#allocation2 + $0x858] sm:$0xff]  ;;  %v6371_v33 = vld [vmem:[#allocation2 + $0x906] sm:$0xff] }
 0x381   : > { %17453 = vmatpush3.msk.msra.mxu1 %vm839_vm0, %v21448_v44  ;;  %17052 = vmatprep.subr.msk.mxu0 %vm839_vm0, %v21535_v39  ;;  %v6356_v44 = vld [vmem:[#allocation2 + $0x776] sm:$0xff] }
 0x382   : > { %17502 = vmatprep.subr.msk.mxu1 %vm839_vm0, %v21540_v41  ;;  %16958 = vmatmul.mubr.msk.f32.gmra.mrb[34].mxu0 %vm273_vm1, %v21411_v22  ;;  %v9377_v22 = vld [vmem:[#allocation2 + $0x890] sm:$0xff] }
 0x383   : > { %17408 = vmatmul.mubr.msk.f32.gmra.mrb[34].mxu1 %vm273_vm1, %v9373_v10  ;;  %16960 = vmatprep.mubr.msk.f32.mxu0 %vm273_vm1, %v21413_v28  ;;  %v6357_v28 = vld [vmem:[#allocation2 + $0x77e] sm:$0xff] }
 0x384   : > { %17410 = vmatprep.mubr.msk.f32.mxu1 %vm273_vm1, %v9374_v14  ;;  %v6372_v14 = vld [vmem:[#allocation2 + $0x936] sm:$0xff] }
 0x386   : > { %16961 = vmatmul.mubr.msk.f32.gmra.mrb[36].mxu0 %vm273_vm1, %v21421_v57  ;;  %v9379_v57 = vld [vmem:[#allocation2 + $0x8c8] sm:$0xff] }
 0x387   : > { %17411 = vmatmul.mubr.msk.f32.gmra.mrb[36].mxu1 %vm273_vm1, %v9375_v18  ;;  %16963 = vmatprep.mubr.msk.f32.mxu0 %vm273_vm1, %v21423_v27  ;;  %v9381_v27 = vld [vmem:[#allocation2 + $0x900] sm:$0xff] }
 0x388   : > { %17413 = vmatprep.mubr.msk.f32.mxu1 %vm273_vm1, %v9376_v43 }
 0x38a   : > { %16964 = vmatmul.mubr.msk.f32.gmra.mrb[38].mxu0 %vm273_vm1, %v21431_v35  ;;  %v6359_v35 = vld [vmem:[#allocation2 + $0x7b6] sm:$0xff] }
 0x38b   : > { %17414 = vmatmul.mubr.msk.f32.gmra.mrb[38].mxu1 %vm273_vm1, %v9377_v22  ;;  %16966 = vmatprep.mubr.msk.f32.mxu0 %vm273_vm1, %v6356_v44  ;;  %v9394_v22 = vld [vmem:[#allocation2 + $0xa80] sm:$0xff]  ;;  %v9395_v44 = vld [vmem:[#allocation2 + $0xa88] sm:$0xff] }
 0x38c   : > { %17416 = vmatprep.mubr.msk.f32.mxu1 %vm273_vm1, %v9378_v46  ;;  %v6373_v46 = vld [vmem:[#allocation2 + $0x93e] sm:$0xff] }
 0x38e   : > { %16967 = vmatmul.mubr.msk.f32.gmra.mrb[40].mxu0 %vm273_vm1, %v6357_v28 }
 0x38f   : > { %17417 = vmatmul.mubr.msk.f32.gmra.mrb[40].mxu1 %vm273_vm1, %v9379_v57  ;;  %16969 = vmatprep.mubr.msk.f32.mxu0 %vm273_vm1, %v6358_v47  ;;  %v6374_v47 = vld [vmem:[#allocation2 + $0x96e] sm:$0xff] }
 0x390   : > { %17419 = vmatprep.mubr.msk.f32.mxu1 %vm273_vm1, %v9380_v48 }
 0x391   : > { %v21574_v49 = vpop.f32.mrb[0].mxu0 }
 0x392   : > { %v16806_v50 = vpop.f32.mrb[0].mxu1  ;;  %v21578_v51 = vpop.f32.mrb[1].mxu0  ;;  %16970 = vmatmul.mubr.msk.f32.gmra.mrb[42].mxu0 %vm273_vm1, %v6359_v35  ;;  %v9396_v35 = vld [vmem:[#allocation2 + $0xab8] sm:$0xff] }
 0x393   : > { %17420 = vmatmul.mubr.msk.f32.gmra.mrb[42].mxu1 %vm273_vm1, %v9381_v27  ;;  %12474 = vrot.lane.b32.xlu0 %v16806_v50, %s18983_s28  ;;  %v6109_v52 = vpop.f32.mrb[1].mxu1  ;;  %v6375_v50 = vld [vmem:[#allocation2 + $0x976] sm:$0xff] }
 0x394   : > { %17422 = vmatprep.mubr.msk.f32.mxu1 %vm273_vm1, %v9382_v60  ;;  %16972 = vmatprep.mubr.msk.f32.mxu0 %vm273_vm1, %v6360_v30  ;;  %v9397_v60 = vld [vmem:[#allocation2 + $0xac0] sm:$0xff] }
 0x395   : > { %v21583_v63 = vpop.f32.mrb[2].mxu0 }
 0x396   : > { %v16809_v0 = vpop.f32.mrb[2].mxu1  ;;  %v21587_v3 = vpop.f32.mrb[3].mxu0  ;;  %16973 = vmatmul.mubr.msk.f32.gmra.mrb[44].mxu0 %vm273_vm1, %v6361_v62 }
 0x397   : > { %17423 = vmatmul.mubr.msk.f32.gmra.mrb[44].mxu1 %vm273_vm1, %v9383_v61  ;;  %12472 = vrot.lane.b32.xlu0 %v6109_v52, %s18983_s28  ;;  %v6119_v5 = vpop.f32.mrb[3].mxu1  ;;  %v6376_v61 = vld [vmem:[#allocation2 + $0x9a6] sm:$0xff] }
 0x398   : > { %12478 = vrot.lane.b32.xlu1 %v16809_v0, %s18983_s28  ;;  %16975 = vmatprep.mubr.msk.f32.mxu0 %vm273_vm1, %v6362_v1  ;;  %v9398_v1 = vld [vmem:[#allocation2 + $0xaf0] sm:$0xff] }
 0x399   : > { %17425 = vmatprep.mubr.msk.f32.mxu1 %vm273_vm1, %v9384_v2  ;;  %v21593_v8 = vpop.f32.mrb[4].mxu0  ;;  %v9399_v2 = vld [vmem:[#allocation2 + $0xaf8] sm:$0xff] }
 0x39a   : > { %v16812_v9 = vpop.f32.mrb[4].mxu1  ;;  %v21596_v13 = vpop.f32.mrb[5].mxu0  ;;  %16976 = vmatmul.mubr.msk.f32.gmra.mrb[46].mxu0 %vm273_vm1, %v6363_v7 }
 0x39b   : > { %17426 = vmatmul.mubr.msk.f32.gmra.mrb[46].mxu1 %vm273_vm1, %v9385_v6  ;;  %v6129_v15 = vpop.f32.mrb[5].mxu1  ;;  %16978 = vmatprep.mubr.msk.f32.mxu0 %vm273_vm1, %v6364_v11 }
 0x39c   : > { %12476 = vrot.lane.b32.xlu1 %v6119_v5, %s18983_s28  ;;  %12480 = vrot.lane.b32.xlu0 %v6129_v15, %s18983_s28  ;;  %v6377_v5 = vld [vmem:[#allocation2 + $0x9ae] sm:$0xff] }
 0x39d   : > { %v21602_v23 = vpop.f32.mrb[6].mxu0  ;;  %17428 = vmatprep.mubr.msk.f32.mxu1 %vm273_vm1, %v9386_v17  ;;  %v9400_v17 = vld [vmem:[#allocation2 + $0xb28] sm:$0xff] }
 0x39e   : > { %v16815_v26 = vpop.f32.mrb[6].mxu1  ;;  %v21606_v56 = vpop.f32.mrb[7].mxu0  ;;  %16979 = vmatmul.mubr.msk.f32.gmra.mrb[48].mxu0 %vm273_vm1, %v6365_v21  ;;  %v6379_v21 = vld [vmem:[#allocation2 + $0x9e6] sm:$0xff] }
 0x39f   : > { %17429 = vmatmul.mubr.msk.f32.gmra.mrb[48].mxu1 %vm273_vm1, %v9387_v19  ;;  %v6139_v12 = vpop.f32.mrb[7].mxu1  ;;  %16981 = vmatprep.mubr.msk.f32.mxu0 %vm273_vm1, %v6366_v54  ;;  %v9401_v19 = vld [vmem:[#allocation2 + $0xb30] sm:$0xff] }
 0x3a0   : > { %12482 = vrot.lane.b32.xlu1 %v16812_v9, %s18983_s28  ;;  %12484 = vrot.lane.b32.xlu0 %v6139_v12, %s18983_s28  ;;  %v6378_v9 = vld [vmem:[#allocation2 + $0x9de] sm:$0xff] }
 0x3a1   : > { %v21612_v55 = vpop.f32.mrb[8].mxu0  ;;  %17431 = vmatprep.mubr.msk.f32.mxu1 %vm273_vm1, %v9388_v16  ;;  %v21675_v12 = vld [vmem:[#allocation2 + $0x162] sm:$0xff] }
 0x3a2   : > { %v16818_v58 = vpop.f32.mrb[8].mxu1  ;;  %v21616_v36 = vpop.f32.mrb[9].mxu0  ;;  %16982 = vmatmul.mubr.msk.f32.gmra.mrb[50].mxu0 %vm273_vm1, %v6367_v24  ;;  %v1570_v24 = vld [vmem:[#allocation2 + $0x12] sm:$0xff] }
 0x3a3   : > { %17432 = vmatmul.mubr.msk.f32.gmra.mrb[50].mxu1 %vm273_vm1, %v9389_v20  ;;  %v6149_v59 = vpop.f32.mrb[9].mxu1  ;;  %16984 = vmatprep.mubr.msk.f32.mxu0 %vm273_vm1, %v6368_v53  ;;  %v21685_v53 = vld [vmem:[#allocation2 + $0x16a] sm:$0xff] }
 0x3a4   : > { %12486 = vrot.lane.b32.xlu1 %v16815_v26, %s18983_s28  ;;  %12488 = vrot.lane.b32.xlu0 %v6149_v59, %s18983_s28 }
 0x3a5   : > { %v21622_v40 = vpop.f32.mrb[10].mxu0  ;;  %17434 = vmatprep.mubr.msk.f32.mxu1 %vm273_vm1, %v9390_v4 }
 0x3a6   : > { %v16821_v42 = vpop.f32.mrb[10].mxu1  ;;  %v21626_v29 = vpop.f32.mrb[11].mxu0  ;;  %16985 = vmatmul.mubr.msk.f32.gmra.mrb[52].mxu0 %vm273_vm1, %v6369_v38 }
 0x3a7   : > { %17435 = vmatmul.mubr.msk.f32.gmra.mrb[52].mxu1 %vm273_vm1, %v9391_v34  ;;  %v6159_v31 = vpop.f32.mrb[11].mxu1  ;;  %16987 = vmatprep.mubr.msk.f32.mxu0 %vm273_vm1, %v6370_v45  ;;  %v1572_v45 = vld [vmem:[#allocation2 + $0x4a] sm:$0xff] }
 0x3a8   : > { %12490 = vrot.lane.b32.xlu1 %v16818_v58, %s18983_s28  ;;  %12492 = vrot.lane.b32.xlu0 %v6159_v31, %s18983_s28  ;;  %v1571_v58 = vld [vmem:[#allocation2 + $0x1a] sm:$0xff]  ;;  %v1573_v31 = vld [vmem:[#allocation2 + $0x52] sm:$0xff] }
 0x3a9   : > { %v21632_v37 = vpop.f32.mrb[12].mxu0  ;;  %17437 = vmatprep.mubr.msk.f32.mxu1 %vm273_vm1, %v9392_v25  ;;  %v21701_v25 = vld [vmem:[%s22914_s1 + $0x64] sm:$0xf] }
 0x3aa   : > { %v16824_v10 = vpop.f32.mrb[12].mxu1  ;;  %v21636_v18 = vpop.f32.mrb[13].mxu0  ;;  %16988 = vmatmul.mubr.msk.f32.gmra.mrb[54].mxu0 %vm273_vm1, %v6371_v33 }
 0x3ab   : > { %17438 = vmatmul.mubr.msk.f32.gmra.mrb[54].mxu1 %vm273_vm1, %v9393_v32  ;;  %v6169_v43 = vpop.f32.mrb[13].mxu1  ;;  %16990 = vmatprep.mubr.msk.f32.mxu0 %vm273_vm1, %v6372_v14 }
 0x3ac   : > { %12494 = vrot.lane.b32.xlu1 %v16821_v42, %s18983_s28  ;;  %12496 = vrot.lane.b32.xlu0 %v6169_v43, %s18983_s28  ;;  %v21693_v42 = vld [vmem:[#allocation2 + $0x19a] sm:$0xff] }
 0x3ad   : > { %v21642_v28 = vpop.f32.mrb[14].mxu0  ;;  %17440 = vmatprep.mubr.msk.f32.mxu1 %vm273_vm1, %v9394_v22  ;;  %v21716_v22 = vld [vmem:[#allocation2 + $0x1d2] sm:$0xff] }
 0x3ae   : > { %v16827_v57 = vpop.f32.mrb[14].mxu1  ;;  %v21646_v48 = vpop.f32.mrb[15].mxu0  ;;  %16991 = vmatmul.mubr.msk.f32.gmra.mrb[56].mxu0 %vm273_vm1, %v6373_v46  ;;  %v21726_v46 = vld [vmem:[%s22914_s1 + $0x88] sm:$0xf] }
 0x3af   : > { %17441 = vmatmul.mubr.msk.f32.gmra.mrb[56].mxu1 %vm273_vm1, %v9395_v44  ;;  %v6179_v27 = vpop.f32.mrb[15].mxu1  ;;  %16993 = vmatprep.mubr.msk.f32.mxu0 %vm273_vm1, %v6374_v47  ;;  %v1575_v44 = vld [vmem:[#allocation2 + $0x8a] sm:$0xff] }
 0x3b0   : > { %12498 = vrot.lane.b32.xlu1 %v16824_v10, %s18983_s28  ;;  %12500 = vrot.lane.b32.xlu0 %v6179_v27, %s18983_s28  ;;  %v21711_v10 = vld [vmem:[#allocation2 + $0x1a2] sm:$0xff] }
 0x3b1   : > { %v21652_v30 = vpop.f32.mrb[16].mxu0  ;;  %17443 = vmatprep.mubr.msk.f32.mxu1 %vm273_vm1, %v9396_v35 }
 0x3b2   : > { %v16830_v52 = vpop.f32.mrb[16].mxu1  ;;  %v21656_v62 = vpop.f32.mrb[17].mxu0  ;;  %16994 = vmatmul.mubr.msk.f32.gmra.mrb[58].mxu0 %vm273_vm1, %v6375_v50  ;;  %v1588_v50 = vld [vmem:[#allocation2 + $0x20a] sm:$0xff] }
 0x3b3   : > { %17444 = vmatmul.mubr.msk.f32.gmra.mrb[58].mxu1 %vm273_vm1, %v9397_v60  ;;  %v6189_v0 = vpop.f32.mrb[17].mxu1  ;;  %16996 = vmatprep.mubr.msk.f32.mxu0 %vm273_vm1, %v6376_v61  ;;  %v1578_v61 = vld [vmem:[#allocation2 + $0xf2] sm:$0xff] }
 0x3b4   : > { %12502 = vrot.lane.b32.xlu1 %v16827_v57, %s18983_s28  ;;  %12504 = vrot.lane.b32.xlu0 %v6189_v0, %s18983_s28  ;;  %v1576_v57 = vld [vmem:[#allocation2 + $0xba] sm:$0xff] }
 0x3b5   : > { %v21662_v6 = vpop.f32.mrb[18].mxu0  ;;  %17446 = vmatprep.mubr.msk.f32.mxu1 %vm273_vm1, %v9398_v1 }
 0x3b6   : > { %v16833_v7 = vpop.f32.mrb[18].mxu1  ;;  %v21666_v11 = vpop.f32.mrb[19].mxu0  ;;  %16997 = vmatmul.mubr.msk.f32.gmra.mrb[60].mxu0 %vm273_vm1, %v6377_v5 }
 0x3b7   : > { %17447 = vmatmul.mubr.msk.f32.gmra.mrb[60].mxu1 %vm273_vm1, %v9399_v2  ;;  %v6199_v15 = vpop.f32.mrb[19].mxu1  ;;  %16999 = vmatprep.mubr.msk.f32.mxu0 %vm273_vm1, %v6378_v9  ;;  %v1589_v2 = vld [vmem:[#allocation2 + $0x212] sm:$0xff]  ;;  %v1590_v9 = vld [vmem:[#allocation2 + $0x242] sm:$0xff] }
 0x3b8   : > { %12506 = vrot.lane.b32.xlu1 %v16830_v52, %s18983_s28  ;;  %12508 = vrot.lane.b32.xlu0 %v6199_v15, %s18983_s28  ;;  %v1577_v52 = vld [vmem:[#allocation2 + $0xc2] sm:$0xff]  ;;  %v1579_v15 = vld [vmem:[#allocation2 + $0xfa] sm:$0xff] }
 0x3b9   : > { %v21672_v26 = vpop.f32.mrb[20].mxu0  ;;  %17449 = vmatprep.mubr.msk.f32.mxu1 %vm273_vm1, %v9400_v17  ;;  %v1580_v17 = vld [vmem:[#allocation2 + $0x12a] sm:$0xff] }
 0x3ba   : > { %v16836_v54 = vpop.f32.mrb[20].mxu1  ;;  %v21678_v16 = vpop.f32.mrb[21].mxu0  ;;  %17000 = vmatmul.mubr.msk.f32.gmra.mrb[62].mxu0 %vm273_vm1, %v6379_v21 }
 0x3bb   : > { %17450 = vmatmul.mubr.msk.f32.gmra.mrb[62].mxu1 %vm273_vm1, %v9401_v19  ;;  %v6209_v20 = vpop.f32.mrb[21].mxu1  ;;  %17004 = vmatprep.mubr.msk.f32.mxu0 %vm273_vm1, %v21675_v12 }
 0x3bc   : > { %12510 = vrot.lane.b32.xlu1 %v16833_v7, %s18983_s28  ;;  %12512 = vrot.lane.b32.xlu0 %v6209_v20, %s18983_s28 }
 0x3bd   : > { %v21687_v59 = vpop.f32.mrb[22].mxu0  ;;  %17454 = vmatprep.mubr.msk.f32.mxu1 %vm273_vm1, %v1570_v24 }
 0x3be   : > { %v16839_v4 = vpop.f32.mrb[22].mxu1  ;;  %v21691_v34 = vpop.f32.mrb[23].mxu0  ;;  %17005 = vmatmul.mubr.msk.f32.vlgmr.msra.gmra.mrb[32].mxu0 %vm273_vm1, %v21685_v53 }
 0x3bf   : > { %17455 = vmatmul.mubr.msk.f32.vlgmr.msra.gmra.mrb[32].mxu1 %vm273_vm1, %v1571_v58  ;;  %v6219_v38 = vpop.f32.mrb[23].mxu1  ;;  %17053 = vmatpush3.msk.msra.mxu0 %vm839_vm0, %v21535_v39  ;;  %v1574_v39 = vld [vmem:[#allocation2 + $0x82] sm:$0xff]  ;;  %v1592_v58 = vld [vmem:[#allocation2 + $0x27a] sm:$0xff] }
 0x3c0   : > { %12514 = vrot.lane.b32.xlu1 %v16836_v54, %s18983_s28  ;;  %12516 = vrot.lane.b32.xlu0 %v6219_v38, %s18983_s28  ;;  %v1591_v54 = vld [vmem:[#allocation2 + $0x24a] sm:$0xff]  ;;  %v1593_v38 = vld [vmem:[#allocation2 + $0x282] sm:$0xff] }
 0x3c1   : > { %v21706_v32 = vpop.f32.mrb[24].mxu0  ;;  %17007 = vmatprep.mubr.msk.f32.mxu0 %vm273_vm1, %v21693_v42  ;;  %17457 = vmatprep.mubr.msk.f32.mxu1 %vm273_vm1, %v1572_v45  ;;  %v18830_v45 = vld [vmem:[#allocation2 + $0x2b2] sm:$0xff] }
 0x3c2   : > { %v16842_v33 = vpop.f32.mrb[24].mxu1  ;;  %v21714_v14 = vpop.f32.mrb[25].mxu0  ;;  %17102 = vmatprep.subr.msk.mxu0 %vm839_vm0, %v21701_v25  ;;  %17503 = vmatpush3.msk.msra.mxu1 %vm839_vm0, %v21540_v41  ;;  %v1587_v41 = vld [vmem:[#allocation2 + $0x1da] sm:$0xff] }
 0x3c3   : > { %17458 = vmatmul.mubr.msk.f32.gmra.mrb[34].mxu1 %vm273_vm1, %v1573_v31  ;;  %v6229_v43 = vpop.f32.mrb[25].mxu1  ;;  %17008 = vmatmul.mubr.msk.f32.gmra.mrb[34].mxu0 %vm273_vm1, %v21711_v10  ;;  %v18831_v31 = vld [vmem:[#allocation2 + $0x2ba] sm:$0xff] }
 0x3c4   : > { %12518 = vrot.lane.b32.xlu1 %v16839_v4, %s18983_s28  ;;  %12520 = vrot.lane.b32.xlu0 %v6229_v43, %s18983_s28  ;;  %v1581_v4 = vld [vmem:[#allocation2 + $0x132] sm:$0xff]  ;;  %v18834_v43 = vld [vmem:[#allocation2 + $0x322] sm:$0xff] }
 0x3c5   : > { %v21731_v47 = vpop.f32.mrb[26].mxu0  ;;  %17010 = vmatprep.mubr.msk.f32.mxu0 %vm273_vm1, %v21716_v22  ;;  %17460 = vmatprep.mubr.msk.f32.mxu1 %vm273_vm1, %v1574_v39  ;;  %v18839_v39 = vld [vmem:[#allocation2 + $0x39a] sm:$0xff] }
 0x3c6   : > { %v16845_v27 = vpop.f32.mrb[26].mxu1  ;;  %v21737_v35 = vpop.f32.mrb[27].mxu0  ;;  %17552 = vmatprep.subr.msk.mxu1 %vm839_vm0, %v21726_v46 }
 0x3c7   : > { %17461 = vmatmul.mubr.msk.f32.gmra.mrb[36].mxu1 %vm273_vm1, %v1575_v44  ;;  %v6239_v60 = vpop.f32.mrb[27].mxu1  ;;  %17011 = vmatmul.mubr.msk.f32.gmra.mrb[36].mxu0 %vm273_vm1, %v1587_v41  ;;  %v18840_v44 = vld [vmem:[#allocation2 + $0x3ca] sm:$0xff] }
 0x3c8   : > { %12522 = vrot.lane.b32.xlu1 %v16842_v33, %s18983_s28  ;;  %17463 = vmatprep.mubr.msk.f32.mxu1 %vm273_vm1, %v1576_v57  ;;  %v18832_v33 = vld [vmem:[#allocation2 + $0x2ea] sm:$0xff]  ;;  %v18841_v57 = vld [vmem:[#allocation2 + $0x3d2] sm:$0xff] }
 0x3c9   : > { %12526 = vrot.lane.b32.xlu0 %v16845_v27, %s18983_s28  ;;  %v21745_v0 = vpop.f32.mrb[28].mxu0  ;;  %17013 = vmatprep.mubr.msk.f32.mxu0 %vm273_vm1, %v1588_v50  ;;  %v21802_v27 = vld [vmem:[#allocation2 + $0x402] sm:$0xff] }
 0x3ca   : > { %v16848_v1 = vpop.f32.mrb[28].mxu1  ;;  %v21748_v5 = vpop.f32.mrb[29].mxu0 }
 0x3cb   : > { %v6249_v7 = vpop.f32.mrb[29].mxu1  ;;  %17464 = vmatmul.mubr.msk.f32.gmra.mrb[38].mxu1 %vm273_vm1, %v1577_v52  ;;  %17014 = vmatmul.mubr.msk.f32.gmra.mrb[38].mxu0 %vm273_vm1, %v1589_v2  ;;  %v21822_v52 = vld [vmem:[#allocation2 + $0x472] sm:$0xff] }
 0x3cc   : > { %12528 = vrot.lane.b32.xlu1 %v6249_v7, %s18983_s28  ;;  %17466 = vmatprep.mubr.msk.f32.mxu1 %vm273_vm1, %v1578_v61  ;;  %v21828_v61 = vld [vmem:[#allocation2 + $0x47a] sm:$0xff]  ;;  %v18849_v7 = vld [vmem:[#allocation2 + $0x4b2] sm:$0xff] }
 0x3cd   : > { %12524 = vrot.lane.b32.xlu0 %v6239_v60, %s18983_s28  ;;  %v21755_v19 = vpop.f32.mrb[30].mxu0  ;;  %17016 = vmatprep.mubr.msk.f32.mxu0 %vm273_vm1, %v1590_v9  ;;  %v21812_v60 = vld [vmem:[#allocation2 + $0x43a] sm:$0xff] }
 0x3ce   : > { %22951 = vst [vmem:[#allocation9_spill] sm:$0xff] %v21755_v19  ;;  %v16851_v21 = vpop.f32.mrb[30].mxu1  ;;  %v21758_v20 = vpop.f32.mrb[31].mxu0 }
 0x3cf   : > { %22952 = vst [vmem:[#allocation10_spill] sm:$0xff] %v21758_v20  ;;  %v6259_v24 = vpop.f32.mrb[31].mxu1  ;;  %17467 = vmatmul.mubr.msk.f32.gmra.mrb[40].mxu1 %vm273_vm1, %v1579_v15  ;;  %17017 = vmatmul.mubr.msk.f32.gmra.mrb[40].mxu0 %vm273_vm1, %v1591_v54  ;;  %v21950_v15 = vld [vmem:[%s22914_s1 + $0x50] sm:$0xf] }
 0x3d0   : > { %12532 = vrot.lane.b32.xlu1 %v6259_v24, %s18983_s28  ;;  %17469 = vmatprep.mubr.msk.f32.mxu1 %vm273_vm1, %v1580_v17  ;;  %v18850_v24 = vld [vmem:[#allocation2 + $0x4e2] sm:$0xff] }
 0x3d1   : > { %12530 = vrot.lane.b32.xlu0 %v16848_v1, %s18983_s28  ;;  %17019 = vmatprep.mubr.msk.f32.mxu0 %vm273_vm1, %v1592_v58  ;;  %v22953_v1 = vmov 0.0  }
 0x3d2   : > { %281 = vst.msk [vmem:[#allocation2 + $0x30] sm:$0xf] %vm280_vm2, %v22953_v1  ;;  %288 = vst.msk [vmem:[#allocation2 + $0x68] sm:$0xf] %vm280_vm2, %v22953_v1 }
 0x3d3   : > { %17470 = vmatmul.mubr.msk.f32.gmra.mrb[42].mxu1 %vm273_vm1, %v1581_v4  ;;  %17020 = vmatmul.mubr.msk.f32.gmra.mrb[42].mxu0 %vm273_vm1, %v1593_v38  ;;  %295 = vst.msk [vmem:[#allocation2 + $0xa0] sm:$0xf] %vm280_vm2, %v22953_v1  ;;  %302 = vst.msk [vmem:[#allocation2 + $0xd8] sm:$0xf] %vm280_vm2, %v22953_v1 }
 0x3d4   : > { %17472 = vmatprep.mubr.msk.f32.mxu1 %vm273_vm1, %v21675_v12  ;;  %17022 = vmatprep.mubr.msk.f32.mxu0 %vm273_vm1, %v18830_v45  ;;  %v18833_v12 = vld [vmem:[#allocation2 + $0x2f2] sm:$0xff]  ;;  %309 = vst.msk [vmem:[#allocation2 + $0x110] sm:$0xf] %vm280_vm2, %v22953_v1  ;;  %316 = vst.msk [vmem:[#allocation2 + $0x148] sm:$0xf] %vm280_vm2, %v22953_v1 }
 0x3d5   : > { %12534 = vrot.lane.b32.xlu0 %v16851_v21, %s18983_s28  ;;  %323 = vst.msk [vmem:[#allocation2 + $0x180] sm:$0xf] %vm280_vm2, %v22953_v1  ;;  %330 = vst.msk [vmem:[#allocation2 + $0x1b8] sm:$0xf] %vm280_vm2, %v22953_v1  ;;  %s13507_s28 = sshll.u32 %s22622_s17, 2 }
 0x3d6   : > { %337 = vst.msk [vmem:[#allocation2 + $0x1f0] sm:$0xf] %vm280_vm2, %v22953_v1  ;;  %344 = vst.msk [vmem:[#allocation2 + $0x228] sm:$0xf] %vm280_vm2, %v22953_v1  ;;  %s262_s29 = scalar_lea.vmem [#allocation5], %s13507_s28 }
 0x3d7   : > { %17473 = vmatmul.mubr.msk.f32.gmra.mrb[44].mxu1 %vm273_vm1, %v21685_v53  ;;  %17023 = vmatmul.mubr.msk.f32.gmra.mrb[44].mxu0 %vm273_vm1, %v18831_v31  ;;  %v18835_v53 = vld [vmem:[#allocation2 + $0x32a] sm:$0xff]  ;;  %351 = vst.msk [vmem:[#allocation2 + $0x260] sm:$0xf] %vm280_vm2, %v22953_v1  ;;  %358 = vst.msk [vmem:[#allocation2 + $0x298] sm:$0xf] %vm280_vm2, %v22953_v1  ;;  %s13386_s10 = sshll.u32 %s262_s29, 4  ;;  %s22651_s10 = int_to_ptr.vmem [resolvable:$true] %s13386_s10 }
 0x3d8   : > { %17475 = vmatprep.mubr.msk.f32.mxu1 %vm273_vm1, %v21693_v42  ;;  %17025 = vmatprep.mubr.msk.f32.mxu0 %vm273_vm1, %v18832_v33  ;;  %v18836_v42 = vld [vmem:[#allocation2 + $0x35a] sm:$0xff]  ;;  %365 = vst.msk [vmem:[#allocation2 + $0x2d0] sm:$0xf] %vm280_vm2, %v22953_v1  ;;  %372 = vst.msk [vmem:[#allocation2 + $0x308] sm:$0xf] %vm280_vm2, %v22953_v1  ;;  %p18893_p0 = scmp.lt.s32.totalorder %s22651_s10, %s18891_s16 }
 0x3d9   : > { %379 = vst.msk [vmem:[#allocation2 + $0x340] sm:$0xf] %vm280_vm2, %v22953_v1  ;;  %386 = vst.msk [vmem:[#allocation2 + $0x378] sm:$0xf] %vm280_vm2, %v22953_v1 }
 0x3da   : > { %407 = vst.msk [vmem:[#allocation2 + $0x420] sm:$0xf] %vm280_vm2, %v22953_v1  ;;  %414 = vst.msk [vmem:[#allocation2 + $0x458] sm:$0xf] %vm280_vm2, %v22953_v1 }
 0x3db   : > { %17476 = vmatmul.mubr.msk.f32.gmra.mrb[46].mxu1 %vm273_vm1, %v21711_v10  ;;  %17026 = vmatmul.mubr.msk.f32.gmra.mrb[46].mxu0 %vm273_vm1, %v18833_v12  ;;  %v21790_v10 = vld [vmem:[#allocation2 + $0x362] sm:$0xff]  ;;  %421 = vst.msk [vmem:[#allocation2 + $0x490] sm:$0xf] %vm280_vm2, %v22953_v1  ;;  %428 = vst.msk [vmem:[#allocation2 + $0x4c8] sm:$0xf] %vm280_vm2, %v22953_v1 }
 0x3dc   : > { %17478 = vmatprep.mubr.msk.f32.mxu1 %vm273_vm1, %v21716_v22  ;;  %17028 = vmatprep.mubr.msk.f32.mxu0 %vm273_vm1, %v18834_v43  ;;  %v18838_v22 = vld [vmem:[#allocation2 + $0x392] sm:$0xff]  ;;  %435 = vst.msk [vmem:[#allocation2 + $0x500] sm:$0xf] %vm280_vm2, %v22953_v1  ;;  %442 = vst.msk [vmem:[#allocation2 + $0x538] sm:$0xf] %vm280_vm2, %v22953_v1 }
 0x3dd   : > { %449 = vst.msk [vmem:[#allocation2 + $0x570] sm:$0xf] %vm280_vm2, %v22953_v1  ;;  %456 = vst.msk [vmem:[#allocation2 + $0x5a8] sm:$0xf] %vm280_vm2, %v22953_v1 }
 0x3de   : > { %463 = vst.msk [vmem:[#allocation2 + $0x5e0] sm:$0xf] %vm280_vm2, %v22953_v1  ;;  %470 = vst.msk [vmem:[#allocation2 + $0x618] sm:$0xf] %vm280_vm2, %v22953_v1 }
 0x3df   : > { %17479 = vmatmul.mubr.msk.f32.gmra.mrb[48].mxu1 %vm273_vm1, %v1587_v41  ;;  %17029 = vmatmul.mubr.msk.f32.gmra.mrb[48].mxu0 %vm273_vm1, %v18835_v53  ;;  %v21808_v41 = vld [vmem:[#allocation2 + $0x40a] sm:$0xff]  ;;  %477 = vst.msk [vmem:[#allocation2 + $0x650] sm:$0xf] %vm280_vm2, %v22953_v1  ;;  %484 = vst.msk [vmem:[#allocation2 + $0x688] sm:$0xf] %vm280_vm2, %v22953_v1 }
 0x3e0   : > { %17481 = vmatprep.mubr.msk.f32.mxu1 %vm273_vm1, %v1588_v50  ;;  %17031 = vmatprep.mubr.msk.f32.mxu0 %vm273_vm1, %v18836_v42  ;;  %v21818_v50 = vld [vmem:[#allocation2 + $0x442] sm:$0xff]  ;;  %491 = vst.msk [vmem:[#allocation2 + $0x6c0] sm:$0xf] %vm280_vm2, %v22953_v1  ;;  %498 = vst.msk [vmem:[#allocation2 + $0x6f8] sm:$0xf] %vm280_vm2, %v22953_v1 }
 0x3e1   : > { %505 = vst.msk [vmem:[#allocation2 + $0x730] sm:$0xf] %vm280_vm2, %v22953_v1  ;;  %512 = vst.msk [vmem:[#allocation2 + $0x768] sm:$0xf] %vm280_vm2, %v22953_v1 }
 0x3e2   : > { %533 = vst.msk [vmem:[#allocation2 + $0x810] sm:$0xf] %vm280_vm2, %v22953_v1  ;;  %540 = vst.msk [vmem:[#allocation2 + $0x848] sm:$0xf] %vm280_vm2, %v22953_v1 }
 0x3e3   : > { %17482 = vmatmul.mubr.msk.f32.gmra.mrb[50].mxu1 %vm273_vm1, %v1589_v2  ;;  %17032 = vmatmul.mubr.msk.f32.gmra.mrb[50].mxu0 %vm273_vm1, %v21790_v10  ;;  %547 = vst.msk [vmem:[#allocation2 + $0x880] sm:$0xf] %vm280_vm2, %v22953_v1  ;;  %554 = vst.msk [vmem:[#allocation2 + $0x8b8] sm:$0xf] %vm280_vm2, %v22953_v1  ;;  %v18848_v2 = vld [vmem:[#allocation2 + $0x4aa] sm:$0xff] }
 0x3e4   : > { %17484 = vmatprep.mubr.msk.f32.mxu1 %vm273_vm1, %v1590_v9  ;;  %17034 = vmatprep.mubr.msk.f32.mxu0 %vm273_vm1, %v18838_v22  ;;  %561 = vst.msk [vmem:[#allocation2 + $0x8f0] sm:$0xf] %vm280_vm2, %v22953_v1  ;;  %568 = vst.msk [vmem:[#allocation2 + $0x928] sm:$0xf] %vm280_vm2, %v22953_v1  ;;  %v21939_v9 = vld [vmem:[%s22914_s1 + $0x74] sm:$0xf] }
 0x3e5   : > { %575 = vst.msk [vmem:[#allocation2 + $0x960] sm:$0xf] %vm280_vm2, %v22953_v1  ;;  %582 = vst.msk [vmem:[#allocation2 + $0x998] sm:$0xf] %vm280_vm2, %v22953_v1  ;;  %v18856_v22 = vld [vmem:[#allocation2 + $0x58a] sm:$0xff] }
 0x3e6   : > { %589 = vst.msk [vmem:[#allocation2 + $0x9d0] sm:$0xf] %vm280_vm2, %v22953_v1  ;;  %596 = vst.msk [vmem:[#allocation2 + $0xa08] sm:$0xf] %vm280_vm2, %v22953_v1 }
 0x3e7   : > { %17485 = vmatmul.mubr.msk.f32.gmra.mrb[52].mxu1 %vm273_vm1, %v1591_v54  ;;  %17035 = vmatmul.mubr.msk.f32.gmra.mrb[52].mxu0 %vm273_vm1, %v18839_v39  ;;  %603 = vst.msk [vmem:[#allocation2 + $0xa40] sm:$0xf] %vm280_vm2, %v22953_v1  ;;  %610 = vst.msk [vmem:[#allocation2 + $0xa78] sm:$0xf] %vm280_vm2, %v22953_v1 }
 0x3e8   : > { %17487 = vmatprep.mubr.msk.f32.mxu1 %vm273_vm1, %v1592_v58  ;;  %17037 = vmatprep.mubr.msk.f32.mxu0 %vm273_vm1, %v18840_v44  ;;  %617 = vst.msk [vmem:[#allocation2 + $0xab0] sm:$0xf] %vm280_vm2, %v22953_v1  ;;  %624 = vst.msk [vmem:[#allocation2 + $0xae8] sm:$0xf] %vm280_vm2, %v22953_v1 }
 0x3e9   : > { %631 = vst.msk [vmem:[#allocation2 + $0xb20] sm:$0xf] %vm280_vm2, %v22953_v1  ;;  %638 = vst.msk [vmem:[#allocation2 + $0xb58] sm:$0xf] %vm280_vm2, %v22953_v1 }
 0x3eb   : > { %17488 = vmatmul.mubr.msk.f32.gmra.mrb[54].mxu1 %vm273_vm1, %v1593_v38  ;;  %17038 = vmatmul.mubr.msk.f32.gmra.mrb[54].mxu0 %vm273_vm1, %v18841_v57  ;;  %v18851_v38 = vld [vmem:[#allocation2 + $0x4ea] sm:$0xff]  ;;  %v18857_v57 = vld [vmem:[#allocation2 + $0x592] sm:$0xff] }
 0x3ec   : > { %17490 = vmatprep.mubr.msk.f32.mxu1 %vm273_vm1, %v18830_v45  ;;  %17040 = vmatprep.mubr.msk.f32.mxu0 %vm273_vm1, %v21802_v27  ;;  %v18852_v45 = vld [vmem:[#allocation2 + $0x51a] sm:$0xff] }
 0x3ef   : > { %17491 = vmatmul.mubr.msk.f32.gmra.mrb[56].mxu1 %vm273_vm1, %v18831_v31  ;;  %17041 = vmatmul.mubr.msk.f32.gmra.mrb[56].mxu0 %vm273_vm1, %v21808_v41 }
 0x3f0   : > { %17493 = vmatprep.mubr.msk.f32.mxu1 %vm273_vm1, %v18832_v33  ;;  %17043 = vmatprep.mubr.msk.f32.mxu0 %vm273_vm1, %v21812_v60 }
 0x3f3   : > { %17494 = vmatmul.mubr.msk.f32.gmra.mrb[58].mxu1 %vm273_vm1, %v18833_v12  ;;  %17044 = vmatmul.mubr.msk.f32.gmra.mrb[58].mxu0 %vm273_vm1, %v21818_v50  ;;  %v18853_v12 = vld [vmem:[#allocation2 + $0x522] sm:$0xff] }
 0x3f4   : > { %17496 = vmatprep.mubr.msk.f32.mxu1 %vm273_vm1, %v18834_v43  ;;  %17046 = vmatprep.mubr.msk.f32.mxu0 %vm273_vm1, %v21822_v52  ;;  %v18854_v43 = vld [vmem:[#allocation2 + $0x552] sm:$0xff] }
 0x3f7   : > { %17497 = vmatmul.mubr.msk.f32.gmra.mrb[60].mxu1 %vm273_vm1, %v18835_v53  ;;  %17047 = vmatmul.mubr.msk.f32.gmra.mrb[60].mxu0 %vm273_vm1, %v21828_v61 }
 0x3f8   : > { %17499 = vmatprep.mubr.msk.f32.mxu1 %vm273_vm1, %v18836_v42  ;;  %17049 = vmatprep.mubr.msk.f32.mxu0 %vm273_vm1, %v18848_v2 }
 0x3fb   : > { %17500 = vmatmul.mubr.msk.f32.gmra.mrb[62].mxu1 %vm273_vm1, %v21790_v10  ;;  %17050 = vmatmul.mubr.msk.f32.gmra.mrb[62].mxu0 %vm273_vm1, %v18849_v7  ;;  %v18855_v10 = vld [vmem:[#allocation2 + $0x55a] sm:$0xff] }
 0x3fc   : > { %17504 = vmatprep.mubr.msk.f32.mxu1 %vm273_vm1, %v21802_v27  ;;  %17054 = vmatprep.mubr.msk.f32.mxu0 %vm273_vm1, %v21802_v27  ;;  %v18858_v27 = vld [vmem:[#allocation2 + $0x5c2] sm:$0xff] }
 0x3ff   : > { %17505 = vmatmul.mubr.msk.f32.vlgmr.msra.gmra.mrb[32].mxu1 %vm273_vm1, %v21808_v41  ;;  %17055 = vmatmul.mubr.msk.f32.vlgmr.msra.gmra.mrb[32].mxu0 %vm273_vm1, %v21808_v41 }
 0x400   : > { %17507 = vmatprep.mubr.msk.f32.mxu1 %vm273_vm1, %v21812_v60  ;;  %17553 = vmatpush3.msk.msra.mxu1 %vm839_vm0, %v21726_v46 }
 0x401   : > { %17602 = vmatprep.subr.msk.mxu1 %vm839_vm0, %v21939_v9  ;;  %17103 = vmatpush3.msk.msra.mxu0 %vm839_vm0, %v21701_v25 }
 0x402   : > { %17057 = vmatprep.mubr.msk.f32.mxu0 %vm273_vm1, %v21812_v60  ;;  %17152 = vmatprep.subr.msk.mxu0 %vm839_vm0, %v21950_v15 }
 0x403   : > { %17508 = vmatmul.mubr.msk.f32.gmra.mrb[34].mxu1 %vm273_vm1, %v21818_v50  ;;  %17058 = vmatmul.mubr.msk.f32.gmra.mrb[34].mxu0 %vm273_vm1, %v21818_v50  ;;  %v18859_v50 = vld [vmem:[#allocation2 + $0x5ca] sm:$0xff] }
 0x404   : > { %17510 = vmatprep.mubr.msk.f32.mxu1 %vm273_vm1, %v21822_v52  ;;  %17060 = vmatprep.mubr.msk.f32.mxu0 %vm273_vm1, %v21822_v52  ;;  %v18860_v52 = vld [vmem:[#allocation2 + $0x5fa] sm:$0xff] }
 0x405   : > { %v12475_v46 = vpop.permute.xlu0 %12474 }
 0x406   : > { %v21970_v25 = vsel %vm12824_vm3, %v21574_v49, %v12475_v46  ;;  %v18862_v46 = vld [vmem:[#allocation2 + $0x632] sm:$0xff] }
 0x407   : > { %17511 = vmatmul.mubr.msk.f32.gmra.mrb[36].mxu1 %vm273_vm1, %v21828_v61  ;;  %17061 = vmatmul.mubr.msk.f32.gmra.mrb[36].mxu0 %vm273_vm1, %v21828_v61 }
 0x408   : > { %17513 = vmatprep.mubr.msk.f32.mxu1 %vm273_vm1, %v18848_v2  ;;  %17063 = vmatprep.mubr.msk.f32.mxu0 %vm273_vm1, %v18848_v2 }
 0x409   : > { %v12473_v17 = vpop.permute.xlu0 %12472 }
 0x40a   : > { %v21981_v21 = vsel %vm12824_vm3, %v21578_v51, %v12473_v17  ;;  %v12479_v54 = vpop.permute.xlu1 %12478 }
 0x40b   : > { %v21986_v49 = vsel %vm12824_vm3, %v21583_v63, %v12479_v54  ;;  %17514 = vmatmul.mubr.msk.f32.gmra.mrb[38].mxu1 %vm273_vm1, %v18849_v7  ;;  %17064 = vmatmul.mubr.msk.f32.gmra.mrb[38].mxu0 %vm273_vm1, %v18849_v7  ;;  %v18861_v7 = vld [vmem:[#allocation2 + $0x602] sm:$0xff] }
 0x40c   : > { %17516 = vmatprep.mubr.msk.f32.mxu1 %vm273_vm1, %v18850_v24  ;;  %17066 = vmatprep.mubr.msk.f32.mxu0 %vm273_vm1, %v18850_v24  ;;  %v18863_v24 = vld [vmem:[#allocation2 + $0x63a] sm:$0xff] }
 0x40e   : > { %v12477_v58 = vpop.permute.xlu1 %12476  ;;  %v12481_v4 = vpop.permute.xlu0 %12480 }
 0x40f   : > { %v21994_v51 = vsel %vm12824_vm3, %v21587_v3, %v12477_v58  ;;  %17517 = vmatmul.mubr.msk.f32.gmra.mrb[40].mxu1 %vm273_vm1, %v18851_v38  ;;  %v21999_v63 = vsel %vm12824_vm3, %v21596_v13, %v12481_v4  ;;  %17067 = vmatmul.mubr.msk.f32.gmra.mrb[40].mxu0 %vm273_vm1, %v18851_v38  ;;  %v18864_v58 = vld [vmem:[#allocation2 + $0x66a] sm:$0xff] }
 0x410   : > { %17519 = vmatprep.mubr.msk.f32.mxu1 %vm273_vm1, %v18852_v45  ;;  %17069 = vmatprep.mubr.msk.f32.mxu0 %vm273_vm1, %v18852_v45  ;;  %v18865_v45 = vld [vmem:[#allocation2 + $0x672] sm:$0xff] }
 0x412   : > { %v12483_v31 = vpop.permute.xlu1 %12482  ;;  %v12485_v33 = vpop.permute.xlu0 %12484 }
 0x413   : > { %v22006_v3 = vsel %vm12824_vm3, %v21593_v8, %v12483_v31  ;;  %17520 = vmatmul.mubr.msk.f32.gmra.mrb[42].mxu1 %vm273_vm1, %v18853_v12  ;;  %v22011_v13 = vsel %vm12824_vm3, %v21606_v56, %v12485_v33  ;;  %17070 = vmatmul.mubr.msk.f32.gmra.mrb[42].mxu0 %vm273_vm1, %v18853_v12  ;;  %v18866_v31 = vld [vmem:[#allocation2 + $0x6a2] sm:$0xff] }
 0x414   : > { %17522 = vmatprep.mubr.msk.f32.mxu1 %vm273_vm1, %v18854_v43  ;;  %17072 = vmatprep.mubr.msk.f32.mxu0 %vm273_vm1, %v18854_v43  ;;  %v18867_v43 = vld [vmem:[#allocation2 + $0x6aa] sm:$0xff] }
 0x416   : > { %v12487_v53 = vpop.permute.xlu1 %12486  ;;  %v12489_v42 = vpop.permute.xlu0 %12488 }
 0x417   : > { %v22018_v8 = vsel %vm12824_vm3, %v21602_v23, %v12487_v53  ;;  %17523 = vmatmul.mubr.msk.f32.gmra.mrb[44].mxu1 %vm273_vm1, %v18855_v10  ;;  %v22023_v56 = vsel %vm12824_vm3, %v21616_v36, %v12489_v42  ;;  %17073 = vmatmul.mubr.msk.f32.gmra.mrb[44].mxu0 %vm273_vm1, %v18855_v10  ;;  %v18868_v53 = vld [vmem:[#allocation2 + $0x6da] sm:$0xff] }
 0x418   : > { %17525 = vmatprep.mubr.msk.f32.mxu1 %vm273_vm1, %v18856_v22  ;;  %17075 = vmatprep.mubr.msk.f32.mxu0 %vm273_vm1, %v18856_v22  ;;  %v18869_v22 = vld [vmem:[#allocation2 + $0x6e2] sm:$0xff] }
 0x41a   : > { %v12491_v39 = vpop.permute.xlu1 %12490  ;;  %v12493_v44 = vpop.permute.xlu0 %12492 }
 0x41b   : > { %v22030_v23 = vsel %vm12824_vm3, %v21612_v55, %v12491_v39  ;;  %17526 = vmatmul.mubr.msk.f32.gmra.mrb[46].mxu1 %vm273_vm1, %v18857_v57  ;;  %v22035_v36 = vsel %vm12824_vm3, %v21626_v29, %v12493_v44  ;;  %17076 = vmatmul.mubr.msk.f32.gmra.mrb[46].mxu0 %vm273_vm1, %v18857_v57  ;;  %v18870_v39 = vld [vmem:[#allocation2 + $0x712] sm:$0xff] }
 0x41c   : > { %17528 = vmatprep.mubr.msk.f32.mxu1 %vm273_vm1, %v18858_v27  ;;  %17078 = vmatprep.mubr.msk.f32.mxu0 %vm273_vm1, %v18858_v27  ;;  %v18871_v27 = vld [vmem:[#allocation2 + $0x71a] sm:$0xff] }
 0x41e   : > { %v12495_v41 = vpop.permute.xlu1 %12494  ;;  %v12497_v60 = vpop.permute.xlu0 %12496 }
 0x41f   : > { %v22042_v55 = vsel %vm12824_vm3, %v21622_v40, %v12495_v41  ;;  %17529 = vmatmul.mubr.msk.f32.gmra.mrb[48].mxu1 %vm273_vm1, %v18859_v50  ;;  %v22047_v29 = vsel %vm12824_vm3, %v21636_v18, %v12497_v60  ;;  %17079 = vmatmul.mubr.msk.f32.gmra.mrb[48].mxu0 %vm273_vm1, %v18859_v50  ;;  %v18872_v41 = vld [vmem:[#allocation2 + $0x74a] sm:$0xff] }
 0x420   : > { %17531 = vmatprep.mubr.msk.f32.mxu1 %vm273_vm1, %v18860_v52  ;;  %17081 = vmatprep.mubr.msk.f32.mxu0 %vm273_vm1, %v18860_v52  ;;  %v18873_v52 = vld [vmem:[#allocation2 + $0x752] sm:$0xff] }
 0x422   : > { %v12499_v61 = vpop.permute.xlu1 %12498  ;;  %v12501_v2 = vpop.permute.xlu0 %12500 }
 0x423   : > { %v22054_v40 = vsel %vm12824_vm3, %v21632_v37, %v12499_v61  ;;  %17532 = vmatmul.mubr.msk.f32.gmra.mrb[50].mxu1 %vm273_vm1, %v18861_v7  ;;  %v22059_v18 = vsel %vm12824_vm3, %v21646_v48, %v12501_v2  ;;  %17082 = vmatmul.mubr.msk.f32.gmra.mrb[50].mxu0 %vm273_vm1, %v18861_v7  ;;  %v18874_v61 = vld [vmem:[#allocation2 + $0x7f2] sm:$0xff] }
 0x424   : > { %17534 = vmatprep.mubr.msk.f32.mxu1 %vm273_vm1, %v18862_v46  ;;  %17084 = vmatprep.mubr.msk.f32.mxu0 %vm273_vm1, %v18862_v46 }
 0x426   : > { %v12503_v17 = vpop.permute.xlu1 %12502  ;;  %v12505_v54 = vpop.permute.xlu0 %12504 }
 0x427   : > { %v22066_v37 = vsel %vm12824_vm3, %v21642_v28, %v12503_v17  ;;  %17535 = vmatmul.mubr.msk.f32.gmra.mrb[52].mxu1 %vm273_vm1, %v18863_v24  ;;  %v22071_v48 = vsel %vm12824_vm3, %v21656_v62, %v12505_v54  ;;  %17085 = vmatmul.mubr.msk.f32.gmra.mrb[52].mxu0 %vm273_vm1, %v18863_v24  ;;  %v18876_v54 = vld [vmem:[#allocation2 + $0x82a] sm:$0xff]  ;;  %v22156_v24 = vld [vmem:[%s22914_s1 + $0x5c] sm:$0xf] }
 0x428   : > { %17537 = vmatprep.mubr.msk.f32.mxu1 %vm273_vm1, %v18864_v58  ;;  %17087 = vmatprep.mubr.msk.f32.mxu0 %vm273_vm1, %v18864_v58  ;;  %v18878_v58 = vld [vmem:[#allocation2 + $0x862] sm:$0xff] }
 0x42a   : > { %v12507_v4 = vpop.permute.xlu1 %12506  ;;  %v12509_v38 = vpop.permute.xlu0 %12508 }
 0x42b   : > { %v22078_v28 = vsel %vm12824_vm3, %v21652_v30, %v12507_v4  ;;  %17538 = vmatmul.mubr.msk.f32.gmra.mrb[54].mxu1 %vm273_vm1, %v18865_v45  ;;  %v22083_v62 = vsel %vm12824_vm3, %v21666_v11, %v12509_v38  ;;  %17088 = vmatmul.mubr.msk.f32.gmra.mrb[54].mxu0 %vm273_vm1, %v18865_v45  ;;  %v18880_v4 = vld [vmem:[#allocation2 + $0x89a] sm:$0xff]  ;;  %v1650_v38 = vld [vmem:[#allocation2 + $0x8d2] sm:$0xff] }
 0x42c   : > { %17540 = vmatprep.mubr.msk.f32.mxu1 %vm273_vm1, %v18866_v31  ;;  %17090 = vmatprep.mubr.msk.f32.mxu0 %vm273_vm1, %v18866_v31  ;;  %v1651_v45 = vld [vmem:[#allocation2 + $0x8da] sm:$0xff] }
 0x42e   : > { %v12511_v33 = vpop.permute.xlu1 %12510  ;;  %v12513_v12 = vpop.permute.xlu0 %12512 }
 0x42f   : > { %v22090_v30 = vsel %vm12824_vm3, %v21662_v6, %v12511_v33  ;;  %17541 = vmatmul.mubr.msk.f32.gmra.mrb[56].mxu1 %vm273_vm1, %v18867_v43  ;;  %v22095_v11 = vsel %vm12824_vm3, %v21678_v16, %v12513_v12  ;;  %17091 = vmatmul.mubr.msk.f32.gmra.mrb[56].mxu0 %vm273_vm1, %v18867_v43  ;;  %v18882_v33 = vld [vmem:[#allocation2 + $0x782] sm:$0xff]  ;;  %v1653_v12 = vld [vmem:[#allocation2 + $0x912] sm:$0xff] }
 0x430   : > { %17543 = vmatprep.mubr.msk.f32.mxu1 %vm273_vm1, %v18868_v53  ;;  %17093 = vmatprep.mubr.msk.f32.mxu0 %vm273_vm1, %v18868_v53 }
 0x432   : > { %v12515_v42 = vpop.permute.xlu1 %12514  ;;  %v12517_v10 = vpop.permute.xlu0 %12516 }
 0x433   : > { %v22102_v6 = vsel %vm12824_vm3, %v21672_v26, %v12515_v42  ;;  %17544 = vmatmul.mubr.msk.f32.gmra.mrb[58].mxu1 %vm273_vm1, %v18869_v22  ;;  %v22107_v16 = vsel %vm12824_vm3, %v21691_v34, %v12517_v10  ;;  %17094 = vmatmul.mubr.msk.f32.gmra.mrb[58].mxu0 %vm273_vm1, %v18869_v22  ;;  %v18884_v42 = vld [vmem:[#allocation2 + $0x7ba] sm:$0xff]  ;;  %v1655_v10 = vld [vmem:[#allocation2 + $0x94a] sm:$0xff] }
 0x434   : > { %17546 = vmatprep.mubr.msk.f32.mxu1 %vm273_vm1, %v18870_v39  ;;  %17096 = vmatprep.mubr.msk.f32.mxu0 %vm273_vm1, %v18870_v39 }
 0x436   : > { %v12519_v44 = vpop.permute.xlu1 %12518  ;;  %v12521_v57 = vpop.permute.xlu0 %12520 }
 0x437   : > { %v22114_v26 = vsel %vm12824_vm3, %v21687_v59, %v12519_v44  ;;  %17547 = vmatmul.mubr.msk.f32.gmra.mrb[60].mxu1 %vm273_vm1, %v18871_v27  ;;  %v22119_v34 = vsel %vm12824_vm3, %v21714_v14, %v12521_v57  ;;  %17097 = vmatmul.mubr.msk.f32.gmra.mrb[60].mxu0 %vm273_vm1, %v18871_v27  ;;  %v1657_v44 = vld [vmem:[#allocation2 + $0x982] sm:$0xff]  ;;  %v1658_v57 = vld [vmem:[#allocation2 + $0x9b2] sm:$0xff] }
 0x438   : > { %17549 = vmatprep.mubr.msk.f32.mxu1 %vm273_vm1, %v18872_v41  ;;  %17099 = vmatprep.mubr.msk.f32.mxu0 %vm273_vm1, %v18872_v41 }
 0x43a   : > { %v12523_v60 = vpop.permute.xlu1 %12522 }
 0x43b   : > { %v22126_v59 = vsel %vm12824_vm3, %v21706_v32, %v12523_v60  ;;  %v12527_v50 = vpop.permute.xlu0 %12526  ;;  %17550 = vmatmul.mubr.msk.f32.gmra.mrb[62].mxu1 %vm273_vm1, %v18873_v52  ;;  %17100 = vmatmul.mubr.msk.f32.gmra.mrb[62].mxu0 %vm273_vm1, %v18873_v52  ;;  %v22139_v32 = vld [vmem:[%s22914_s1 + $0x80] sm:$0xf]  ;;  %v1661_v60 = vld [vmem:[#allocation2 + $0x9f2] sm:$0xff] }
 0x43c   : > { %v22131_v14 = vsel %vm12824_vm3, %v21731_v47, %v12527_v50  ;;  %17554 = vmatprep.mubr.msk.f32.mxu1 %vm273_vm1, %v18874_v61  ;;  %17104 = vmatprep.mubr.msk.f32.mxu0 %vm273_vm1, %v18866_v31  ;;  %v18875_v47 = vld [vmem:[#allocation2 + $0x7fa] sm:$0xff]  ;;  %v1652_v31 = vld [vmem:[#allocation2 + $0x90a] sm:$0xff]  ;;  %v1662_v50 = vld [vmem:[#allocation2 + $0xa22] sm:$0xff] }
 0x43d   : > { %22954 = vst [vmem:[#allocation11_spill] sm:$0xff] %v22131_v14 }
 0x43e   : > { %v12529_v2 = vpop.permute.xlu1 %12528 }
 0x43f   : > { %v12525_v7 = vpop.permute.xlu0 %12524  ;;  %v22143_v46 = vsel %vm12824_vm3, %v21748_v5, %v12529_v2  ;;  %17555 = vmatmul.mubr.msk.f32.vlgmr.msra.gmra.mrb[32].mxu1 %vm273_vm1, %v18875_v47  ;;  %17105 = vmatmul.mubr.msk.f32.vlgmr.msra.gmra.mrb[32].mxu0 %vm273_vm1, %v18867_v43  ;;  %v18877_v5 = vld [vmem:[#allocation2 + $0x832] sm:$0xff]  ;;  %v18883_v43 = vld [vmem:[#allocation2 + $0x78a] sm:$0xff]  ;;  %v1665_v2 = vld [vmem:[#allocation2 + $0xa62] sm:$0xff] }
 0x440   : > { %22955 = vst [vmem:[#allocation12_spill] sm:$0xff] %v22143_v46  ;;  %v22148_v17 = vsel %vm12824_vm3, %v21737_v35, %v12525_v7  ;;  %17557 = vmatprep.mubr.msk.f32.mxu1 %vm273_vm1, %v18876_v54  ;;  %17603 = vmatpush3.msk.msra.mxu1 %vm839_vm0, %v21939_v9  ;;  %v1666_v7 = vld [vmem:[#allocation2 + $0xa92] sm:$0xff] }
 0x441   : > { %22956 = vst [vmem:[#allocation13_spill] sm:$0xff] %v22148_v17  ;;  %17652 = vmatprep.subr.msk.mxu1 %vm839_vm0, %v22139_v32  ;;  %17153 = vmatpush3.msk.msra.mxu0 %vm839_vm0, %v21950_v15  ;;  %v18879_v15 = vld [vmem:[#allocation2 + $0x86a] sm:$0xff] }
 0x442   : > { %17107 = vmatprep.mubr.msk.f32.mxu0 %vm273_vm1, %v18868_v53  ;;  %17202 = vmatprep.subr.msk.mxu0 %vm839_vm0, %v22156_v24  ;;  %v1654_v53 = vld [vmem:[#allocation2 + $0x942] sm:$0xff] }
 0x443   : > { %v12531_v35 = vpop.permute.xlu0 %12530  ;;  %17558 = vmatmul.mubr.msk.f32.gmra.mrb[34].mxu1 %vm273_vm1, %v18877_v5  ;;  %17108 = vmatmul.mubr.msk.f32.gmra.mrb[34].mxu0 %vm273_vm1, %v18869_v22  ;;  %v18885_v22 = vld [vmem:[#allocation2 + $0x7c2] sm:$0xff] }
 0x444   : > { %v22169_v9 = vsel %vm12824_vm3, %v21745_v0, %v12531_v35  ;;  %17560 = vmatprep.mubr.msk.f32.mxu1 %vm273_vm1, %v18878_v58  ;;  %17110 = vmatprep.mubr.msk.f32.mxu0 %vm273_vm1, %v18870_v39  ;;  %v18881_v0 = vld [vmem:[#allocation2 + $0x8a2] sm:$0xff]  ;;  %v1656_v39 = vld [vmem:[#allocation2 + $0x97a] sm:$0xff]  ;;  %v1669_v35 = vld [vmem:[#allocation2 + $0xad2] sm:$0xff] }
 0x445   : > { %22957 = vst [vmem:[#allocation14_spill] sm:$0xff] %v22169_v9 }
 0x447   : > { %17561 = vmatmul.mubr.msk.f32.gmra.mrb[36].mxu1 %vm273_vm1, %v18879_v15  ;;  %17111 = vmatmul.mubr.msk.f32.gmra.mrb[36].mxu0 %vm273_vm1, %v18871_v27  ;;  %v1659_v27 = vld [vmem:[#allocation2 + $0x9ba] sm:$0xff] }
 0x448   : > { %17563 = vmatprep.mubr.msk.f32.mxu1 %vm273_vm1, %v18880_v4  ;;  %17113 = vmatprep.mubr.msk.f32.mxu0 %vm273_vm1, %v18872_v41  ;;  %v1660_v41 = vld [vmem:[#allocation2 + $0x9ea] sm:$0xff] }
 0x44b   : > { %17564 = vmatmul.mubr.msk.f32.gmra.mrb[38].mxu1 %vm273_vm1, %v18881_v0  ;;  %17114 = vmatmul.mubr.msk.f32.gmra.mrb[38].mxu0 %vm273_vm1, %v18873_v52  ;;  %v1663_v52 = vld [vmem:[#allocation2 + $0xa2a] sm:$0xff] }
 0x44c   : > { %17566 = vmatprep.mubr.msk.f32.mxu1 %vm273_vm1, %v1650_v38  ;;  %17116 = vmatprep.mubr.msk.f32.mxu0 %vm273_vm1, %v18882_v33  ;;  %v8201_v33 = vld [vmem:[#allocation2 + $0x176] sm:$0xff] }
 0x44f   : > { %17567 = vmatmul.mubr.msk.f32.gmra.mrb[40].mxu1 %vm273_vm1, %v1651_v45  ;;  %17117 = vmatmul.mubr.msk.f32.gmra.mrb[40].mxu0 %vm273_vm1, %v18883_v43  ;;  %v8202_v43 = vld [vmem:[#allocation2 + $0x1a6] sm:$0xff] }
 0x450   : > { %17569 = vmatprep.mubr.msk.f32.mxu1 %vm273_vm1, %v1652_v31  ;;  %17119 = vmatprep.mubr.msk.f32.mxu0 %vm273_vm1, %v18884_v42  ;;  %v22242_v42 = vld [vmem:[%s22914_s1 + $0x68] sm:$0xf] }
 0x453   : > { %17570 = vmatmul.mubr.msk.f32.gmra.mrb[42].mxu1 %vm273_vm1, %v1653_v12  ;;  %17120 = vmatmul.mubr.msk.f32.gmra.mrb[42].mxu0 %vm273_vm1, %v18885_v22  ;;  %v8203_v22 = vld [vmem:[#allocation2 + $0x1ae] sm:$0xff] }
 0x454   : > { %17572 = vmatprep.mubr.msk.f32.mxu1 %vm273_vm1, %v1654_v53  ;;  %17122 = vmatprep.mubr.msk.f32.mxu0 %vm273_vm1, %v18874_v61  ;;  %v1664_v61 = vld [vmem:[#allocation2 + $0xa5a] sm:$0xff] }
 0x457   : > { %17573 = vmatmul.mubr.msk.f32.gmra.mrb[44].mxu1 %vm273_vm1, %v1655_v10  ;;  %17123 = vmatmul.mubr.msk.f32.gmra.mrb[44].mxu0 %vm273_vm1, %v18875_v47  ;;  %v1667_v47 = vld [vmem:[#allocation2 + $0xa9a] sm:$0xff] }
 0x458   : > { %17575 = vmatprep.mubr.msk.f32.mxu1 %vm273_vm1, %v1656_v39  ;;  %17125 = vmatprep.mubr.msk.f32.mxu0 %vm273_vm1, %v18876_v54  ;;  %v1668_v54 = vld [vmem:[#allocation2 + $0xaca] sm:$0xff] }
 0x45b   : > { %17576 = vmatmul.mubr.msk.f32.gmra.mrb[46].mxu1 %vm273_vm1, %v1657_v44  ;;  %17126 = vmatmul.mubr.msk.f32.gmra.mrb[46].mxu0 %vm273_vm1, %v18877_v5  ;;  %v1670_v5 = vld [vmem:[#allocation2 + $0xb02] sm:$0xff] }
 0x45c   : > { %17578 = vmatprep.mubr.msk.f32.mxu1 %vm273_vm1, %v1658_v57  ;;  %17128 = vmatprep.mubr.msk.f32.mxu0 %vm273_vm1, %v18878_v58  ;;  %v1671_v58 = vld [vmem:[#allocation2 + $0xb0a] sm:$0xff] }
 0x45f   : > { %17579 = vmatmul.mubr.msk.f32.gmra.mrb[48].mxu1 %vm273_vm1, %v1659_v27  ;;  %17129 = vmatmul.mubr.msk.f32.gmra.mrb[48].mxu0 %vm273_vm1, %v18879_v15  ;;  %v1672_v15 = vld [vmem:[#allocation2 + $0xb3a] sm:$0xff] }
 0x460   : > { %17581 = vmatprep.mubr.msk.f32.mxu1 %vm273_vm1, %v1660_v41  ;;  %17131 = vmatprep.mubr.msk.f32.mxu0 %vm273_vm1, %v18880_v4  ;;  %v1673_v4 = vld [vmem:[#allocation2 + $0xb42] sm:$0xff] }
 0x463   : > { %17582 = vmatmul.mubr.msk.f32.gmra.mrb[50].mxu1 %vm273_vm1, %v1661_v60  ;;  %17132 = vmatmul.mubr.msk.f32.gmra.mrb[50].mxu0 %vm273_vm1, %v18881_v0  ;;  %v8200_v0 = vld [vmem:[#allocation2 + $0x16e] sm:$0xff] }
 0x464   : > { %17584 = vmatprep.mubr.msk.f32.mxu1 %vm273_vm1, %v1662_v50  ;;  %17134 = vmatprep.mubr.msk.f32.mxu0 %vm273_vm1, %v1650_v38  ;;  %v11270_v38 = vld [vmem:[#allocation2 + $0x24] sm:$0xff]  ;;  %v8208_v50 = vld [vmem:[#allocation2 + $0x24e] sm:$0xff] }
 0x467   : > { %17585 = vmatmul.mubr.msk.f32.gmra.mrb[52].mxu1 %vm273_vm1, %v1663_v52  ;;  %17135 = vmatmul.mubr.msk.f32.gmra.mrb[52].mxu0 %vm273_vm1, %v1651_v45  ;;  %v11271_v45 = vld [vmem:[#allocation2 + $0x2c] sm:$0xff] }
 0x468   : > { %17587 = vmatprep.mubr.msk.f32.mxu1 %vm273_vm1, %v1664_v61  ;;  %17137 = vmatprep.mubr.msk.f32.mxu0 %vm273_vm1, %v1652_v31  ;;  %v11272_v31 = vld [vmem:[#allocation2 + $0x5c] sm:$0xff]  ;;  %v11279_v52 = vld [vmem:[#allocation2 + $0x10c] sm:$0xff] }
 0x469   : > { %v11280_v61 = vld [vmem:[#allocation2 + $0x13c] sm:$0xff] }
 0x46b   : > { %17588 = vmatmul.mubr.msk.f32.gmra.mrb[54].mxu1 %vm273_vm1, %v1665_v2  ;;  %17138 = vmatmul.mubr.msk.f32.gmra.mrb[54].mxu0 %vm273_vm1, %v1653_v12  ;;  %v22233_v12 = vld [vmem:[%s22914_s1 + $0x8c] sm:$0xf]  ;;  %v8209_v2 = vld [vmem:[#allocation2 + $0x256] sm:$0xff] }
 0x46c   : > { %17590 = vmatprep.mubr.msk.f32.mxu1 %vm273_vm1, %v1666_v7  ;;  %17140 = vmatprep.mubr.msk.f32.mxu0 %vm273_vm1, %v1654_v53  ;;  %v11273_v53 = vld [vmem:[#allocation2 + $0x64] sm:$0xff] }
 0x46d   : > { %v8210_v7 = vld [vmem:[#allocation2 + $0x286] sm:$0xff] }
 0x46f   : > { %17591 = vmatmul.mubr.msk.f32.gmra.mrb[56].mxu1 %vm273_vm1, %v1667_v47  ;;  %17141 = vmatmul.mubr.msk.f32.gmra.mrb[56].mxu0 %vm273_vm1, %v1655_v10  ;;  %v11274_v10 = vld [vmem:[#allocation2 + $0x94] sm:$0xff]  ;;  %v11281_v47 = vld [vmem:[#allocation2 + $0x144] sm:$0xff] }
 0x470   : > { %17593 = vmatprep.mubr.msk.f32.mxu1 %vm273_vm1, %v1668_v54  ;;  %17143 = vmatprep.mubr.msk.f32.mxu0 %vm273_vm1, %v1656_v39  ;;  %v11275_v39 = vld [vmem:[#allocation2 + $0x9c] sm:$0xff]  ;;  %v11282_v54 = vld [vmem:[#allocation2 + $0x174] sm:$0xff] }
 0x473   : > { %17594 = vmatmul.mubr.msk.f32.gmra.mrb[58].mxu1 %vm273_vm1, %v1669_v35  ;;  %17144 = vmatmul.mubr.msk.f32.gmra.mrb[58].mxu0 %vm273_vm1, %v1657_v44  ;;  %v11276_v44 = vld [vmem:[#allocation2 + $0xcc] sm:$0xff] }
 0x474   : > { %17596 = vmatprep.mubr.msk.f32.mxu1 %vm273_vm1, %v1670_v5  ;;  %17146 = vmatprep.mubr.msk.f32.mxu0 %vm273_vm1, %v1658_v57  ;;  %v8205_v57 = vld [vmem:[#allocation2 + $0x1e6] sm:$0xff]  ;;  %v8211_v35 = vld [vmem:[#allocation2 + $0x28e] sm:$0xff]  ;;  %v8212_v5 = vld [vmem:[#allocation2 + $0x2be] sm:$0xff] }
 0x477   : > { %17597 = vmatmul.mubr.msk.f32.gmra.mrb[60].mxu1 %vm273_vm1, %v1671_v58  ;;  %17147 = vmatmul.mubr.msk.f32.gmra.mrb[60].mxu0 %vm273_vm1, %v1659_v27  ;;  %v11277_v27 = vld [vmem:[#allocation2 + $0xd4] sm:$0xff]  ;;  %v11283_v58 = vld [vmem:[#allocation2 + $0x17c] sm:$0xff] }
 0x478   : > { %17599 = vmatprep.mubr.msk.f32.mxu1 %vm273_vm1, %v1672_v15  ;;  %17149 = vmatprep.mubr.msk.f32.mxu0 %vm273_vm1, %v1660_v41  ;;  %v11278_v41 = vld [vmem:[#allocation2 + $0x104] sm:$0xff]  ;;  %v11284_v15 = vld [vmem:[#allocation2 + $0x1ac] sm:$0xff] }
 0x47b   : > { %17600 = vmatmul.mubr.msk.f32.gmra.mrb[62].mxu1 %vm273_vm1, %v1673_v4  ;;  %17150 = vmatmul.mubr.msk.f32.gmra.mrb[62].mxu0 %vm273_vm1, %v1661_v60  ;;  %v8207_v60 = vld [vmem:[#allocation2 + $0x21e] sm:$0xff]  ;;  %v8213_v4 = vld [vmem:[#allocation2 + $0x2c6] sm:$0xff] }
 0x47c   : > { %17604 = vmatprep.mubr.msk.f32.mxu1 %vm273_vm1, %v11270_v38  ;;  %17154 = vmatprep.mubr.msk.f32.mxu0 %vm273_vm1, %v8200_v0  ;;  %v8214_v38 = vld [vmem:[#allocation2 + $0x2f6] sm:$0xff] }
 0x47d   : > { %v11285_v0 = vld [vmem:[#allocation2 + $0x1b4] sm:$0xff] }
 0x47f   : > { %17605 = vmatmul.mubr.msk.f32.vlgmr.msra.gmra.mrb[32].mxu1 %vm273_vm1, %v11271_v45  ;;  %17155 = vmatmul.mubr.msk.f32.vlgmr.msra.gmra.mrb[32].mxu0 %vm273_vm1, %v8201_v33  ;;  %v11286_v45 = vld [vmem:[#allocation2 + $0x1e4] sm:$0xff]  ;;  %v8216_v33 = vld [vmem:[#allocation2 + $0x32e] sm:$0xff] }
 0x480   : > { %17607 = vmatprep.mubr.msk.f32.mxu1 %vm273_vm1, %v11272_v31  ;;  %17653 = vmatpush3.msk.msra.mxu1 %vm839_vm0, %v22139_v32  ;;  %v8204_v32 = vld [vmem:[#allocation2 + $0x1de] sm:$0xff] }
 0x481   : > { %17702 = vmatprep.subr.msk.mxu1 %vm839_vm0, %v22233_v12  ;;  %17203 = vmatpush3.msk.msra.mxu0 %vm839_vm0, %v22156_v24  ;;  %v8206_v24 = vld [vmem:[#allocation2 + $0x216] sm:$0xff]  ;;  %v8215_v31 = vld [vmem:[#allocation2 + $0x2fe] sm:$0xff] }
 0x482   : > { %17157 = vmatprep.mubr.msk.f32.mxu0 %vm273_vm1, %v8202_v43  ;;  %17252 = vmatprep.subr.msk.mxu0 %vm839_vm0, %v22242_v42  ;;  %v11287_v43 = vld [vmem:[#allocation2 + $0x1ec] sm:$0xff] }
 0x483   : > { %17608 = vmatmul.mubr.msk.f32.gmra.mrb[34].mxu1 %vm273_vm1, %v11273_v53  ;;  %17158 = vmatmul.mubr.msk.f32.gmra.mrb[34].mxu0 %vm273_vm1, %v8203_v22  ;;  %v11288_v53 = vld [vmem:[#allocation2 + $0x21c] sm:$0xff]  ;;  %v8218_v22 = vld [vmem:[#allocation2 + $0x366] sm:$0xff] }
 0x484   : > { %17610 = vmatprep.mubr.msk.f32.mxu1 %vm273_vm1, %v11274_v10  ;;  %17160 = vmatprep.mubr.msk.f32.mxu0 %vm273_vm1, %v8204_v32  ;;  %v8217_v10 = vld [vmem:[#allocation2 + $0x336] sm:$0xff]  ;;  %v11289_v32 = vld [vmem:[#allocation2 + $0x224] sm:$0xff] }
 0x487   : > { %17611 = vmatmul.mubr.msk.f32.gmra.mrb[36].mxu1 %vm273_vm1, %v11275_v39  ;;  %17161 = vmatmul.mubr.msk.f32.gmra.mrb[36].mxu0 %vm273_vm1, %v8205_v57  ;;  %v11290_v39 = vld [vmem:[#allocation2 + $0x254] sm:$0xff]  ;;  %v8220_v57 = vld [vmem:[#allocation2 + $0x39e] sm:$0xff] }
 0x488   : > { %17613 = vmatprep.mubr.msk.f32.mxu1 %vm273_vm1, %v11276_v44  ;;  %17163 = vmatprep.mubr.msk.f32.mxu0 %vm273_vm1, %v8206_v24  ;;  %v8219_v44 = vld [vmem:[#allocation2 + $0x36e] sm:$0xff]  ;;  %v11291_v24 = vld [vmem:[#allocation2 + $0x25c] sm:$0xff] }
 0x48b   : > { %17614 = vmatmul.mubr.msk.f32.gmra.mrb[38].mxu1 %vm273_vm1, %v11277_v27  ;;  %17164 = vmatmul.mubr.msk.f32.gmra.mrb[38].mxu0 %vm273_vm1, %v8207_v60  ;;  %v11292_v27 = vld [vmem:[#allocation2 + $0x28c] sm:$0xff]  ;;  %v8222_v60 = vld [vmem:[#allocation2 + $0x3d6] sm:$0xff] }
 0x48c   : > { %17616 = vmatprep.mubr.msk.f32.mxu1 %vm273_vm1, %v11278_v41  ;;  %17166 = vmatprep.mubr.msk.f32.mxu0 %vm273_vm1, %v8208_v50  ;;  %v8221_v41 = vld [vmem:[#allocation2 + $0x3a6] sm:$0xff]  ;;  %v11293_v50 = vld [vmem:[#allocation2 + $0x294] sm:$0xff] }
 0x48f   : > { %17617 = vmatmul.mubr.msk.f32.gmra.mrb[40].mxu1 %vm273_vm1, %v11279_v52  ;;  %17167 = vmatmul.mubr.msk.f32.gmra.mrb[40].mxu0 %vm273_vm1, %v8209_v2  ;;  %v11294_v52 = vld [vmem:[#allocation2 + $0x2c4] sm:$0xff]  ;;  %v8224_v2 = vld [vmem:[#allocation2 + $0x40e] sm:$0xff] }
 0x490   : > { %17619 = vmatprep.mubr.msk.f32.mxu1 %vm273_vm1, %v11280_v61  ;;  %17169 = vmatprep.mubr.msk.f32.mxu0 %vm273_vm1, %v8210_v7  ;;  %v8223_v61 = vld [vmem:[#allocation2 + $0x3de] sm:$0xff]  ;;  %v11295_v7 = vld [vmem:[#allocation2 + $0x2cc] sm:$0xff] }
 0x493   : > { %17620 = vmatmul.mubr.msk.f32.gmra.mrb[42].mxu1 %vm273_vm1, %v11281_v47  ;;  %17170 = vmatmul.mubr.msk.f32.gmra.mrb[42].mxu0 %vm273_vm1, %v8211_v35  ;;  %v11296_v47 = vld [vmem:[#allocation2 + $0x2fc] sm:$0xff]  ;;  %v8226_v35 = vld [vmem:[#allocation2 + $0x446] sm:$0xff] }
 0x494   : > { %17622 = vmatprep.mubr.msk.f32.mxu1 %vm273_vm1, %v11282_v54  ;;  %17172 = vmatprep.mubr.msk.f32.mxu0 %vm273_vm1, %v8212_v5  ;;  %v8225_v54 = vld [vmem:[#allocation2 + $0x416] sm:$0xff]  ;;  %v11297_v5 = vld [vmem:[#allocation2 + $0x304] sm:$0xff] }
 0x497   : > { %17623 = vmatmul.mubr.msk.f32.gmra.mrb[44].mxu1 %vm273_vm1, %v11283_v58  ;;  %17173 = vmatmul.mubr.msk.f32.gmra.mrb[44].mxu0 %vm273_vm1, %v8213_v4  ;;  %v11298_v58 = vld [vmem:[#allocation2 + $0x334] sm:$0xff]  ;;  %v8228_v4 = vld [vmem:[#allocation2 + $0x47e] sm:$0xff] }
 0x498   : > { %17625 = vmatprep.mubr.msk.f32.mxu1 %vm273_vm1, %v11284_v15  ;;  %17175 = vmatprep.mubr.msk.f32.mxu0 %vm273_vm1, %v8214_v38  ;;  %v8227_v15 = vld [vmem:[#allocation2 + $0x44e] sm:$0xff]  ;;  %v11299_v38 = vld [vmem:[#allocation2 + $0x33c] sm:$0xff] }
 0x49b   : > { %17626 = vmatmul.mubr.msk.f32.gmra.mrb[46].mxu1 %vm273_vm1, %v11285_v0  ;;  %17176 = vmatmul.mubr.msk.f32.gmra.mrb[46].mxu0 %vm273_vm1, %v8215_v31  ;;  %v11300_v0 = vld [vmem:[#allocation2 + $0x36c] sm:$0xff]  ;;  %v8230_v31 = vld [vmem:[#allocation2 + $0x4b6] sm:$0xff] }
 0x49c   : > { %17628 = vmatprep.mubr.msk.f32.mxu1 %vm273_vm1, %v11286_v45  ;;  %17178 = vmatprep.mubr.msk.f32.mxu0 %vm273_vm1, %v8216_v33  ;;  %v8229_v45 = vld [vmem:[#allocation2 + $0x486] sm:$0xff]  ;;  %v11301_v33 = vld [vmem:[#allocation2 + $0x374] sm:$0xff] }
 0x49f   : > { %17629 = vmatmul.mubr.msk.f32.gmra.mrb[48].mxu1 %vm273_vm1, %v11287_v43  ;;  %17179 = vmatmul.mubr.msk.f32.gmra.mrb[48].mxu0 %vm273_vm1, %v8217_v10  ;;  %v11302_v43 = vld [vmem:[#allocation2 + $0x414] sm:$0xff]  ;;  %v11303_v10 = vld [vmem:[#allocation2 + $0x41c] sm:$0xff] }
 0x4a0   : > { %17631 = vmatprep.mubr.msk.f32.mxu1 %vm273_vm1, %v11288_v53  ;;  %17181 = vmatprep.mubr.msk.f32.mxu0 %vm273_vm1, %v8218_v22  ;;  %v8231_v53 = vld [vmem:[#allocation2 + $0x4be] sm:$0xff]  ;;  %v11304_v22 = vld [vmem:[#allocation2 + $0x44c] sm:$0xff] }
 0x4a3   : > { %17632 = vmatmul.mubr.msk.f32.gmra.mrb[50].mxu1 %vm273_vm1, %v11289_v32  ;;  %17182 = vmatmul.mubr.msk.f32.gmra.mrb[50].mxu0 %vm273_vm1, %v8219_v44  ;;  %v11305_v32 = vld [vmem:[#allocation2 + $0x454] sm:$0xff]  ;;  %v11307_v44 = vld [vmem:[#allocation2 + $0x48c] sm:$0xff] }
 0x4a4   : > { %17634 = vmatprep.mubr.msk.f32.mxu1 %vm273_vm1, %v11290_v39  ;;  %17184 = vmatprep.mubr.msk.f32.mxu0 %vm273_vm1, %v8220_v57  ;;  %v11306_v39 = vld [vmem:[#allocation2 + $0x484] sm:$0xff]  ;;  %v11308_v57 = vld [vmem:[#allocation2 + $0x4bc] sm:$0xff] }
 0x4a7   : > { %17635 = vmatmul.mubr.msk.f32.gmra.mrb[52].mxu1 %vm273_vm1, %v11291_v24  ;;  %17185 = vmatmul.mubr.msk.f32.gmra.mrb[52].mxu0 %vm273_vm1, %v8221_v41  ;;  %v8232_v24 = vld [vmem:[#allocation2 + $0x4ee] sm:$0xff] }
 0x4a8   : > { %17637 = vmatprep.mubr.msk.f32.mxu1 %vm273_vm1, %v11292_v27  ;;  %17187 = vmatprep.mubr.msk.f32.mxu0 %vm273_vm1, %v8222_v60  ;;  %v11311_v27 = vld [vmem:[#allocation2 + $0x4fc] sm:$0xff]  ;;  %v11312_v41 = vld [vmem:[#allocation2 + $0x52c] sm:$0xff] }
 0x4a9   : > { %v8233_v60 = vld [vmem:[#allocation2 + $0x4f6] sm:$0xff] }
 0x4ab   : > { %17638 = vmatmul.mubr.msk.f32.gmra.mrb[54].mxu1 %vm273_vm1, %v11293_v50  ;;  %17188 = vmatmul.mubr.msk.f32.gmra.mrb[54].mxu0 %vm273_vm1, %v8223_v61  ;;  %v8234_v50 = vld [vmem:[#allocation2 + $0x526] sm:$0xff] }
 0x4ac   : > { %17640 = vmatprep.mubr.msk.f32.mxu1 %vm273_vm1, %v11294_v52  ;;  %17190 = vmatprep.mubr.msk.f32.mxu0 %vm273_vm1, %v8224_v2  ;;  %v11313_v52 = vld [vmem:[#allocation2 + $0x534] sm:$0xff]  ;;  %v11314_v61 = vld [vmem:[#allocation2 + $0x564] sm:$0xff] }
 0x4af   : > { %17641 = vmatmul.mubr.msk.f32.gmra.mrb[56].mxu1 %vm273_vm1, %v11295_v7  ;;  %17191 = vmatmul.mubr.msk.f32.gmra.mrb[56].mxu0 %vm273_vm1, %v8225_v54  ;;  %v8236_v7 = vld [vmem:[#allocation2 + $0x55e] sm:$0xff] }
 0x4b0   : > { %17643 = vmatprep.mubr.msk.f32.mxu1 %vm273_vm1, %v11296_v47  ;;  %17193 = vmatprep.mubr.msk.f32.mxu0 %vm273_vm1, %v8226_v35  ;;  %v11315_v47 = vld [vmem:[#allocation2 + $0x56c] sm:$0xff] }
 0x4b3   : > { %17644 = vmatmul.mubr.msk.f32.gmra.mrb[58].mxu1 %vm273_vm1, %v11297_v5  ;;  %17194 = vmatmul.mubr.msk.f32.gmra.mrb[58].mxu0 %vm273_vm1, %v8227_v15  ;;  %v8238_v5 = vld [vmem:[#allocation2 + $0x596] sm:$0xff] }
 0x4b4   : > { %17646 = vmatprep.mubr.msk.f32.mxu1 %vm273_vm1, %v11298_v58  ;;  %17196 = vmatprep.mubr.msk.f32.mxu0 %vm273_vm1, %v8228_v4  ;;  %v11317_v58 = vld [vmem:[#allocation2 + $0x5a4] sm:$0xff] }
 0x4b7   : > { %17647 = vmatmul.mubr.msk.f32.gmra.mrb[60].mxu1 %vm273_vm1, %v11299_v38  ;;  %17197 = vmatmul.mubr.msk.f32.gmra.mrb[60].mxu0 %vm273_vm1, %v8229_v45  ;;  %v8240_v38 = vld [vmem:[#allocation2 + $0x5ce] sm:$0xff] }
 0x4b8   : > { %17649 = vmatprep.mubr.msk.f32.mxu1 %vm273_vm1, %v11300_v0  ;;  %17199 = vmatprep.mubr.msk.f32.mxu0 %vm273_vm1, %v8230_v31  ;;  %v11319_v0 = vld [vmem:[#allocation2 + $0x5dc] sm:$0xff] }
 0x4bb   : > { %17650 = vmatmul.mubr.msk.f32.gmra.mrb[62].mxu1 %vm273_vm1, %v11301_v33  ;;  %17200 = vmatmul.mubr.msk.f32.gmra.mrb[62].mxu0 %vm273_vm1, %v8231_v53  ;;  %v8242_v33 = vld [vmem:[#allocation2 + $0x606] sm:$0xff] }
 0x4bc   : > { %17654 = vmatprep.mubr.msk.f32.mxu1 %vm273_vm1, %v11302_v43  ;;  %17204 = vmatprep.mubr.msk.f32.mxu0 %vm273_vm1, %v8224_v2  ;;  %v8235_v2 = vld [vmem:[#allocation2 + $0x52e] sm:$0xff] }
 0x4bd   : > { %v11321_v43 = vld [vmem:[#allocation2 + $0x614] sm:$0xff] }
 0x4bf   : > { %17655 = vmatmul.mubr.msk.f32.vlgmr.msra.gmra.mrb[32].mxu1 %vm273_vm1, %v11303_v10  ;;  %17205 = vmatmul.mubr.msk.f32.vlgmr.msra.gmra.mrb[32].mxu0 %vm273_vm1, %v8225_v54  ;;  %v11316_v54 = vld [vmem:[#allocation2 + $0x59c] sm:$0xff]  ;;  %v8243_v10 = vld [vmem:[#allocation2 + $0x60e] sm:$0xff] }
 0x4c0   : > { %17657 = vmatprep.mubr.msk.f32.mxu1 %vm273_vm1, %v11304_v22  ;;  %17703 = vmatpush3.msk.msra.mxu1 %vm839_vm0, %v22233_v12  ;;  %v11309_v12 = vld [vmem:[#allocation2 + $0x4c4] sm:$0xff] }
 0x4c1   : > { %17253 = vmatpush3.msk.msra.mxu0 %vm839_vm0, %v22242_v42  ;;  %17207 = vmatprep.mubr.msk.f32.mxu0 %vm273_vm1, %v8226_v35  ;;  %v11310_v42 = vld [vmem:[#allocation2 + $0x4f4] sm:$0xff]  ;;  %v8237_v35 = vld [vmem:[#allocation2 + $0x566] sm:$0xff]  ;;  %v8244_v22 = vld [vmem:[#allocation2 + $0x63e] sm:$0xff] }
 0x4c2   : > { %17752 = vmatprep.subr.mxu0 %v22953_v1 }
 0x4c3   : > { %17658 = vmatmul.mubr.msk.f32.gmra.mrb[34].mxu1 %vm273_vm1, %v11305_v32  ;;  %17208 = vmatmul.mubr.msk.f32.gmra.mrb[34].mxu0 %vm273_vm1, %v8227_v15  ;;  %v11318_v15 = vld [vmem:[#allocation2 + $0x5d4] sm:$0xff]  ;;  %v11323_v32 = vld [vmem:[#allocation2 + $0x64c] sm:$0xff] }
 0x4c4   : > { %17660 = vmatprep.mubr.msk.f32.mxu1 %vm273_vm1, %v11306_v39  ;;  %17210 = vmatprep.mubr.msk.f32.mxu0 %vm273_vm1, %v8228_v4  ;;  %v8239_v4 = vld [vmem:[#allocation2 + $0x59e] sm:$0xff] }
 0x4c5   : > { %v11324_v39 = vld [vmem:[#allocation2 + $0x67c] sm:$0xff] }
 0x4c7   : > { %17661 = vmatmul.mubr.msk.f32.gmra.mrb[36].mxu1 %vm273_vm1, %v11307_v44  ;;  %17211 = vmatmul.mubr.msk.f32.gmra.mrb[36].mxu0 %vm273_vm1, %v8229_v45  ;;  %v11320_v45 = vld [vmem:[#allocation2 + $0x60c] sm:$0xff] }
 0x4c8   : > { %17663 = vmatprep.mubr.msk.f32.mxu1 %vm273_vm1, %v11308_v57  ;;  %17213 = vmatprep.mubr.msk.f32.mxu0 %vm273_vm1, %v8230_v31  ;;  %v8241_v31 = vld [vmem:[#allocation2 + $0x5d6] sm:$0xff]  ;;  %v8245_v44 = vld [vmem:[#allocation2 + $0x646] sm:$0xff] }
 0x4c9   : > { %v8246_v57 = vld [vmem:[#allocation2 + $0x676] sm:$0xff] }
 0x4cb   : > { %17664 = vmatmul.mubr.msk.f32.gmra.mrb[38].mxu1 %vm273_vm1, %v11309_v12  ;;  %17214 = vmatmul.mubr.msk.f32.gmra.mrb[38].mxu0 %vm273_vm1, %v8231_v53  ;;  %v11322_v53 = vld [vmem:[#allocation2 + $0x644] sm:$0xff] }
 0x4cc   : > { %17666 = vmatprep.mubr.msk.f32.mxu1 %vm273_vm1, %v11310_v42  ;;  %17216 = vmatprep.mubr.msk.f32.mxu0 %vm273_vm1, %v8232_v24  ;;  %v11325_v12 = vld [vmem:[#allocation2 + $0x684] sm:$0xff]  ;;  %v11326_v42 = vld [vmem:[#allocation2 + $0x6b4] sm:$0xff] }
 0x4cd   : > { %v8247_v24 = vld [vmem:[#allocation2 + $0x67e] sm:$0xff] }
 0x4cf   : > { %17667 = vmatmul.mubr.msk.f32.gmra.mrb[40].mxu1 %vm273_vm1, %v11311_v27  ;;  %17217 = vmatmul.mubr.msk.f32.gmra.mrb[40].mxu0 %vm273_vm1, %v8233_v60  ;;  %v8248_v27 = vld [vmem:[#allocation2 + $0x6ae] sm:$0xff] }
 0x4d0   : > { %17669 = vmatprep.mubr.msk.f32.mxu1 %vm273_vm1, %v11312_v41  ;;  %17219 = vmatprep.mubr.msk.f32.mxu0 %vm273_vm1, %v8234_v50  ;;  %v11327_v41 = vld [vmem:[#allocation2 + $0x6bc] sm:$0xff]  ;;  %v11328_v60 = vld [vmem:[#allocation2 + $0x6ec] sm:$0xff] }
 0x4d1   : > { %v8249_v50 = vld [vmem:[#allocation2 + $0x6b6] sm:$0xff] }
 0x4d3   : > { %17670 = vmatmul.mubr.msk.f32.gmra.mrb[42].mxu1 %vm273_vm1, %v11313_v52  ;;  %17220 = vmatmul.mubr.msk.f32.gmra.mrb[42].mxu0 %vm273_vm1, %v8235_v2  ;;  %v8250_v52 = vld [vmem:[#allocation2 + $0x6e6] sm:$0xff] }
 0x4d4   : > { %17672 = vmatprep.mubr.msk.f32.mxu1 %vm273_vm1, %v11314_v61  ;;  %17222 = vmatprep.mubr.msk.f32.mxu0 %vm273_vm1, %v8236_v7  ;;  %v11329_v61 = vld [vmem:[#allocation2 + $0x6f4] sm:$0xff]  ;;  %v11330_v2 = vld [vmem:[#allocation2 + $0x724] sm:$0xff] }
 0x4d5   : > { %v8251_v7 = vld [vmem:[#allocation2 + $0x6ee] sm:$0xff] }
 0x4d7   : > { %17673 = vmatmul.mubr.msk.f32.gmra.mrb[44].mxu1 %vm273_vm1, %v11315_v47  ;;  %17223 = vmatmul.mubr.msk.f32.gmra.mrb[44].mxu0 %vm273_vm1, %v8237_v35  ;;  %v8252_v47 = vld [vmem:[#allocation2 + $0x71e] sm:$0xff] }
 0x4d8   : > { %17675 = vmatprep.mubr.msk.f32.mxu1 %vm273_vm1, %v11316_v54  ;;  %17225 = vmatprep.mubr.msk.f32.mxu0 %vm273_vm1, %v8238_v5  ;;  %v11331_v54 = vld [vmem:[#allocation2 + $0x72c] sm:$0xff]  ;;  %v11332_v35 = vld [vmem:[#allocation2 + $0x75c] sm:$0xff] }
 0x4d9   : > { %v8253_v5 = vld [vmem:[#allocation2 + $0x726] sm:$0xff] }
 0x4db   : > { %17676 = vmatmul.mubr.msk.f32.gmra.mrb[46].mxu1 %vm273_vm1, %v11317_v58  ;;  %17226 = vmatmul.mubr.msk.f32.gmra.mrb[46].mxu0 %vm273_vm1, %v8239_v4  ;;  %v8254_v58 = vld [vmem:[#allocation2 + $0x756] sm:$0xff]  ;;  %v11334_v4 = vld [vmem:[#allocation2 + $0x804] sm:$0xff] }
 0x4dc   : > { %17678 = vmatprep.mubr.msk.f32.mxu1 %vm273_vm1, %v11318_v15  ;;  %17228 = vmatprep.mubr.msk.f32.mxu0 %vm273_vm1, %v8240_v38  ;;  %v11333_v15 = vld [vmem:[#allocation2 + $0x764] sm:$0xff] }
 0x4dd   : > { %v8255_v38 = vld [vmem:[#allocation2 + $0x75e] sm:$0xff] }
 0x4df   : > { %17679 = vmatmul.mubr.msk.f32.gmra.mrb[48].mxu1 %vm273_vm1, %v11319_v0  ;;  %17229 = vmatmul.mubr.msk.f32.gmra.mrb[48].mxu0 %vm273_vm1, %v8241_v31  ;;  %v11335_v0 = vld [vmem:[#allocation2 + $0x80c] sm:$0xff]  ;;  %v13260_v31 = vld [vmem:[%s22915_s2] sm:$0xf] }
 0x4e0   : > { %17681 = vmatprep.mubr.msk.f32.mxu1 %vm273_vm1, %v11320_v45  ;;  %17231 = vmatprep.mubr.msk.f32.mxu0 %vm273_vm1, %v8242_v33  ;;  %v11336_v45 = vld [vmem:[#allocation2 + $0x83c] sm:$0xff]  ;;  %v11337_v33 = vld [vmem:[#allocation2 + $0x844] sm:$0xff] }
 0x4e3   : > { %17682 = vmatmul.mubr.msk.f32.gmra.mrb[50].mxu1 %vm273_vm1, %v11321_v43  ;;  %17232 = vmatmul.mubr.msk.f32.gmra.mrb[50].mxu0 %vm273_vm1, %v8243_v10  ;;  %v11338_v43 = vld [vmem:[#allocation2 + $0x874] sm:$0xff]  ;;  %v11340_v10 = vld [vmem:[#allocation2 + $0x8ac] sm:$0xff] }
 0x4e4   : > { %17684 = vmatprep.mubr.msk.f32.mxu1 %vm273_vm1, %v11322_v53  ;;  %17234 = vmatprep.mubr.msk.f32.mxu0 %vm273_vm1, %v8244_v22  ;;  %v11339_v53 = vld [vmem:[#allocation2 + $0x87c] sm:$0xff]  ;;  %v11341_v22 = vld [vmem:[#allocation2 + $0x8b4] sm:$0xff] }
 0x4e7   : > { %17685 = vmatmul.mubr.msk.f32.gmra.mrb[52].mxu1 %vm273_vm1, %v11323_v32  ;;  %17235 = vmatmul.mubr.msk.f32.gmra.mrb[52].mxu0 %vm273_vm1, %v8245_v44  ;;  %v11342_v32 = vld [vmem:[#allocation2 + $0x8e4] sm:$0xff]  ;;  %v11343_v44 = vld [vmem:[#allocation2 + $0x8ec] sm:$0xff] }
 0x4e8   : > { %17687 = vmatprep.mubr.msk.f32.mxu1 %vm273_vm1, %v11324_v39  ;;  %17237 = vmatprep.mubr.msk.f32.mxu0 %vm273_vm1, %v8246_v57  ;;  %v8256_v39 = vld [vmem:[#allocation2 + $0x78e] sm:$0xff]  ;;  %v11344_v57 = vld [vmem:[#allocation2 + $0x91c] sm:$0xff] }
 0x4eb   : > { %17688 = vmatmul.mubr.msk.f32.gmra.mrb[54].mxu1 %vm273_vm1, %v11325_v12  ;;  %17238 = vmatmul.mubr.msk.f32.gmra.mrb[54].mxu0 %vm273_vm1, %v8247_v24  ;;  %v8257_v12 = vld [vmem:[#allocation2 + $0x796] sm:$0xff]  ;;  %v11345_v24 = vld [vmem:[#allocation2 + $0x924] sm:$0xff] }
 0x4ec   : > { %17690 = vmatprep.mubr.msk.f32.mxu1 %vm273_vm1, %v11326_v42  ;;  %17240 = vmatprep.mubr.msk.f32.mxu0 %vm273_vm1, %v8248_v27  ;;  %v8258_v42 = vld [vmem:[#allocation2 + $0x7c6] sm:$0xff] }
 0x4ef   : > { %17691 = vmatmul.mubr.msk.f32.gmra.mrb[56].mxu1 %vm273_vm1, %v11327_v41  ;;  %17241 = vmatmul.mubr.msk.f32.gmra.mrb[56].mxu0 %vm273_vm1, %v8249_v50  ;;  %v8259_v41 = vld [vmem:[#allocation2 + $0x7ce] sm:$0xff] }
 0x4f0   : > { %17693 = vmatprep.mubr.msk.f32.mxu1 %vm273_vm1, %v11328_v60  ;;  %17243 = vmatprep.mubr.msk.f32.mxu0 %vm273_vm1, %v8250_v52  ;;  %v8260_v60 = vld [vmem:[#allocation2 + $0x7fe] sm:$0xff] }
 0x4f3   : > { %17694 = vmatmul.mubr.msk.f32.gmra.mrb[58].mxu1 %vm273_vm1, %v11329_v61  ;;  %17244 = vmatmul.mubr.msk.f32.gmra.mrb[58].mxu0 %vm273_vm1, %v8251_v7  ;;  %v8261_v61 = vld [vmem:[#allocation2 + $0x806] sm:$0xff] }
 0x4f4   : > { %17696 = vmatprep.mubr.msk.f32.mxu1 %vm273_vm1, %v11330_v2  ;;  %17246 = vmatprep.mubr.msk.f32.mxu0 %vm273_vm1, %v8252_v47  ;;  %v8262_v2 = vld [vmem:[#allocation2 + $0x836] sm:$0xff] }
 0x4f7   : > { %17697 = vmatmul.mubr.msk.f32.gmra.mrb[60].mxu1 %vm273_vm1, %v11331_v54  ;;  %17247 = vmatmul.mubr.msk.f32.gmra.mrb[60].mxu0 %vm273_vm1, %v8253_v5  ;;  %v8263_v54 = vld [vmem:[#allocation2 + $0x83e] sm:$0xff] }
 0x4f8   : > { %17699 = vmatprep.mubr.msk.f32.mxu1 %vm273_vm1, %v11332_v35  ;;  %17249 = vmatprep.mubr.msk.f32.mxu0 %vm273_vm1, %v8254_v58  ;;  %v8264_v35 = vld [vmem:[#allocation2 + $0x86e] sm:$0xff] }
 0x4fb   : > { %17700 = vmatmul.mubr.msk.f32.gmra.mrb[62].mxu1 %vm273_vm1, %v11333_v15  ;;  %17250 = vmatmul.mubr.msk.f32.gmra.mrb[62].mxu0 %vm273_vm1, %v8255_v38  ;;  %v8265_v15 = vld [vmem:[#allocation2 + $0x876] sm:$0xff] }
 0x4fc   : > { %17704 = vmatprep.mubr.msk.f32.mxu1 %vm273_vm1, %v11334_v4  ;;  %17254 = vmatprep.mubr.msk.f32.mxu0 %vm273_vm1, %v8248_v27  ;;  %v11346_v27 = vld [vmem:[#allocation2 + $0x954] sm:$0xff]  ;;  %v8266_v4 = vld [vmem:[#allocation2 + $0x8a6] sm:$0xff] }
 0x4ff   : > { %17705 = vmatmul.mubr.msk.f32.vlgmr.msra.gmra.mrb[32].mxu1 %vm273_vm1, %v11335_v0  ;;  %17255 = vmatmul.mubr.msk.f32.vlgmr.msra.gmra.mrb[32].mxu0 %vm273_vm1, %v8249_v50  ;;  %v11347_v50 = vld [vmem:[#allocation2 + $0x95c] sm:$0xff]  ;;  %v11354_v0 = vld [vmem:[#allocation2 + $0xa34] sm:$0xff] }
 0x500   : > { %17707 = vmatprep.mubr.msk.f32.mxu1 %vm273_vm1, %v11336_v45  ;;  %17257 = vmatprep.mubr.msk.f32.mxu0 %vm273_vm1, %v8250_v52  ;;  %v11348_v52 = vld [vmem:[#allocation2 + $0x98c] sm:$0xff] }
 0x501   : > { %17753 = vmatpush3.msk.msra.mxu0 %vm839_vm0, %v13260_v31  ;;  %v8267_v45 = vld [vmem:[#allocation2 + $0x8ae] sm:$0xff]  ;;  %v8268_v31 = vld [vmem:[#allocation2 + $0x8de] sm:$0xff] }
 0x503   : > { %17708 = vmatmul.mubr.msk.f32.gmra.mrb[34].mxu1 %vm273_vm1, %v11337_v33  ;;  %17258 = vmatmul.mubr.msk.f32.gmra.mrb[34].mxu0 %vm273_vm1, %v8251_v7  ;;  %v11349_v7 = vld [vmem:[#allocation2 + $0x994] sm:$0xff]  ;;  %v11355_v33 = vld [vmem:[#allocation2 + $0xa3c] sm:$0xff] }
 0x504   : > { %17710 = vmatprep.mubr.msk.f32.mxu1 %vm273_vm1, %v11338_v43  ;;  %17260 = vmatprep.mubr.msk.f32.mxu0 %vm273_vm1, %v8252_v47  ;;  %v11350_v47 = vld [vmem:[#allocation2 + $0x9c4] sm:$0xff]  ;;  %v11356_v43 = vld [vmem:[#allocation2 + $0xa6c] sm:$0xff] }
 0x507   : > { %17711 = vmatmul.mubr.msk.f32.gmra.mrb[36].mxu1 %vm273_vm1, %v11339_v53  ;;  %17261 = vmatmul.mubr.msk.f32.gmra.mrb[36].mxu0 %vm273_vm1, %v8253_v5  ;;  %v11351_v5 = vld [vmem:[#allocation2 + $0x9cc] sm:$0xff] }
 0x508   : > { %17713 = vmatprep.mubr.msk.f32.mxu1 %vm273_vm1, %v11340_v10  ;;  %17263 = vmatprep.mubr.msk.f32.mxu0 %vm273_vm1, %v8254_v58  ;;  %v11352_v58 = vld [vmem:[#allocation2 + $0x9fc] sm:$0xff]  ;;  %v8269_v53 = vld [vmem:[#allocation2 + $0x8e6] sm:$0xff] }
 0x509   : > { %v8270_v10 = vld [vmem:[#allocation2 + $0x916] sm:$0xff] }
 0x50b   : > { %17714 = vmatmul.mubr.msk.f32.gmra.mrb[38].mxu1 %vm273_vm1, %v11341_v22  ;;  %17264 = vmatmul.mubr.msk.f32.gmra.mrb[38].mxu0 %vm273_vm1, %v8255_v38  ;;  %v11353_v38 = vld [vmem:[#allocation2 + $0xa04] sm:$0xff]  ;;  %v11357_v22 = vld [vmem:[#allocation2 + $0xa74] sm:$0xff] }
 0x50c   : > { %17716 = vmatprep.mubr.msk.f32.mxu1 %vm273_vm1, %v11342_v32  ;;  %17266 = vmatprep.mubr.msk.f32.mxu0 %vm273_vm1, %v8256_v39  ;;  %v11358_v32 = vld [vmem:[#allocation2 + $0xaa4] sm:$0xff] }
 0x50d   : > { %v8271_v39 = vld [vmem:[#allocation2 + $0x91e] sm:$0xff] }
 0x50f   : > { %17717 = vmatmul.mubr.msk.f32.gmra.mrb[40].mxu1 %vm273_vm1, %v11343_v44  ;;  %17267 = vmatmul.mubr.msk.f32.gmra.mrb[40].mxu0 %vm273_vm1, %v8257_v12  ;;  %v8272_v44 = vld [vmem:[#allocation2 + $0x94e] sm:$0xff]  ;;  %v11360_v12 = vld [vmem:[#allocation2 + $0xadc] sm:$0xff] }
 0x510   : > { %17719 = vmatprep.mubr.msk.f32.mxu1 %vm273_vm1, %v11344_v57  ;;  %17269 = vmatprep.mubr.msk.f32.mxu0 %vm273_vm1, %v8258_v42  ;;  %v11359_v57 = vld [vmem:[#allocation2 + $0xaac] sm:$0xff]  ;;  %v8273_v42 = vld [vmem:[#allocation2 + $0x956] sm:$0xff] }
 0x513   : > { %17720 = vmatmul.mubr.msk.f32.gmra.mrb[42].mxu1 %vm273_vm1, %v11345_v24  ;;  %17270 = vmatmul.mubr.msk.f32.gmra.mrb[42].mxu0 %vm273_vm1, %v8259_v41  ;;  %v8274_v24 = vld [vmem:[#allocation2 + $0x986] sm:$0xff]  ;;  %v11362_v41 = vld [vmem:[#allocation2 + $0xb14] sm:$0xff] }
 0x514   : > { %17722 = vmatprep.mubr.msk.f32.mxu1 %vm273_vm1, %v11346_v27  ;;  %17272 = vmatprep.mubr.msk.f32.mxu0 %vm273_vm1, %v8260_v60  ;;  %v11361_v27 = vld [vmem:[#allocation2 + $0xae4] sm:$0xff]  ;;  %v8275_v60 = vld [vmem:[#allocation2 + $0x98e] sm:$0xff] }
 0x517   : > { %17723 = vmatmul.mubr.msk.f32.gmra.mrb[44].mxu1 %vm273_vm1, %v11347_v50  ;;  %17273 = vmatmul.mubr.msk.f32.gmra.mrb[44].mxu0 %vm273_vm1, %v8261_v61  ;;  %v8276_v50 = vld [vmem:[#allocation2 + $0x9be] sm:$0xff]  ;;  %v11364_v61 = vld [vmem:[#allocation2 + $0xb4c] sm:$0xff] }
 0x518   : > { %17725 = vmatprep.mubr.msk.f32.mxu1 %vm273_vm1, %v11348_v52  ;;  %17275 = vmatprep.mubr.msk.f32.mxu0 %vm273_vm1, %v8262_v2  ;;  %v11363_v52 = vld [vmem:[#allocation2 + $0xb1c] sm:$0xff]  ;;  %v8277_v2 = vld [vmem:[#allocation2 + $0x9c6] sm:$0xff] }
 0x51b   : > { %17726 = vmatmul.mubr.msk.f32.gmra.mrb[46].mxu1 %vm273_vm1, %v11349_v7  ;;  %17276 = vmatmul.mubr.msk.f32.gmra.mrb[46].mxu0 %vm273_vm1, %v8263_v54  ;;  %v8278_v7 = vld [vmem:[#allocation2 + $0x9f6] sm:$0xff]  ;;  %v8279_v54 = vld [vmem:[#allocation2 + $0x9fe] sm:$0xff] }
 0x51c   : > { %17728 = vmatprep.mubr.msk.f32.mxu1 %vm273_vm1, %v11350_v47  ;;  %17278 = vmatprep.mubr.msk.f32.mxu0 %vm273_vm1, %v8264_v35  ;;  %v11365_v47 = vld [vmem:[#allocation2 + $0xb54] sm:$0xff]  ;;  %v13130_v35 = vld [vmem:[%s19734_s26] sm:$0xff] }
 0x51f   : > { %17729 = vmatmul.mubr.msk.f32.gmra.mrb[48].mxu1 %vm273_vm1, %v11351_v5  ;;  %17279 = vmatmul.mubr.msk.f32.gmra.mrb[48].mxu0 %vm273_vm1, %v8265_v15  ;;  %v13131_v5 = vld [vmem:[%s19734_s26 + $0x10] sm:$0xff]  ;;  %v13138_v15 = vsel %vm273_vm1, %v13130_v35, 0.0 }
 0x520   : > { %17731 = vmatprep.mubr.msk.f32.mxu1 %vm273_vm1, %v11352_v58  ;;  %17281 = vmatprep.mubr.msk.f32.mxu0 %vm273_vm1, %v8266_v4  ;;  %v13161_v58 = vld [vmem:[%s19734_s26 + $0x8] sm:$0xff]  ;;  %v13139_v4 = vsel %vm273_vm1, %v13131_v5, 0.0  ;;  %v14738_v5 = vld [vmem:[%s19734_s26 + $0xb0] sm:$0xff] }
 0x523   : > { %17732 = vmatmul.mubr.msk.f32.gmra.mrb[50].mxu1 %vm273_vm1, %v11353_v38  ;;  %17282 = vmatmul.mubr.msk.f32.gmra.mrb[50].mxu0 %vm273_vm1, %v8267_v45  ;;  %v13162_v38 = vld [vmem:[%s19734_s26 + $0x18] sm:$0xff]  ;;  %v14735_v45 = vld [vmem:[%s19734_s26 + $0x80] sm:$0xff] }
 0x524   : > { %17734 = vmatprep.mubr.msk.f32.mxu1 %vm273_vm1, %v11354_v0  ;;  %17284 = vmatprep.mubr.msk.f32.mxu0 %vm273_vm1, %v8268_v31  ;;  %v13169_v0 = vsel %vm273_vm1, %v13161_v58, 0.0  ;;  %v14736_v31 = vld [vmem:[%s19734_s26 + $0x90] sm:$0xff] }
 0x527   : > { %17735 = vmatmul.mubr.msk.f32.gmra.mrb[52].mxu1 %vm273_vm1, %v11355_v33  ;;  %17285 = vmatmul.mubr.msk.f32.gmra.mrb[52].mxu0 %vm273_vm1, %v8269_v53  ;;  %v13132_v33 = vld [vmem:[%s19734_s26 + $0x20] sm:$0xff]  ;;  %v13163_v53 = vld [vmem:[%s19734_s26 + $0x28] sm:$0xff] }
 0x528   : > { %17737 = vmatprep.mubr.msk.f32.mxu1 %vm273_vm1, %v11356_v43  ;;  %17287 = vmatprep.mubr.msk.f32.mxu0 %vm273_vm1, %v8270_v10  ;;  %v13140_v43 = vadd.f32 %v13139_v4, %v13138_v15  ;;  %v13170_v10 = vsel %vm273_vm1, %v13162_v38, 0.0  ;;  %v13134_v15 = vld [vmem:[%s19734_s26 + $0x40] sm:$0xff]  ;;  %v13165_v38 = vld [vmem:[%s19734_s26 + $0x48] sm:$0xff] }
 0x52b   : > { %17738 = vmatmul.mubr.msk.f32.gmra.mrb[54].mxu1 %vm273_vm1, %v11357_v22  ;;  %17288 = vmatmul.mubr.msk.f32.gmra.mrb[54].mxu0 %vm273_vm1, %v8271_v39  ;;  %v13201_v22 = vsel %vm273_vm1, %v14735_v45, 0.0  ;;  %v14743_v39 = vld [vmem:[%s19734_s26 + $0x88] sm:$0xff]  ;;  %v14746_v45 = vld [vmem:[%s19734_s26 + $0xb8] sm:$0xff] }
 0x52c   : > { %17740 = vmatprep.mubr.msk.f32.mxu1 %vm273_vm1, %v11358_v32  ;;  %17290 = vmatprep.mubr.msk.f32.mxu0 %vm273_vm1, %v8272_v44  ;;  %v13202_v32 = vsel %vm273_vm1, %v14736_v31, 0.0  ;;  %v13141_v44 = vsel %vm273_vm1, %v13132_v33, 0.0 }
 0x52f   : > { %17741 = vmatmul.mubr.msk.f32.gmra.mrb[56].mxu1 %vm273_vm1, %v11359_v57  ;;  %17291 = vmatmul.mubr.msk.f32.gmra.mrb[56].mxu0 %vm273_vm1, %v8273_v42  ;;  %v13171_v57 = vadd.f32 %v13170_v10, %v13169_v0  ;;  %v14737_v42 = vld [vmem:[%s19734_s26 + $0xa0] sm:$0xff]  ;;  %v13206_v0 = vsel %vm273_vm1, %v14738_v5, 0.0  ;;  %v13176_v10 = vsel %vm273_vm1, %v13165_v38, 0.0 }
 0x530   : > { %17743 = vmatprep.mubr.msk.f32.mxu1 %vm273_vm1, %v11360_v12  ;;  %17293 = vmatprep.mubr.msk.f32.mxu0 %vm273_vm1, %v8274_v24  ;;  %v13172_v12 = vsel %vm273_vm1, %v13163_v53, 0.0  ;;  %v13203_v24 = vadd.f32 %v13202_v32, %v13201_v22  ;;  %v14739_v22 = vld [vmem:[%s19734_s26 + $0xc0] sm:$0xff] }
 0x533   : > { %17744 = vmatmul.mubr.msk.f32.gmra.mrb[58].mxu1 %vm273_vm1, %v11361_v27  ;;  %17294 = vmatmul.mubr.msk.f32.gmra.mrb[58].mxu0 %vm273_vm1, %v8275_v60  ;;  %v14744_v27 = vld [vmem:[%s19734_s26 + $0x98] sm:$0xff]  ;;  %v13142_v60 = vadd.f32 %v13141_v44, %v13140_v43  ;;  %v13145_v43 = vsel %vm273_vm1, %v13134_v15, 0.0 }
 0x534   : > { %17746 = vmatprep.mubr.msk.f32.mxu1 %vm273_vm1, %v11362_v41  ;;  %17296 = vmatprep.mubr.msk.f32.mxu0 %vm273_vm1, %v8276_v50  ;;  %v13133_v41 = vld [vmem:[%s19734_s26 + $0x30] sm:$0xff]  ;;  %v13164_v50 = vld [vmem:[%s19734_s26 + $0x38] sm:$0xff] }
 0x535   : > { %v13174_v35 = vsel %vm273_vm1, %v13164_v50, 0.0 }
 0x537   : > { %17747 = vmatmul.mubr.msk.f32.gmra.mrb[60].mxu1 %vm273_vm1, %v11363_v52  ;;  %17297 = vmatmul.mubr.msk.f32.gmra.mrb[60].mxu0 %vm273_vm1, %v8277_v2  ;;  %v13204_v52 = vsel %vm273_vm1, %v14737_v42, 0.0  ;;  %v13232_v2 = vsel %vm273_vm1, %v14743_v39, 0.0  ;;  %v13135_v39 = vld [vmem:[%s19734_s26 + $0x50] sm:$0xff]  ;;  %v14747_v42 = vld [vmem:[%s19734_s26 + $0xc8] sm:$0xff] }
 0x538   : > { %17749 = vmatprep.mubr.msk.f32.mxu1 %vm273_vm1, %v11364_v61  ;;  %17299 = vmatprep.mubr.msk.f32.mxu0 %vm273_vm1, %v8278_v7  ;;  %v14745_v61 = vld [vmem:[%s19734_s26 + $0xa8] sm:$0xff]  ;;  %v13233_v7 = vsel %vm273_vm1, %v14744_v27, 0.0  ;;  %v13205_v58 = vadd.f32 %v13204_v52, %v13203_v24  ;;  %v13237_v27 = vsel %vm273_vm1, %v14746_v45, 0.0  ;;  %v14740_v52 = vld [vmem:[%s19734_s26 + $0xd0] sm:$0xff] }
 0x539   : > { %v13234_v31 = vadd.f32 %v13233_v7, %v13232_v2  ;;  %v13235_v33 = vsel %vm273_vm1, %v14745_v61, 0.0  ;;  %v13136_v2 = vld [vmem:[%s19734_s26 + $0x60] sm:$0xff] }
 0x53a   : > { %v13207_v32 = vadd.f32 %v13206_v0, %v13205_v58  ;;  %v13239_v58 = vsel %vm273_vm1, %v14747_v42, 0.0  ;;  %v13149_v15 = vsel %vm273_vm1, %v13136_v2, 0.0  ;;  %v14741_v0 = vld [vmem:[%s19734_s26 + $0xe0] sm:$0xff] }
 0x53b   : > { %17750 = vmatmul.mubr.msk.f32.gmra.mrb[62].mxu1 %vm273_vm1, %v11365_v47  ;;  %17300 = vmatmul.mubr.msk.f32.gmra.mrb[62].mxu0 %vm273_vm1, %v8279_v54  ;;  %v13143_v47 = vsel %vm273_vm1, %v13133_v41, 0.0  ;;  %v13173_v54 = vadd.f32 %v13172_v12, %v13171_v57  ;;  %v13166_v57 = vld [vmem:[%s19734_s26 + $0x58] sm:$0xff]  ;;  %v13208_v12 = vsel %vm273_vm1, %v14739_v22, 0.0  ;;  %v13236_v24 = vadd.f32 %v13235_v33, %v13234_v31  ;;  %v13137_v31 = vld [vmem:[%s19734_s26 + $0x70] sm:$0xff] }
 0x53c   : > { %v13144_v4 = vadd.f32 %v13143_v47, %v13142_v60  ;;  %v13147_v41 = vsel %vm273_vm1, %v13135_v39, 0.0  ;;  %v13178_v50 = vsel %vm273_vm1, %v13166_v57, 0.0  ;;  %v13209_v61 = vadd.f32 %v13208_v12, %v13207_v32  ;;  %v13167_v47 = vld [vmem:[%s19734_s26 + $0x68] sm:$0xff]  ;;  %v14742_v12 = vld [vmem:[%s19734_s26 + $0xf0] sm:$0xff]  ;;  %17754 = vmatprep.mubr.msk.f32.mxu0 %vm18984_vm7, %v22953_v1 }
 0x53d   : > { %v13175_v53 = vadd.f32 %v13174_v35, %v13173_v54  ;;  %v13210_v54 = vsel %vm273_vm1, %v14740_v52, 0.0  ;;  %v14748_v35 = vld [vmem:[%s19734_s26 + $0xd8] sm:$0xff]  ;;  %v13238_v5 = vadd.f32 %v13237_v27, %v13236_v24  ;;  %v13180_v38 = vsel %vm273_vm1, %v13167_v47, 0.0 }
 0x53e   : > { %v13146_v44 = vadd.f32 %v13145_v43, %v13144_v4  ;;  %v13211_v45 = vadd.f32 %v13210_v54, %v13209_v61  ;;  %v13168_v43 = vld [vmem:[%s19734_s26 + $0x78] sm:$0xff]  ;;  %v13241_v32 = vsel %vm273_vm1, %v14748_v35, 0.0  ;;  %v13151_v39 = vsel %vm273_vm1, %v13137_v31, 0.0 }
 0x53f   : > { %v13177_v60 = vadd.f32 %v13176_v10, %v13175_v53  ;;  %v13212_v53 = vsel %vm273_vm1, %v14741_v0, 0.0  ;;  %v14749_v10 = vld [vmem:[%s19734_s26 + $0xe8] sm:$0xff]  ;;  %v13240_v22 = vadd.f32 %v13239_v58, %v13238_v5  ;;  %v13182_v57 = vsel %vm273_vm1, %v13168_v43, 0.0 }
 0x540   : > { %v13148_v7 = vadd.f32 %v13147_v41, %v13146_v44  ;;  %v13213_v42 = vadd.f32 %v13212_v53, %v13211_v45  ;;  %v13214_v27 = vsel %vm273_vm1, %v14742_v12, 0.0  ;;  %v14750_v41 = vld [vmem:[%s19734_s26 + $0xf8] sm:$0xff]  ;;  %s18985_s26 = smov 16  }
 0x541   : > { %v13179_v4 = vadd.f32 %v13178_v50, %v13177_v60  ;;  %v13242_v60 = vadd.f32 %v13241_v32, %v13240_v22  ;;  %v13243_v50 = vsel %vm273_vm1, %v14749_v10, 0.0  ;;  %v13245_v2 = vsel %vm273_vm1, %v14750_v41, 0.0 }
 0x542   : > { %v13150_v33 = vadd.f32 %v13149_v15, %v13148_v7  ;;  %v13215_v61 = vadd.f32 %v13214_v27, %v13213_v42 }
 0x543   : > { %v13181_v44 = vadd.f32 %v13180_v38, %v13179_v4  ;;  %v13244_v47 = vadd.f32 %v13243_v50, %v13242_v60 }
 0x544   : > { %v13152_v24 = vadd.f32 %v13151_v39, %v13150_v33  ;;  %v13216_v5 = vsel %vm273_vm1, %v13215_v61, 0.0 }
 0x545   : > { %v13183_v52 = vadd.f32 %v13182_v57, %v13181_v44  ;;  %v13217_v15 = vrot.slane %v13216_v5, 4  ;;  %v13246_v4 = vadd.f32 %v13245_v2, %v13244_v47 }
 0x546   : > { %v13153_v7 = vsel %vm273_vm1, %v13152_v24, 0.0 }
 0x547   : > { %v13154_v54 = vrot.slane %v13153_v7, 4  ;;  %v13184_v35 = vsel %vm273_vm1, %v13183_v52, 0.0  ;;  %v13218_v45 = vadd.f32 %v13217_v15, %v13216_v5  ;;  %v13247_v31 = vsel %vm273_vm1, %v13246_v4, 0.0 }
 0x548   : > { %v13185_v58 = vrot.slane %v13184_v35, 4  ;;  %v13248_v43 = vrot.slane %v13247_v31, 4 }
 0x549   : > { %v13155_v38 = vadd.f32 %v13154_v54, %v13153_v7  ;;  %v13219_v10 = vrot.slane %v13218_v45, 2 }
 0x54a   : > { %v13186_v0 = vadd.f32 %v13185_v58, %v13184_v35  ;;  %v13249_v32 = vadd.f32 %v13248_v43, %v13247_v31 }
 0x54b   : > { %v13156_v33 = vrot.slane %v13155_v38, 2  ;;  %v13220_v44 = vadd.f32 %v13219_v10, %v13218_v45 }
 0x54c   : > { %v13187_v53 = vrot.slane %v13186_v0, 2  ;;  %v13250_v12 = vrot.slane %v13249_v32, 2 }
 0x54d   : > { %v13157_v22 = vadd.f32 %v13156_v33, %v13155_v38  ;;  %v13221_v24 = vrot.slane %v13220_v44, 1 }
 0x54e   : > { %v13188_v39 = vadd.f32 %v13187_v53, %v13186_v0  ;;  %v13251_v41 = vadd.f32 %v13250_v12, %v13249_v32 }
 0x54f   : > { %v13158_v57 = vrot.slane %v13157_v22, 1  ;;  %v13222_v50 = vadd.f32 %v13221_v24, %v13220_v44 }
 0x550   : > { %v13189_v42 = vrot.slane %v13188_v39, 1  ;;  %v13252_v61 = vrot.slane %v13251_v41, 1 }
 0x551   : > { %v13159_v27 = vadd.f32 %v13158_v57, %v13157_v22  ;;  %v13223_v7 = vmul.f32 0.015625, %v13222_v50 }
 0x552   : > { %v13190_v60 = vadd.f32 %v13189_v42, %v13188_v39  ;;  %v13253_v47 = vadd.f32 %v13252_v61, %v13251_v41 }
 0x553   : > { %v13160_v52 = vmul.f32 0.015625, %v13159_v27 }
 0x554   : > { %v13191_v2 = vmul.f32 0.015625, %v13190_v60  ;;  %v13254_v35 = vmul.f32 0.015625, %v13253_v47 }
 0x556   : > { %v13255_v54 = vsel %vm13126_vm4, %v13160_v52, %v13191_v2 }
 0x557   : > { %v13257_v5 = vsel %vm13256_vm5, %v13255_v54, %v13223_v7 }
 0x558   : > { %v13259_v58 = vsel %vm13258_vm6, %v13257_v5, %v13254_v35 }
 0x559   : > { %17755 = vmatmul.mubr.msk.f32.vlgmr.msra.gmra.mrb[64].mxu0 %vm273_vm1, %v13259_v58 }
 0x5d2   : > { %v17706_v15 = vpop.f32.mrb[32].mxu1  ;;  %v17256_v38 = vpop.f32.mrb[32].mxu0 }
 0x5d3   : > { %v12249_v4 = vpop.f32.mrb[33].mxu1  ;;  %12602 = vrot.lane.b32.xlu0 %v17256_v38, %s18985_s26  ;;  %v9115_v0 = vpop.f32.mrb[33].mxu0 }
 0x5d4   : > { %12600 = vrot.lane.b32.xlu1 %v9115_v0, %s18985_s26 }
 0x5d6   : > { %v17709_v45 = vpop.f32.mrb[34].mxu1  ;;  %v17259_v33 = vpop.f32.mrb[34].mxu0 }
 0x5d7   : > { %v12259_v31 = vpop.f32.mrb[35].mxu1  ;;  %12730 = vrot.lane.b32.xlu0 %v17706_v15, %s18986_s14  ;;  %v9125_v1 = vpop.f32.mrb[35].mxu0 }
 0x5d8   : > { %12728 = vrot.lane.b32.xlu1 %v12249_v4, %s18986_s14 }
 0x5da   : > { %v17712_v43 = vpop.f32.mrb[36].mxu1  ;;  %v17262_v10 = vpop.f32.mrb[36].mxu0 }
 0x5db   : > { %v12269_v53 = vpop.f32.mrb[37].mxu1  ;;  %12734 = vrot.lane.b32.xlu0 %v17709_v45, %s18986_s14  ;;  %v9135_v22 = vpop.f32.mrb[37].mxu0 }
 0x5dc   : > { %12606 = vrot.lane.b32.xlu1 %v17259_v33, %s18985_s26 }
 0x5de   : > { %v17715_v32 = vpop.f32.mrb[38].mxu1  ;;  %v17265_v44 = vpop.f32.mrb[38].mxu0 }
 0x5df   : > { %v12279_v39 = vpop.f32.mrb[39].mxu1  ;;  %12732 = vrot.lane.b32.xlu0 %v12259_v31, %s18986_s14  ;;  %v9145_v57 = vpop.f32.mrb[39].mxu0 }
 0x5e0   : > { %12604 = vrot.lane.b32.xlu1 %v9125_v1, %s18985_s26 }
 0x5e2   : > { %v17718_v12 = vpop.f32.mrb[40].mxu1  ;;  %v17268_v24 = vpop.f32.mrb[40].mxu0 }
 0x5e3   : > { %v12289_v42 = vpop.f32.mrb[41].mxu1  ;;  %12738 = vrot.lane.b32.xlu0 %v17712_v43, %s18986_s14  ;;  %v9155_v27 = vpop.f32.mrb[41].mxu0 }
 0x5e4   : > { %12610 = vrot.lane.b32.xlu1 %v17262_v10, %s18985_s26 }
 0x5e6   : > { %v17721_v41 = vpop.f32.mrb[42].mxu1  ;;  %v17271_v50 = vpop.f32.mrb[42].mxu0 }
 0x5e7   : > { %v12299_v60 = vpop.f32.mrb[43].mxu1  ;;  %12736 = vrot.lane.b32.xlu0 %v12269_v53, %s18986_s14  ;;  %v9165_v52 = vpop.f32.mrb[43].mxu0 }
 0x5e8   : > { %12608 = vrot.lane.b32.xlu1 %v9135_v22, %s18985_s26 }
 0x5ea   : > { %v17724_v61 = vpop.f32.mrb[44].mxu1  ;;  %v17274_v7 = vpop.f32.mrb[44].mxu0 }
 0x5eb   : > { %v12309_v2 = vpop.f32.mrb[45].mxu1  ;;  %12742 = vrot.lane.b32.xlu0 %v17715_v32, %s18986_s14  ;;  %v9175_v47 = vpop.f32.mrb[45].mxu0 }
 0x5ec   : > { %12614 = vrot.lane.b32.xlu1 %v17265_v44, %s18985_s26 }
 0x5ee   : > { %v17727_v54 = vpop.f32.mrb[46].mxu1  ;;  %v17277_v5 = vpop.f32.mrb[46].mxu0 }
 0x5ef   : > { %v12319_v35 = vpop.f32.mrb[47].mxu1  ;;  %12740 = vrot.lane.b32.xlu0 %v12279_v39, %s18986_s14  ;;  %v9185_v58 = vpop.f32.mrb[47].mxu0 }
 0x5f0   : > { %12612 = vrot.lane.b32.xlu1 %v9145_v57, %s18985_s26 }
 0x5f2   : > { %v17730_v15 = vpop.f32.mrb[48].mxu1  ;;  %v17280_v38 = vpop.f32.mrb[48].mxu0 }
 0x5f3   : > { %v12329_v4 = vpop.f32.mrb[49].mxu1  ;;  %12746 = vrot.lane.b32.xlu0 %v17718_v12, %s18986_s14  ;;  %v9195_v0 = vpop.f32.mrb[49].mxu0 }
 0x5f4   : > { %12618 = vrot.lane.b32.xlu1 %v17268_v24, %s18985_s26 }
 0x5f6   : > { %v17733_v45 = vpop.f32.mrb[50].mxu1  ;;  %v17283_v33 = vpop.f32.mrb[50].mxu0 }
 0x5f7   : > { %v12339_v31 = vpop.f32.mrb[51].mxu1  ;;  %12744 = vrot.lane.b32.xlu0 %v12289_v42, %s18986_s14  ;;  %v9205_v1 = vpop.f32.mrb[51].mxu0 }
 0x5f8   : > { %12616 = vrot.lane.b32.xlu1 %v9155_v27, %s18985_s26 }
 0x5fa   : > { %v17736_v43 = vpop.f32.mrb[52].mxu1  ;;  %v17286_v10 = vpop.f32.mrb[52].mxu0 }
 0x5fb   : > { %v12349_v53 = vpop.f32.mrb[53].mxu1  ;;  %12750 = vrot.lane.b32.xlu0 %v17721_v41, %s18986_s14  ;;  %v9215_v22 = vpop.f32.mrb[53].mxu0 }
 0x5fc   : > { %12622 = vrot.lane.b32.xlu1 %v17271_v50, %s18985_s26 }
 0x5fe   : > { %v17739_v32 = vpop.f32.mrb[54].mxu1  ;;  %v17289_v44 = vpop.f32.mrb[54].mxu0 }
 0x5ff   : > { %v12359_v39 = vpop.f32.mrb[55].mxu1  ;;  %12748 = vrot.lane.b32.xlu0 %v12299_v60, %s18986_s14  ;;  %v9225_v57 = vpop.f32.mrb[55].mxu0 }
 0x600   : > { %12620 = vrot.lane.b32.xlu1 %v9165_v52, %s18985_s26 }
 0x602   : > { %v17742_v12 = vpop.f32.mrb[56].mxu1  ;;  %v17292_v24 = vpop.f32.mrb[56].mxu0 }
 0x603   : > { %v12369_v42 = vpop.f32.mrb[57].mxu1  ;;  %12754 = vrot.lane.b32.xlu0 %v17724_v61, %s18986_s14  ;;  %v9235_v27 = vpop.f32.mrb[57].mxu0 }
 0x604   : > { %12626 = vrot.lane.b32.xlu1 %v17274_v7, %s18985_s26 }
 0x606   : > { %v17745_v41 = vpop.f32.mrb[58].mxu1  ;;  %v17295_v20 = vpop.f32.mrb[58].mxu0 }
 0x607   : > { %v12379_v19 = vpop.f32.mrb[59].mxu1  ;;  %12752 = vrot.lane.b32.xlu0 %v12309_v2, %s18986_s14  ;;  %v9245_v50 = vpop.f32.mrb[59].mxu0 }
 0x608   : > { %12624 = vrot.lane.b32.xlu1 %v9175_v47, %s18985_s26  ;;  %v22578_v2 = vpop.permute.xlu0 %12534  ;;  %v22580_v47 = vpop.permute.xlu1 %12532 }
 0x60a   : > { %v17748_v60 = vpop.f32.mrb[60].mxu1  ;;  %v17298_v9 = vpop.f32.mrb[60].mxu0 }
 0x60b   : > { %v12389_v46 = vpop.f32.mrb[61].mxu1  ;;  %12758 = vrot.lane.b32.xlu0 %v17727_v54, %s18986_s14  ;;  %v9255_v52 = vpop.f32.mrb[61].mxu0 }
 0x60c   : > { %12630 = vrot.lane.b32.xlu1 %v17277_v5, %s18985_s26 }
 0x60e   : > { %v22548_v61 = vpop.f32.mrb[62].mxu1  ;;  %v17301_v7 = vpop.f32.mrb[62].mxu0 }
 0x60f   : > { %v22550_v17 = vpop.f32.mrb[63].mxu1  ;;  %12756 = vrot.lane.b32.xlu0 %v12319_v35, %s18986_s14  ;;  %v9265_v14 = vpop.f32.mrb[63].mxu0 }
 0x610   : > { %12628 = vrot.lane.b32.xlu1 %v9185_v58, %s18985_s26 }
 0x613   : > { %12762 = vrot.lane.b32.xlu0 %v17730_v15, %s18986_s14 }
 0x614   : > { %12634 = vrot.lane.b32.xlu1 %v17280_v38, %s18985_s26 }
 0x617   : > { %12760 = vrot.lane.b32.xlu0 %v12329_v4, %s18986_s14 }
 0x618   : > { %12632 = vrot.lane.b32.xlu1 %v9195_v0, %s18985_s26 }
 0x61b   : > { %12766 = vrot.lane.b32.xlu0 %v17733_v45, %s18986_s14 }
 0x61c   : > { %12638 = vrot.lane.b32.xlu1 %v17283_v33, %s18985_s26 }
 0x61f   : > { %12764 = vrot.lane.b32.xlu0 %v12339_v31, %s18986_s14 }
 0x620   : > { %12636 = vrot.lane.b32.xlu1 %v9205_v1, %s18985_s26 }
 0x623   : > { %12770 = vrot.lane.b32.xlu0 %v17736_v43, %s18986_s14 }
 0x624   : > { %12642 = vrot.lane.b32.xlu1 %v17286_v10, %s18985_s26 }
 0x627   : > { %12768 = vrot.lane.b32.xlu0 %v12349_v53, %s18986_s14 }
 0x628   : > { %12640 = vrot.lane.b32.xlu1 %v9215_v22, %s18985_s26 }
 0x62b   : > { %12774 = vrot.lane.b32.xlu0 %v17739_v32, %s18986_s14 }
 0x62c   : > { %12646 = vrot.lane.b32.xlu1 %v17289_v44, %s18985_s26 }
 0x62f   : > { %12772 = vrot.lane.b32.xlu0 %v12359_v39, %s18986_s14 }
 0x630   : > { %12644 = vrot.lane.b32.xlu1 %v9225_v57, %s18985_s26 }
 0x633   : > { %12778 = vrot.lane.b32.xlu0 %v17742_v12, %s18986_s14 }
 0x634   : > { %12650 = vrot.lane.b32.xlu1 %v17292_v24, %s18985_s26 }
 0x637   : > { %12776 = vrot.lane.b32.xlu0 %v12369_v42, %s18986_s14 }
 0x638   : > { %12648 = vrot.lane.b32.xlu1 %v9235_v27, %s18985_s26 }
 0x63b   : > { %12654 = vrot.lane.b32.xlu0 %v17295_v20, %s18985_s26 }
 0x63c   : > { %12652 = vrot.lane.b32.xlu1 %v9245_v50, %s18985_s26 }
 0x63f   : > { %12782 = vrot.lane.b32.xlu0 %v17745_v41, %s18986_s14 }
 0x640   : > { %12780 = vrot.lane.b32.xlu1 %v12379_v19, %s18986_s14 }
 0x643   : > { %12658 = vrot.lane.b32.xlu0 %v17298_v9, %s18985_s26 }
 0x644   : > { %12656 = vrot.lane.b32.xlu1 %v9255_v52, %s18985_s26  ;;  %v13340_v52 = vpop.f32.mrb[64].mxu0 }
 0x645   : > { %v12603_v54 = vpop.permute.xlu0 %12602 }
 0x646   : > { %v12601_v35 = vpop.permute.xlu1 %12600  ;;  %v12859_v19 = vsel %vm12857_vm8, %v21970_v25, %v12603_v54 }
 0x647   : > { %12786 = vrot.lane.b32.xlu0 %v17748_v60, %s18986_s14  ;;  %v12858_v9 = vsel %vm12857_vm8, %v21981_v21, %v12601_v35  ;;  %v17756_v35 = vpop.f32.mrb[65].mxu0 }
 0x648   : > { %12784 = vrot.lane.b32.xlu1 %v12389_v46, %s18986_s14 }
 0x649   : > { %v12731_v20 = vpop.permute.xlu0 %12730 }
 0x64a   : > { %v12892_v5 = vsel %vm12890_vm9, %v12859_v19, %v12731_v20  ;;  %v12729_v58 = vpop.permute.xlu1 %12728 }
 0x64b   : > { %12925 = vst.msk [vmem:[%s22591_s19 + $0x8] sm:$0xff] %vm12923_vm10, %v12892_v5  ;;  %v12957_v46 = vsel %vm12923_vm10, %v12892_v5, 0.0  ;;  %v13026_v15 = vmul.f32 %v12892_v5, %v12892_v5  ;;  %v12891_v4 = vsel %vm12890_vm9, %v12858_v9, %v12729_v58  ;;  %12662 = vrot.lane.b32.xlu0 %v17301_v7, %s18985_s26 }
 0x64c   : > { %12924 = vst.msk [vmem:[%s22591_s19] sm:$0xff] %vm12923_vm10, %v12891_v4  ;;  %v12956_v25 = vsel %vm12923_vm10, %v12891_v4, 0.0  ;;  %v13025_v38 = vmul.f32 %v12891_v4, %v12891_v4  ;;  %12660 = vrot.lane.b32.xlu1 %v9265_v14, %s18985_s26  ;;  %s13357_s26 = scalar_lea.sflag [#allocation6], %s22622_s17 }
 0x64d   : > { %v13058_v21 = vsel %vm12923_vm10, %v13026_v15, 0.0  ;;  %v12958_v0 = vadd.f32 %v12957_v46, %v12956_v25  ;;  %v12735_v45 = vpop.permute.xlu0 %12734 }
 0x64e   : > { %v13057_v31 = vsel %vm12923_vm10, %v13025_v38, 0.0  ;;  %v12607_v33 = vpop.permute.xlu1 %12606 }
 0x64f   : > { %v13059_v1 = vadd.f32 %v13058_v21, %v13057_v31  ;;  %v12861_v43 = vsel %vm12857_vm8, %v21986_v49, %v12607_v33 }
 0x650   : > { %v12894_v53 = vsel %vm12890_vm9, %v12861_v43, %v12735_v45  ;;  %12788 = vrot.lane.b32.xlu1 %v22550_v17, %s18986_s14 }
 0x651   : > { %12927 = vst.msk [vmem:[%s22591_s19 + $0x18] sm:$0xff] %vm12923_vm10, %v12894_v53  ;;  %v12733_v14 = vpop.permute.xlu0 %12732  ;;  %v13028_v49 = vmul.f32 %v12894_v53, %v12894_v53  ;;  %v12961_v42 = vsel %vm12923_vm10, %v12894_v53, 0.0 }
 0x652   : > { %v12605_v10 = vpop.permute.xlu1 %12604 }
 0x653   : > { %v12860_v22 = vsel %vm12857_vm8, %v21994_v51, %v12605_v10  ;;  %v14751_v51 = vld [vmem:[%s22916_s3] ss:$0 sm:$0xff] }
 0x654   : > { %v12893_v32 = vsel %vm12890_vm9, %v12860_v22, %v12733_v14  ;;  %12790 = vrot.lane.b32.xlu1 %v22548_v61, %s18986_s14  ;;  %v13062_v61 = vsel %vm12923_vm10, %v13028_v49, 0.0  ;;  %v13341_v54 = vadd.f32 %v14751_v51, %v13340_v52  ;;  %s18886_s14 = scalar_lea.vmem %s22651_s10, 64 }
 0x655   : > { %12926 = vst.msk [vmem:[%s22591_s19 + $0x10] sm:$0xff] %vm12923_vm10, %v12893_v32  ;;  %v12959_v17 = vsel %vm12923_vm10, %v12893_v32, 0.0  ;;  %v13027_v39 = vmul.f32 %v12893_v32, %v12893_v32  ;;  %v12739_v44 = vpop.permute.xlu0 %12738  ;;  %p18887_p11 = scmp.ne.s32.totalorder %s22651_s10, %s18886_s14  ;;  %p18894_p1 = scmp.lt.s32.totalorder %s18892_s18, %s18886_s14 }
 0x656   : > { %v12960_v57 = vadd.f32 %v12959_v17, %v12958_v0  ;;  %v12611_v12 = vpop.permute.xlu1 %12610  ;;  %13345 = vst.msk [vmem:[%s262_s29] sm:$0xf] %vm13344_vm11, %v13341_v54 }
 0x657   : > { %v13060_v24 = vsel %vm12923_vm10, %v13027_v39, 0.0  ;;  %v12863_v27 = vsel %vm12857_vm8, %v22006_v3, %v12611_v12  ;;  %p18888_p12 = pnand %p18887_p11, %p19062_p5  ;;  %p18895_p2 = por %p18894_p1, %p18893_p0 }
 0x658   : > { %v13061_v41 = vadd.f32 %v13060_v24, %v13059_v1  ;;  %v12896_v50 = vsel %vm12890_vm9, %v12863_v27, %v12739_v44  ;;  %v12962_v60 = vadd.f32 %v12961_v42, %v12960_v57 }
 0x659   : > { %12929 = vst.msk [vmem:[%s22591_s19 + $0x28] sm:$0xff] %vm12923_vm10, %v12896_v50  ;;  %v12737_v7 = vpop.permute.xlu0 %12736  ;;  %v13030_v5 = vmul.f32 %v12896_v50, %v12896_v50  ;;  %p18889_p13 = pneg %p18888_p12 }
 0x65a   : > { %v13063_v19 = vadd.f32 %v13062_v61, %v13061_v41  ;;  %v12609_v20 = vpop.permute.xlu1 %12608 }
 0x65b   : > { %v12862_v3 = vsel %vm12857_vm8, %v21999_v63, %v12609_v20  ;;  %p18896_p3 = pnand %p18895_p2, %p18889_p13 }
 0x65c   : > { %v12895_v9 = vsel %vm12890_vm9, %v12862_v3, %v12737_v7 }
 0x65d   : > { %12928 = vst.msk [vmem:[%s22591_s19 + $0x20] sm:$0xff] %vm12923_vm10, %v12895_v9  ;;  %v12963_v58 = vsel %vm12923_vm10, %v12895_v9, 0.0  ;;  %v13029_v46 = vmul.f32 %v12895_v9, %v12895_v9  ;;  %v12743_v15 = vpop.permute.xlu0 %12742 }
 0x65e   : > { %v12964_v63 = vadd.f32 %v12963_v58, %v12962_v60  ;;  %v12615_v4 = vpop.permute.xlu1 %12614 }
 0x65f   : > { %18899 = shalt.err (!%p18896_p3)
}
 0x660   : > { %s18900_s20 = scalar_lea.hbm %s22649_s13, 64  ;;  %s18904_s9 = scalar_lea.hbm %s22919_s6, 128 }
 0x661   : > { %p18901_p4 = scmp.ne.s32.totalorder %s22649_s13, %s18900_s20  ;;  %p18905_p9 = scmp.lt.u32.totalorder %s22649_s13, %s22919_s6 }
 0x662   : > { %p18906_p10 = scmp.lt.u32.totalorder %s18904_s9, %s18900_s20  ;;  %p18908_p12 = scmp.lt.u32.totalorder %s18900_s20, %s22649_s13 }
 0x663   : > { %p18902_p7 = pnand %p18901_p4, %p19062_p5 }
 0x664   : > { %p18907_p11 = por %p18906_p10, %p18905_p9 }
 0x665   : > { %p18903_p8 = pneg %p18902_p7 }
 0x666   : > { %p18909_p13 = por %p18908_p12, %p18907_p11 }
 0x668   : > { %p18910_p0 = pnand %p18909_p13, %p18903_p8 }
 0x66a   : > { %18913 = shalt.err (!%p18910_p0)
}
 0x66b   : > { %18782 = dma.vmem_to_hbm [thread:$0]  (%p19062_p5), %s22651_s10, 64, %s22649_s13, %s13357_s26   ;;  %v12965_v25 = vsel %vm12923_vm10, %v12896_v50, 0.0  ;;  %v13064_v38 = vsel %vm12923_vm10, %v13029_v46, 0.0  ;;  %v12865_v21 = vsel %vm12857_vm8, %v22018_v8, %v12615_v4  ;;  %v13066_v33 = vsel %vm12923_vm10, %v13030_v5, 0.0  ;;  %v12741_v1 = vpop.permute.xlu0 %12740  ;;  %v12613_v53 = vpop.permute.xlu1 %12612 }
 0x66c   : > { %v13065_v0 = vadd.f32 %v13064_v38, %v13063_v19  ;;  %v12898_v45 = vsel %vm12890_vm9, %v12865_v21, %v12743_v15  ;;  %v12966_v31 = vadd.f32 %v12965_v25, %v12964_v63  ;;  %v12864_v14 = vsel %vm12857_vm8, %v22011_v13, %v12613_v53  ;;  %s13506_s10 = sshll.u32 %s22622_s17, 1  ;;  %s13352_s18 = scalar_lea.sflag [#allocation4], %s22622_s17 }
 0x66d   : > { %12931 = vst.msk [vmem:[%s22591_s19 + $0x38] sm:$0xff] %vm12923_vm10, %v12898_v45  ;;  %v12897_v10 = vsel %vm12890_vm9, %v12864_v14, %v12741_v1  ;;  %v13032_v22 = vmul.f32 %v12898_v45, %v12898_v45  ;;  %v12969_v44 = vsel %vm12923_vm10, %v12898_v45, 0.0  ;;  %s255_s13 = scalar_lea.vmem [#allocation3], %s13506_s10  ;;  %vm13128_vm12 = vcmask 254976   ;;  %s18988_s20 = smov [#allocation3]  }
 0x66e   : > { %v13067_v43 = vadd.f32 %v13066_v33, %v13065_v0  ;;  %12930 = vst.msk [vmem:[%s22591_s19 + $0x30] sm:$0xff] %vm12923_vm10, %v12897_v10  ;;  %v12967_v8 = vsel %vm12923_vm10, %v12897_v10, 0.0  ;;  %v13031_v32 = vmul.f32 %v12897_v10, %v12897_v10  ;;  %s13373_s26 = sshll.u32 %s255_s13, 4  ;;  %s18918_s28 = sshll.u32 %s18988_s20, 4  ;;  %s22871_s26 = int_to_ptr.vmem [resolvable:$true] %s13373_s26  ;;  %s18919_s28 = int_to_ptr.vmem [resolvable:$false] %s18918_s28 }
 0x66f   : > { %v12747_v49 = vpop.permute.xlu0 %12746  ;;  %v12968_v17 = vadd.f32 %v12967_v8, %v12966_v31  ;;  %v12619_v39 = vpop.permute.xlu1 %12618  ;;  %v13070_v24 = vsel %vm12923_vm10, %v13032_v22, 0.0  ;;  %s18920_s29 = scalar_lea.vmem %s18919_s28, 64  ;;  %p18921_p4 = scmp.lt.s32.totalorder %s22871_s26, %s18919_s28 }
 0x670   : > { %v13068_v57 = vsel %vm12923_vm10, %v13031_v32, 0.0  ;;  %v12867_v13 = vsel %vm12857_vm8, %v22030_v23, %v12619_v39 }
 0x671   : > { %v13069_v12 = vadd.f32 %v13068_v57, %v13067_v43  ;;  %v12900_v51 = vsel %vm12890_vm9, %v12867_v13, %v12747_v49  ;;  %v12970_v42 = vadd.f32 %v12969_v44, %v12968_v17 }
 0x672   : > { %12933 = vst.msk [vmem:[%s22591_s19 + $0x48] sm:$0xff] %vm12923_vm10, %v12900_v51  ;;  %v13034_v61 = vmul.f32 %v12900_v51, %v12900_v51  ;;  %v12973_v20 = vsel %vm12923_vm10, %v12900_v51, 0.0 }
 0x673   : > { %v12745_v27 = vpop.permute.xlu0 %12744  ;;  %v13071_v41 = vadd.f32 %v13070_v24, %v13069_v12  ;;  %v12617_v50 = vpop.permute.xlu1 %12616 }
 0x674   : > { %v12866_v60 = vsel %vm12857_vm8, %v22023_v56, %v12617_v50  ;;  %v13074_v46 = vsel %vm12923_vm10, %v13034_v61, 0.0 }
 0x675   : > { %v12899_v52 = vsel %vm12890_vm9, %v12866_v60, %v12745_v27 }
 0x676   : > { %12932 = vst.msk [vmem:[%s22591_s19 + $0x40] sm:$0xff] %vm12923_vm10, %v12899_v52  ;;  %v12971_v23 = vsel %vm12923_vm10, %v12899_v52, 0.0  ;;  %v13033_v7 = vmul.f32 %v12899_v52, %v12899_v52 }
 0x677   : > { %v12751_v54 = vpop.permute.xlu0 %12750  ;;  %v12972_v35 = vadd.f32 %v12971_v23, %v12970_v42  ;;  %v12623_v19 = vpop.permute.xlu1 %12622 }
 0x678   : > { %v13072_v3 = vsel %vm12923_vm10, %v13033_v7, 0.0  ;;  %v12869_v56 = vsel %vm12857_vm8, %v22042_v55, %v12623_v19 }
 0x679   : > { %v13073_v9 = vadd.f32 %v13072_v3, %v13071_v41  ;;  %v12902_v5 = vsel %vm12890_vm9, %v12869_v56, %v12751_v54  ;;  %v12974_v58 = vadd.f32 %v12973_v20, %v12972_v35 }
 0x67a   : > { %12935 = vst.msk [vmem:[%s22591_s19 + $0x58] sm:$0xff] %vm12923_vm10, %v12902_v5  ;;  %v13036_v21 = vmul.f32 %v12902_v5, %v12902_v5  ;;  %v12977_v1 = vsel %vm12923_vm10, %v12902_v5, 0.0 }
 0x67b   : > { %v12749_v15 = vpop.permute.xlu0 %12748  ;;  %v13075_v63 = vadd.f32 %v13074_v46, %v13073_v9  ;;  %v12621_v4 = vpop.permute.xlu1 %12620 }
 0x67c   : > { %v12868_v25 = vsel %vm12857_vm8, %v22035_v36, %v12621_v4  ;;  %v13078_v22 = vsel %vm12923_vm10, %v13036_v21, 0.0 }
 0x67d   : > { %v12901_v38 = vsel %vm12890_vm9, %v12868_v25, %v12749_v15 }
 0x67e   : > { %12934 = vst.msk [vmem:[%s22591_s19 + $0x50] sm:$0xff] %vm12923_vm10, %v12901_v38  ;;  %v12975_v55 = vsel %vm12923_vm10, %v12901_v38, 0.0  ;;  %v13035_v0 = vmul.f32 %v12901_v38, %v12901_v38 }
 0x67f   : > { %v12755_v45 = vpop.permute.xlu0 %12754  ;;  %v12976_v31 = vadd.f32 %v12975_v55, %v12974_v58  ;;  %v12627_v33 = vpop.permute.xlu1 %12626 }
 0x680   : > { %v13076_v43 = vsel %vm12923_vm10, %v13035_v0, 0.0  ;;  %v12871_v36 = vsel %vm12857_vm8, %v22054_v40, %v12627_v33 }
 0x681   : > { %v13077_v53 = vadd.f32 %v13076_v43, %v13075_v63  ;;  %v12904_v14 = vsel %vm12890_vm9, %v12871_v36, %v12755_v45  ;;  %v12978_v10 = vadd.f32 %v12977_v1, %v12976_v31 }
 0x682   : > { %12937 = vst.msk [vmem:[%s22591_s19 + $0x68] sm:$0xff] %vm12923_vm10, %v12904_v14  ;;  %v13038_v44 = vmul.f32 %v12904_v14, %v12904_v14  ;;  %v12981_v42 = vsel %vm12923_vm10, %v12904_v14, 0.0 }
 0x683   : > { %v12753_v8 = vpop.permute.xlu0 %12752  ;;  %v13079_v32 = vadd.f32 %v13078_v22, %v13077_v53  ;;  %v12625_v49 = vpop.permute.xlu1 %12624 }
 0x684   : > { %v12870_v17 = vsel %vm12857_vm8, %v22047_v29, %v12625_v49  ;;  %v13082_v60 = vsel %vm12923_vm10, %v13038_v44, 0.0 }
 0x685   : > { %v12903_v39 = vsel %vm12890_vm9, %v12870_v17, %v12753_v8 }
 0x686   : > { %12936 = vst.msk [vmem:[%s22591_s19 + $0x60] sm:$0xff] %vm12923_vm10, %v12903_v39  ;;  %v12979_v40 = vsel %vm12923_vm10, %v12903_v39, 0.0  ;;  %v13037_v57 = vmul.f32 %v12903_v39, %v12903_v39 }
 0x687   : > { %v12759_v13 = vpop.permute.xlu0 %12758  ;;  %v12980_v12 = vadd.f32 %v12979_v40, %v12978_v10  ;;  %v12631_v51 = vpop.permute.xlu1 %12630 }
 0x688   : > { %v13080_v24 = vsel %vm12923_vm10, %v13037_v57, 0.0  ;;  %v12873_v29 = vsel %vm12857_vm8, %v22066_v37, %v12631_v51 }
 0x689   : > { %v13081_v27 = vadd.f32 %v13080_v24, %v13079_v32  ;;  %v12906_v41 = vsel %vm12890_vm9, %v12873_v29, %v12759_v13  ;;  %v12982_v50 = vadd.f32 %v12981_v42, %v12980_v12 }
 0x68a   : > { %12939 = vst.msk [vmem:[%s22591_s19 + $0x78] sm:$0xff] %vm12923_vm10, %v12906_v41  ;;  %v13040_v35 = vmul.f32 %v12906_v41, %v12906_v41  ;;  %v12985_v9 = vsel %vm12923_vm10, %v12906_v41, 0.0 }
 0x68b   : > { %v12757_v52 = vpop.permute.xlu0 %12756  ;;  %v13083_v61 = vadd.f32 %v13082_v60, %v13081_v27  ;;  %v12629_v23 = vpop.permute.xlu1 %12628 }
 0x68c   : > { %v12872_v7 = vsel %vm12857_vm8, %v22059_v18, %v12629_v23  ;;  %v13086_v63 = vsel %vm12923_vm10, %v13040_v35, 0.0 }
 0x68d   : > { %v12905_v54 = vsel %vm12890_vm9, %v12872_v7, %v12757_v52 }
 0x68e   : > { %12938 = vst.msk [vmem:[%s22591_s19 + $0x70] sm:$0xff] %vm12923_vm10, %v12905_v54  ;;  %v12983_v37 = vsel %vm12923_vm10, %v12905_v54, 0.0  ;;  %v13039_v19 = vmul.f32 %v12905_v54, %v12905_v54 }
 0x68f   : > { %v12763_v20 = vpop.permute.xlu0 %12762  ;;  %v12984_v3 = vadd.f32 %v12983_v37, %v12982_v50  ;;  %v12635_v56 = vpop.permute.xlu1 %12634 }
 0x690   : > { %v13084_v5 = vsel %vm12923_vm10, %v13039_v19, 0.0  ;;  %v12875_v18 = vsel %vm12857_vm8, %v22078_v28, %v12635_v56 }
 0x691   : > { %v13085_v58 = vadd.f32 %v13084_v5, %v13083_v61  ;;  %v12908_v46 = vsel %vm12890_vm9, %v12875_v18, %v12763_v20  ;;  %v12986_v15 = vadd.f32 %v12985_v9, %v12984_v3 }
 0x692   : > { %12941 = vst.msk [vmem:[%s22591_s19 + $0x88] sm:$0xff] %vm12923_vm10, %v12908_v46  ;;  %v13042_v0 = vmul.f32 %v12908_v46, %v12908_v46  ;;  %v12989_v43 = vsel %vm12923_vm10, %v12908_v46, 0.0 }
 0x693   : > { %v12761_v4 = vpop.permute.xlu0 %12760  ;;  %v13087_v25 = vadd.f32 %v13086_v63, %v13085_v58  ;;  %v12633_v38 = vpop.permute.xlu1 %12632 }
 0x694   : > { %v12874_v21 = vsel %vm12857_vm8, %v22071_v48, %v12633_v38  ;;  %v13090_v22 = vsel %vm12923_vm10, %v13042_v0, 0.0 }
 0x695   : > { %v12907_v55 = vsel %vm12890_vm9, %v12874_v21, %v12761_v4 }
 0x696   : > { %12940 = vst.msk [vmem:[%s22591_s19 + $0x80] sm:$0xff] %vm12923_vm10, %v12907_v55  ;;  %v12987_v28 = vsel %vm12923_vm10, %v12907_v55, 0.0  ;;  %v13041_v45 = vmul.f32 %v12907_v55, %v12907_v55 }
 0x697   : > { %v12767_v31 = vpop.permute.xlu0 %12766  ;;  %v12988_v33 = vadd.f32 %v12987_v28, %v12986_v15  ;;  %v12639_v1 = vpop.permute.xlu1 %12638 }
 0x698   : > { %v13088_v36 = vsel %vm12923_vm10, %v13041_v45, 0.0  ;;  %v12877_v48 = vsel %vm12857_vm8, %v22090_v30, %v12639_v1 }
 0x699   : > { %v13089_v53 = vadd.f32 %v13088_v36, %v13087_v25  ;;  %v12910_v14 = vsel %vm12890_vm9, %v12877_v48, %v12767_v31  ;;  %v12990_v10 = vadd.f32 %v12989_v43, %v12988_v33 }
 0x69a   : > { %12943 = vst.msk [vmem:[%s22591_s19 + $0x98] sm:$0xff] %vm12923_vm10, %v12910_v14  ;;  %v13044_v44 = vmul.f32 %v12910_v14, %v12910_v14  ;;  %v12993_v51 = vsel %vm12923_vm10, %v12910_v14, 0.0 }
 0x69b   : > { %v12765_v8 = vpop.permute.xlu0 %12764  ;;  %v13091_v32 = vadd.f32 %v13090_v22, %v13089_v53  ;;  %v12637_v49 = vpop.permute.xlu1 %12636 }
 0x69c   : > { %v12876_v17 = vsel %vm12857_vm8, %v22083_v62, %v12637_v49  ;;  %v13094_v41 = vsel %vm12923_vm10, %v13044_v44, 0.0 }
 0x69d   : > { %v12909_v39 = vsel %vm12890_vm9, %v12876_v17, %v12765_v8 }
 0x69e   : > { %12942 = vst.msk [vmem:[%s22591_s19 + $0x90] sm:$0xff] %vm12923_vm10, %v12909_v39  ;;  %v12991_v30 = vsel %vm12923_vm10, %v12909_v39, 0.0  ;;  %v13043_v40 = vmul.f32 %v12909_v39, %v12909_v39 }
 0x69f   : > { %v12771_v57 = vpop.permute.xlu0 %12770  ;;  %v12992_v13 = vadd.f32 %v12991_v30, %v12990_v10  ;;  %v12643_v12 = vpop.permute.xlu1 %12642 }
 0x6a0   : > { %v13092_v42 = vsel %vm12923_vm10, %v13043_v40, 0.0  ;;  %v12879_v62 = vsel %vm12857_vm8, %v22102_v6, %v12643_v12 }
 0x6a1   : > { %v13093_v24 = vadd.f32 %v13092_v42, %v13091_v32  ;;  %v12912_v29 = vsel %vm12890_vm9, %v12879_v62, %v12771_v57  ;;  %v12994_v27 = vadd.f32 %v12993_v51, %v12992_v13  ;;  %v22958_v57 = vld [vmem:[#allocation11_spill] sm:$0xff]  ;;  %v22959_v51 = vld [vmem:[#allocation13_spill] sm:$0xff] }
 0x6a2   : > { %12945 = vst.msk [vmem:[%s22591_s19 + $0xa8] sm:$0xff] %vm12923_vm10, %v12912_v29  ;;  %v13046_v7 = vmul.f32 %v12912_v29, %v12912_v29  ;;  %v12997_v20 = vsel %vm12923_vm10, %v12912_v29, 0.0 }
 0x6a3   : > { %v12769_v50 = vpop.permute.xlu0 %12768  ;;  %v13095_v60 = vadd.f32 %v13094_v41, %v13093_v24  ;;  %v12641_v52 = vpop.permute.xlu1 %12640 }
 0x6a4   : > { %v12878_v61 = vsel %vm12857_vm8, %v22095_v11, %v12641_v52  ;;  %v13098_v18 = vsel %vm12923_vm10, %v13046_v7, 0.0 }
 0x6a5   : > { %v12911_v23 = vsel %vm12890_vm9, %v12878_v61, %v12769_v50 }
 0x6a6   : > { %12944 = vst.msk [vmem:[%s22591_s19 + $0xa0] sm:$0xff] %vm12923_vm10, %v12911_v23  ;;  %v12995_v6 = vsel %vm12923_vm10, %v12911_v23, 0.0  ;;  %v13045_v54 = vmul.f32 %v12911_v23, %v12911_v23 }
 0x6a7   : > { %v12775_v35 = vpop.permute.xlu0 %12774  ;;  %v12996_v37 = vadd.f32 %v12995_v6, %v12994_v27  ;;  %v12647_v19 = vpop.permute.xlu1 %12646 }
 0x6a8   : > { %v13096_v3 = vsel %vm12923_vm10, %v13045_v54, 0.0  ;;  %v12881_v11 = vsel %vm12857_vm8, %v22114_v26, %v12647_v19  ;;  %v22960_v19 = vld [vmem:[#allocation14_spill] sm:$0xff] }
 0x6a9   : > { %v13097_v56 = vadd.f32 %v13096_v3, %v13095_v60  ;;  %v12914_v9 = vsel %vm12890_vm9, %v12881_v11, %v12775_v35  ;;  %v12998_v5 = vadd.f32 %v12997_v20, %v12996_v37 }
 0x6aa   : > { %12947 = vst.msk [vmem:[%s22591_s19 + $0xb8] sm:$0xff] %vm12923_vm10, %v12914_v9  ;;  %v13048_v25 = vmul.f32 %v12914_v9, %v12914_v9  ;;  %v13001_v28 = vsel %vm12923_vm10, %v12914_v9, 0.0 }
 0x6ab   : > { %v12773_v58 = vpop.permute.xlu0 %12772  ;;  %v13099_v46 = vadd.f32 %v13098_v18, %v13097_v56  ;;  %v12645_v15 = vpop.permute.xlu1 %12644  ;;  %v22961_v56 = vld [vmem:[#allocation12_spill] sm:$0xff] }
 0x6ac   : > { %v12880_v63 = vsel %vm12857_vm8, %v22107_v16, %v12645_v15  ;;  %v13102_v43 = vsel %vm12923_vm10, %v13048_v25, 0.0 }
 0x6ad   : > { %v12913_v4 = vsel %vm12890_vm9, %v12880_v63, %v12773_v58 }
 0x6ae   : > { %12946 = vst.msk [vmem:[%s22591_s19 + $0xb0] sm:$0xff] %vm12923_vm10, %v12913_v4  ;;  %v12999_v26 = vsel %vm12923_vm10, %v12913_v4, 0.0  ;;  %v13047_v38 = vmul.f32 %v12913_v4, %v12913_v4 }
 0x6af   : > { %v12779_v21 = vpop.permute.xlu0 %12778  ;;  %v13000_v55 = vadd.f32 %v12999_v26, %v12998_v5  ;;  %v12651_v0 = vpop.permute.xlu1 %12650 }
 0x6b0   : > { %v13100_v45 = vsel %vm12923_vm10, %v13047_v38, 0.0  ;;  %v12883_v16 = vsel %vm12857_vm8, %v22126_v59, %v12651_v0 }
 0x6b1   : > { %v13101_v31 = vadd.f32 %v13100_v45, %v13099_v46  ;;  %v12916_v33 = vsel %vm12890_vm9, %v12883_v16, %v12779_v21  ;;  %v13002_v1 = vadd.f32 %v13001_v28, %v13000_v55  ;;  %v22962_v28 = vld [vmem:[#allocation10_spill] sm:$0xff] }
 0x6b2   : > { %12949 = vst.msk [vmem:[%s22591_s19 + $0xc8] sm:$0xff] %vm12923_vm10, %v12916_v33  ;;  %v13050_v22 = vmul.f32 %v12916_v33, %v12916_v33  ;;  %v13005_v39 = vsel %vm12923_vm10, %v12916_v33, 0.0  ;;  %v12855_v45 = vsel %vm12824_vm3, %v22962_v28, %v22580_v47 }
 0x6b3   : > { %v12777_v36 = vpop.permute.xlu0 %12776  ;;  %v13103_v48 = vadd.f32 %v13102_v43, %v13101_v31  ;;  %v12649_v53 = vpop.permute.xlu1 %12648 }
 0x6b4   : > { %v12882_v14 = vsel %vm12857_vm8, %v22119_v34, %v12649_v53  ;;  %v13106_v34 = vsel %vm12923_vm10, %v13050_v22, 0.0  ;;  %v22963_v53 = vld [vmem:[#allocation9_spill] sm:$0xff] }
 0x6b5   : > { %v12915_v10 = vsel %vm12890_vm9, %v12882_v14, %v12777_v36  ;;  %v12856_v14 = vsel %vm12824_vm3, %v22963_v53, %v22578_v2 }
 0x6b6   : > { %12948 = vst.msk [vmem:[%s22591_s19 + $0xc0] sm:$0xff] %vm12923_vm10, %v12915_v10  ;;  %v13003_v59 = vsel %vm12923_vm10, %v12915_v10, 0.0  ;;  %v13049_v8 = vmul.f32 %v12915_v10, %v12915_v10 }
 0x6b7   : > { %v12655_v32 = vpop.permute.xlu0 %12654  ;;  %v13004_v49 = vadd.f32 %v13003_v59, %v13002_v1  ;;  %v12653_v17 = vpop.permute.xlu1 %12652 }
 0x6b8   : > { %v13104_v44 = vsel %vm12923_vm10, %v13049_v8, 0.0  ;;  %v12885_v13 = vsel %vm12857_vm8, %v22958_v57, %v12655_v32  ;;  %v12884_v42 = vsel %vm12857_vm8, %v22959_v51, %v12653_v17 }
 0x6b9   : > { %v13105_v30 = vadd.f32 %v13104_v44, %v13103_v48  ;;  %v13006_v40 = vadd.f32 %v13005_v39, %v13004_v49 }
 0x6bb   : > { %v12783_v12 = vpop.permute.xlu0 %12782  ;;  %v13107_v24 = vadd.f32 %v13106_v34, %v13105_v30  ;;  %v12781_v29 = vpop.permute.xlu1 %12780 }
 0x6bc   : > { %v12918_v62 = vsel %vm12890_vm9, %v12885_v13, %v12783_v12  ;;  %v12917_v27 = vsel %vm12890_vm9, %v12884_v42, %v12781_v29 }
 0x6bd   : > { %12951 = vst.msk [vmem:[%s22591_s19 + $0xd8] sm:$0xff] %vm12923_vm10, %v12918_v62  ;;  %v13052_v41 = vmul.f32 %v12918_v62, %v12918_v62  ;;  %12950 = vst.msk [vmem:[%s22591_s19 + $0xd0] sm:$0xff] %vm12923_vm10, %v12917_v27  ;;  %v13007_v50 = vsel %vm12923_vm10, %v12917_v27, 0.0  ;;  %v13051_v60 = vmul.f32 %v12917_v27, %v12917_v27  ;;  %v13009_v23 = vsel %vm12923_vm10, %v12918_v62, 0.0 }
 0x6be   : > { %v13008_v52 = vadd.f32 %v13007_v50, %v13006_v40 }
 0x6bf   : > { %v12659_v61 = vpop.permute.xlu0 %12658  ;;  %v13108_v7 = vsel %vm12923_vm10, %v13051_v60, 0.0  ;;  %v12657_v6 = vpop.permute.xlu1 %12656  ;;  %v13110_v37 = vsel %vm12923_vm10, %v13052_v41, 0.0 }
 0x6c0   : > { %v13109_v54 = vadd.f32 %v13108_v7, %v13107_v24  ;;  %v13010_v35 = vadd.f32 %v13009_v23, %v13008_v52  ;;  %v12887_v20 = vsel %vm12857_vm8, %v22960_v19, %v12659_v61  ;;  %v12886_v9 = vsel %vm12857_vm8, %v22961_v56, %v12657_v6 }
 0x6c2   : > { %v13111_v11 = vadd.f32 %v13110_v37, %v13109_v54 }
 0x6c3   : > { %v12787_v3 = vpop.permute.xlu0 %12786  ;;  %v12785_v18 = vpop.permute.xlu1 %12784 }
 0x6c4   : > { %v12920_v5 = vsel %vm12890_vm9, %v12887_v20, %v12787_v3  ;;  %v12919_v58 = vsel %vm12890_vm9, %v12886_v9, %v12785_v18 }
 0x6c5   : > { %12953 = vst.msk [vmem:[%s22591_s19 + $0xe8] sm:$0xff] %vm12923_vm10, %v12920_v5  ;;  %v13054_v46 = vmul.f32 %v12920_v5, %v12920_v5  ;;  %12952 = vst.msk [vmem:[%s22591_s19 + $0xe0] sm:$0xff] %vm12923_vm10, %v12919_v58  ;;  %v13011_v15 = vsel %vm12923_vm10, %v12919_v58, 0.0  ;;  %v13053_v63 = vmul.f32 %v12919_v58, %v12919_v58  ;;  %v13013_v25 = vsel %vm12923_vm10, %v12920_v5, 0.0 }
 0x6c6   : > { %v13012_v4 = vadd.f32 %v13011_v15, %v13010_v35 }
 0x6c7   : > { %v13112_v26 = vsel %vm12923_vm10, %v13053_v63, 0.0  ;;  %v12661_v38 = vpop.permute.xlu1 %12660  ;;  %v13114_v0 = vsel %vm12923_vm10, %v13054_v46, 0.0  ;;  %v12663_v1 = vpop.permute.xlu0 %12662 }
 0x6c8   : > { %v13113_v21 = vadd.f32 %v13112_v26, %v13111_v11  ;;  %v13014_v55 = vadd.f32 %v13013_v25, %v13012_v4  ;;  %v12888_v31 = vsel %vm12857_vm8, %v12855_v45, %v12661_v38  ;;  %v12889_v47 = vsel %vm12857_vm8, %v12856_v14, %v12663_v1 }
 0x6ca   : > { %v13115_v16 = vadd.f32 %v13114_v0, %v13113_v21 }
 0x6cb   : > { %v12789_v33 = vpop.permute.xlu1 %12788 }
 0x6cc   : > { %v12921_v43 = vsel %vm12890_vm9, %v12888_v31, %v12789_v33 }
 0x6cd   : > { %12954 = vst.msk [vmem:[%s22591_s19 + $0xf0] sm:$0xff] %vm12923_vm10, %v12921_v43  ;;  %v13015_v36 = vsel %vm12923_vm10, %v12921_v43, 0.0  ;;  %v13055_v48 = vmul.f32 %v12921_v43, %v12921_v43 }
 0x6ce   : > { %v13016_v10 = vadd.f32 %v13015_v36, %v13014_v55 }
 0x6cf   : > { %v13116_v22 = vsel %vm12923_vm10, %v13055_v48, 0.0  ;;  %v12791_v59 = vpop.permute.xlu1 %12790 }
 0x6d0   : > { %v13117_v8 = vadd.f32 %v13116_v22, %v13115_v16  ;;  %v12922_v32 = vsel %vm12890_vm9, %v12889_v47, %v12791_v59 }
 0x6d1   : > { %12955 = vst.msk [vmem:[%s22591_s19 + $0xf8] sm:$0xff] %vm12923_vm10, %v12922_v32  ;;  %v13017_v49 = vsel %vm12923_vm10, %v12922_v32, 0.0  ;;  %v13056_v17 = vmul.f32 %v12922_v32, %v12922_v32  ;;  %s14756_s19 = sshll.u32 %s19045_s25, 5  ;;  %s18914_s25 = scalar_lea.vmem %s22871_s26, 32 }
 0x6d2   : > { %v13018_v39 = vadd.f32 %v13017_v49, %v13016_v10  ;;  %s22869_s16 = scalar_lea.hbm %s22918_s5, %s14756_s19  ;;  %p18915_p1 = scmp.ne.s32.totalorder %s22871_s26, %s18914_s25 }
 0x6d3   : > { %v13118_v44 = vsel %vm12923_vm10, %v13056_v17, 0.0  ;;  %p18922_p7 = scmp.lt.s32.totalorder %s18920_s29, %s18914_s25 }
 0x6d4   : > { %v13019_v2 = vrot.slane %v13018_v39, 4  ;;  %v13119_v30 = vadd.f32 %v13118_v44, %v13117_v8  ;;  %p18916_p2 = pnand %p18915_p1, %p19062_p5 }
 0x6d5   : > { %p18923_p8 = por %p18922_p7, %p18921_p4 }
 0x6d6   : > { %v13020_v40 = vadd.f32 %v13019_v2, %v13018_v39  ;;  %v13120_v34 = vrot.slane %v13119_v30, 4  ;;  %p18917_p3 = pneg %p18916_p2 }
 0x6d8   : > { %v13021_v57 = vrot.slane %v13020_v40, 2  ;;  %v13121_v13 = vadd.f32 %v13120_v34, %v13119_v30  ;;  %p18924_p9 = pnand %p18923_p8, %p18917_p3 }
 0x6da   : > { %v13022_v12 = vadd.f32 %v13021_v57, %v13020_v40  ;;  %v13122_v51 = vrot.slane %v13121_v13, 2 }
 0x6dc   : > { %v13023_v42 = vrot.slane %v13022_v12, 1  ;;  %v13123_v62 = vadd.f32 %v13122_v51, %v13121_v13 }
 0x6de   : > { %v13124_v24 = vrot.slane %v13123_v62, 1  ;;  %v13024_v29 = vadd.f32 %v13023_v42, %v13022_v12 }
 0x6e0   : > { %v13125_v27 = vadd.f32 %v13124_v24, %v13123_v62 }
 0x6e2   : > { %v13127_v41 = vsel %vm13126_vm4, %v13024_v29, %v13125_v27 }
 0x6e3   : > { %13129 = vst.msk [vmem:[%s255_s13] sm:$0x3] %vm13128_vm12, %v13127_v41 }
 0x6e4   : > { %18927 = shalt.err (!%p18924_p9)
}
 0x6e5   : > { %s18928_s17 = scalar_lea.hbm %s22869_s16, 32  ;;  %s18932_s12 = scalar_lea.hbm %s22918_s5, 64 }
 0x6e6   : > { %p18929_p10 = scmp.ne.s32.totalorder %s22869_s16, %s18928_s17  ;;  %p18933_p13 = scmp.lt.u32.totalorder %s22869_s16, %s22918_s5 }
 0x6e7   : > { %p18934_p0 = scmp.lt.u32.totalorder %s18932_s12, %s18928_s17  ;;  %p18936_p2 = scmp.lt.u32.totalorder %s18928_s17, %s22869_s16 }
 0x6e8   : > { %p18930_p11 = pnand %p18929_p10, %p19062_p5 }
 0x6e9   : > { %p18935_p1 = por %p18934_p0, %p18933_p13 }
 0x6ea   : > { %p18931_p12 = pneg %p18930_p11 }
 0x6eb   : > { %p18937_p3 = por %p18936_p2, %p18935_p1 }
 0x6ed   : > { %p18938_p4 = pnand %p18937_p3, %p18931_p12 }
 0x6ef   : > { %18941 = shalt.err (!%p18938_p4)
}
 0x6f0   : > { %18781 = dma.vmem_to_hbm [thread:$0]  (%p19062_p5), %s22871_s26, 32, %s22869_s16, %s13352_s18  }
 0x6f1 PF: > { %p18792_p7 = scmp.ge.s32.totalorder %s18980_s24, 2  ;;  %s13406_s13 = sand.u32 1, %s18968_s21  }
 0x6f2   : > { %s13407_s14 = scalar_lea.sflag [#allocation4], %s13406_s13 }
 0x6f3   : > { %p18786_p8 = pnand %p18792_p7, %p19066_p6 }
 0x6f5   : > { %18959 = dma.done.wait (!%p18786_p8), %s13407_s14, 32  }
 0x6f6   : > { %18961 = vsyncadd (!%p18786_p8), %s13407_s14, 4294967264  ;;  %s13416_s15 = scalar_lea.sflag [#allocation6], %s13406_s13 }
 0x6f7   : > { %18963 = dma.done.wait (!%p18786_p8), %s13416_s15, 64  }
 0x6f8   : > { %18965 = vsyncadd (!%p18786_p8), %s13416_s15, 4294967232  ;;  %p20_p5 = scmp.ge.s32.totalorder %s19049_s27, 4   ;;  %s22964_s21 = smov %s18972_s22 }
 0x6f9   : > { %s22965_s22 = smov %s18976_s23  ;;  %s22966_s23 = smov %s19060_s30 }
 0x6fa   : > { %s22967_s24 = smov %s19049_s27  ;;  %22 = sbr.rel (!%p20_p5) target bundleno = 5 (0x5), region = 137 }
 0x701   :  { %13421 = vsyncpa [#allocation4], 1 }
 0x702   :  { %13423 = vsyncpa [#allocation4 + $0x1], 1 }
 0x703   :  { %13424 = vsyncpa [#allocation6], 1 }
 0x704   :  { %13426 = vsyncpa [#allocation6 + $0x1], 1 }

</bundles_post_ra>
